<compile_context>
chip_gen: v7x
topology: tpu7x:2x2x1
jax: 0.10.0
libtpu: 0.0.40
codegen_flags: <defaults>
</compile_context>

<pallas_src>
import functools

import jax
import jax.numpy as jnp
from jax import lax
from jax.experimental import pallas as pl
from jax.experimental.pallas import tpu as pltpu

_BN_EPS = 1e-5


def _rup(a, b):
    return (a + b - 1) // b * b


def _im2col(x, k, dil, pad):
    """Full-k^3 host im2col: (N,D,H,W,C) -> (M, k^3*C), M = N*Do*Ho*Wo."""
    if pad:
        x = jnp.pad(x, ((0, 0), (pad, pad), (pad, pad), (pad, pad), (0, 0)))
    n, d, h, w, c = x.shape
    do = d - (k - 1) * dil
    ho = h - (k - 1) * dil
    wo = w - (k - 1) * dil
    cols = []
    for kd in range(k):
        for kh in range(k):
            for kw in range(k):
                cols.append(x[:, kd * dil:kd * dil + do,
                              kh * dil:kh * dil + ho,
                              kw * dil:kw * dil + wo, :])
    xc = jnp.concatenate(cols, axis=-1) if len(cols) > 1 else cols[0]
    return xc.reshape(n * do * ho * wo, k * k * k * c), (n, do, ho, wo)


# ----------------------------------------------------------------------------
# Kernel A: conv (one wide-K MXU dot per branch) + per-tile partial BN stats
# ----------------------------------------------------------------------------
def _make_conv_stats_kernel(n_groups, cs):
    def kernel(*refs):
        x_refs = refs[:n_groups]
        w_ref = refs[n_groups]
        raw_ref = refs[n_groups + 1]
        st_ref = refs[n_groups + 2]
        for g in range(n_groups):
            acc = jnp.dot(x_refs[g][...], w_ref[g],
                          preferred_element_type=jnp.float32)
            raw_ref[:, g * cs:(g + 1) * cs] = acc
            st_ref[0, 0:1, g * cs:(g + 1) * cs] = jnp.sum(
                acc, axis=0, keepdims=True)
            st_ref[0, 1:2, g * cs:(g + 1) * cs] = jnp.sum(
                acc * acc, axis=0, keepdims=True)
    return kernel


# ----------------------------------------------------------------------------
# Kernel B: BN affine (+residual) (+ReLU) (+fused 1x1 'last' convs + bias)
# ----------------------------------------------------------------------------
def _make_apply_kernel(*, relu, has_res, has_last):
    def kernel(*refs):
        idx = 0
        raw_ref = refs[idx]; idx += 1
        sc_ref = refs[idx]; idx += 1
        sh_ref = refs[idx]; idx += 1
        res_ref = None
        wl_ref = bl_ref = None
        if has_res:
            res_ref = refs[idx]; idx += 1
        if has_last:
            wl_ref = refs[idx]; idx += 1
            bl_ref = refs[idx]; idx += 1
        o_ref = refs[idx]

        h = raw_ref[...] * sc_ref[...] + sh_ref[...]
        if has_res:
            h = h + res_ref[...].astype(jnp.float32)
        if relu:
            h = jnp.maximum(h, 0.0)
        if has_last:
            out = jnp.dot(h.astype(jnp.bfloat16), wl_ref[...],
                          preferred_element_type=jnp.float32) + bl_ref[...]
        else:
            out = h
        o_ref[...] = out.astype(o_ref.dtype)
    return kernel


# ----------------------------------------------------------------------------
# One Conv3d + train-mode BN (+residual) (+ReLU) (+fused 1x1 'last') stage
# ----------------------------------------------------------------------------
def _conv_bn_stage(x, weights, gammas, betas, *, dils, pads, relu,
                   residual=None, last_w=None, last_b=None,
                   out_dtype=jnp.bfloat16):
    n_groups = len(weights)
    cout, cin, k, _, _ = weights[0].shape
    K = k * k * k * cin

    # per-branch host im2col (dilation-aware); all branches share the output grid
    x_cols, out_sp = [], None
    for g in range(n_groups):
        xc, out_sp = _im2col(x, k, dils[g], pads[g])
        x_cols.append(xc)
    n, do, ho, wo = out_sp
    m = n * do * ho * wo

    cs = cout if n_groups == 1 else _rup(cout, 128)   # lane-aligned branch blocks
    gc = n_groups * cs
    tm_max = 512 if cs >= 64 else 256                 # review: small tiles for Cout=4
    tm = min(tm_max, _rup(m, 8))
    mpad = _rup(m, tm)
    mtiles = mpad // tm

    x_in = [jnp.pad(xc, ((0, mpad - m), (0, 0))).astype(jnp.bfloat16)
            for xc in x_cols]

    # weights -> (G, K, cs) bf16, K ordered (kd, kh, kw, cin); pad channels zero
    w_stack = []
    for w in weights:
        wk = jnp.transpose(w, (2, 3, 4, 1, 0)).reshape(K, cout)
        w_stack.append(jnp.pad(wk, ((0, 0), (0, cs - cout))))
    w_all = jnp.stack(w_stack, axis=0).astype(jnp.bfloat16)

    # ---- kernel A: conv + per-tile partial BN statistics (parallel grid) ----
    conv_kernel = _make_conv_stats_kernel(n_groups, cs)
    in_specs = [pl.BlockSpec((tm, K), lambda i: (i, 0)) for _ in range(n_groups)]
    in_specs.append(pl.BlockSpec((n_groups, K, cs), lambda i: (0, 0, 0)))
    flops = 2 * mpad * K * cs * n_groups
    bytes_acc = (sum(int(a.size) * a.dtype.itemsize for a in x_in)
                 + int(w_all.size) * 2 + mpad * gc * 4 + mtiles * 2 * gc * 4)
    raw, part_stats = pl.pallas_call(
        conv_kernel,
        out_shape=(jax.ShapeDtypeStruct((mpad, gc), jnp.float32),
                   jax.ShapeDtypeStruct((mtiles, 2, gc), jnp.float32)),
        grid=(mtiles,),
        in_specs=in_specs,
        out_specs=(pl.BlockSpec((tm, gc), lambda i: (i, 0)),
                   pl.BlockSpec((1, 2, gc), lambda i: (i, 0, 0))),
        compiler_params=pltpu.CompilerParams(
            dimension_semantics=("parallel",)),
        cost_estimate=pl.CostEstimate(flops=int(flops), transcendentals=0,
                                      bytes_accessed=int(bytes_acc)),
    )(*x_in, w_all)

    # ---- exact train-mode BN stats -> per-channel scale/shift (tiny XLA) ----
    tot = jnp.sum(part_stats, axis=0)                 # (2, gc)
    mean = tot[0] / float(m)
    var = tot[1] / float(m) - mean * mean
    gam = jnp.concatenate(
        [jnp.pad(jnp.asarray(g, jnp.float32), (0, cs - cout)) for g in gammas])
    bet = jnp.concatenate(
        [jnp.pad(jnp.asarray(b, jnp.float32), (0, cs - cout)) for b in betas])
    scale = gam * lax.rsqrt(var + _BN_EPS)
    shift = bet - mean * scale
    scale = scale.reshape(1, gc)
    shift = shift.reshape(1, gc)

    # ---- kernel B: BN apply (+residual) (+ReLU) (+fused 1x1) (parallel) ----
    has_res = residual is not None
    has_last = last_w is not None

    inputs = [raw, scale, shift]
    in_specs_b = [pl.BlockSpec((tm, gc), lambda i: (i, 0)),
                  pl.BlockSpec((1, gc), lambda i: (0, 0)),
                  pl.BlockSpec((1, gc), lambda i: (0, 0))]
    if has_res:
        res = jnp.pad(residual.reshape(m, cout), ((0, mpad - m), (0, 0)))
        inputs.append(res.astype(jnp.bfloat16))
        in_specs_b.append(pl.BlockSpec((tm, cout), lambda i: (i, 0)))
    if has_last:
        c_last = last_w[0].shape[0]
        wl_parts = [jnp.pad(w.reshape(c_last, cout).T, ((0, cs - cout), (0, 0)))
                    for w in last_w]
        wl_all = jnp.concatenate(wl_parts, axis=0).astype(jnp.bfloat16)
        bl = sum(jnp.asarray(b, jnp.float32) for b in last_b).reshape(1, c_last)
        inputs += [wl_all, bl]
        in_specs_b += [pl.BlockSpec((gc, c_last), lambda i: (0, 0)),
                       pl.BlockSpec((1, c_last), lambda i: (0, 0))]
    else:
        c_last = cout

    apply_kernel = _make_apply_kernel(relu=relu, has_res=has_res,
                                      has_last=has_last)
    y = pl.pallas_call(
        apply_kernel,
        out_shape=jax.ShapeDtypeStruct((mpad, c_last), out_dtype),
        grid=(mtiles,),
        in_specs=in_specs_b,
        out_specs=pl.BlockSpec((tm, c_last), lambda i: (i, 0)),
        compiler_params=pltpu.CompilerParams(
            dimension_semantics=("parallel",)),
    )(*inputs)

    return y[:m].reshape(n, do, ho, wo, c_last)


# ----------------------------------------------------------------------------
# Network
# ----------------------------------------------------------------------------
def _basic_block(x, p):
    residual = x[:, 4:-4, 4:-4, 4:-4, :]
    h = _conv_bn_stage(x, [p['conv1_w']], [p['bn1_g']], [p['bn1_b']],
                       dils=[2], pads=[0], relu=True)
    if 'ds_w' in p:   # downsample = Conv3d(1x1) + BN when channels change
        residual = _conv_bn_stage(residual, [p['ds_w']], [p['ds_bn_g']],
                                  [p['ds_bn_b']], dils=[1], pads=[0],
                                  relu=False)
    h = _conv_bn_stage(h, [p['conv2_w']], [p['bn2_g']], [p['bn2_b']],
                       dils=[2], pads=[0], relu=True, residual=residual)
    return h


def aspp_s_forward(x, params, *, dilation_list, num_branches):
    # NCDHW -> channel-last once at the entry; back once at the exit.
    x = jnp.transpose(x, (0, 2, 3, 4, 1))
    x = _conv_bn_stage(x, [params['conv1_w']], [params['bn1_g']],
                       [params['bn1_b']], dils=[1], pads=[0], relu=True)
    x = _conv_bn_stage(x, [params['conv2_w']], [params['bn2_g']],
                       [params['bn2_b']], dils=[1], pads=[0], relu=True)
    x = _basic_block(x, params['layer3'])
    x = _basic_block(x, params['layer4'])
    x = _basic_block(x, params['layer5'])

    # ASPP head: both branch convs + BN + ReLU + fused 1x1 'last' + sum.
    bs = params['branches'][:num_branches]
    dl = list(dilation_list[:num_branches])
    out = _conv_bn_stage(
        x,
        [bp['conv_w'] for bp in bs],
        [bp['bn_g'] for bp in bs],
        [bp['bn_b'] for bp in bs],
        dils=dl, pads=dl, relu=True,
        last_w=[bp['last_w'] for bp in bs],
        last_b=[bp['last_b'] for bp in bs],
        out_dtype=jnp.float32,
    )
    return jnp.transpose(out, (0, 4, 1, 2, 3))


# ----------------------------------------------------------------------------
# Deterministic parameter init (mirrors ASPP_s.__init__ shapes)
# ----------------------------------------------------------------------------
def init_params(key, channels, kernel_size, num_branches):
    ch = list(channels)
    ch.insert(-1, 120)                       # channels.insert(-1, 120)
    keys = iter(jax.random.split(key, 128))

    def conv_p(cin, cout, k):
        w = 0.01 * jax.random.normal(next(keys), (cout, cin, k, k, k),
                                     jnp.float32)
        b = 0.01 * jax.random.normal(next(keys), (cout,), jnp.float32)
        return w, b

    def bn_p(c):
        return jnp.ones((c,), jnp.float32), jnp.zeros((c,), jnp.float32)

    params = {}
    params['conv1_w'], params['conv1_b'] = conv_p(ch[0], ch[1], kernel_size)
    params['bn1_g'], params['bn1_b'] = bn_p(ch[1])
    params['conv2_w'], params['conv2_b'] = conv_p(ch[1], ch[2], kernel_size)
    params['bn2_g'], params['bn2_b'] = bn_p(ch[2])

    def block_p(cin, cmid, cout):
        p = {}
        p['conv1_w'], p['conv1_b'] = conv_p(cin, cmid, 3)
        p['bn1_g'], p['bn1_b'] = bn_p(cmid)
        p['conv2_w'], p['conv2_b'] = conv_p(cmid, cout, 3)
        p['bn2_g'], p['bn2_b'] = bn_p(cout)
        if cin != cout:
            p['ds_w'], p['ds_b'] = conv_p(cin, cout, 1)
            p['ds_bn_g'], p['ds_bn_b'] = bn_p(cout)
        return p

    params['layer3'] = block_p(ch[2], ch[3], ch[4])
    params['layer4'] = block_p(ch[4], ch[5], ch[6])
    params['layer5'] = block_p(ch[6], ch[7], ch[8])

    branches = []
    for _ in range(num_branches):
        bp = {}
        bp['conv_w'], bp['conv_b'] = conv_p(ch[8], ch[9], kernel_size)
        bp['bn_g'], bp['bn_b'] = bn_p(ch[9])
        bp['last_w'], bp['last_b'] = conv_p(ch[9], ch[10], 1)
        branches.append(bp)
    params['branches'] = branches
    return params


if __name__ == "__main__":
    # ASPP_s(dilation_list, channels, kernel_size, num_branches)
    dilation_list = (2, 6)
    channels = [1, 4, 4, 4, 4, 4, 4, 4, 6, 2]   # 120 gets inserted at -1
    kernel_size = 3
    num_branches = 2

    key = jax.random.PRNGKey(0)
    pkey, xkey = jax.random.split(key)
    params = init_params(pkey, channels, kernel_size, num_branches)

    # Spatial must be >= 29 (two valid 3^3 convs + three BasicBlocks each -8).
    x = jax.random.normal(xkey, (1, channels[0], 30, 30, 30), jnp.float32)

    fwd = jax.jit(functools.partial(aspp_s_forward,
                                    dilation_list=dilation_list,
                                    num_branches=num_branches))
    out = fwd(x, params)
    jax.block_until_ready(out)

    # 30 -2 -2 -8 -8 -8 = 2 spatial; final channels = 2.
    assert out.shape == (1, 2, 2, 2, 2), out.shape
    assert bool(jnp.all(jnp.isfinite(out)))
    print("KERNEL_OK")
</pallas_src>

<mosaic_0001>
module attributes {stable_mosaic.version = 11 : i64} {
  func.func @kernel(%arg0: i32, %arg1: memref<256x27xbf16, #tpu.memory_space<vmem>>, %arg2: memref<1x27x4xbf16, #tpu.memory_space<vmem>>, %arg3: memref<256x4xf32, #tpu.memory_space<vmem>>, %arg4: memref<1x2x4xf32, #tpu.memory_space<vmem>>) attributes {dimension_semantics = [#tpu.dimension_semantics<parallel>], iteration_bounds = array<i64: 86>, scalar_prefetch = 0 : i64, scratch_operands = 0 : i64, tpu.core_type = #tpu.core_type<tc>, window_params = [{transform_indices = @transform_0, window_bounds = array<i64: 256, 27>}, {pipeline_mode = #tpu.pipeline_mode<synchronous>, transform_indices = @transform_1, window_bounds = array<i64: 1, 27, 4>}, {transform_indices = @transform_2, window_bounds = array<i64: 256, 4>}, {transform_indices = @transform_3, window_bounds = array<i64: 1, 2, 4>}]} {
    %c0 = arith.constant 0 : index
    %c0_0 = arith.constant 0 : index
    %0 = vector.load %arg1[%c0, %c0_0] : memref<256x27xbf16, #tpu.memory_space<vmem>>, vector<256x27xbf16>
    %c0_1 = arith.constant 0 : index
    %c0_2 = arith.constant 0 : index
    %c0_3 = arith.constant 0 : index
    %1 = vector.load %arg2[%c0_1, %c0_2, %c0_3] : memref<1x27x4xbf16, #tpu.memory_space<vmem>>, vector<1x27x4xbf16>
    %2 = vector.shape_cast %1 : vector<1x27x4xbf16> to vector<27x4xbf16>
    %cst = arith.constant dense<0.000000e+00> : vector<256x4xf32>
    %3 = tpu.matmul %0, %2, %cst {dimension_numbers = #tpu.dot_dimension_numbers<[1], [0], [0], [1], [0, 0, 1, 1], [], []>} : vector<256x27xbf16>, vector<27x4xbf16>, vector<256x4xf32> -> vector<256x4xf32>
    %c0_4 = arith.constant 0 : index
    %c0_5 = arith.constant 0 : index
    %4 = vector.load %arg3[%c0_4, %c0_5] : memref<256x4xf32, #tpu.memory_space<vmem>>, vector<256x4xf32>
    tpu.vector_store %arg3[%c0_4, %c0_5], %3 {strides = array<i32>} : memref<256x4xf32, #tpu.memory_space<vmem>>, vector<256x4xf32>,
    %cst_6 = arith.constant dense<0.000000e+00> : vector<4xf32>
    %5 = vector.multi_reduction <add>, %3, %cst_6 [0] : vector<256x4xf32> to vector<4xf32>
    %6 = vector.shape_cast %5 : vector<4xf32> to vector<1x4xf32>
    %c0_7 = arith.constant 0 : index
    %c0_8 = arith.constant 0 : index
    %c0_9 = arith.constant 0 : index
    %7 = vector.load %arg4[%c0_7, %c0_8, %c0_9] : memref<1x2x4xf32, #tpu.memory_space<vmem>>, vector<1x1x4xf32>
    %8 = vector.shape_cast %7 : vector<1x1x4xf32> to vector<1x4xf32>
    %9 = vector.shape_cast %6 : vector<1x4xf32> to vector<1x1x4xf32>
    tpu.vector_store %arg4[%c0_7, %c0_8, %c0_9], %9 {strides = array<i32>} : memref<1x2x4xf32, #tpu.memory_space<vmem>>, vector<1x1x4xf32>,
    %10 = arith.mulf %3, %3 : vector<256x4xf32>
    %cst_10 = arith.constant dense<0.000000e+00> : vector<4xf32>
    %11 = vector.multi_reduction <add>, %10, %cst_10 [0] : vector<256x4xf32> to vector<4xf32>
    %12 = vector.shape_cast %11 : vector<4xf32> to vector<1x4xf32>
    %c0_11 = arith.constant 0 : index
    %c1 = arith.constant 1 : index
    %c0_12 = arith.constant 0 : index
    %13 = vector.load %arg4[%c0_11, %c1, %c0_12] : memref<1x2x4xf32, #tpu.memory_space<vmem>>, vector<1x1x4xf32>
    %14 = vector.shape_cast %13 : vector<1x1x4xf32> to vector<1x4xf32>
    %15 = vector.shape_cast %12 : vector<1x4xf32> to vector<1x1x4xf32>
    tpu.vector_store %arg4[%c0_11, %c1, %c0_12], %15 {strides = array<i32>} : memref<1x2x4xf32, #tpu.memory_space<vmem>>, vector<1x1x4xf32>,
    return
  }
  func.func @transform_0(%arg0: i32) -> (i32, i32) {
    %c0_i32 = arith.constant 0 : i32
    %c0_i32_0 = arith.constant 0 : i32
    return %arg0, %c0_i32 : i32, i32
  }
  func.func @transform_1(%arg0: i32) -> (i32, i32, i32) {
    %c0_i32 = arith.constant 0 : i32
    %c0_i32_0 = arith.constant 0 : i32
    %c0_i32_1 = arith.constant 0 : i32
    %c0_i32_2 = arith.constant 0 : i32
    return %c0_i32, %c0_i32_0, %c0_i32_1 : i32, i32, i32
  }
  func.func @transform_2(%arg0: i32) -> (i32, i32) {
    %c0_i32 = arith.constant 0 : i32
    %c0_i32_0 = arith.constant 0 : i32
    return %arg0, %c0_i32 : i32, i32
  }
  func.func @transform_3(%arg0: i32) -> (i32, i32, i32) {
    %c0_i32 = arith.constant 0 : i32
    %c0_i32_0 = arith.constant 0 : i32
    %c0_i32_1 = arith.constant 0 : i32
    return %arg0, %c0_i32, %c0_i32_0 : i32, i32, i32
  }
}

module attributes {stable_mosaic.version = 11 : i64} {
  func.func @kernel(%arg0: i32, %arg1: memref<256x4xf32, #tpu.memory_space<vmem>>, %arg2: memref<1x4xf32, #tpu.memory_space<vmem>>, %arg3: memref<1x4xf32, #tpu.memory_space<vmem>>, %arg4: memref<256x4xbf16, #tpu.memory_space<vmem>>) attributes {dimension_semantics = [#tpu.dimension_semantics<parallel>], iteration_bounds = array<i64: 86>, scalar_prefetch = 0 : i64, scratch_operands = 0 : i64, tpu.core_type = #tpu.core_type<tc>, window_params = [{transform_indices = @transform_0, window_bounds = array<i64: 256, 4>}, {pipeline_mode = #tpu.pipeline_mode<synchronous>, transform_indices = @transform_1, window_bounds = array<i64: 1, 4>}, {pipeline_mode = #tpu.pipeline_mode<synchronous>, transform_indices = @transform_2, window_bounds = array<i64: 1, 4>}, {transform_indices = @transform_3, window_bounds = array<i64: 256, 4>}]} {
    %c0 = arith.constant 0 : index
    %c0_0 = arith.constant 0 : index
    %0 = vector.load %arg1[%c0, %c0_0] : memref<256x4xf32, #tpu.memory_space<vmem>>, vector<256x4xf32>
    %c0_1 = arith.constant 0 : index
    %c0_2 = arith.constant 0 : index
    %1 = vector.load %arg2[%c0_1, %c0_2] : memref<1x4xf32, #tpu.memory_space<vmem>>, vector<1x4xf32>
    %2 = vector.broadcast %1 : vector<1x4xf32> to vector<256x4xf32>
    %3 = arith.mulf %0, %2 : vector<256x4xf32>
    %c0_3 = arith.constant 0 : index
    %c0_4 = arith.constant 0 : index
    %4 = vector.load %arg3[%c0_3, %c0_4] : memref<1x4xf32, #tpu.memory_space<vmem>>, vector<1x4xf32>
    %5 = vector.broadcast %4 : vector<1x4xf32> to vector<256x4xf32>
    %6 = arith.addf %3, %5 : vector<256x4xf32>
    %cst = arith.constant 0.000000e+00 : f32
    %7 = vector.broadcast %cst : f32 to vector<256x4xf32>
    %8 = arith.maximumf %6, %7 : vector<256x4xf32>
    %9 = arith.truncf %8 : vector<256x4xf32> to vector<256x4xbf16>
    %c0_5 = arith.constant 0 : index
    %c0_6 = arith.constant 0 : index
    %10 = vector.load %arg4[%c0_5, %c0_6] : memref<256x4xbf16, #tpu.memory_space<vmem>>, vector<256x4xbf16>
    tpu.vector_store %arg4[%c0_5, %c0_6], %9 {strides = array<i32>} : memref<256x4xbf16, #tpu.memory_space<vmem>>, vector<256x4xbf16>,
    return
  }
  func.func @transform_0(%arg0: i32) -> (i32, i32) {
    %c0_i32 = arith.constant 0 : i32
    %c0_i32_0 = arith.constant 0 : i32
    return %arg0, %c0_i32 : i32, i32
  }
  func.func @transform_1(%arg0: i32) -> (i32, i32) {
    %c0_i32 = arith.constant 0 : i32
    %c0_i32_0 = arith.constant 0 : i32
    %c0_i32_1 = arith.constant 0 : i32
    return %c0_i32, %c0_i32_0 : i32, i32
  }
  func.func @transform_2(%arg0: i32) -> (i32, i32) {
    %c0_i32 = arith.constant 0 : i32
    %c0_i32_0 = arith.constant 0 : i32
    %c0_i32_1 = arith.constant 0 : i32
    return %c0_i32, %c0_i32_0 : i32, i32
  }
  func.func @transform_3(%arg0: i32) -> (i32, i32) {
    %c0_i32 = arith.constant 0 : i32
    %c0_i32_0 = arith.constant 0 : i32
    return %arg0, %c0_i32 : i32, i32
  }
}

module attributes {stable_mosaic.version = 11 : i64} {
  func.func @kernel(%arg0: i32, %arg1: memref<256x108xbf16, #tpu.memory_space<vmem>>, %arg2: memref<1x108x4xbf16, #tpu.memory_space<vmem>>, %arg3: memref<256x4xf32, #tpu.memory_space<vmem>>, %arg4: memref<1x2x4xf32, #tpu.memory_space<vmem>>) attributes {dimension_semantics = [#tpu.dimension_semantics<parallel>], iteration_bounds = array<i64: 69>, scalar_prefetch = 0 : i64, scratch_operands = 0 : i64, tpu.core_type = #tpu.core_type<tc>, window_params = [{transform_indices = @transform_0, window_bounds = array<i64: 256, 108>}, {pipeline_mode = #tpu.pipeline_mode<synchronous>, transform_indices = @transform_1, window_bounds = array<i64: 1, 108, 4>}, {transform_indices = @transform_2, window_bounds = array<i64: 256, 4>}, {transform_indices = @transform_3, window_bounds = array<i64: 1, 2, 4>}]} {
    %c0 = arith.constant 0 : index
    %c0_0 = arith.constant 0 : index
    %0 = vector.load %arg1[%c0, %c0_0] : memref<256x108xbf16, #tpu.memory_space<vmem>>, vector<256x108xbf16>
    %c0_1 = arith.constant 0 : index
    %c0_2 = arith.constant 0 : index
    %c0_3 = arith.constant 0 : index
    %1 = vector.load %arg2[%c0_1, %c0_2, %c0_3] : memref<1x108x4xbf16, #tpu.memory_space<vmem>>, vector<1x108x4xbf16>
    %2 = vector.shape_cast %1 : vector<1x108x4xbf16> to vector<108x4xbf16>
    %cst = arith.constant dense<0.000000e+00> : vector<256x4xf32>
    %3 = tpu.matmul %0, %2, %cst {dimension_numbers = #tpu.dot_dimension_numbers<[1], [0], [0], [1], [0, 0, 1, 1], [], []>} : vector<256x108xbf16>, vector<108x4xbf16>, vector<256x4xf32> -> vector<256x4xf32>
    %c0_4 = arith.constant 0 : index
    %c0_5 = arith.constant 0 : index
    %4 = vector.load %arg3[%c0_4, %c0_5] : memref<256x4xf32, #tpu.memory_space<vmem>>, vector<256x4xf32>
    tpu.vector_store %arg3[%c0_4, %c0_5], %3 {strides = array<i32>} : memref<256x4xf32, #tpu.memory_space<vmem>>, vector<256x4xf32>,
    %cst_6 = arith.constant dense<0.000000e+00> : vector<4xf32>
    %5 = vector.multi_reduction <add>, %3, %cst_6 [0] : vector<256x4xf32> to vector<4xf32>
    %6 = vector.shape_cast %5 : vector<4xf32> to vector<1x4xf32>
    %c0_7 = arith.constant 0 : index
    %c0_8 = arith.constant 0 : index
    %c0_9 = arith.constant 0 : index
    %7 = vector.load %arg4[%c0_7, %c0_8, %c0_9] : memref<1x2x4xf32, #tpu.memory_space<vmem>>, vector<1x1x4xf32>
    %8 = vector.shape_cast %7 : vector<1x1x4xf32> to vector<1x4xf32>
    %9 = vector.shape_cast %6 : vector<1x4xf32> to vector<1x1x4xf32>
    tpu.vector_store %arg4[%c0_7, %c0_8, %c0_9], %9 {strides = array<i32>} : memref<1x2x4xf32, #tpu.memory_space<vmem>>, vector<1x1x4xf32>,
    %10 = arith.mulf %3, %3 : vector<256x4xf32>
    %cst_10 = arith.constant dense<0.000000e+00> : vector<4xf32>
    %11 = vector.multi_reduction <add>, %10, %cst_10 [0] : vector<256x4xf32> to vector<4xf32>
    %12 = vector.shape_cast %11 : vector<4xf32> to vector<1x4xf32>
    %c0_11 = arith.constant 0 : index
    %c1 = arith.constant 1 : index
    %c0_12 = arith.constant 0 : index
    %13 = vector.load %arg4[%c0_11, %c1, %c0_12] : memref<1x2x4xf32, #tpu.memory_space<vmem>>, vector<1x1x4xf32>
    %14 = vector.shape_cast %13 : vector<1x1x4xf32> to vector<1x4xf32>
    %15 = vector.shape_cast %12 : vector<1x4xf32> to vector<1x1x4xf32>
    tpu.vector_store %arg4[%c0_11, %c1, %c0_12], %15 {strides = array<i32>} : memref<1x2x4xf32, #tpu.memory_space<vmem>>, vector<1x1x4xf32>,
    return
  }
  func.func @transform_0(%arg0: i32) -> (i32, i32) {
    %c0_i32 = arith.constant 0 : i32
    %c0_i32_0 = arith.constant 0 : i32
    return %arg0, %c0_i32 : i32, i32
  }
  func.func @transform_1(%arg0: i32) -> (i32, i32, i32) {
    %c0_i32 = arith.constant 0 : i32
    %c0_i32_0 = arith.constant 0 : i32
    %c0_i32_1 = arith.constant 0 : i32
    %c0_i32_2 = arith.constant 0 : i32
    return %c0_i32, %c0_i32_0, %c0_i32_1 : i32, i32, i32
  }
  func.func @transform_2(%arg0: i32) -> (i32, i32) {
    %c0_i32 = arith.constant 0 : i32
    %c0_i32_0 = arith.constant 0 : i32
    return %arg0, %c0_i32 : i32, i32
  }
  func.func @transform_3(%arg0: i32) -> (i32, i32, i32) {
    %c0_i32 = arith.constant 0 : i32
    %c0_i32_0 = arith.constant 0 : i32
    %c0_i32_1 = arith.constant 0 : i32
    return %arg0, %c0_i32, %c0_i32_0 : i32, i32, i32
  }
}

module attributes {stable_mosaic.version = 11 : i64} {
  func.func @kernel(%arg0: i32, %arg1: memref<256x4xf32, #tpu.memory_space<vmem>>, %arg2: memref<1x4xf32, #tpu.memory_space<vmem>>, %arg3: memref<1x4xf32, #tpu.memory_space<vmem>>, %arg4: memref<256x4xbf16, #tpu.memory_space<vmem>>) attributes {dimension_semantics = [#tpu.dimension_semantics<parallel>], iteration_bounds = array<i64: 69>, scalar_prefetch = 0 : i64, scratch_operands = 0 : i64, tpu.core_type = #tpu.core_type<tc>, window_params = [{transform_indices = @transform_0, window_bounds = array<i64: 256, 4>}, {pipeline_mode = #tpu.pipeline_mode<synchronous>, transform_indices = @transform_1, window_bounds = array<i64: 1, 4>}, {pipeline_mode = #tpu.pipeline_mode<synchronous>, transform_indices = @transform_2, window_bounds = array<i64: 1, 4>}, {transform_indices = @transform_3, window_bounds = array<i64: 256, 4>}]} {
    %c0 = arith.constant 0 : index
    %c0_0 = arith.constant 0 : index
    %0 = vector.load %arg1[%c0, %c0_0] : memref<256x4xf32, #tpu.memory_space<vmem>>, vector<256x4xf32>
    %c0_1 = arith.constant 0 : index
    %c0_2 = arith.constant 0 : index
    %1 = vector.load %arg2[%c0_1, %c0_2] : memref<1x4xf32, #tpu.memory_space<vmem>>, vector<1x4xf32>
    %2 = vector.broadcast %1 : vector<1x4xf32> to vector<256x4xf32>
    %3 = arith.mulf %0, %2 : vector<256x4xf32>
    %c0_3 = arith.constant 0 : index
    %c0_4 = arith.constant 0 : index
    %4 = vector.load %arg3[%c0_3, %c0_4] : memref<1x4xf32, #tpu.memory_space<vmem>>, vector<1x4xf32>
    %5 = vector.broadcast %4 : vector<1x4xf32> to vector<256x4xf32>
    %6 = arith.addf %3, %5 : vector<256x4xf32>
    %cst = arith.constant 0.000000e+00 : f32
    %7 = vector.broadcast %cst : f32 to vector<256x4xf32>
    %8 = arith.maximumf %6, %7 : vector<256x4xf32>
    %9 = arith.truncf %8 : vector<256x4xf32> to vector<256x4xbf16>
    %c0_5 = arith.constant 0 : index
    %c0_6 = arith.constant 0 : index
    %10 = vector.load %arg4[%c0_5, %c0_6] : memref<256x4xbf16, #tpu.memory_space<vmem>>, vector<256x4xbf16>
    tpu.vector_store %arg4[%c0_5, %c0_6], %9 {strides = array<i32>} : memref<256x4xbf16, #tpu.memory_space<vmem>>, vector<256x4xbf16>,
    return
  }
  func.func @transform_0(%arg0: i32) -> (i32, i32) {
    %c0_i32 = arith.constant 0 : i32
    %c0_i32_0 = arith.constant 0 : i32
    return %arg0, %c0_i32 : i32, i32
  }
  func.func @transform_1(%arg0: i32) -> (i32, i32) {
    %c0_i32 = arith.constant 0 : i32
    %c0_i32_0 = arith.constant 0 : i32
    %c0_i32_1 = arith.constant 0 : i32
    return %c0_i32, %c0_i32_0 : i32, i32
  }
  func.func @transform_2(%arg0: i32) -> (i32, i32) {
    %c0_i32 = arith.constant 0 : i32
    %c0_i32_0 = arith.constant 0 : i32
    %c0_i32_1 = arith.constant 0 : i32
    return %c0_i32, %c0_i32_0 : i32, i32
  }
  func.func @transform_3(%arg0: i32) -> (i32, i32) {
    %c0_i32 = arith.constant 0 : i32
    %c0_i32_0 = arith.constant 0 : i32
    return %arg0, %c0_i32 : i32, i32
  }
}

module attributes {stable_mosaic.version = 11 : i64} {
  func.func @kernel(%arg0: i32, %arg1: memref<256x108xbf16, #tpu.memory_space<vmem>>, %arg2: memref<1x108x4xbf16, #tpu.memory_space<vmem>>, %arg3: memref<256x4xf32, #tpu.memory_space<vmem>>, %arg4: memref<1x2x4xf32, #tpu.memory_space<vmem>>) attributes {dimension_semantics = [#tpu.dimension_semantics<parallel>], iteration_bounds = array<i64: 42>, scalar_prefetch = 0 : i64, scratch_operands = 0 : i64, tpu.core_type = #tpu.core_type<tc>, window_params = [{transform_indices = @transform_0, window_bounds = array<i64: 256, 108>}, {pipeline_mode = #tpu.pipeline_mode<synchronous>, transform_indices = @transform_1, window_bounds = array<i64: 1, 108, 4>}, {transform_indices = @transform_2, window_bounds = array<i64: 256, 4>}, {transform_indices = @transform_3, window_bounds = array<i64: 1, 2, 4>}]} {
    %c0 = arith.constant 0 : index
    %c0_0 = arith.constant 0 : index
    %0 = vector.load %arg1[%c0, %c0_0] : memref<256x108xbf16, #tpu.memory_space<vmem>>, vector<256x108xbf16>
    %c0_1 = arith.constant 0 : index
    %c0_2 = arith.constant 0 : index
    %c0_3 = arith.constant 0 : index
    %1 = vector.load %arg2[%c0_1, %c0_2, %c0_3] : memref<1x108x4xbf16, #tpu.memory_space<vmem>>, vector<1x108x4xbf16>
    %2 = vector.shape_cast %1 : vector<1x108x4xbf16> to vector<108x4xbf16>
    %cst = arith.constant dense<0.000000e+00> : vector<256x4xf32>
    %3 = tpu.matmul %0, %2, %cst {dimension_numbers = #tpu.dot_dimension_numbers<[1], [0], [0], [1], [0, 0, 1, 1], [], []>} : vector<256x108xbf16>, vector<108x4xbf16>, vector<256x4xf32> -> vector<256x4xf32>
    %c0_4 = arith.constant 0 : index
    %c0_5 = arith.constant 0 : index
    %4 = vector.load %arg3[%c0_4, %c0_5] : memref<256x4xf32, #tpu.memory_space<vmem>>, vector<256x4xf32>
    tpu.vector_store %arg3[%c0_4, %c0_5], %3 {strides = array<i32>} : memref<256x4xf32, #tpu.memory_space<vmem>>, vector<256x4xf32>,
    %cst_6 = arith.constant dense<0.000000e+00> : vector<4xf32>
    %5 = vector.multi_reduction <add>, %3, %cst_6 [0] : vector<256x4xf32> to vector<4xf32>
    %6 = vector.shape_cast %5 : vector<4xf32> to vector<1x4xf32>
    %c0_7 = arith.constant 0 : index
    %c0_8 = arith.constant 0 : index
    %c0_9 = arith.constant 0 : index
    %7 = vector.load %arg4[%c0_7, %c0_8, %c0_9] : memref<1x2x4xf32, #tpu.memory_space<vmem>>, vector<1x1x4xf32>
    %8 = vector.shape_cast %7 : vector<1x1x4xf32> to vector<1x4xf32>
    %9 = vector.shape_cast %6 : vector<1x4xf32> to vector<1x1x4xf32>
    tpu.vector_store %arg4[%c0_7, %c0_8, %c0_9], %9 {strides = array<i32>} : memref<1x2x4xf32, #tpu.memory_space<vmem>>, vector<1x1x4xf32>,
    %10 = arith.mulf %3, %3 : vector<256x4xf32>
    %cst_10 = arith.constant dense<0.000000e+00> : vector<4xf32>
    %11 = vector.multi_reduction <add>, %10, %cst_10 [0] : vector<256x4xf32> to vector<4xf32>
    %12 = vector.shape_cast %11 : vector<4xf32> to vector<1x4xf32>
    %c0_11 = arith.constant 0 : index
    %c1 = arith.constant 1 : index
    %c0_12 = arith.constant 0 : index
    %13 = vector.load %arg4[%c0_11, %c1, %c0_12] : memref<1x2x4xf32, #tpu.memory_space<vmem>>, vector<1x1x4xf32>
    %14 = vector.shape_cast %13 : vector<1x1x4xf32> to vector<1x4xf32>
    %15 = vector.shape_cast %12 : vector<1x4xf32> to vector<1x1x4xf32>
    tpu.vector_store %arg4[%c0_11, %c1, %c0_12], %15 {strides = array<i32>} : memref<1x2x4xf32, #tpu.memory_space<vmem>>, vector<1x1x4xf32>,
    return
  }
  func.func @transform_0(%arg0: i32) -> (i32, i32) {
    %c0_i32 = arith.constant 0 : i32
    %c0_i32_0 = arith.constant 0 : i32
    return %arg0, %c0_i32 : i32, i32
  }
  func.func @transform_1(%arg0: i32) -> (i32, i32, i32) {
    %c0_i32 = arith.constant 0 : i32
    %c0_i32_0 = arith.constant 0 : i32
    %c0_i32_1 = arith.constant 0 : i32
    %c0_i32_2 = arith.constant 0 : i32
    return %c0_i32, %c0_i32_0, %c0_i32_1 : i32, i32, i32
  }
  func.func @transform_2(%arg0: i32) -> (i32, i32) {
    %c0_i32 = arith.constant 0 : i32
    %c0_i32_0 = arith.constant 0 : i32
    return %arg0, %c0_i32 : i32, i32
  }
  func.func @transform_3(%arg0: i32) -> (i32, i32, i32) {
    %c0_i32 = arith.constant 0 : i32
    %c0_i32_0 = arith.constant 0 : i32
    %c0_i32_1 = arith.constant 0 : i32
    return %arg0, %c0_i32, %c0_i32_0 : i32, i32, i32
  }
}

module attributes {stable_mosaic.version = 11 : i64} {
  func.func @kernel(%arg0: i32, %arg1: memref<256x4xf32, #tpu.memory_space<vmem>>, %arg2: memref<1x4xf32, #tpu.memory_space<vmem>>, %arg3: memref<1x4xf32, #tpu.memory_space<vmem>>, %arg4: memref<256x4xbf16, #tpu.memory_space<vmem>>) attributes {dimension_semantics = [#tpu.dimension_semantics<parallel>], iteration_bounds = array<i64: 42>, scalar_prefetch = 0 : i64, scratch_operands = 0 : i64, tpu.core_type = #tpu.core_type<tc>, window_params = [{transform_indices = @transform_0, window_bounds = array<i64: 256, 4>}, {pipeline_mode = #tpu.pipeline_mode<synchronous>, transform_indices = @transform_1, window_bounds = array<i64: 1, 4>}, {pipeline_mode = #tpu.pipeline_mode<synchronous>, transform_indices = @transform_2, window_bounds = array<i64: 1, 4>}, {transform_indices = @transform_3, window_bounds = array<i64: 256, 4>}]} {
    %c0 = arith.constant 0 : index
    %c0_0 = arith.constant 0 : index
    %0 = vector.load %arg1[%c0, %c0_0] : memref<256x4xf32, #tpu.memory_space<vmem>>, vector<256x4xf32>
    %c0_1 = arith.constant 0 : index
    %c0_2 = arith.constant 0 : index
    %1 = vector.load %arg2[%c0_1, %c0_2] : memref<1x4xf32, #tpu.memory_space<vmem>>, vector<1x4xf32>
    %2 = vector.broadcast %1 : vector<1x4xf32> to vector<256x4xf32>
    %3 = arith.mulf %0, %2 : vector<256x4xf32>
    %c0_3 = arith.constant 0 : index
    %c0_4 = arith.constant 0 : index
    %4 = vector.load %arg3[%c0_3, %c0_4] : memref<1x4xf32, #tpu.memory_space<vmem>>, vector<1x4xf32>
    %5 = vector.broadcast %4 : vector<1x4xf32> to vector<256x4xf32>
    %6 = arith.addf %3, %5 : vector<256x4xf32>
    %cst = arith.constant 0.000000e+00 : f32
    %7 = vector.broadcast %cst : f32 to vector<256x4xf32>
    %8 = arith.maximumf %6, %7 : vector<256x4xf32>
    %9 = arith.truncf %8 : vector<256x4xf32> to vector<256x4xbf16>
    %c0_5 = arith.constant 0 : index
    %c0_6 = arith.constant 0 : index
    %10 = vector.load %arg4[%c0_5, %c0_6] : memref<256x4xbf16, #tpu.memory_space<vmem>>, vector<256x4xbf16>
    tpu.vector_store %arg4[%c0_5, %c0_6], %9 {strides = array<i32>} : memref<256x4xbf16, #tpu.memory_space<vmem>>, vector<256x4xbf16>,
    return
  }
  func.func @transform_0(%arg0: i32) -> (i32, i32) {
    %c0_i32 = arith.constant 0 : i32
    %c0_i32_0 = arith.constant 0 : i32
    return %arg0, %c0_i32 : i32, i32
  }
  func.func @transform_1(%arg0: i32) -> (i32, i32) {
    %c0_i32 = arith.constant 0 : i32
    %c0_i32_0 = arith.constant 0 : i32
    %c0_i32_1 = arith.constant 0 : i32
    return %c0_i32, %c0_i32_0 : i32, i32
  }
  func.func @transform_2(%arg0: i32) -> (i32, i32) {
    %c0_i32 = arith.constant 0 : i32
    %c0_i32_0 = arith.constant 0 : i32
    %c0_i32_1 = arith.constant 0 : i32
    return %c0_i32, %c0_i32_0 : i32, i32
  }
  func.func @transform_3(%arg0: i32) -> (i32, i32) {
    %c0_i32 = arith.constant 0 : i32
    %c0_i32_0 = arith.constant 0 : i32
    return %arg0, %c0_i32 : i32, i32
  }
}

module attributes {stable_mosaic.version = 11 : i64} {
  func.func @kernel(%arg0: i32, %arg1: memref<256x108xbf16, #tpu.memory_space<vmem>>, %arg2: memref<1x108x4xbf16, #tpu.memory_space<vmem>>, %arg3: memref<256x4xf32, #tpu.memory_space<vmem>>, %arg4: memref<1x2x4xf32, #tpu.memory_space<vmem>>) attributes {dimension_semantics = [#tpu.dimension_semantics<parallel>], iteration_bounds = array<i64: 23>, scalar_prefetch = 0 : i64, scratch_operands = 0 : i64, tpu.core_type = #tpu.core_type<tc>, window_params = [{transform_indices = @transform_0, window_bounds = array<i64: 256, 108>}, {pipeline_mode = #tpu.pipeline_mode<synchronous>, transform_indices = @transform_1, window_bounds = array<i64: 1, 108, 4>}, {transform_indices = @transform_2, window_bounds = array<i64: 256, 4>}, {transform_indices = @transform_3, window_bounds = array<i64: 1, 2, 4>}]} {
    %c0 = arith.constant 0 : index
    %c0_0 = arith.constant 0 : index
    %0 = vector.load %arg1[%c0, %c0_0] : memref<256x108xbf16, #tpu.memory_space<vmem>>, vector<256x108xbf16>
    %c0_1 = arith.constant 0 : index
    %c0_2 = arith.constant 0 : index
    %c0_3 = arith.constant 0 : index
    %1 = vector.load %arg2[%c0_1, %c0_2, %c0_3] : memref<1x108x4xbf16, #tpu.memory_space<vmem>>, vector<1x108x4xbf16>
    %2 = vector.shape_cast %1 : vector<1x108x4xbf16> to vector<108x4xbf16>
    %cst = arith.constant dense<0.000000e+00> : vector<256x4xf32>
    %3 = tpu.matmul %0, %2, %cst {dimension_numbers = #tpu.dot_dimension_numbers<[1], [0], [0], [1], [0, 0, 1, 1], [], []>} : vector<256x108xbf16>, vector<108x4xbf16>, vector<256x4xf32> -> vector<256x4xf32>
    %c0_4 = arith.constant 0 : index
    %c0_5 = arith.constant 0 : index
    %4 = vector.load %arg3[%c0_4, %c0_5] : memref<256x4xf32, #tpu.memory_space<vmem>>, vector<256x4xf32>
    tpu.vector_store %arg3[%c0_4, %c0_5], %3 {strides = array<i32>} : memref<256x4xf32, #tpu.memory_space<vmem>>, vector<256x4xf32>,
    %cst_6 = arith.constant dense<0.000000e+00> : vector<4xf32>
    %5 = vector.multi_reduction <add>, %3, %cst_6 [0] : vector<256x4xf32> to vector<4xf32>
    %6 = vector.shape_cast %5 : vector<4xf32> to vector<1x4xf32>
    %c0_7 = arith.constant 0 : index
    %c0_8 = arith.constant 0 : index
    %c0_9 = arith.constant 0 : index
    %7 = vector.load %arg4[%c0_7, %c0_8, %c0_9] : memref<1x2x4xf32, #tpu.memory_space<vmem>>, vector<1x1x4xf32>
    %8 = vector.shape_cast %7 : vector<1x1x4xf32> to vector<1x4xf32>
    %9 = vector.shape_cast %6 : vector<1x4xf32> to vector<1x1x4xf32>
    tpu.vector_store %arg4[%c0_7, %c0_8, %c0_9], %9 {strides = array<i32>} : memref<1x2x4xf32, #tpu.memory_space<vmem>>, vector<1x1x4xf32>,
    %10 = arith.mulf %3, %3 : vector<256x4xf32>
    %cst_10 = arith.constant dense<0.000000e+00> : vector<4xf32>
    %11 = vector.multi_reduction <add>, %10, %cst_10 [0] : vector<256x4xf32> to vector<4xf32>
    %12 = vector.shape_cast %11 : vector<4xf32> to vector<1x4xf32>
    %c0_11 = arith.constant 0 : index
    %c1 = arith.constant 1 : index
    %c0_12 = arith.constant 0 : index
    %13 = vector.load %arg4[%c0_11, %c1, %c0_12] : memref<1x2x4xf32, #tpu.memory_space<vmem>>, vector<1x1x4xf32>
    %14 = vector.shape_cast %13 : vector<1x1x4xf32> to vector<1x4xf32>
    %15 = vector.shape_cast %12 : vector<1x4xf32> to vector<1x1x4xf32>
    tpu.vector_store %arg4[%c0_11, %c1, %c0_12], %15 {strides = array<i32>} : memref<1x2x4xf32, #tpu.memory_space<vmem>>, vector<1x1x4xf32>,
    return
  }
  func.func @transform_0(%arg0: i32) -> (i32, i32) {
    %c0_i32 = arith.constant 0 : i32
    %c0_i32_0 = arith.constant 0 : i32
    return %arg0, %c0_i32 : i32, i32
  }
  func.func @transform_1(%arg0: i32) -> (i32, i32, i32) {
    %c0_i32 = arith.constant 0 : i32
    %c0_i32_0 = arith.constant 0 : i32
    %c0_i32_1 = arith.constant 0 : i32
    %c0_i32_2 = arith.constant 0 : i32
    return %c0_i32, %c0_i32_0, %c0_i32_1 : i32, i32, i32
  }
  func.func @transform_2(%arg0: i32) -> (i32, i32) {
    %c0_i32 = arith.constant 0 : i32
    %c0_i32_0 = arith.constant 0 : i32
    return %arg0, %c0_i32 : i32, i32
  }
  func.func @transform_3(%arg0: i32) -> (i32, i32, i32) {
    %c0_i32 = arith.constant 0 : i32
    %c0_i32_0 = arith.constant 0 : i32
    %c0_i32_1 = arith.constant 0 : i32
    return %arg0, %c0_i32, %c0_i32_0 : i32, i32, i32
  }
}

module attributes {stable_mosaic.version = 11 : i64} {
  func.func @kernel(%arg0: i32, %arg1: memref<256x4xf32, #tpu.memory_space<vmem>>, %arg2: memref<1x4xf32, #tpu.memory_space<vmem>>, %arg3: memref<1x4xf32, #tpu.memory_space<vmem>>, %arg4: memref<256x4xbf16, #tpu.memory_space<vmem>>, %arg5: memref<256x4xbf16, #tpu.memory_space<vmem>>) attributes {dimension_semantics = [#tpu.dimension_semantics<parallel>], iteration_bounds = array<i64: 23>, scalar_prefetch = 0 : i64, scratch_operands = 0 : i64, tpu.core_type = #tpu.core_type<tc>, window_params = [{transform_indices = @transform_0, window_bounds = array<i64: 256, 4>}, {pipeline_mode = #tpu.pipeline_mode<synchronous>, transform_indices = @transform_1, window_bounds = array<i64: 1, 4>}, {pipeline_mode = #tpu.pipeline_mode<synchronous>, transform_indices = @transform_2, window_bounds = array<i64: 1, 4>}, {transform_indices = @transform_3, window_bounds = array<i64: 256, 4>}, {transform_indices = @transform_4, window_bounds = array<i64: 256, 4>}]} {
    %c0 = arith.constant 0 : index
    %c0_0 = arith.constant 0 : index
    %0 = vector.load %arg1[%c0, %c0_0] : memref<256x4xf32, #tpu.memory_space<vmem>>, vector<256x4xf32>
    %c0_1 = arith.constant 0 : index
    %c0_2 = arith.constant 0 : index
    %1 = vector.load %arg2[%c0_1, %c0_2] : memref<1x4xf32, #tpu.memory_space<vmem>>, vector<1x4xf32>
    %2 = vector.broadcast %1 : vector<1x4xf32> to vector<256x4xf32>
    %3 = arith.mulf %0, %2 : vector<256x4xf32>
    %c0_3 = arith.constant 0 : index
    %c0_4 = arith.constant 0 : index
    %4 = vector.load %arg3[%c0_3, %c0_4] : memref<1x4xf32, #tpu.memory_space<vmem>>, vector<1x4xf32>
    %5 = vector.broadcast %4 : vector<1x4xf32> to vector<256x4xf32>
    %6 = arith.addf %3, %5 : vector<256x4xf32>
    %c0_5 = arith.constant 0 : index
    %c0_6 = arith.constant 0 : index
    %7 = vector.load %arg4[%c0_5, %c0_6] : memref<256x4xbf16, #tpu.memory_space<vmem>>, vector<256x4xbf16>
    %8 = arith.extf %7 : vector<256x4xbf16> to vector<256x4xf32>
    %9 = arith.addf %6, %8 : vector<256x4xf32>
    %cst = arith.constant 0.000000e+00 : f32
    %10 = vector.broadcast %cst : f32 to vector<256x4xf32>
    %11 = arith.maximumf %9, %10 : vector<256x4xf32>
    %12 = arith.truncf %11 : vector<256x4xf32> to vector<256x4xbf16>
    %c0_7 = arith.constant 0 : index
    %c0_8 = arith.constant 0 : index
    %13 = vector.load %arg5[%c0_7, %c0_8] : memref<256x4xbf16, #tpu.memory_space<vmem>>, vector<256x4xbf16>
    tpu.vector_store %arg5[%c0_7, %c0_8], %12 {strides = array<i32>} : memref<256x4xbf16, #tpu.memory_space<vmem>>, vector<256x4xbf16>,
    return
  }
  func.func @transform_0(%arg0: i32) -> (i32, i32) {
    %c0_i32 = arith.constant 0 : i32
    %c0_i32_0 = arith.constant 0 : i32
    return %arg0, %c0_i32 : i32, i32
  }
  func.func @transform_1(%arg0: i32) -> (i32, i32) {
    %c0_i32 = arith.constant 0 : i32
    %c0_i32_0 = arith.constant 0 : i32
    %c0_i32_1 = arith.constant 0 : i32
    return %c0_i32, %c0_i32_0 : i32, i32
  }
  func.func @transform_2(%arg0: i32) -> (i32, i32) {
    %c0_i32 = arith.constant 0 : i32
    %c0_i32_0 = arith.constant 0 : i32
    %c0_i32_1 = arith.constant 0 : i32
    return %c0_i32, %c0_i32_0 : i32, i32
  }
  func.func @transform_3(%arg0: i32) -> (i32, i32) {
    %c0_i32 = arith.constant 0 : i32
    %c0_i32_0 = arith.constant 0 : i32
    return %arg0, %c0_i32 : i32, i32
  }
  func.func @transform_4(%arg0: i32) -> (i32, i32) {
    %c0_i32 = arith.constant 0 : i32
    %c0_i32_0 = arith.constant 0 : i32
    return %arg0, %c0_i32 : i32, i32
  }
}

module attributes {stable_mosaic.version = 11 : i64} {
  func.func @kernel(%arg0: i32, %arg1: memref<256x108xbf16, #tpu.memory_space<vmem>>, %arg2: memref<1x108x4xbf16, #tpu.memory_space<vmem>>, %arg3: memref<256x4xf32, #tpu.memory_space<vmem>>, %arg4: memref<1x2x4xf32, #tpu.memory_space<vmem>>) attributes {dimension_semantics = [#tpu.dimension_semantics<parallel>], iteration_bounds = array<i64: 11>, scalar_prefetch = 0 : i64, scratch_operands = 0 : i64, tpu.core_type = #tpu.core_type<tc>, window_params = [{transform_indices = @transform_0, window_bounds = array<i64: 256, 108>}, {pipeline_mode = #tpu.pipeline_mode<synchronous>, transform_indices = @transform_1, window_bounds = array<i64: 1, 108, 4>}, {transform_indices = @transform_2, window_bounds = array<i64: 256, 4>}, {transform_indices = @transform_3, window_bounds = array<i64: 1, 2, 4>}]} {
    %c0 = arith.constant 0 : index
    %c0_0 = arith.constant 0 : index
    %0 = vector.load %arg1[%c0, %c0_0] : memref<256x108xbf16, #tpu.memory_space<vmem>>, vector<256x108xbf16>
    %c0_1 = arith.constant 0 : index
    %c0_2 = arith.constant 0 : index
    %c0_3 = arith.constant 0 : index
    %1 = vector.load %arg2[%c0_1, %c0_2, %c0_3] : memref<1x108x4xbf16, #tpu.memory_space<vmem>>, vector<1x108x4xbf16>
    %2 = vector.shape_cast %1 : vector<1x108x4xbf16> to vector<108x4xbf16>
    %cst = arith.constant dense<0.000000e+00> : vector<256x4xf32>
    %3 = tpu.matmul %0, %2, %cst {dimension_numbers = #tpu.dot_dimension_numbers<[1], [0], [0], [1], [0, 0, 1, 1], [], []>} : vector<256x108xbf16>, vector<108x4xbf16>, vector<256x4xf32> -> vector<256x4xf32>
    %c0_4 = arith.constant 0 : index
    %c0_5 = arith.constant 0 : index
    %4 = vector.load %arg3[%c0_4, %c0_5] : memref<256x4xf32, #tpu.memory_space<vmem>>, vector<256x4xf32>
    tpu.vector_store %arg3[%c0_4, %c0_5], %3 {strides = array<i32>} : memref<256x4xf32, #tpu.memory_space<vmem>>, vector<256x4xf32>,
    %cst_6 = arith.constant dense<0.000000e+00> : vector<4xf32>
    %5 = vector.multi_reduction <add>, %3, %cst_6 [0] : vector<256x4xf32> to vector<4xf32>
    %6 = vector.shape_cast %5 : vector<4xf32> to vector<1x4xf32>
    %c0_7 = arith.constant 0 : index
    %c0_8 = arith.constant 0 : index
    %c0_9 = arith.constant 0 : index
    %7 = vector.load %arg4[%c0_7, %c0_8, %c0_9] : memref<1x2x4xf32, #tpu.memory_space<vmem>>, vector<1x1x4xf32>
    %8 = vector.shape_cast %7 : vector<1x1x4xf32> to vector<1x4xf32>
    %9 = vector.shape_cast %6 : vector<1x4xf32> to vector<1x1x4xf32>
    tpu.vector_store %arg4[%c0_7, %c0_8, %c0_9], %9 {strides = array<i32>} : memref<1x2x4xf32, #tpu.memory_space<vmem>>, vector<1x1x4xf32>,
    %10 = arith.mulf %3, %3 : vector<256x4xf32>
    %cst_10 = arith.constant dense<0.000000e+00> : vector<4xf32>
    %11 = vector.multi_reduction <add>, %10, %cst_10 [0] : vector<256x4xf32> to vector<4xf32>
    %12 = vector.shape_cast %11 : vector<4xf32> to vector<1x4xf32>
    %c0_11 = arith.constant 0 : index
    %c1 = arith.constant 1 : index
    %c0_12 = arith.constant 0 : index
    %13 = vector.load %arg4[%c0_11, %c1, %c0_12] : memref<1x2x4xf32, #tpu.memory_space<vmem>>, vector<1x1x4xf32>
    %14 = vector.shape_cast %13 : vector<1x1x4xf32> to vector<1x4xf32>
    %15 = vector.shape_cast %12 : vector<1x4xf32> to vector<1x1x4xf32>
    tpu.vector_store %arg4[%c0_11, %c1, %c0_12], %15 {strides = array<i32>} : memref<1x2x4xf32, #tpu.memory_space<vmem>>, vector<1x1x4xf32>,
    return
  }
  func.func @transform_0(%arg0: i32) -> (i32, i32) {
    %c0_i32 = arith.constant 0 : i32
    %c0_i32_0 = arith.constant 0 : i32
    return %arg0, %c0_i32 : i32, i32
  }
  func.func @transform_1(%arg0: i32) -> (i32, i32, i32) {
    %c0_i32 = arith.constant 0 : i32
    %c0_i32_0 = arith.constant 0 : i32
    %c0_i32_1 = arith.constant 0 : i32
    %c0_i32_2 = arith.constant 0 : i32
    return %c0_i32, %c0_i32_0, %c0_i32_1 : i32, i32, i32
  }
  func.func @transform_2(%arg0: i32) -> (i32, i32) {
    %c0_i32 = arith.constant 0 : i32
    %c0_i32_0 = arith.constant 0 : i32
    return %arg0, %c0_i32 : i32, i32
  }
  func.func @transform_3(%arg0: i32) -> (i32, i32, i32) {
    %c0_i32 = arith.constant 0 : i32
    %c0_i32_0 = arith.constant 0 : i32
    %c0_i32_1 = arith.constant 0 : i32
    return %arg0, %c0_i32, %c0_i32_0 : i32, i32, i32
  }
}

module attributes {stable_mosaic.version = 11 : i64} {
  func.func @kernel(%arg0: i32, %arg1: memref<256x4xf32, #tpu.memory_space<vmem>>, %arg2: memref<1x4xf32, #tpu.memory_space<vmem>>, %arg3: memref<1x4xf32, #tpu.memory_space<vmem>>, %arg4: memref<256x4xbf16, #tpu.memory_space<vmem>>) attributes {dimension_semantics = [#tpu.dimension_semantics<parallel>], iteration_bounds = array<i64: 11>, scalar_prefetch = 0 : i64, scratch_operands = 0 : i64, tpu.core_type = #tpu.core_type<tc>, window_params = [{transform_indices = @transform_0, window_bounds = array<i64: 256, 4>}, {pipeline_mode = #tpu.pipeline_mode<synchronous>, transform_indices = @transform_1, window_bounds = array<i64: 1, 4>}, {pipeline_mode = #tpu.pipeline_mode<synchronous>, transform_indices = @transform_2, window_bounds = array<i64: 1, 4>}, {transform_indices = @transform_3, window_bounds = array<i64: 256, 4>}]} {
    %c0 = arith.constant 0 : index
    %c0_0 = arith.constant 0 : index
    %0 = vector.load %arg1[%c0, %c0_0] : memref<256x4xf32, #tpu.memory_space<vmem>>, vector<256x4xf32>
    %c0_1 = arith.constant 0 : index
    %c0_2 = arith.constant 0 : index
    %1 = vector.load %arg2[%c0_1, %c0_2] : memref<1x4xf32, #tpu.memory_space<vmem>>, vector<1x4xf32>
    %2 = vector.broadcast %1 : vector<1x4xf32> to vector<256x4xf32>
    %3 = arith.mulf %0, %2 : vector<256x4xf32>
    %c0_3 = arith.constant 0 : index
    %c0_4 = arith.constant 0 : index
    %4 = vector.load %arg3[%c0_3, %c0_4] : memref<1x4xf32, #tpu.memory_space<vmem>>, vector<1x4xf32>
    %5 = vector.broadcast %4 : vector<1x4xf32> to vector<256x4xf32>
    %6 = arith.addf %3, %5 : vector<256x4xf32>
    %cst = arith.constant 0.000000e+00 : f32
    %7 = vector.broadcast %cst : f32 to vector<256x4xf32>
    %8 = arith.maximumf %6, %7 : vector<256x4xf32>
    %9 = arith.truncf %8 : vector<256x4xf32> to vector<256x4xbf16>
    %c0_5 = arith.constant 0 : index
    %c0_6 = arith.constant 0 : index
    %10 = vector.load %arg4[%c0_5, %c0_6] : memref<256x4xbf16, #tpu.memory_space<vmem>>, vector<256x4xbf16>
    tpu.vector_store %arg4[%c0_5, %c0_6], %9 {strides = array<i32>} : memref<256x4xbf16, #tpu.memory_space<vmem>>, vector<256x4xbf16>,
    return
  }
  func.func @transform_0(%arg0: i32) -> (i32, i32) {
    %c0_i32 = arith.constant 0 : i32
    %c0_i32_0 = arith.constant 0 : i32
    return %arg0, %c0_i32 : i32, i32
  }
  func.func @transform_1(%arg0: i32) -> (i32, i32) {
    %c0_i32 = arith.constant 0 : i32
    %c0_i32_0 = arith.constant 0 : i32
    %c0_i32_1 = arith.constant 0 : i32
    return %c0_i32, %c0_i32_0 : i32, i32
  }
  func.func @transform_2(%arg0: i32) -> (i32, i32) {
    %c0_i32 = arith.constant 0 : i32
    %c0_i32_0 = arith.constant 0 : i32
    %c0_i32_1 = arith.constant 0 : i32
    return %c0_i32, %c0_i32_0 : i32, i32
  }
  func.func @transform_3(%arg0: i32) -> (i32, i32) {
    %c0_i32 = arith.constant 0 : i32
    %c0_i32_0 = arith.constant 0 : i32
    return %arg0, %c0_i32 : i32, i32
  }
}

module attributes {stable_mosaic.version = 11 : i64} {
  func.func @kernel(%arg0: i32, %arg1: memref<256x108xbf16, #tpu.memory_space<vmem>>, %arg2: memref<1x108x4xbf16, #tpu.memory_space<vmem>>, %arg3: memref<256x4xf32, #tpu.memory_space<vmem>>, %arg4: memref<1x2x4xf32, #tpu.memory_space<vmem>>) attributes {dimension_semantics = [#tpu.dimension_semantics<parallel>], iteration_bounds = array<i64: 4>, scalar_prefetch = 0 : i64, scratch_operands = 0 : i64, tpu.core_type = #tpu.core_type<tc>, window_params = [{transform_indices = @transform_0, window_bounds = array<i64: 256, 108>}, {pipeline_mode = #tpu.pipeline_mode<synchronous>, transform_indices = @transform_1, window_bounds = array<i64: 1, 108, 4>}, {transform_indices = @transform_2, window_bounds = array<i64: 256, 4>}, {transform_indices = @transform_3, window_bounds = array<i64: 1, 2, 4>}]} {
    %c0 = arith.constant 0 : index
    %c0_0 = arith.constant 0 : index
    %0 = vector.load %arg1[%c0, %c0_0] : memref<256x108xbf16, #tpu.memory_space<vmem>>, vector<256x108xbf16>
    %c0_1 = arith.constant 0 : index
    %c0_2 = arith.constant 0 : index
    %c0_3 = arith.constant 0 : index
    %1 = vector.load %arg2[%c0_1, %c0_2, %c0_3] : memref<1x108x4xbf16, #tpu.memory_space<vmem>>, vector<1x108x4xbf16>
    %2 = vector.shape_cast %1 : vector<1x108x4xbf16> to vector<108x4xbf16>
    %cst = arith.constant dense<0.000000e+00> : vector<256x4xf32>
    %3 = tpu.matmul %0, %2, %cst {dimension_numbers = #tpu.dot_dimension_numbers<[1], [0], [0], [1], [0, 0, 1, 1], [], []>} : vector<256x108xbf16>, vector<108x4xbf16>, vector<256x4xf32> -> vector<256x4xf32>
    %c0_4 = arith.constant 0 : index
    %c0_5 = arith.constant 0 : index
    %4 = vector.load %arg3[%c0_4, %c0_5] : memref<256x4xf32, #tpu.memory_space<vmem>>, vector<256x4xf32>
    tpu.vector_store %arg3[%c0_4, %c0_5], %3 {strides = array<i32>} : memref<256x4xf32, #tpu.memory_space<vmem>>, vector<256x4xf32>,
    %cst_6 = arith.constant dense<0.000000e+00> : vector<4xf32>
    %5 = vector.multi_reduction <add>, %3, %cst_6 [0] : vector<256x4xf32> to vector<4xf32>
    %6 = vector.shape_cast %5 : vector<4xf32> to vector<1x4xf32>
    %c0_7 = arith.constant 0 : index
    %c0_8 = arith.constant 0 : index
    %c0_9 = arith.constant 0 : index
    %7 = vector.load %arg4[%c0_7, %c0_8, %c0_9] : memref<1x2x4xf32, #tpu.memory_space<vmem>>, vector<1x1x4xf32>
    %8 = vector.shape_cast %7 : vector<1x1x4xf32> to vector<1x4xf32>
    %9 = vector.shape_cast %6 : vector<1x4xf32> to vector<1x1x4xf32>
    tpu.vector_store %arg4[%c0_7, %c0_8, %c0_9], %9 {strides = array<i32>} : memref<1x2x4xf32, #tpu.memory_space<vmem>>, vector<1x1x4xf32>,
    %10 = arith.mulf %3, %3 : vector<256x4xf32>
    %cst_10 = arith.constant dense<0.000000e+00> : vector<4xf32>
    %11 = vector.multi_reduction <add>, %10, %cst_10 [0] : vector<256x4xf32> to vector<4xf32>
    %12 = vector.shape_cast %11 : vector<4xf32> to vector<1x4xf32>
    %c0_11 = arith.constant 0 : index
    %c1 = arith.constant 1 : index
    %c0_12 = arith.constant 0 : index
    %13 = vector.load %arg4[%c0_11, %c1, %c0_12] : memref<1x2x4xf32, #tpu.memory_space<vmem>>, vector<1x1x4xf32>
    %14 = vector.shape_cast %13 : vector<1x1x4xf32> to vector<1x4xf32>
    %15 = vector.shape_cast %12 : vector<1x4xf32> to vector<1x1x4xf32>
    tpu.vector_store %arg4[%c0_11, %c1, %c0_12], %15 {strides = array<i32>} : memref<1x2x4xf32, #tpu.memory_space<vmem>>, vector<1x1x4xf32>,
    return
  }
  func.func @transform_0(%arg0: i32) -> (i32, i32) {
    %c0_i32 = arith.constant 0 : i32
    %c0_i32_0 = arith.constant 0 : i32
    return %arg0, %c0_i32 : i32, i32
  }
  func.func @transform_1(%arg0: i32) -> (i32, i32, i32) {
    %c0_i32 = arith.constant 0 : i32
    %c0_i32_0 = arith.constant 0 : i32
    %c0_i32_1 = arith.constant 0 : i32
    %c0_i32_2 = arith.constant 0 : i32
    return %c0_i32, %c0_i32_0, %c0_i32_1 : i32, i32, i32
  }
  func.func @transform_2(%arg0: i32) -> (i32, i32) {
    %c0_i32 = arith.constant 0 : i32
    %c0_i32_0 = arith.constant 0 : i32
    return %arg0, %c0_i32 : i32, i32
  }
  func.func @transform_3(%arg0: i32) -> (i32, i32, i32) {
    %c0_i32 = arith.constant 0 : i32
    %c0_i32_0 = arith.constant 0 : i32
    %c0_i32_1 = arith.constant 0 : i32
    return %arg0, %c0_i32, %c0_i32_0 : i32, i32, i32
  }
}

module attributes {stable_mosaic.version = 11 : i64} {
  func.func @kernel(%arg0: i32, %arg1: memref<256x4xf32, #tpu.memory_space<vmem>>, %arg2: memref<1x4xf32, #tpu.memory_space<vmem>>, %arg3: memref<1x4xf32, #tpu.memory_space<vmem>>, %arg4: memref<256x4xbf16, #tpu.memory_space<vmem>>, %arg5: memref<256x4xbf16, #tpu.memory_space<vmem>>) attributes {dimension_semantics = [#tpu.dimension_semantics<parallel>], iteration_bounds = array<i64: 4>, scalar_prefetch = 0 : i64, scratch_operands = 0 : i64, tpu.core_type = #tpu.core_type<tc>, window_params = [{transform_indices = @transform_0, window_bounds = array<i64: 256, 4>}, {pipeline_mode = #tpu.pipeline_mode<synchronous>, transform_indices = @transform_1, window_bounds = array<i64: 1, 4>}, {pipeline_mode = #tpu.pipeline_mode<synchronous>, transform_indices = @transform_2, window_bounds = array<i64: 1, 4>}, {transform_indices = @transform_3, window_bounds = array<i64: 256, 4>}, {transform_indices = @transform_4, window_bounds = array<i64: 256, 4>}]} {
    %c0 = arith.constant 0 : index
    %c0_0 = arith.constant 0 : index
    %0 = vector.load %arg1[%c0, %c0_0] : memref<256x4xf32, #tpu.memory_space<vmem>>, vector<256x4xf32>
    %c0_1 = arith.constant 0 : index
    %c0_2 = arith.constant 0 : index
    %1 = vector.load %arg2[%c0_1, %c0_2] : memref<1x4xf32, #tpu.memory_space<vmem>>, vector<1x4xf32>
    %2 = vector.broadcast %1 : vector<1x4xf32> to vector<256x4xf32>
    %3 = arith.mulf %0, %2 : vector<256x4xf32>
    %c0_3 = arith.constant 0 : index
    %c0_4 = arith.constant 0 : index
    %4 = vector.load %arg3[%c0_3, %c0_4] : memref<1x4xf32, #tpu.memory_space<vmem>>, vector<1x4xf32>
    %5 = vector.broadcast %4 : vector<1x4xf32> to vector<256x4xf32>
    %6 = arith.addf %3, %5 : vector<256x4xf32>
    %c0_5 = arith.constant 0 : index
    %c0_6 = arith.constant 0 : index
    %7 = vector.load %arg4[%c0_5, %c0_6] : memref<256x4xbf16, #tpu.memory_space<vmem>>, vector<256x4xbf16>
    %8 = arith.extf %7 : vector<256x4xbf16> to vector<256x4xf32>
    %9 = arith.addf %6, %8 : vector<256x4xf32>
    %cst = arith.constant 0.000000e+00 : f32
    %10 = vector.broadcast %cst : f32 to vector<256x4xf32>
    %11 = arith.maximumf %9, %10 : vector<256x4xf32>
    %12 = arith.truncf %11 : vector<256x4xf32> to vector<256x4xbf16>
    %c0_7 = arith.constant 0 : index
    %c0_8 = arith.constant 0 : index
    %13 = vector.load %arg5[%c0_7, %c0_8] : memref<256x4xbf16, #tpu.memory_space<vmem>>, vector<256x4xbf16>
    tpu.vector_store %arg5[%c0_7, %c0_8], %12 {strides = array<i32>} : memref<256x4xbf16, #tpu.memory_space<vmem>>, vector<256x4xbf16>,
    return
  }
  func.func @transform_0(%arg0: i32) -> (i32, i32) {
    %c0_i32 = arith.constant 0 : i32
    %c0_i32_0 = arith.constant 0 : i32
    return %arg0, %c0_i32 : i32, i32
  }
  func.func @transform_1(%arg0: i32) -> (i32, i32) {
    %c0_i32 = arith.constant 0 : i32
    %c0_i32_0 = arith.constant 0 : i32
    %c0_i32_1 = arith.constant 0 : i32
    return %c0_i32, %c0_i32_0 : i32, i32
  }
  func.func @transform_2(%arg0: i32) -> (i32, i32) {
    %c0_i32 = arith.constant 0 : i32
    %c0_i32_0 = arith.constant 0 : i32
    %c0_i32_1 = arith.constant 0 : i32
    return %c0_i32, %c0_i32_0 : i32, i32
  }
  func.func @transform_3(%arg0: i32) -> (i32, i32) {
    %c0_i32 = arith.constant 0 : i32
    %c0_i32_0 = arith.constant 0 : i32
    return %arg0, %c0_i32 : i32, i32
  }
  func.func @transform_4(%arg0: i32) -> (i32, i32) {
    %c0_i32 = arith.constant 0 : i32
    %c0_i32_0 = arith.constant 0 : i32
    return %arg0, %c0_i32 : i32, i32
  }
}

module attributes {stable_mosaic.version = 11 : i64} {
  func.func @kernel(%arg0: i32, %arg1: memref<8x4xbf16, #tpu.memory_space<vmem>>, %arg2: memref<1x4x6xbf16, #tpu.memory_space<vmem>>, %arg3: memref<8x6xf32, #tpu.memory_space<vmem>>, %arg4: memref<1x2x6xf32, #tpu.memory_space<vmem>>) attributes {dimension_semantics = [#tpu.dimension_semantics<parallel>], iteration_bounds = array<i64: 1>, scalar_prefetch = 0 : i64, scratch_operands = 0 : i64, tpu.core_type = #tpu.core_type<tc>, window_params = [{transform_indices = @transform_0, window_bounds = array<i64: 8, 4>}, {pipeline_mode = #tpu.pipeline_mode<synchronous>, transform_indices = @transform_1, window_bounds = array<i64: 1, 4, 6>}, {transform_indices = @transform_2, window_bounds = array<i64: 8, 6>}, {transform_indices = @transform_3, window_bounds = array<i64: 1, 2, 6>}]} {
    %c0 = arith.constant 0 : index
    %c0_0 = arith.constant 0 : index
    %0 = vector.load %arg1[%c0, %c0_0] : memref<8x4xbf16, #tpu.memory_space<vmem>>, vector<8x4xbf16>
    %c0_1 = arith.constant 0 : index
    %c0_2 = arith.constant 0 : index
    %c0_3 = arith.constant 0 : index
    %1 = vector.load %arg2[%c0_1, %c0_2, %c0_3] : memref<1x4x6xbf16, #tpu.memory_space<vmem>>, vector<1x4x6xbf16>
    %2 = vector.shape_cast %1 : vector<1x4x6xbf16> to vector<4x6xbf16>
    %cst = arith.constant dense<0.000000e+00> : vector<8x6xf32>
    %3 = tpu.matmul %0, %2, %cst {dimension_numbers = #tpu.dot_dimension_numbers<[1], [0], [0], [1], [0, 0, 1, 1], [], []>} : vector<8x4xbf16>, vector<4x6xbf16>, vector<8x6xf32> -> vector<8x6xf32>
    %c0_4 = arith.constant 0 : index
    %c0_5 = arith.constant 0 : index
    %4 = vector.load %arg3[%c0_4, %c0_5] : memref<8x6xf32, #tpu.memory_space<vmem>>, vector<8x6xf32>
    tpu.vector_store %arg3[%c0_4, %c0_5], %3 {strides = array<i32>} : memref<8x6xf32, #tpu.memory_space<vmem>>, vector<8x6xf32>,
    %cst_6 = arith.constant dense<0.000000e+00> : vector<6xf32>
    %5 = vector.multi_reduction <add>, %3, %cst_6 [0] : vector<8x6xf32> to vector<6xf32>
    %6 = vector.shape_cast %5 : vector<6xf32> to vector<1x6xf32>
    %c0_7 = arith.constant 0 : index
    %c0_8 = arith.constant 0 : index
    %c0_9 = arith.constant 0 : index
    %7 = vector.load %arg4[%c0_7, %c0_8, %c0_9] : memref<1x2x6xf32, #tpu.memory_space<vmem>>, vector<1x1x6xf32>
    %8 = vector.shape_cast %7 : vector<1x1x6xf32> to vector<1x6xf32>
    %9 = vector.shape_cast %6 : vector<1x6xf32> to vector<1x1x6xf32>
    tpu.vector_store %arg4[%c0_7, %c0_8, %c0_9], %9 {strides = array<i32>} : memref<1x2x6xf32, #tpu.memory_space<vmem>>, vector<1x1x6xf32>,
    %10 = arith.mulf %3, %3 : vector<8x6xf32>
    %cst_10 = arith.constant dense<0.000000e+00> : vector<6xf32>
    %11 = vector.multi_reduction <add>, %10, %cst_10 [0] : vector<8x6xf32> to vector<6xf32>
    %12 = vector.shape_cast %11 : vector<6xf32> to vector<1x6xf32>
    %c0_11 = arith.constant 0 : index
    %c1 = arith.constant 1 : index
    %c0_12 = arith.constant 0 : index
    %13 = vector.load %arg4[%c0_11, %c1, %c0_12] : memref<1x2x6xf32, #tpu.memory_space<vmem>>, vector<1x1x6xf32>
    %14 = vector.shape_cast %13 : vector<1x1x6xf32> to vector<1x6xf32>
    %15 = vector.shape_cast %12 : vector<1x6xf32> to vector<1x1x6xf32>
    tpu.vector_store %arg4[%c0_11, %c1, %c0_12], %15 {strides = array<i32>} : memref<1x2x6xf32, #tpu.memory_space<vmem>>, vector<1x1x6xf32>,
    return
  }
  func.func @transform_0(%arg0: i32) -> (i32, i32) {
    %c0_i32 = arith.constant 0 : i32
    %c0_i32_0 = arith.constant 0 : i32
    return %arg0, %c0_i32 : i32, i32
  }
  func.func @transform_1(%arg0: i32) -> (i32, i32, i32) {
    %c0_i32 = arith.constant 0 : i32
    %c0_i32_0 = arith.constant 0 : i32
    %c0_i32_1 = arith.constant 0 : i32
    %c0_i32_2 = arith.constant 0 : i32
    return %c0_i32, %c0_i32_0, %c0_i32_1 : i32, i32, i32
  }
  func.func @transform_2(%arg0: i32) -> (i32, i32) {
    %c0_i32 = arith.constant 0 : i32
    %c0_i32_0 = arith.constant 0 : i32
    return %arg0, %c0_i32 : i32, i32
  }
  func.func @transform_3(%arg0: i32) -> (i32, i32, i32) {
    %c0_i32 = arith.constant 0 : i32
    %c0_i32_0 = arith.constant 0 : i32
    %c0_i32_1 = arith.constant 0 : i32
    return %arg0, %c0_i32, %c0_i32_0 : i32, i32, i32
  }
}

module attributes {stable_mosaic.version = 11 : i64} {
  func.func @kernel(%arg0: i32, %arg1: memref<8x6xf32, #tpu.memory_space<vmem>>, %arg2: memref<1x6xf32, #tpu.memory_space<vmem>>, %arg3: memref<1x6xf32, #tpu.memory_space<vmem>>, %arg4: memref<8x6xbf16, #tpu.memory_space<vmem>>) attributes {dimension_semantics = [#tpu.dimension_semantics<parallel>], iteration_bounds = array<i64: 1>, scalar_prefetch = 0 : i64, scratch_operands = 0 : i64, tpu.core_type = #tpu.core_type<tc>, window_params = [{transform_indices = @transform_0, window_bounds = array<i64: 8, 6>}, {pipeline_mode = #tpu.pipeline_mode<synchronous>, transform_indices = @transform_1, window_bounds = array<i64: 1, 6>}, {pipeline_mode = #tpu.pipeline_mode<synchronous>, transform_indices = @transform_2, window_bounds = array<i64: 1, 6>}, {transform_indices = @transform_3, window_bounds = array<i64: 8, 6>}]} {
    %c0 = arith.constant 0 : index
    %c0_0 = arith.constant 0 : index
    %0 = vector.load %arg1[%c0, %c0_0] : memref<8x6xf32, #tpu.memory_space<vmem>>, vector<8x6xf32>
    %c0_1 = arith.constant 0 : index
    %c0_2 = arith.constant 0 : index
    %1 = vector.load %arg2[%c0_1, %c0_2] : memref<1x6xf32, #tpu.memory_space<vmem>>, vector<1x6xf32>
    %2 = vector.broadcast %1 : vector<1x6xf32> to vector<8x6xf32>
    %3 = arith.mulf %0, %2 : vector<8x6xf32>
    %c0_3 = arith.constant 0 : index
    %c0_4 = arith.constant 0 : index
    %4 = vector.load %arg3[%c0_3, %c0_4] : memref<1x6xf32, #tpu.memory_space<vmem>>, vector<1x6xf32>
    %5 = vector.broadcast %4 : vector<1x6xf32> to vector<8x6xf32>
    %6 = arith.addf %3, %5 : vector<8x6xf32>
    %7 = arith.truncf %6 : vector<8x6xf32> to vector<8x6xbf16>
    %c0_5 = arith.constant 0 : index
    %c0_6 = arith.constant 0 : index
    %8 = vector.load %arg4[%c0_5, %c0_6] : memref<8x6xbf16, #tpu.memory_space<vmem>>, vector<8x6xbf16>
    tpu.vector_store %arg4[%c0_5, %c0_6], %7 {strides = array<i32>} : memref<8x6xbf16, #tpu.memory_space<vmem>>, vector<8x6xbf16>,
    return
  }
  func.func @transform_0(%arg0: i32) -> (i32, i32) {
    %c0_i32 = arith.constant 0 : i32
    %c0_i32_0 = arith.constant 0 : i32
    return %arg0, %c0_i32 : i32, i32
  }
  func.func @transform_1(%arg0: i32) -> (i32, i32) {
    %c0_i32 = arith.constant 0 : i32
    %c0_i32_0 = arith.constant 0 : i32
    %c0_i32_1 = arith.constant 0 : i32
    return %c0_i32, %c0_i32_0 : i32, i32
  }
  func.func @transform_2(%arg0: i32) -> (i32, i32) {
    %c0_i32 = arith.constant 0 : i32
    %c0_i32_0 = arith.constant 0 : i32
    %c0_i32_1 = arith.constant 0 : i32
    return %c0_i32, %c0_i32_0 : i32, i32
  }
  func.func @transform_3(%arg0: i32) -> (i32, i32) {
    %c0_i32 = arith.constant 0 : i32
    %c0_i32_0 = arith.constant 0 : i32
    return %arg0, %c0_i32 : i32, i32
  }
}

module attributes {stable_mosaic.version = 11 : i64} {
  func.func @kernel(%arg0: i32, %arg1: memref<216x108xbf16, #tpu.memory_space<vmem>>, %arg2: memref<1x108x4xbf16, #tpu.memory_space<vmem>>, %arg3: memref<216x4xf32, #tpu.memory_space<vmem>>, %arg4: memref<1x2x4xf32, #tpu.memory_space<vmem>>) attributes {dimension_semantics = [#tpu.dimension_semantics<parallel>], iteration_bounds = array<i64: 1>, scalar_prefetch = 0 : i64, scratch_operands = 0 : i64, tpu.core_type = #tpu.core_type<tc>, window_params = [{transform_indices = @transform_0, window_bounds = array<i64: 216, 108>}, {pipeline_mode = #tpu.pipeline_mode<synchronous>, transform_indices = @transform_1, window_bounds = array<i64: 1, 108, 4>}, {transform_indices = @transform_2, window_bounds = array<i64: 216, 4>}, {transform_indices = @transform_3, window_bounds = array<i64: 1, 2, 4>}]} {
    %c0 = arith.constant 0 : index
    %c0_0 = arith.constant 0 : index
    %0 = vector.load %arg1[%c0, %c0_0] : memref<216x108xbf16, #tpu.memory_space<vmem>>, vector<216x108xbf16>
    %c0_1 = arith.constant 0 : index
    %c0_2 = arith.constant 0 : index
    %c0_3 = arith.constant 0 : index
    %1 = vector.load %arg2[%c0_1, %c0_2, %c0_3] : memref<1x108x4xbf16, #tpu.memory_space<vmem>>, vector<1x108x4xbf16>
    %2 = vector.shape_cast %1 : vector<1x108x4xbf16> to vector<108x4xbf16>
    %cst = arith.constant dense<0.000000e+00> : vector<216x4xf32>
    %3 = tpu.matmul %0, %2, %cst {dimension_numbers = #tpu.dot_dimension_numbers<[1], [0], [0], [1], [0, 0, 1, 1], [], []>} : vector<216x108xbf16>, vector<108x4xbf16>, vector<216x4xf32> -> vector<216x4xf32>
    %c0_4 = arith.constant 0 : index
    %c0_5 = arith.constant 0 : index
    %4 = vector.load %arg3[%c0_4, %c0_5] : memref<216x4xf32, #tpu.memory_space<vmem>>, vector<216x4xf32>
    tpu.vector_store %arg3[%c0_4, %c0_5], %3 {strides = array<i32>} : memref<216x4xf32, #tpu.memory_space<vmem>>, vector<216x4xf32>,
    %cst_6 = arith.constant dense<0.000000e+00> : vector<4xf32>
    %5 = vector.multi_reduction <add>, %3, %cst_6 [0] : vector<216x4xf32> to vector<4xf32>
    %6 = vector.shape_cast %5 : vector<4xf32> to vector<1x4xf32>
    %c0_7 = arith.constant 0 : index
    %c0_8 = arith.constant 0 : index
    %c0_9 = arith.constant 0 : index
    %7 = vector.load %arg4[%c0_7, %c0_8, %c0_9] : memref<1x2x4xf32, #tpu.memory_space<vmem>>, vector<1x1x4xf32>
    %8 = vector.shape_cast %7 : vector<1x1x4xf32> to vector<1x4xf32>
    %9 = vector.shape_cast %6 : vector<1x4xf32> to vector<1x1x4xf32>
    tpu.vector_store %arg4[%c0_7, %c0_8, %c0_9], %9 {strides = array<i32>} : memref<1x2x4xf32, #tpu.memory_space<vmem>>, vector<1x1x4xf32>,
    %10 = arith.mulf %3, %3 : vector<216x4xf32>
    %cst_10 = arith.constant dense<0.000000e+00> : vector<4xf32>
    %11 = vector.multi_reduction <add>, %10, %cst_10 [0] : vector<216x4xf32> to vector<4xf32>
    %12 = vector.shape_cast %11 : vector<4xf32> to vector<1x4xf32>
    %c0_11 = arith.constant 0 : index
    %c1 = arith.constant 1 : index
    %c0_12 = arith.constant 0 : index
    %13 = vector.load %arg4[%c0_11, %c1, %c0_12] : memref<1x2x4xf32, #tpu.memory_space<vmem>>, vector<1x1x4xf32>
    %14 = vector.shape_cast %13 : vector<1x1x4xf32> to vector<1x4xf32>
    %15 = vector.shape_cast %12 : vector<1x4xf32> to vector<1x1x4xf32>
    tpu.vector_store %arg4[%c0_11, %c1, %c0_12], %15 {strides = array<i32>} : memref<1x2x4xf32, #tpu.memory_space<vmem>>, vector<1x1x4xf32>,
    return
  }
  func.func @transform_0(%arg0: i32) -> (i32, i32) {
    %c0_i32 = arith.constant 0 : i32
    %c0_i32_0 = arith.constant 0 : i32
    return %arg0, %c0_i32 : i32, i32
  }
  func.func @transform_1(%arg0: i32) -> (i32, i32, i32) {
    %c0_i32 = arith.constant 0 : i32
    %c0_i32_0 = arith.constant 0 : i32
    %c0_i32_1 = arith.constant 0 : i32
    %c0_i32_2 = arith.constant 0 : i32
    return %c0_i32, %c0_i32_0, %c0_i32_1 : i32, i32, i32
  }
  func.func @transform_2(%arg0: i32) -> (i32, i32) {
    %c0_i32 = arith.constant 0 : i32
    %c0_i32_0 = arith.constant 0 : i32
    return %arg0, %c0_i32 : i32, i32
  }
  func.func @transform_3(%arg0: i32) -> (i32, i32, i32) {
    %c0_i32 = arith.constant 0 : i32
    %c0_i32_0 = arith.constant 0 : i32
    %c0_i32_1 = arith.constant 0 : i32
    return %arg0, %c0_i32, %c0_i32_0 : i32, i32, i32
  }
}

module attributes {stable_mosaic.version = 11 : i64} {
  func.func @kernel(%arg0: i32, %arg1: memref<216x4xf32, #tpu.memory_space<vmem>>, %arg2: memref<1x4xf32, #tpu.memory_space<vmem>>, %arg3: memref<1x4xf32, #tpu.memory_space<vmem>>, %arg4: memref<216x4xbf16, #tpu.memory_space<vmem>>) attributes {dimension_semantics = [#tpu.dimension_semantics<parallel>], iteration_bounds = array<i64: 1>, scalar_prefetch = 0 : i64, scratch_operands = 0 : i64, tpu.core_type = #tpu.core_type<tc>, window_params = [{transform_indices = @transform_0, window_bounds = array<i64: 216, 4>}, {pipeline_mode = #tpu.pipeline_mode<synchronous>, transform_indices = @transform_1, window_bounds = array<i64: 1, 4>}, {pipeline_mode = #tpu.pipeline_mode<synchronous>, transform_indices = @transform_2, window_bounds = array<i64: 1, 4>}, {transform_indices = @transform_3, window_bounds = array<i64: 216, 4>}]} {
    %c0 = arith.constant 0 : index
    %c0_0 = arith.constant 0 : index
    %0 = vector.load %arg1[%c0, %c0_0] : memref<216x4xf32, #tpu.memory_space<vmem>>, vector<216x4xf32>
    %c0_1 = arith.constant 0 : index
    %c0_2 = arith.constant 0 : index
    %1 = vector.load %arg2[%c0_1, %c0_2] : memref<1x4xf32, #tpu.memory_space<vmem>>, vector<1x4xf32>
    %2 = vector.broadcast %1 : vector<1x4xf32> to vector<216x4xf32>
    %3 = arith.mulf %0, %2 : vector<216x4xf32>
    %c0_3 = arith.constant 0 : index
    %c0_4 = arith.constant 0 : index
    %4 = vector.load %arg3[%c0_3, %c0_4] : memref<1x4xf32, #tpu.memory_space<vmem>>, vector<1x4xf32>
    %5 = vector.broadcast %4 : vector<1x4xf32> to vector<216x4xf32>
    %6 = arith.addf %3, %5 : vector<216x4xf32>
    %cst = arith.constant 0.000000e+00 : f32
    %7 = vector.broadcast %cst : f32 to vector<216x4xf32>
    %8 = arith.maximumf %6, %7 : vector<216x4xf32>
    %9 = arith.truncf %8 : vector<216x4xf32> to vector<216x4xbf16>
    %c0_5 = arith.constant 0 : index
    %c0_6 = arith.constant 0 : index
    %10 = vector.load %arg4[%c0_5, %c0_6] : memref<216x4xbf16, #tpu.memory_space<vmem>>, vector<216x4xbf16>
    tpu.vector_store %arg4[%c0_5, %c0_6], %9 {strides = array<i32>} : memref<216x4xbf16, #tpu.memory_space<vmem>>, vector<216x4xbf16>,
    return
  }
  func.func @transform_0(%arg0: i32) -> (i32, i32) {
    %c0_i32 = arith.constant 0 : i32
    %c0_i32_0 = arith.constant 0 : i32
    return %arg0, %c0_i32 : i32, i32
  }
  func.func @transform_1(%arg0: i32) -> (i32, i32) {
    %c0_i32 = arith.constant 0 : i32
    %c0_i32_0 = arith.constant 0 : i32
    %c0_i32_1 = arith.constant 0 : i32
    return %c0_i32, %c0_i32_0 : i32, i32
  }
  func.func @transform_2(%arg0: i32) -> (i32, i32) {
    %c0_i32 = arith.constant 0 : i32
    %c0_i32_0 = arith.constant 0 : i32
    %c0_i32_1 = arith.constant 0 : i32
    return %c0_i32, %c0_i32_0 : i32, i32
  }
  func.func @transform_3(%arg0: i32) -> (i32, i32) {
    %c0_i32 = arith.constant 0 : i32
    %c0_i32_0 = arith.constant 0 : i32
    return %arg0, %c0_i32 : i32, i32
  }
}

module attributes {stable_mosaic.version = 11 : i64} {
  func.func @kernel(%arg0: i32, %arg1: memref<8x108xbf16, #tpu.memory_space<vmem>>, %arg2: memref<1x108x6xbf16, #tpu.memory_space<vmem>>, %arg3: memref<8x6xf32, #tpu.memory_space<vmem>>, %arg4: memref<1x2x6xf32, #tpu.memory_space<vmem>>) attributes {dimension_semantics = [#tpu.dimension_semantics<parallel>], iteration_bounds = array<i64: 1>, scalar_prefetch = 0 : i64, scratch_operands = 0 : i64, tpu.core_type = #tpu.core_type<tc>, window_params = [{transform_indices = @transform_0, window_bounds = array<i64: 8, 108>}, {pipeline_mode = #tpu.pipeline_mode<synchronous>, transform_indices = @transform_1, window_bounds = array<i64: 1, 108, 6>}, {transform_indices = @transform_2, window_bounds = array<i64: 8, 6>}, {transform_indices = @transform_3, window_bounds = array<i64: 1, 2, 6>}]} {
    %c0 = arith.constant 0 : index
    %c0_0 = arith.constant 0 : index
    %0 = vector.load %arg1[%c0, %c0_0] : memref<8x108xbf16, #tpu.memory_space<vmem>>, vector<8x108xbf16>
    %c0_1 = arith.constant 0 : index
    %c0_2 = arith.constant 0 : index
    %c0_3 = arith.constant 0 : index
    %1 = vector.load %arg2[%c0_1, %c0_2, %c0_3] : memref<1x108x6xbf16, #tpu.memory_space<vmem>>, vector<1x108x6xbf16>
    %2 = vector.shape_cast %1 : vector<1x108x6xbf16> to vector<108x6xbf16>
    %cst = arith.constant dense<0.000000e+00> : vector<8x6xf32>
    %3 = tpu.matmul %0, %2, %cst {dimension_numbers = #tpu.dot_dimension_numbers<[1], [0], [0], [1], [0, 0, 1, 1], [], []>} : vector<8x108xbf16>, vector<108x6xbf16>, vector<8x6xf32> -> vector<8x6xf32>
    %c0_4 = arith.constant 0 : index
    %c0_5 = arith.constant 0 : index
    %4 = vector.load %arg3[%c0_4, %c0_5] : memref<8x6xf32, #tpu.memory_space<vmem>>, vector<8x6xf32>
    tpu.vector_store %arg3[%c0_4, %c0_5], %3 {strides = array<i32>} : memref<8x6xf32, #tpu.memory_space<vmem>>, vector<8x6xf32>,
    %cst_6 = arith.constant dense<0.000000e+00> : vector<6xf32>
    %5 = vector.multi_reduction <add>, %3, %cst_6 [0] : vector<8x6xf32> to vector<6xf32>
    %6 = vector.shape_cast %5 : vector<6xf32> to vector<1x6xf32>
    %c0_7 = arith.constant 0 : index
    %c0_8 = arith.constant 0 : index
    %c0_9 = arith.constant 0 : index
    %7 = vector.load %arg4[%c0_7, %c0_8, %c0_9] : memref<1x2x6xf32, #tpu.memory_space<vmem>>, vector<1x1x6xf32>
    %8 = vector.shape_cast %7 : vector<1x1x6xf32> to vector<1x6xf32>
    %9 = vector.shape_cast %6 : vector<1x6xf32> to vector<1x1x6xf32>
    tpu.vector_store %arg4[%c0_7, %c0_8, %c0_9], %9 {strides = array<i32>} : memref<1x2x6xf32, #tpu.memory_space<vmem>>, vector<1x1x6xf32>,
    %10 = arith.mulf %3, %3 : vector<8x6xf32>
    %cst_10 = arith.constant dense<0.000000e+00> : vector<6xf32>
    %11 = vector.multi_reduction <add>, %10, %cst_10 [0] : vector<8x6xf32> to vector<6xf32>
    %12 = vector.shape_cast %11 : vector<6xf32> to vector<1x6xf32>
    %c0_11 = arith.constant 0 : index
    %c1 = arith.constant 1 : index
    %c0_12 = arith.constant 0 : index
    %13 = vector.load %arg4[%c0_11, %c1, %c0_12] : memref<1x2x6xf32, #tpu.memory_space<vmem>>, vector<1x1x6xf32>
    %14 = vector.shape_cast %13 : vector<1x1x6xf32> to vector<1x6xf32>
    %15 = vector.shape_cast %12 : vector<1x6xf32> to vector<1x1x6xf32>
    tpu.vector_store %arg4[%c0_11, %c1, %c0_12], %15 {strides = array<i32>} : memref<1x2x6xf32, #tpu.memory_space<vmem>>, vector<1x1x6xf32>,
    return
  }
  func.func @transform_0(%arg0: i32) -> (i32, i32) {
    %c0_i32 = arith.constant 0 : i32
    %c0_i32_0 = arith.constant 0 : i32
    return %arg0, %c0_i32 : i32, i32
  }
  func.func @transform_1(%arg0: i32) -> (i32, i32, i32) {
    %c0_i32 = arith.constant 0 : i32
    %c0_i32_0 = arith.constant 0 : i32
    %c0_i32_1 = arith.constant 0 : i32
    %c0_i32_2 = arith.constant 0 : i32
    return %c0_i32, %c0_i32_0, %c0_i32_1 : i32, i32, i32
  }
  func.func @transform_2(%arg0: i32) -> (i32, i32) {
    %c0_i32 = arith.constant 0 : i32
    %c0_i32_0 = arith.constant 0 : i32
    return %arg0, %c0_i32 : i32, i32
  }
  func.func @transform_3(%arg0: i32) -> (i32, i32, i32) {
    %c0_i32 = arith.constant 0 : i32
    %c0_i32_0 = arith.constant 0 : i32
    %c0_i32_1 = arith.constant 0 : i32
    return %arg0, %c0_i32, %c0_i32_0 : i32, i32, i32
  }
}

module attributes {stable_mosaic.version = 11 : i64} {
  func.func @kernel(%arg0: i32, %arg1: memref<8x6xf32, #tpu.memory_space<vmem>>, %arg2: memref<1x6xf32, #tpu.memory_space<vmem>>, %arg3: memref<1x6xf32, #tpu.memory_space<vmem>>, %arg4: memref<8x6xbf16, #tpu.memory_space<vmem>>, %arg5: memref<8x6xbf16, #tpu.memory_space<vmem>>) attributes {dimension_semantics = [#tpu.dimension_semantics<parallel>], iteration_bounds = array<i64: 1>, scalar_prefetch = 0 : i64, scratch_operands = 0 : i64, tpu.core_type = #tpu.core_type<tc>, window_params = [{transform_indices = @transform_0, window_bounds = array<i64: 8, 6>}, {pipeline_mode = #tpu.pipeline_mode<synchronous>, transform_indices = @transform_1, window_bounds = array<i64: 1, 6>}, {pipeline_mode = #tpu.pipeline_mode<synchronous>, transform_indices = @transform_2, window_bounds = array<i64: 1, 6>}, {transform_indices = @transform_3, window_bounds = array<i64: 8, 6>}, {transform_indices = @transform_4, window_bounds = array<i64: 8, 6>}]} {
    %c0 = arith.constant 0 : index
    %c0_0 = arith.constant 0 : index
    %0 = vector.load %arg1[%c0, %c0_0] : memref<8x6xf32, #tpu.memory_space<vmem>>, vector<8x6xf32>
    %c0_1 = arith.constant 0 : index
    %c0_2 = arith.constant 0 : index
    %1 = vector.load %arg2[%c0_1, %c0_2] : memref<1x6xf32, #tpu.memory_space<vmem>>, vector<1x6xf32>
    %2 = vector.broadcast %1 : vector<1x6xf32> to vector<8x6xf32>
    %3 = arith.mulf %0, %2 : vector<8x6xf32>
    %c0_3 = arith.constant 0 : index
    %c0_4 = arith.constant 0 : index
    %4 = vector.load %arg3[%c0_3, %c0_4] : memref<1x6xf32, #tpu.memory_space<vmem>>, vector<1x6xf32>
    %5 = vector.broadcast %4 : vector<1x6xf32> to vector<8x6xf32>
    %6 = arith.addf %3, %5 : vector<8x6xf32>
    %c0_5 = arith.constant 0 : index
    %c0_6 = arith.constant 0 : index
    %7 = vector.load %arg4[%c0_5, %c0_6] : memref<8x6xbf16, #tpu.memory_space<vmem>>, vector<8x6xbf16>
    %8 = arith.extf %7 : vector<8x6xbf16> to vector<8x6xf32>
    %9 = arith.addf %6, %8 : vector<8x6xf32>
    %cst = arith.constant 0.000000e+00 : f32
    %10 = vector.broadcast %cst : f32 to vector<8x6xf32>
    %11 = arith.maximumf %9, %10 : vector<8x6xf32>
    %12 = arith.truncf %11 : vector<8x6xf32> to vector<8x6xbf16>
    %c0_7 = arith.constant 0 : index
    %c0_8 = arith.constant 0 : index
    %13 = vector.load %arg5[%c0_7, %c0_8] : memref<8x6xbf16, #tpu.memory_space<vmem>>, vector<8x6xbf16>
    tpu.vector_store %arg5[%c0_7, %c0_8], %12 {strides = array<i32>} : memref<8x6xbf16, #tpu.memory_space<vmem>>, vector<8x6xbf16>,
    return
  }
  func.func @transform_0(%arg0: i32) -> (i32, i32) {
    %c0_i32 = arith.constant 0 : i32
    %c0_i32_0 = arith.constant 0 : i32
    return %arg0, %c0_i32 : i32, i32
  }
  func.func @transform_1(%arg0: i32) -> (i32, i32) {
    %c0_i32 = arith.constant 0 : i32
    %c0_i32_0 = arith.constant 0 : i32
    %c0_i32_1 = arith.constant 0 : i32
    return %c0_i32, %c0_i32_0 : i32, i32
  }
  func.func @transform_2(%arg0: i32) -> (i32, i32) {
    %c0_i32 = arith.constant 0 : i32
    %c0_i32_0 = arith.constant 0 : i32
    %c0_i32_1 = arith.constant 0 : i32
    return %c0_i32, %c0_i32_0 : i32, i32
  }
  func.func @transform_3(%arg0: i32) -> (i32, i32) {
    %c0_i32 = arith.constant 0 : i32
    %c0_i32_0 = arith.constant 0 : i32
    return %arg0, %c0_i32 : i32, i32
  }
  func.func @transform_4(%arg0: i32) -> (i32, i32) {
    %c0_i32 = arith.constant 0 : i32
    %c0_i32_0 = arith.constant 0 : i32
    return %arg0, %c0_i32 : i32, i32
  }
}

module attributes {stable_mosaic.version = 11 : i64} {
  func.func @kernel(%arg0: i32, %arg1: memref<8x162xbf16, #tpu.memory_space<vmem>>, %arg2: memref<8x162xbf16, #tpu.memory_space<vmem>>, %arg3: memref<2x162x128xbf16, #tpu.memory_space<vmem>>, %arg4: memref<8x256xf32, #tpu.memory_space<vmem>>, %arg5: memref<1x2x256xf32, #tpu.memory_space<vmem>>) attributes {dimension_semantics = [#tpu.dimension_semantics<parallel>], iteration_bounds = array<i64: 1>, scalar_prefetch = 0 : i64, scratch_operands = 0 : i64, tpu.core_type = #tpu.core_type<tc>, window_params = [{transform_indices = @transform_0, window_bounds = array<i64: 8, 162>}, {transform_indices = @transform_1, window_bounds = array<i64: 8, 162>}, {pipeline_mode = #tpu.pipeline_mode<synchronous>, transform_indices = @transform_2, window_bounds = array<i64: 2, 162, 128>}, {transform_indices = @transform_3, window_bounds = array<i64: 8, 256>}, {transform_indices = @transform_4, window_bounds = array<i64: 1, 2, 256>}]} {
    %c0 = arith.constant 0 : index
    %c0_0 = arith.constant 0 : index
    %0 = vector.load %arg1[%c0, %c0_0] : memref<8x162xbf16, #tpu.memory_space<vmem>>, vector<8x162xbf16>
    %c0_1 = arith.constant 0 : index
    %c0_2 = arith.constant 0 : index
    %c0_3 = arith.constant 0 : index
    %1 = vector.load %arg3[%c0_1, %c0_2, %c0_3] : memref<2x162x128xbf16, #tpu.memory_space<vmem>>, vector<1x162x128xbf16>
    %2 = vector.shape_cast %1 : vector<1x162x128xbf16> to vector<162x128xbf16>
    %cst = arith.constant dense<0.000000e+00> : vector<8x128xf32>
    %3 = tpu.matmul %0, %2, %cst {dimension_numbers = #tpu.dot_dimension_numbers<[1], [0], [0], [1], [0, 0, 1, 1], [], []>} : vector<8x162xbf16>, vector<162x128xbf16>, vector<8x128xf32> -> vector<8x128xf32>
    %c0_4 = arith.constant 0 : index
    %c0_5 = arith.constant 0 : index
    %4 = vector.load %arg4[%c0_4, %c0_5] : memref<8x256xf32, #tpu.memory_space<vmem>>, vector<8x128xf32>
    tpu.vector_store %arg4[%c0_4, %c0_5], %3 {strides = array<i32>} : memref<8x256xf32, #tpu.memory_space<vmem>>, vector<8x128xf32>,
    %cst_6 = arith.constant dense<0.000000e+00> : vector<128xf32>
    %5 = vector.multi_reduction <add>, %3, %cst_6 [0] : vector<8x128xf32> to vector<128xf32>
    %6 = vector.shape_cast %5 : vector<128xf32> to vector<1x128xf32>
    %c0_7 = arith.constant 0 : index
    %c0_8 = arith.constant 0 : index
    %c0_9 = arith.constant 0 : index
    %7 = vector.load %arg5[%c0_7, %c0_8, %c0_9] : memref<1x2x256xf32, #tpu.memory_space<vmem>>, vector<1x1x128xf32>
    %8 = vector.shape_cast %7 : vector<1x1x128xf32> to vector<1x128xf32>
    %9 = vector.shape_cast %6 : vector<1x128xf32> to vector<1x1x128xf32>
    tpu.vector_store %arg5[%c0_7, %c0_8, %c0_9], %9 {strides = array<i32>} : memref<1x2x256xf32, #tpu.memory_space<vmem>>, vector<1x1x128xf32>,
    %10 = arith.mulf %3, %3 : vector<8x128xf32>
    %cst_10 = arith.constant dense<0.000000e+00> : vector<128xf32>
    %11 = vector.multi_reduction <add>, %10, %cst_10 [0] : vector<8x128xf32> to vector<128xf32>
    %12 = vector.shape_cast %11 : vector<128xf32> to vector<1x128xf32>
    %c0_11 = arith.constant 0 : index
    %c1 = arith.constant 1 : index
    %c0_12 = arith.constant 0 : index
    %13 = vector.load %arg5[%c0_11, %c1, %c0_12] : memref<1x2x256xf32, #tpu.memory_space<vmem>>, vector<1x1x128xf32>
    %14 = vector.shape_cast %13 : vector<1x1x128xf32> to vector<1x128xf32>
    %15 = vector.shape_cast %12 : vector<1x128xf32> to vector<1x1x128xf32>
    tpu.vector_store %arg5[%c0_11, %c1, %c0_12], %15 {strides = array<i32>} : memref<1x2x256xf32, #tpu.memory_space<vmem>>, vector<1x1x128xf32>,
    %c0_13 = arith.constant 0 : index
    %c0_14 = arith.constant 0 : index
    %16 = vector.load %arg2[%c0_13, %c0_14] : memref<8x162xbf16, #tpu.memory_space<vmem>>, vector<8x162xbf16>
    %c1_15 = arith.constant 1 : index
    %c0_16 = arith.constant 0 : index
    %c0_17 = arith.constant 0 : index
    %17 = vector.load %arg3[%c1_15, %c0_16, %c0_17] : memref<2x162x128xbf16, #tpu.memory_space<vmem>>, vector<1x162x128xbf16>
    %18 = vector.shape_cast %17 : vector<1x162x128xbf16> to vector<162x128xbf16>
    %cst_18 = arith.constant dense<0.000000e+00> : vector<8x128xf32>
    %19 = tpu.matmul %16, %18, %cst_18 {dimension_numbers = #tpu.dot_dimension_numbers<[1], [0], [0], [1], [0, 0, 1, 1], [], []>} : vector<8x162xbf16>, vector<162x128xbf16>, vector<8x128xf32> -> vector<8x128xf32>
    %c0_19 = arith.constant 0 : index
    %c128 = arith.constant 128 : index
    %20 = vector.load %arg4[%c0_19, %c128] : memref<8x256xf32, #tpu.memory_space<vmem>>, vector<8x128xf32>
    tpu.vector_store %arg4[%c0_19, %c128], %19 {strides = array<i32>} : memref<8x256xf32, #tpu.memory_space<vmem>>, vector<8x128xf32>,
    %cst_20 = arith.constant dense<0.000000e+00> : vector<128xf32>
    %21 = vector.multi_reduction <add>, %19, %cst_20 [0] : vector<8x128xf32> to vector<128xf32>
    %22 = vector.shape_cast %21 : vector<128xf32> to vector<1x128xf32>
    %c0_21 = arith.constant 0 : index
    %c0_22 = arith.constant 0 : index
    %c128_23 = arith.constant 128 : index
    %23 = vector.load %arg5[%c0_21, %c0_22, %c128_23] : memref<1x2x256xf32, #tpu.memory_space<vmem>>, vector<1x1x128xf32>
    %24 = vector.shape_cast %23 : vector<1x1x128xf32> to vector<1x128xf32>
    %25 = vector.shape_cast %22 : vector<1x128xf32> to vector<1x1x128xf32>
    tpu.vector_store %arg5[%c0_21, %c0_22, %c128_23], %25 {strides = array<i32>} : memref<1x2x256xf32, #tpu.memory_space<vmem>>, vector<1x1x128xf32>,
    %26 = arith.mulf %19, %19 : vector<8x128xf32>
    %cst_24 = arith.constant dense<0.000000e+00> : vector<128xf32>
    %27 = vector.multi_reduction <add>, %26, %cst_24 [0] : vector<8x128xf32> to vector<128xf32>
    %28 = vector.shape_cast %27 : vector<128xf32> to vector<1x128xf32>
    %c0_25 = arith.constant 0 : index
    %c1_26 = arith.constant 1 : index
    %c128_27 = arith.constant 128 : index
    %29 = vector.load %arg5[%c0_25, %c1_26, %c128_27] : memref<1x2x256xf32, #tpu.memory_space<vmem>>, vector<1x1x128xf32>
    %30 = vector.shape_cast %29 : vector<1x1x128xf32> to vector<1x128xf32>
    %31 = vector.shape_cast %28 : vector<1x128xf32> to vector<1x1x128xf32>
    tpu.vector_store %arg5[%c0_25, %c1_26, %c128_27], %31 {strides = array<i32>} : memref<1x2x256xf32, #tpu.memory_space<vmem>>, vector<1x1x128xf32>,
    return
  }
  func.func @transform_0(%arg0: i32) -> (i32, i32) {
    %c0_i32 = arith.constant 0 : i32
    %c0_i32_0 = arith.constant 0 : i32
    return %arg0, %c0_i32 : i32, i32
  }
  func.func @transform_1(%arg0: i32) -> (i32, i32) {
    %c0_i32 = arith.constant 0 : i32
    %c0_i32_0 = arith.constant 0 : i32
    return %arg0, %c0_i32 : i32, i32
  }
  func.func @transform_2(%arg0: i32) -> (i32, i32, i32) {
    %c0_i32 = arith.constant 0 : i32
    %c0_i32_0 = arith.constant 0 : i32
    %c0_i32_1 = arith.constant 0 : i32
    %c0_i32_2 = arith.constant 0 : i32
    return %c0_i32, %c0_i32_0, %c0_i32_1 : i32, i32, i32
  }
  func.func @transform_3(%arg0: i32) -> (i32, i32) {
    %c0_i32 = arith.constant 0 : i32
    %c0_i32_0 = arith.constant 0 : i32
    return %arg0, %c0_i32 : i32, i32
  }
  func.func @transform_4(%arg0: i32) -> (i32, i32, i32) {
    %c0_i32 = arith.constant 0 : i32
    %c0_i32_0 = arith.constant 0 : i32
    %c0_i32_1 = arith.constant 0 : i32
    return %arg0, %c0_i32, %c0_i32_0 : i32, i32, i32
  }
}

module attributes {stable_mosaic.version = 11 : i64} {
  func.func @kernel(%arg0: i32, %arg1: memref<8x256xf32, #tpu.memory_space<vmem>>, %arg2: memref<1x256xf32, #tpu.memory_space<vmem>>, %arg3: memref<1x256xf32, #tpu.memory_space<vmem>>, %arg4: memref<256x2xbf16, #tpu.memory_space<vmem>>, %arg5: memref<1x2xf32, #tpu.memory_space<vmem>>, %arg6: memref<8x2xf32, #tpu.memory_space<vmem>>) attributes {dimension_semantics = [#tpu.dimension_semantics<parallel>], iteration_bounds = array<i64: 1>, scalar_prefetch = 0 : i64, scratch_operands = 0 : i64, tpu.core_type = #tpu.core_type<tc>, window_params = [{transform_indices = @transform_0, window_bounds = array<i64: 8, 256>}, {pipeline_mode = #tpu.pipeline_mode<synchronous>, transform_indices = @transform_1, window_bounds = array<i64: 1, 256>}, {pipeline_mode = #tpu.pipeline_mode<synchronous>, transform_indices = @transform_2, window_bounds = array<i64: 1, 256>}, {pipeline_mode = #tpu.pipeline_mode<synchronous>, transform_indices = @transform_3, window_bounds = array<i64: 256, 2>}, {pipeline_mode = #tpu.pipeline_mode<synchronous>, transform_indices = @transform_4, window_bounds = array<i64: 1, 2>}, {transform_indices = @transform_5, window_bounds = array<i64: 8, 2>}]} {
    %c0 = arith.constant 0 : index
    %c0_0 = arith.constant 0 : index
    %0 = vector.load %arg1[%c0, %c0_0] : memref<8x256xf32, #tpu.memory_space<vmem>>, vector<8x256xf32>
    %c0_1 = arith.constant 0 : index
    %c0_2 = arith.constant 0 : index
    %1 = vector.load %arg2[%c0_1, %c0_2] : memref<1x256xf32, #tpu.memory_space<vmem>>, vector<1x256xf32>
    %2 = vector.broadcast %1 : vector<1x256xf32> to vector<8x256xf32>
    %3 = arith.mulf %0, %2 : vector<8x256xf32>
    %c0_3 = arith.constant 0 : index
    %c0_4 = arith.constant 0 : index
    %4 = vector.load %arg3[%c0_3, %c0_4] : memref<1x256xf32, #tpu.memory_space<vmem>>, vector<1x256xf32>
    %5 = vector.broadcast %4 : vector<1x256xf32> to vector<8x256xf32>
    %6 = arith.addf %3, %5 : vector<8x256xf32>
    %cst = arith.constant 0.000000e+00 : f32
    %7 = vector.broadcast %cst : f32 to vector<8x256xf32>
    %8 = arith.maximumf %6, %7 : vector<8x256xf32>
    %9 = arith.truncf %8 : vector<8x256xf32> to vector<8x256xbf16>
    %c0_5 = arith.constant 0 : index
    %c0_6 = arith.constant 0 : index
    %10 = vector.load %arg4[%c0_5, %c0_6] : memref<256x2xbf16, #tpu.memory_space<vmem>>, vector<256x2xbf16>
    %cst_7 = arith.constant dense<0.000000e+00> : vector<8x2xf32>
    %11 = tpu.matmul %9, %10, %cst_7 {dimension_numbers = #tpu.dot_dimension_numbers<[1], [0], [0], [1], [0, 0, 1, 1], [], []>} : vector<8x256xbf16>, vector<256x2xbf16>, vector<8x2xf32> -> vector<8x2xf32>
    %c0_8 = arith.constant 0 : index
    %c0_9 = arith.constant 0 : index
    %12 = vector.load %arg5[%c0_8, %c0_9] : memref<1x2xf32, #tpu.memory_space<vmem>>, vector<1x2xf32>
    %13 = vector.broadcast %12 : vector<1x2xf32> to vector<8x2xf32>
    %14 = arith.addf %11, %13 : vector<8x2xf32>
    %c0_10 = arith.constant 0 : index
    %c0_11 = arith.constant 0 : index
    %15 = vector.load %arg6[%c0_10, %c0_11] : memref<8x2xf32, #tpu.memory_space<vmem>>, vector<8x2xf32>
    tpu.vector_store %arg6[%c0_10, %c0_11], %14 {strides = array<i32>} : memref<8x2xf32, #tpu.memory_space<vmem>>, vector<8x2xf32>,
    return
  }
  func.func @transform_0(%arg0: i32) -> (i32, i32) {
    %c0_i32 = arith.constant 0 : i32
    %c0_i32_0 = arith.constant 0 : i32
    return %arg0, %c0_i32 : i32, i32
  }
  func.func @transform_1(%arg0: i32) -> (i32, i32) {
    %c0_i32 = arith.constant 0 : i32
    %c0_i32_0 = arith.constant 0 : i32
    %c0_i32_1 = arith.constant 0 : i32
    return %c0_i32, %c0_i32_0 : i32, i32
  }
  func.func @transform_2(%arg0: i32) -> (i32, i32) {
    %c0_i32 = arith.constant 0 : i32
    %c0_i32_0 = arith.constant 0 : i32
    %c0_i32_1 = arith.constant 0 : i32
    return %c0_i32, %c0_i32_0 : i32, i32
  }
  func.func @transform_3(%arg0: i32) -> (i32, i32) {
    %c0_i32 = arith.constant 0 : i32
    %c0_i32_0 = arith.constant 0 : i32
    %c0_i32_1 = arith.constant 0 : i32
    return %c0_i32, %c0_i32_0 : i32, i32
  }
  func.func @transform_4(%arg0: i32) -> (i32, i32) {
    %c0_i32 = arith.constant 0 : i32
    %c0_i32_0 = arith.constant 0 : i32
    %c0_i32_1 = arith.constant 0 : i32
    return %c0_i32, %c0_i32_0 : i32, i32
  }
  func.func @transform_5(%arg0: i32) -> (i32, i32) {
    %c0_i32 = arith.constant 0 : i32
    %c0_i32_0 = arith.constant 0 : i32
    return %arg0, %c0_i32 : i32, i32
  }
}

</mosaic_0001>

<bundles_post_ra>
// kernel: aspp_s_forward.20
= control target key start
LH: loop header
LB: loop body
LE: loop exit
PB: predicated region body
PF: predicated region fallthrough
CT: control target
= control target key end

     0   :  { %s983_s12 = smov 0   ;;  %s1281_s0 = inlined_call_operand.vmem [shape: bf16[22016,27], index: 0, kind: input, shape index: {}]   ;;  %s1282_s1 = inlined_call_operand.vmem [shape: bf16[1,27,4], index: 1, kind: input, shape index: {}]   ;;  %s1283_s2 = inlined_call_operand.vmem [shape: f32[22016,4], index: 2, kind: output, shape index: {0}]   ;;  %s1284_s3 = inlined_call_operand.vmem [shape: f32[86,2,4], index: 3, kind: output, shape index: {1}]  }
   0x1 LB: > { %s989_s13 = sadd.s32 4294967295, %s960_s12   ;;  %p827_p0 = scmp.ge.s32.totalorder %s960_s12, 1  ;;  %s960_s12 = sphi %s983_s12, %s14_s12  }
   0x2   : > { %p141_p1 = scmp.lt.s32.totalorder %s960_s12, 87 }
   0x4   : > { %p142_p2 = pnand %p827_p0, %p141_p1 }
   0x5   : > { %v936_v0 = vld [vmem:[%s1282_s1] sm:$0xff] (!%p142_p2)   ;;  %vm362_vm0 = vcmask (!%p142_p2), 1044480   ;;  %v937_v1 = vld [vmem:[%s1282_s1 + $0x8] sm:$0x3f] (!%p142_p2)   ;;  %vm363_vm1 = vcmask (!%p142_p2), 1045504   ;;  %s828_s18 = sshll.u32 (!%p142_p2), %s989_s13, 5 }
   0x6   : > { %145 = sbr.rel (%p142_p2) target bundleno = 311 (0x137), region = 28  ;;  %887 = vmatprep.subr.bf16.mxu0 (!%p142_p2), %v936_v0  ;;  %923 = vmatprep.subr.bf16.mxu1 (!%p142_p2), %v936_v0  ;;  %v962_v2 = vmov (!%p142_p2), 65535   ;;  %p170_p3 = scmp.lt.s32.totalorder (!%p142_p2), %s828_s18, 2751  ;;  %vm313_vm2 = vcmask (!%p142_p2), 220160   ;;  %vm530_vm3 = vcmask (!%p142_p2), 31744   ;;  %vm632_vm4 = vcmask (!%p142_p2), 24576  }
   0x7   : > { %888 = vmatpush3.bf16.msra.mxu0 (!%p142_p2), %v936_v0  ;;  %v364_v3 = vsel (!%p142_p2), %vm362_vm0, 4294967295, %v962_v2  ;;  %925 = vmatpush3.bf16.msra.mxu1 (!%p142_p2), %v936_v0  ;;  %p181_p4 = scmp.lt.s32.totalorder (!%p142_p2), %s989_s13, 85 }
   0x8   : > { %v365_v4 = vsel (!%p142_p2), %vm363_vm1, %v364_v3, 0 }
   0x9   : > { %v367_v5 = vand.u32 (!%p142_p2), %v937_v1, %v365_v4 }
   0xb   : > { %889 = vmatprep.subr.bf16.mxu0 (!%p142_p2), %v367_v5  ;;  %924 = vmatprep.subr.bf16.mxu1 (!%p142_p2), %v367_v5 }
   0xc   : > { %890 = vmatpush3.bf16.msra.mxu0 (!%p142_p2), %v367_v5  ;;  %926 = vmatpush3.bf16.msra.mxu1 (!%p142_p2), %v367_v5 }
   0xd   : > { %s1286_s18 = smov (!%p170_p3, %s828_s18), 2751  ;;  %s1288_s13 = smov (!%p181_p4, %s989_s13), 85 }
   0xe   : > { %s829_s19 = sshll.u32 %s1286_s18, 2  ;;  %s831_s23 = sshll.u32 %s1286_s18, 3 }
   0xf   : > { %s1006_s22 = scalar_lea.vmem %s1281_s0, %s829_s19  ;;  %s1044_s26 = scalar_lea.vmem %s1283_s2, %s831_s23 }
  0x10   : > { %v938_v6 = vld [vmem:[%s1006_s22] sm:$0xff]   ;;  %v939_v7 = vld [vmem:[%s1006_s22 + $0x8] sm:$0xff]   ;;  %v940_v8 = vld [vmem:[%s1006_s22 + $0x10] sm:$0xff]   ;;  %s832_s27 = sshll.u32 %s1288_s13, 1 }
  0x11   : > { %891 = vmatprep.mubr.msk.bf16.mxu0 %vm313_vm2, %v938_v6  ;;  %v941_v9 = vld [vmem:[%s1006_s22 + $0x18] sm:$0xff]   ;;  %v942_v10 = vld [vmem:[%s1006_s22 + $0x20] sm:$0xff]   ;;  %v947_v12 = vld [vmem:[%s1006_s22 + $0x48] sm:$0xff]   ;;  %s184_s30 = scalar_lea.vmem %s1284_s3, %s832_s27 }
  0x12   : > { %892 = vmatmul.mubr.msk.bf16.vlgmr.msra.gmra.mrb[0].mxu0 %vm313_vm2, %v939_v7  ;;  %v946_v11 = vld [vmem:[%s1006_s22 + $0x40] sm:$0xff]   ;;  %v948_v13 = vld [vmem:[%s1006_s22 + $0x50] sm:$0xff]   ;;  %v943_v14 = vld [vmem:[%s1006_s22 + $0x28] sm:$0xff]  }
  0x13   : > { %895 = vmatprep.mubr.msk.bf16.mxu0 %vm313_vm2, %v940_v8  ;;  %907 = vmatprep.mubr.msk.bf16.mxu1 %vm313_vm2, %v946_v11  ;;  %v949_v15 = vld [vmem:[%s1006_s22 + $0x58] sm:$0xff]   ;;  %v944_v16 = vld [vmem:[%s1006_s22 + $0x30] sm:$0xff]   ;;  %v950_v17 = vld [vmem:[%s1006_s22 + $0x60] sm:$0xff]  }
  0x14   : > { %908 = vmatmul.mubr.msk.bf16.vlgmr.msra.gmra.mrb[0].mxu1 %vm313_vm2, %v947_v12  ;;  %v945_v18 = vld [vmem:[%s1006_s22 + $0x38] sm:$0xff]   ;;  %v951_v19 = vld [vmem:[%s1006_s22 + $0x68] sm:$0xff]   ;;  %v952_v20 = vld [vmem:[%s1006_s22 + $0x70] sm:$0xff]  }
  0x15   : > { %911 = vmatprep.mubr.msk.bf16.mxu1 %vm313_vm2, %v948_v13  ;;  %v953_v21 = vld [vmem:[%s1006_s22 + $0x78] sm:$0xff]  }
  0x1a   : > { %896 = vmatmul.mubr.msk.bf16.gmra.mrb[4].mxu0 %vm313_vm2, %v941_v9 }
  0x1b   : > { %899 = vmatprep.mubr.msk.bf16.mxu0 %vm313_vm2, %v942_v10 }
  0x1c   : > { %912 = vmatmul.mubr.msk.bf16.gmra.mrb[4].mxu1 %vm313_vm2, %v949_v15 }
  0x1d   : > { %915 = vmatprep.mubr.msk.bf16.mxu1 %vm313_vm2, %v950_v17 }
  0x22   : > { %900 = vmatmul.mubr.msk.bf16.gmra.mrb[8].mxu0 %vm313_vm2, %v943_v14 }
  0x23   : > { %903 = vmatprep.mubr.msk.bf16.mxu0 %vm313_vm2, %v944_v16 }
  0x24   : > { %916 = vmatmul.mubr.msk.bf16.gmra.mrb[8].mxu1 %vm313_vm2, %v951_v19 }
  0x25   : > { %919 = vmatprep.mubr.msk.bf16.mxu1 %vm313_vm2, %v952_v20 }
  0x2a   : > { %904 = vmatmul.mubr.msk.bf16.gmra.mrb[12].mxu0 %vm313_vm2, %v945_v18 }
  0x2c   : > { %920 = vmatmul.mubr.msk.bf16.gmra.mrb[12].mxu1 %vm313_vm2, %v953_v21 }
  0xe5   : > { %v893_v22 = vpop.f32.mrb[0].mxu0 }
  0xe6   : > { %533 = vst.msk [vmem:[%s1044_s26 + $0x10] sm:$0xff] %vm530_vm3, %v893_v22  ;;  %v403_v23 = vpop.f32.mrb[1].mxu0  ;;  %v636_v27 = vmul.f32 %v893_v22, %v893_v22  ;;  %v566_v32 = vsel %vm530_vm3, %v893_v22, 0.0 }
  0xe7   : > { %531 = vst.msk [vmem:[%s1044_s26] sm:$0xff] %vm530_vm3, %v403_v23  ;;  %v634_v24 = vmul.f32 %v403_v23, %v403_v23  ;;  %v894_v25 = vpop.f32.mrb[2].mxu0  ;;  %v563_v28 = vsel %vm530_vm3, %v403_v23, 0.0  ;;  %v1061_v41 = vpop.f32.mrb[0].mxu1 }
  0xe8   : > { %534 = vst.msk [vmem:[%s1044_s26 + $0x18] sm:$0xff] %vm530_vm3, %v894_v25  ;;  %v406_v26 = vpop.f32.mrb[3].mxu0  ;;  %v637_v34 = vmul.f32 %v894_v25, %v894_v25  ;;  %v669_v38 = vsel %vm530_vm3, %v636_v27, 0.0  ;;  %v568_v39 = vsel %vm530_vm3, %v894_v25, 0.0  ;;  %549 = vst.msk [vmem:[%s1044_s26 + $0x90] sm:$0xff] %vm530_vm3, %v1061_v41  ;;  %v1068_v45 = vpop.f32.mrb[1].mxu1 }
  0xe9   : > { %532 = vst.msk [vmem:[%s1044_s26 + $0x8] sm:$0xff] %vm530_vm3, %v406_v26  ;;  %v564_v29 = vsel %vm530_vm3, %v406_v26, 0.0  ;;  %v635_v30 = vmul.f32 %v406_v26, %v406_v26  ;;  %v666_v33 = vsel %vm530_vm3, %v634_v24, 0.0  ;;  %547 = vst.msk [vmem:[%s1044_s26 + $0x80] sm:$0xff] %vm530_vm3, %v1068_v45  ;;  %v1077_v50 = vpop.f32.mrb[2].mxu1 }
  0xea   : > { %v565_v31 = vadd.f32 %v564_v29, %v563_v28  ;;  %v671_v46 = vsel %vm530_vm3, %v637_v34, 0.0  ;;  %550 = vst.msk [vmem:[%s1044_s26 + $0x98] sm:$0xff] %vm530_vm3, %v1077_v50  ;;  %v1084_v54 = vpop.f32.mrb[3].mxu1 }
  0xeb   : > { %v667_v35 = vsel %vm530_vm3, %v635_v30, 0.0  ;;  %548 = vst.msk [vmem:[%s1044_s26 + $0x88] sm:$0xff] %vm530_vm3, %v1084_v54 }
  0xec   : > { %v567_v36 = vadd.f32 %v566_v32, %v565_v31  ;;  %v668_v37 = vadd.f32 %v667_v35, %v666_v33 }
  0xed   : > { %v897_v40 = vpop.f32.mrb[4].mxu0 }
  0xee   : > { %v670_v42 = vadd.f32 %v669_v38, %v668_v37  ;;  %537 = vst.msk [vmem:[%s1044_s26 + $0x30] sm:$0xff] %vm530_vm3, %v897_v40  ;;  %v419_v43 = vpop.f32.mrb[5].mxu0  ;;  %v569_v44 = vadd.f32 %v568_v39, %v567_v36  ;;  %v640_v55 = vmul.f32 %v897_v40, %v897_v40  ;;  %v574_v61 = vsel %vm530_vm3, %v897_v40, 0.0 }
  0xef   : > { %535 = vst.msk [vmem:[%s1044_s26 + $0x20] sm:$0xff] %vm530_vm3, %v419_v43  ;;  %v570_v47 = vsel %vm530_vm3, %v419_v43, 0.0  ;;  %v638_v48 = vmul.f32 %v419_v43, %v419_v43  ;;  %v898_v49 = vpop.f32.mrb[6].mxu0  ;;  %v1097_v5 = vpop.f32.mrb[4].mxu1 }
  0xf0   : > { %v571_v51 = vadd.f32 %v570_v47, %v569_v44  ;;  %v672_v52 = vadd.f32 %v671_v46, %v670_v42  ;;  %538 = vst.msk [vmem:[%s1044_s26 + $0x38] sm:$0xff] %vm530_vm3, %v898_v49  ;;  %v422_v53 = vpop.f32.mrb[7].mxu0  ;;  %v641_v62 = vmul.f32 %v898_v49, %v898_v49  ;;  %v677_v2 = vsel %vm530_vm3, %v640_v55, 0.0  ;;  %553 = vst.msk [vmem:[%s1044_s26 + $0xb0] sm:$0xff] %vm530_vm3, %v1097_v5  ;;  %v1104_v9 = vpop.f32.mrb[5].mxu1 }
  0xf1   : > { %v673_v56 = vsel %vm530_vm3, %v638_v48, 0.0  ;;  %536 = vst.msk [vmem:[%s1044_s26 + $0x28] sm:$0xff] %vm530_vm3, %v422_v53  ;;  %v572_v57 = vsel %vm530_vm3, %v422_v53, 0.0  ;;  %v639_v58 = vmul.f32 %v422_v53, %v422_v53  ;;  %v576_v3 = vsel %vm530_vm3, %v898_v49, 0.0  ;;  %551 = vst.msk [vmem:[%s1044_s26 + $0xa0] sm:$0xff] %vm530_vm3, %v1104_v9  ;;  %v1113_v14 = vpop.f32.mrb[6].mxu1 }
  0xf2   : > { %v674_v59 = vadd.f32 %v673_v56, %v672_v52  ;;  %v573_v60 = vadd.f32 %v572_v57, %v571_v51  ;;  %v679_v10 = vsel %vm530_vm3, %v641_v62, 0.0  ;;  %554 = vst.msk [vmem:[%s1044_s26 + $0xb8] sm:$0xff] %vm530_vm3, %v1113_v14  ;;  %v1120_v18 = vpop.f32.mrb[7].mxu1 }
  0xf3   : > { %v675_v63 = vsel %vm530_vm3, %v639_v58, 0.0  ;;  %552 = vst.msk [vmem:[%s1044_s26 + $0xa8] sm:$0xff] %vm530_vm3, %v1120_v18 }
  0xf4   : > { %v575_v0 = vadd.f32 %v574_v61, %v573_v60  ;;  %v676_v1 = vadd.f32 %v675_v63, %v674_v59  ;;  %v650_v60 = vmul.f32 %v1068_v45, %v1068_v45 }
  0xf5   : > { %v901_v4 = vpop.f32.mrb[8].mxu0 }
  0xf6   : > { %v678_v6 = vadd.f32 %v677_v2, %v676_v1  ;;  %541 = vst.msk [vmem:[%s1044_s26 + $0x50] sm:$0xff] %vm530_vm3, %v901_v4  ;;  %v435_v7 = vpop.f32.mrb[9].mxu0  ;;  %v577_v8 = vadd.f32 %v576_v3, %v575_v0  ;;  %v644_v19 = vmul.f32 %v901_v4, %v901_v4  ;;  %v582_v25 = vsel %vm530_vm3, %v901_v4, 0.0 }
  0xf7   : > { %539 = vst.msk [vmem:[%s1044_s26 + $0x40] sm:$0xff] %vm530_vm3, %v435_v7  ;;  %v578_v11 = vsel %vm530_vm3, %v435_v7, 0.0  ;;  %v642_v12 = vmul.f32 %v435_v7, %v435_v7  ;;  %v902_v13 = vpop.f32.mrb[10].mxu0  ;;  %v1133_v33 = vpop.f32.mrb[8].mxu1  ;;  %v594_v1 = vsel %vm530_vm3, %v1068_v45, 0.0 }
  0xf8   : > { %v579_v15 = vadd.f32 %v578_v11, %v577_v8  ;;  %v680_v16 = vadd.f32 %v679_v10, %v678_v6  ;;  %542 = vst.msk [vmem:[%s1044_s26 + $0x58] sm:$0xff] %vm530_vm3, %v902_v13  ;;  %v438_v17 = vpop.f32.mrb[11].mxu0  ;;  %v645_v26 = vmul.f32 %v902_v13, %v902_v13  ;;  %v685_v30 = vsel %vm530_vm3, %v644_v19, 0.0  ;;  %557 = vst.msk [vmem:[%s1044_s26 + $0xd0] sm:$0xff] %vm530_vm3, %v1133_v33  ;;  %v1140_v37 = vpop.f32.mrb[9].mxu1 }
  0xf9   : > { %v681_v20 = vsel %vm530_vm3, %v642_v12, 0.0  ;;  %540 = vst.msk [vmem:[%s1044_s26 + $0x48] sm:$0xff] %vm530_vm3, %v438_v17  ;;  %v580_v21 = vsel %vm530_vm3, %v438_v17, 0.0  ;;  %v643_v22 = vmul.f32 %v438_v17, %v438_v17  ;;  %v584_v31 = vsel %vm530_vm3, %v902_v13, 0.0  ;;  %555 = vst.msk [vmem:[%s1044_s26 + $0xc0] sm:$0xff] %vm530_vm3, %v1140_v37  ;;  %v1149_v43 = vpop.f32.mrb[10].mxu1 }
  0xfa   : > { %v682_v23 = vadd.f32 %v681_v20, %v680_v16  ;;  %v581_v24 = vadd.f32 %v580_v21, %v579_v15  ;;  %v687_v38 = vsel %vm530_vm3, %v645_v26, 0.0  ;;  %558 = vst.msk [vmem:[%s1044_s26 + $0xd8] sm:$0xff] %vm530_vm3, %v1149_v43  ;;  %v1156_v48 = vpop.f32.mrb[11].mxu1  ;;  %v697_v8 = vsel %vm530_vm3, %v650_v60, 0.0 }
  0xfb   : > { %v683_v27 = vsel %vm530_vm3, %v643_v22, 0.0  ;;  %556 = vst.msk [vmem:[%s1044_s26 + $0xc8] sm:$0xff] %vm530_vm3, %v1156_v48  ;;  %v651_v10 = vmul.f32 %v1084_v54, %v1084_v54  ;;  %v652_v15 = vmul.f32 %v1061_v41, %v1061_v41  ;;  %v596_v16 = vsel %vm530_vm3, %v1084_v54, 0.0 }
  0xfc   : > { %v583_v28 = vadd.f32 %v582_v25, %v581_v24  ;;  %v684_v29 = vadd.f32 %v683_v27, %v682_v23  ;;  %v598_v19 = vsel %vm530_vm3, %v1061_v41, 0.0  ;;  %v653_v22 = vmul.f32 %v1077_v50, %v1077_v50 }
  0xfd   : > { %v905_v32 = vpop.f32.mrb[12].mxu0  ;;  %v699_v23 = vsel %vm530_vm3, %v651_v10, 0.0  ;;  %v654_v24 = vmul.f32 %v1104_v9, %v1104_v9  ;;  %v701_v27 = vsel %vm530_vm3, %v652_v15, 0.0  ;;  %v600_v41 = vsel %vm530_vm3, %v1077_v50, 0.0 }
  0xfe   : > { %v686_v34 = vadd.f32 %v685_v30, %v684_v29  ;;  %545 = vst.msk [vmem:[%s1044_s26 + $0x70] sm:$0xff] %vm530_vm3, %v905_v32  ;;  %v451_v35 = vpop.f32.mrb[13].mxu0  ;;  %v585_v36 = vadd.f32 %v584_v31, %v583_v28  ;;  %v648_v49 = vmul.f32 %v905_v32, %v905_v32  ;;  %v590_v57 = vsel %vm530_vm3, %v905_v32, 0.0 }
  0xff   : > { %543 = vst.msk [vmem:[%s1044_s26 + $0x60] sm:$0xff] %vm530_vm3, %v451_v35  ;;  %v586_v39 = vsel %vm530_vm3, %v451_v35, 0.0  ;;  %v646_v40 = vmul.f32 %v451_v35, %v451_v35  ;;  %v906_v42 = vpop.f32.mrb[14].mxu0  ;;  %v1173_v2 = vpop.f32.mrb[12].mxu1  ;;  %v602_v28 = vsel %vm530_vm3, %v1104_v9, 0.0  ;;  %v703_v31 = vsel %vm530_vm3, %v653_v22, 0.0 }
 0x100   : > { %v587_v44 = vadd.f32 %v586_v39, %v585_v36  ;;  %v688_v46 = vadd.f32 %v687_v38, %v686_v34  ;;  %546 = vst.msk [vmem:[%s1044_s26 + $0x78] sm:$0xff] %vm530_vm3, %v906_v42  ;;  %v454_v47 = vpop.f32.mrb[15].mxu0  ;;  %v649_v58 = vmul.f32 %v906_v42, %v906_v42  ;;  %v693_v63 = vsel %vm530_vm3, %v648_v49, 0.0  ;;  %561 = vst.msk [vmem:[%s1044_s26 + $0xf0] sm:$0xff] %vm530_vm3, %v1173_v2  ;;  %v1178_v6 = vpop.f32.mrb[13].mxu1 }
 0x101   : > { %v689_v51 = vsel %vm530_vm3, %v646_v40, 0.0  ;;  %544 = vst.msk [vmem:[%s1044_s26 + $0x68] sm:$0xff] %vm530_vm3, %v454_v47  ;;  %v588_v52 = vsel %vm530_vm3, %v454_v47, 0.0  ;;  %v647_v53 = vmul.f32 %v454_v47, %v454_v47  ;;  %v592_v0 = vsel %vm530_vm3, %v906_v42, 0.0  ;;  %559 = vst.msk [vmem:[%s1044_s26 + $0xe0] sm:$0xff] %vm530_vm3, %v1178_v6  ;;  %v1187_v45 = vpop.f32.mrb[14].mxu1 }
 0x102   : > { %v690_v55 = vadd.f32 %v689_v51, %v688_v46  ;;  %v589_v56 = vadd.f32 %v588_v52, %v587_v44  ;;  %v695_v7 = vsel %vm530_vm3, %v649_v58, 0.0  ;;  %562 = vst.msk [vmem:[%s1044_s26 + $0xf8] sm:$0xff] %vm530_vm3, %v1187_v45  ;;  %v1192_v13 = vpop.f32.mrb[15].mxu1  ;;  %v665_v17 = vmul.f32 %v1187_v45, %v1187_v45 }
 0x103   : > { %v691_v59 = vsel %vm530_vm3, %v647_v53, 0.0  ;;  %560 = vst.msk [vmem:[%s1044_s26 + $0xe8] sm:$0xff] %vm530_vm3, %v1192_v13  ;;  %v705_v32 = vsel %vm530_vm3, %v654_v24, 0.0  ;;  %v655_v34 = vmul.f32 %v1120_v18, %v1120_v18  ;;  %v656_v38 = vmul.f32 %v1097_v5, %v1097_v5 }
 0x104   : > { %v591_v61 = vadd.f32 %v590_v57, %v589_v56  ;;  %v692_v62 = vadd.f32 %v691_v59, %v690_v55  ;;  %v1211_v54 = vsel %vm530_vm3, %v665_v17, 0.0  ;;  %v604_v50 = vsel %vm530_vm3, %v1120_v18, 0.0 }
 0x105   : > { %v606_v9 = vsel %vm530_vm3, %v1097_v5, 0.0  ;;  %v657_v42 = vmul.f32 %v1113_v14, %v1113_v14  ;;  %v707_v44 = vsel %vm530_vm3, %v655_v34, 0.0  ;;  %v658_v46 = vmul.f32 %v1140_v37, %v1140_v37 }
 0x106   : > { %v694_v3 = vadd.f32 %v693_v63, %v692_v62  ;;  %v593_v4 = vadd.f32 %v592_v0, %v591_v61  ;;  %v709_v51 = vsel %vm530_vm3, %v656_v38, 0.0  ;;  %v608_v18 = vsel %vm530_vm3, %v1113_v14, 0.0 }
 0x107   : > { %v610_v52 = vsel %vm530_vm3, %v1140_v37, 0.0  ;;  %v711_v55 = vsel %vm530_vm3, %v657_v42, 0.0  ;;  %v713_v56 = vsel %vm530_vm3, %v658_v46, 0.0  ;;  %v659_v57 = vmul.f32 %v1156_v48, %v1156_v48 }
 0x108   : > { %v595_v11 = vadd.f32 %v594_v1, %v593_v4  ;;  %v696_v12 = vadd.f32 %v695_v7, %v694_v3  ;;  %v660_v60 = vmul.f32 %v1133_v33, %v1133_v33  ;;  %v612_v14 = vsel %vm530_vm3, %v1156_v48, 0.0 }
 0x109   : > { %v614_v37 = vsel %vm530_vm3, %v1133_v33, 0.0  ;;  %v661_v63 = vmul.f32 %v1149_v43, %v1149_v43  ;;  %v715_v0 = vsel %vm530_vm3, %v659_v57, 0.0  ;;  %v662_v1 = vmul.f32 %v1178_v6, %v1178_v6 }
 0x10a   : > { %v698_v20 = vadd.f32 %v697_v8, %v696_v12  ;;  %v597_v21 = vadd.f32 %v596_v16, %v595_v11  ;;  %v717_v7 = vsel %vm530_vm3, %v660_v60, 0.0  ;;  %v616_v48 = vsel %vm530_vm3, %v1149_v43, 0.0 }
 0x10b   : > { %v618_v8 = vsel %vm530_vm3, %v1178_v6, 0.0  ;;  %v719_v11 = vsel %vm530_vm3, %v661_v63, 0.0  ;;  %v721_v12 = vsel %vm530_vm3, %v662_v1, 0.0  ;;  %v663_v15 = vmul.f32 %v1192_v13, %v1192_v13 }
 0x10c   : > { %v599_v25 = vadd.f32 %v598_v19, %v597_v21  ;;  %v700_v26 = vadd.f32 %v699_v23, %v698_v20  ;;  %v664_v19 = vmul.f32 %v1173_v2, %v1173_v2  ;;  %v620_v43 = vsel %vm530_vm3, %v1192_v13, 0.0 }
 0x10d   : > { %v622_v21 = vsel %vm530_vm3, %v1173_v2, 0.0  ;;  %v723_v22 = vsel %vm530_vm3, %v663_v15, 0.0 }
 0x10e   : > { %v702_v29 = vadd.f32 %v701_v27, %v700_v26  ;;  %v601_v30 = vadd.f32 %v600_v41, %v599_v25  ;;  %v725_v25 = vsel %vm530_vm3, %v664_v19, 0.0  ;;  %v624_v26 = vsel %vm530_vm3, %v1187_v45, 0.0 }
 0x110   : > { %v603_v35 = vadd.f32 %v602_v28, %v601_v30  ;;  %v704_v36 = vadd.f32 %v703_v31, %v702_v29 }
 0x112   : > { %v706_v39 = vadd.f32 %v705_v32, %v704_v36  ;;  %v605_v40 = vadd.f32 %v604_v50, %v603_v35 }
 0x114   : > { %v607_v47 = vadd.f32 %v606_v9, %v605_v40  ;;  %v708_v49 = vadd.f32 %v707_v44, %v706_v39 }
 0x116   : > { %v710_v53 = vadd.f32 %v709_v51, %v708_v49  ;;  %v609_v5 = vadd.f32 %v608_v18, %v607_v47 }
 0x118   : > { %v611_v58 = vadd.f32 %v610_v52, %v609_v5  ;;  %v712_v59 = vadd.f32 %v711_v55, %v710_v53 }
 0x11a   : > { %v714_v61 = vadd.f32 %v713_v56, %v712_v59  ;;  %v613_v62 = vadd.f32 %v612_v14, %v611_v58 }
 0x11c   : > { %v615_v3 = vadd.f32 %v614_v37, %v613_v62  ;;  %v716_v4 = vadd.f32 %v715_v0, %v714_v61 }
 0x11e   : > { %v718_v10 = vadd.f32 %v717_v7, %v716_v4  ;;  %v617_v33 = vadd.f32 %v616_v48, %v615_v3 }
 0x120   : > { %v619_v16 = vadd.f32 %v618_v8, %v617_v33  ;;  %v720_v17 = vadd.f32 %v719_v11, %v718_v10 }
 0x122   : > { %v722_v6 = vadd.f32 %v721_v12, %v720_v17  ;;  %v621_v20 = vadd.f32 %v620_v43, %v619_v16 }
 0x124   : > { %v623_v23 = vadd.f32 %v622_v21, %v621_v20  ;;  %v724_v24 = vadd.f32 %v723_v22, %v722_v6 }
 0x126   : > { %v625_v27 = vadd.f32 %v624_v26, %v623_v23  ;;  %v726_v41 = vadd.f32 %v725_v25, %v724_v24 }
 0x128   : > { %v626_v28 = vrot.slane %v625_v27, 4  ;;  %v728_v13 = vadd.f32 %v1211_v54, %v726_v41 }
 0x12a   : > { %v627_v29 = vadd.f32 %v626_v28, %v625_v27  ;;  %v729_v30 = vrot.slane %v728_v13, 4 }
 0x12c   : > { %v628_v31 = vrot.slane %v627_v29, 2  ;;  %v730_v2 = vadd.f32 %v729_v30, %v728_v13 }
 0x12e   : > { %v629_v32 = vadd.f32 %v628_v31, %v627_v29  ;;  %v731_v34 = vrot.slane %v730_v2, 2 }
 0x130   : > { %v630_v35 = vrot.slane %v629_v32, 1  ;;  %v732_v36 = vadd.f32 %v731_v34, %v730_v2 }
 0x132   : > { %v631_v45 = vadd.f32 %v630_v35, %v629_v32  ;;  %v733_v38 = vrot.slane %v732_v36, 1 }
 0x134   : > { %633 = vst.msk [vmem:[%s184_s30] sm:$0x1] %vm632_vm4, %v631_v45  ;;  %v734_v50 = vadd.f32 %v733_v38, %v732_v36 }
 0x136   : > { %735 = vst.msk [vmem:[%s184_s30 + $0x1] sm:$0x1] %vm632_vm4, %v734_v50 }
 0x137 PF: > { %s14_s12 = sadd.s32 1, %s960_s12  }
 0x138   : > { %p11_p5 = scmp.ge.s32.totalorder %s14_s12, 88  }
 0x13a   :  { %13 = sbr.rel (!%p11_p5) target bundleno = 1 (0x1), region = 70 }

// kernel: aspp_s_forward.21
= control target key start
LH: loop header
LB: loop body
LE: loop exit
PB: predicated region body
PF: predicated region fallthrough
CT: control target
= control target key end

     0   :  { %s646_s12 = smov 0   ;;  %s841_s0 = inlined_call_operand.vmem [shape: f32[22016,4], index: 0, kind: input, shape index: {}]   ;;  %s842_s1 = inlined_call_operand.vmem [shape: f32[1,4], index: 1, kind: input, shape index: {}]   ;;  %s843_s2 = inlined_call_operand.vmem [shape: f32[1,4], index: 2, kind: input, shape index: {}]   ;;  %s844_s3 = inlined_call_operand.vmem [shape: bf16[22016,4], index: 3, kind: output, shape index: {}]  }
   0x1 LB: > { %s533_s13 = sadd.s32 4294967295, %s624_s12   ;;  %p537_p0 = scmp.ge.s32.totalorder %s624_s12, 1  ;;  %s624_s12 = sphi %s646_s12, %s13_s12  }
   0x2   : > { %p138_p1 = scmp.lt.s32.totalorder %s624_s12, 87 }
   0x4   : > { %p139_p2 = pnand %p537_p0, %p138_p1 }
   0x5   : > { %s538_s14 = sshll.u32 (!%p139_p2), %s533_s13, 5  ;;  %v660_v0 = vld [vmem:[%s842_s1] ss:$0 sm:$0xff] (!%p139_p2)  ;;  %vm444_vm0 = vcmask (!%p139_p2), 27648  }
   0x6   : > { %142 = sbr.rel (%p139_p2) target bundleno = 56 (0x38), region = 32  ;;  %p163_p3 = scmp.lt.s32.totalorder (!%p139_p2), %s538_s14, 2751  ;;  %v670_v1 = vld [vmem:[%s843_s2] ss:$0 sm:$0xff] (!%p139_p2) }
   0xd   : > { %s846_s14 = smov (!%p163_p3, %s538_s14), 2751 }
   0xe   : > { %s539_s15 = sshll.u32 %s846_s14, 3  ;;  %s541_s23 = sshll.u32 %s846_s14, 2 }
   0xf   : > { %s665_s20 = scalar_lea.vmem %s841_s0, %s539_s15  ;;  %s699_s26 = scalar_lea.vmem %s844_s3, %s541_s23 }
  0x10   : > { %v174_v2 = vld [vmem:[%s665_s20] sm:$0xff]  ;;  %v175_v3 = vld [vmem:[%s665_s20 + $0x8] sm:$0xff]  ;;  %v176_v4 = vld [vmem:[%s665_s20 + $0x10] sm:$0xff] }
  0x11   : > { %v213_v5 = vmul.f32 %v660_v0, %v174_v2  ;;  %v214_v6 = vmul.f32 %v660_v0, %v175_v3  ;;  %v215_v7 = vmul.f32 %v660_v0, %v176_v4  ;;  %v177_v8 = vld [vmem:[%s665_s20 + $0x18] sm:$0xff]  ;;  %v178_v9 = vld [vmem:[%s665_s20 + $0x20] sm:$0xff]  ;;  %v179_v10 = vld [vmem:[%s665_s20 + $0x28] sm:$0xff] }
  0x12   : > { %v216_v11 = vmul.f32 %v660_v0, %v177_v8  ;;  %v217_v12 = vmul.f32 %v660_v0, %v178_v9  ;;  %v218_v13 = vmul.f32 %v660_v0, %v179_v10  ;;  %v180_v14 = vld [vmem:[%s665_s20 + $0x30] sm:$0xff]  ;;  %v181_v15 = vld [vmem:[%s665_s20 + $0x38] sm:$0xff]  ;;  %v182_v32 = vld [vmem:[%s665_s20 + $0x40] sm:$0xff] }
  0x13   : > { %v252_v16 = vadd.f32 %v670_v1, %v213_v5  ;;  %v253_v17 = vadd.f32 %v670_v1, %v214_v6  ;;  %v254_v18 = vadd.f32 %v670_v1, %v215_v7  ;;  %v219_v19 = vmul.f32 %v660_v0, %v180_v14  ;;  %v183_v33 = vld [vmem:[%s665_s20 + $0x48] sm:$0xff]  ;;  %v184_v34 = vld [vmem:[%s665_s20 + $0x50] sm:$0xff]  ;;  %v185_v39 = vld [vmem:[%s665_s20 + $0x58] sm:$0xff] }
  0x14   : > { %v255_v20 = vadd.f32 %v670_v1, %v216_v11  ;;  %v256_v21 = vadd.f32 %v670_v1, %v217_v12  ;;  %v257_v22 = vadd.f32 %v670_v1, %v218_v13  ;;  %v220_v23 = vmul.f32 %v660_v0, %v181_v15  ;;  %v186_v40 = vld [vmem:[%s665_s20 + $0x60] sm:$0xff]  ;;  %v187_v41 = vld [vmem:[%s665_s20 + $0x68] sm:$0xff]  ;;  %v188_v46 = vld [vmem:[%s665_s20 + $0x70] sm:$0xff] }
  0x15   : > { %v284_v24 = vmax.f32 %v252_v16, 0.0  ;;  %v285_v25 = vmax.f32 %v253_v17, 0.0  ;;  %v286_v26 = vmax.f32 %v254_v18, 0.0  ;;  %v258_v27 = vadd.f32 %v670_v1, %v219_v19  ;;  %v189_v51 = vld [vmem:[%s665_s20 + $0x78] sm:$0xff]  ;;  %v190_v10 = vld [vmem:[%s665_s20 + $0x80] sm:$0xff]  ;;  %v191_v11 = vld [vmem:[%s665_s20 + $0x88] sm:$0xff] }
  0x16   : > { %v287_v28 = vmax.f32 %v255_v20, 0.0  ;;  %v288_v29 = vmax.f32 %v256_v21, 0.0  ;;  %v289_v30 = vmax.f32 %v257_v22, 0.0  ;;  %v259_v31 = vadd.f32 %v670_v1, %v220_v23  ;;  %v192_v12 = vld [vmem:[%s665_s20 + $0x90] sm:$0xff]  ;;  %v193_v17 = vld [vmem:[%s665_s20 + $0x98] sm:$0xff]  ;;  %v194_v18 = vld [vmem:[%s665_s20 + $0xa0] sm:$0xff] }
  0x17   : > { %v578_v35 = vpack.c.bf16 %v284_v24, %v284_v24  ;;  %v579_v36 = vpack.c.bf16 %v285_v25, %v285_v25  ;;  %v580_v37 = vpack.c.bf16 %v286_v26, %v286_v26  ;;  %v290_v38 = vmax.f32 %v258_v27, 0.0  ;;  %v195_v19 = vld [vmem:[%s665_s20 + $0xa8] sm:$0xff]  ;;  %v196_v24 = vld [vmem:[%s665_s20 + $0xb0] sm:$0xff] }
  0x18   : > { %v581_v42 = vpack.c.bf16 %v287_v28, %v287_v28  ;;  %v582_v43 = vpack.c.bf16 %v288_v29, %v288_v29  ;;  %v583_v44 = vpack.c.bf16 %v289_v30, %v289_v30  ;;  %v291_v45 = vmax.f32 %v259_v31, 0.0  ;;  %v197_v29 = vld [vmem:[%s665_s20 + $0xb8] sm:$0xff] }
  0x19   : > { %445 = vst.msk [vmem:[%s699_s26] sm:$0xf] %vm444_vm0, %v578_v35  ;;  %446 = vst.msk [vmem:[%s699_s26 + $0x4] sm:$0xf] %vm444_vm0, %v579_v36  ;;  %v584_v47 = vpack.c.bf16 %v290_v38, %v290_v38  ;;  %v221_v48 = vmul.f32 %v660_v0, %v182_v32  ;;  %v222_v49 = vmul.f32 %v660_v0, %v183_v33 }
  0x1a   : > { %447 = vst.msk [vmem:[%s699_s26 + $0x8] sm:$0xf] %vm444_vm0, %v580_v37  ;;  %v223_v50 = vmul.f32 %v660_v0, %v184_v34  ;;  %448 = vst.msk [vmem:[%s699_s26 + $0xc] sm:$0xf] %vm444_vm0, %v581_v42  ;;  %v585_v52 = vpack.c.bf16 %v291_v45, %v291_v45  ;;  %v224_v53 = vmul.f32 %v660_v0, %v185_v39 }
  0x1b   : > { %449 = vst.msk [vmem:[%s699_s26 + $0x10] sm:$0xf] %vm444_vm0, %v582_v43  ;;  %450 = vst.msk [vmem:[%s699_s26 + $0x14] sm:$0xf] %vm444_vm0, %v583_v44  ;;  %v225_v54 = vmul.f32 %v660_v0, %v186_v40  ;;  %v226_v55 = vmul.f32 %v660_v0, %v187_v41  ;;  %v260_v56 = vadd.f32 %v670_v1, %v221_v48 }
  0x1c   : > { %451 = vst.msk [vmem:[%s699_s26 + $0x18] sm:$0xf] %vm444_vm0, %v584_v47  ;;  %v261_v57 = vadd.f32 %v670_v1, %v222_v49  ;;  %v262_v58 = vadd.f32 %v670_v1, %v223_v50  ;;  %v227_v59 = vmul.f32 %v660_v0, %v188_v46  ;;  %452 = vst.msk [vmem:[%s699_s26 + $0x1c] sm:$0xf] %vm444_vm0, %v585_v52  ;;  %v198_v50 = vld [vmem:[%s665_s20 + $0xc0] sm:$0xff]  ;;  %v200_v52 = vld [vmem:[%s665_s20 + $0xd0] sm:$0xff] }
  0x1d   : > { %v263_v60 = vadd.f32 %v670_v1, %v224_v53  ;;  %v264_v61 = vadd.f32 %v670_v1, %v225_v54  ;;  %v265_v62 = vadd.f32 %v670_v1, %v226_v55  ;;  %v228_v63 = vmul.f32 %v660_v0, %v189_v51  ;;  %v199_v51 = vld [vmem:[%s665_s20 + $0xc8] sm:$0xff] }
  0x1e   : > { %v292_v2 = vmax.f32 %v260_v56, 0.0  ;;  %v293_v3 = vmax.f32 %v261_v57, 0.0  ;;  %v294_v4 = vmax.f32 %v262_v58, 0.0  ;;  %v266_v5 = vadd.f32 %v670_v1, %v227_v59  ;;  %v201_v57 = vld [vmem:[%s665_s20 + $0xd8] sm:$0xff]  ;;  %v202_v58 = vld [vmem:[%s665_s20 + $0xe0] sm:$0xff]  ;;  %v203_v59 = vld [vmem:[%s665_s20 + $0xe8] sm:$0xff] }
  0x1f   : > { %v295_v6 = vmax.f32 %v263_v60, 0.0  ;;  %v296_v7 = vmax.f32 %v264_v61, 0.0  ;;  %v297_v8 = vmax.f32 %v265_v62, 0.0  ;;  %v267_v9 = vadd.f32 %v670_v1, %v228_v63 }
  0x20   : > { %v586_v13 = vpack.c.bf16 %v292_v2, %v292_v2  ;;  %v587_v14 = vpack.c.bf16 %v293_v3, %v293_v3  ;;  %v588_v15 = vpack.c.bf16 %v294_v4, %v294_v4  ;;  %v298_v16 = vmax.f32 %v266_v5, 0.0  ;;  %v204_v2 = vld [vmem:[%s665_s20 + $0xf0] sm:$0xff] }
  0x21   : > { %v589_v20 = vpack.c.bf16 %v295_v6, %v295_v6  ;;  %v590_v21 = vpack.c.bf16 %v296_v7, %v296_v7  ;;  %v591_v22 = vpack.c.bf16 %v297_v8, %v297_v8  ;;  %v299_v23 = vmax.f32 %v267_v9, 0.0  ;;  %v205_v7 = vld [vmem:[%s665_s20 + $0xf8] sm:$0xff] }
  0x22   : > { %453 = vst.msk [vmem:[%s699_s26 + $0x20] sm:$0xf] %vm444_vm0, %v586_v13  ;;  %454 = vst.msk [vmem:[%s699_s26 + $0x24] sm:$0xf] %vm444_vm0, %v587_v14  ;;  %v592_v25 = vpack.c.bf16 %v298_v16, %v298_v16  ;;  %v229_v26 = vmul.f32 %v660_v0, %v190_v10  ;;  %v230_v27 = vmul.f32 %v660_v0, %v191_v11 }
  0x23   : > { %455 = vst.msk [vmem:[%s699_s26 + $0x28] sm:$0xf] %vm444_vm0, %v588_v15  ;;  %v231_v28 = vmul.f32 %v660_v0, %v192_v12  ;;  %456 = vst.msk [vmem:[%s699_s26 + $0x2c] sm:$0xf] %vm444_vm0, %v589_v20  ;;  %v593_v30 = vpack.c.bf16 %v299_v23, %v299_v23  ;;  %v232_v31 = vmul.f32 %v660_v0, %v193_v17 }
  0x24   : > { %457 = vst.msk [vmem:[%s699_s26 + $0x30] sm:$0xf] %vm444_vm0, %v590_v21  ;;  %458 = vst.msk [vmem:[%s699_s26 + $0x34] sm:$0xf] %vm444_vm0, %v591_v22  ;;  %v233_v32 = vmul.f32 %v660_v0, %v194_v18  ;;  %v234_v33 = vmul.f32 %v660_v0, %v195_v19  ;;  %v268_v34 = vadd.f32 %v670_v1, %v229_v26 }
  0x25   : > { %459 = vst.msk [vmem:[%s699_s26 + $0x38] sm:$0xf] %vm444_vm0, %v592_v25  ;;  %v269_v35 = vadd.f32 %v670_v1, %v230_v27  ;;  %v270_v36 = vadd.f32 %v670_v1, %v231_v28  ;;  %v235_v37 = vmul.f32 %v660_v0, %v196_v24  ;;  %460 = vst.msk [vmem:[%s699_s26 + $0x3c] sm:$0xf] %vm444_vm0, %v593_v30 }
  0x26   : > { %v271_v38 = vadd.f32 %v670_v1, %v232_v31  ;;  %v272_v39 = vadd.f32 %v670_v1, %v233_v32  ;;  %v273_v40 = vadd.f32 %v670_v1, %v234_v33  ;;  %v236_v41 = vmul.f32 %v660_v0, %v197_v29 }
  0x27   : > { %v300_v42 = vmax.f32 %v268_v34, 0.0  ;;  %v301_v43 = vmax.f32 %v269_v35, 0.0  ;;  %v302_v44 = vmax.f32 %v270_v36, 0.0  ;;  %v274_v45 = vadd.f32 %v670_v1, %v235_v37 }
  0x28   : > { %v303_v46 = vmax.f32 %v271_v38, 0.0  ;;  %v304_v47 = vmax.f32 %v272_v39, 0.0  ;;  %v305_v48 = vmax.f32 %v273_v40, 0.0  ;;  %v275_v49 = vadd.f32 %v670_v1, %v236_v41 }
  0x29   : > { %v594_v53 = vpack.c.bf16 %v300_v42, %v300_v42  ;;  %v595_v54 = vpack.c.bf16 %v301_v43, %v301_v43  ;;  %v596_v55 = vpack.c.bf16 %v302_v44, %v302_v44  ;;  %v306_v56 = vmax.f32 %v274_v45, 0.0 }
  0x2a   : > { %v597_v60 = vpack.c.bf16 %v303_v46, %v303_v46  ;;  %v598_v61 = vpack.c.bf16 %v304_v47, %v304_v47  ;;  %v599_v62 = vpack.c.bf16 %v305_v48, %v305_v48  ;;  %v307_v63 = vmax.f32 %v275_v49, 0.0 }
  0x2b   : > { %461 = vst.msk [vmem:[%s699_s26 + $0x40] sm:$0xf] %vm444_vm0, %v594_v53  ;;  %462 = vst.msk [vmem:[%s699_s26 + $0x44] sm:$0xf] %vm444_vm0, %v595_v54  ;;  %v600_v3 = vpack.c.bf16 %v306_v56, %v306_v56  ;;  %v237_v4 = vmul.f32 %v660_v0, %v198_v50  ;;  %v238_v5 = vmul.f32 %v660_v0, %v199_v51 }
  0x2c   : > { %463 = vst.msk [vmem:[%s699_s26 + $0x48] sm:$0xf] %vm444_vm0, %v596_v55  ;;  %v239_v6 = vmul.f32 %v660_v0, %v200_v52  ;;  %464 = vst.msk [vmem:[%s699_s26 + $0x4c] sm:$0xf] %vm444_vm0, %v597_v60  ;;  %v601_v8 = vpack.c.bf16 %v307_v63, %v307_v63  ;;  %v240_v9 = vmul.f32 %v660_v0, %v201_v57 }
  0x2d   : > { %465 = vst.msk [vmem:[%s699_s26 + $0x50] sm:$0xf] %vm444_vm0, %v598_v61  ;;  %466 = vst.msk [vmem:[%s699_s26 + $0x54] sm:$0xf] %vm444_vm0, %v599_v62  ;;  %v241_v10 = vmul.f32 %v660_v0, %v202_v58  ;;  %v242_v11 = vmul.f32 %v660_v0, %v203_v59  ;;  %v276_v12 = vadd.f32 %v670_v1, %v237_v4 }
  0x2e   : > { %467 = vst.msk [vmem:[%s699_s26 + $0x58] sm:$0xf] %vm444_vm0, %v600_v3  ;;  %v277_v13 = vadd.f32 %v670_v1, %v238_v5  ;;  %v278_v14 = vadd.f32 %v670_v1, %v239_v6  ;;  %v243_v15 = vmul.f32 %v660_v0, %v204_v2  ;;  %468 = vst.msk [vmem:[%s699_s26 + $0x5c] sm:$0xf] %vm444_vm0, %v601_v8 }
  0x2f   : > { %v279_v16 = vadd.f32 %v670_v1, %v240_v9  ;;  %v280_v17 = vadd.f32 %v670_v1, %v241_v10  ;;  %v281_v18 = vadd.f32 %v670_v1, %v242_v11  ;;  %v244_v19 = vmul.f32 %v660_v0, %v205_v7 }
  0x30   : > { %v308_v20 = vmax.f32 %v276_v12, 0.0  ;;  %v309_v21 = vmax.f32 %v277_v13, 0.0  ;;  %v310_v22 = vmax.f32 %v278_v14, 0.0  ;;  %v282_v23 = vadd.f32 %v670_v1, %v243_v15 }
  0x31   : > { %v311_v24 = vmax.f32 %v279_v16, 0.0  ;;  %v312_v25 = vmax.f32 %v280_v17, 0.0  ;;  %v313_v26 = vmax.f32 %v281_v18, 0.0  ;;  %v283_v27 = vadd.f32 %v670_v1, %v244_v19 }
  0x32   : > { %v602_v28 = vpack.c.bf16 %v308_v20, %v308_v20  ;;  %v603_v29 = vpack.c.bf16 %v309_v21, %v309_v21  ;;  %v604_v0 = vpack.c.bf16 %v310_v22, %v310_v22  ;;  %v314_v30 = vmax.f32 %v282_v23, 0.0 }
  0x33   : > { %v605_v31 = vpack.c.bf16 %v311_v24, %v311_v24  ;;  %v606_v32 = vpack.c.bf16 %v312_v25, %v312_v25  ;;  %v607_v33 = vpack.c.bf16 %v313_v26, %v313_v26  ;;  %v315_v34 = vmax.f32 %v283_v27, 0.0 }
  0x34   : > { %469 = vst.msk [vmem:[%s699_s26 + $0x60] sm:$0xf] %vm444_vm0, %v602_v28  ;;  %470 = vst.msk [vmem:[%s699_s26 + $0x64] sm:$0xf] %vm444_vm0, %v603_v29  ;;  %v608_v35 = vpack.c.bf16 %v314_v30, %v314_v30 }
  0x35   : > { %471 = vst.msk [vmem:[%s699_s26 + $0x68] sm:$0xf] %vm444_vm0, %v604_v0  ;;  %472 = vst.msk [vmem:[%s699_s26 + $0x6c] sm:$0xf] %vm444_vm0, %v605_v31  ;;  %v609_v1 = vpack.c.bf16 %v315_v34, %v315_v34 }
  0x36   : > { %473 = vst.msk [vmem:[%s699_s26 + $0x70] sm:$0xf] %vm444_vm0, %v606_v32  ;;  %474 = vst.msk [vmem:[%s699_s26 + $0x74] sm:$0xf] %vm444_vm0, %v607_v33 }
  0x37   : > { %475 = vst.msk [vmem:[%s699_s26 + $0x78] sm:$0xf] %vm444_vm0, %v608_v35  ;;  %476 = vst.msk [vmem:[%s699_s26 + $0x7c] sm:$0xf] %vm444_vm0, %v609_v1 }
  0x38 PF: > { %s13_s12 = sadd.s32 1, %s624_s12  }
  0x39   : > { %p10_p4 = scmp.ge.s32.totalorder %s13_s12, 88  }
  0x3b   :  { %12 = sbr.rel (!%p10_p4) target bundleno = 1 (0x1), region = 62 }

// kernel: aspp_s_forward.22
= control target key start
LH: loop header
LB: loop body
LE: loop exit
PB: predicated region body
PF: predicated region fallthrough
CT: control target
= control target key end

     0   :  { %s1055_s12 = smov 0   ;;  %s1368_s0 = inlined_call_operand.vmem [shape: bf16[17664,108], index: 0, kind: input, shape index: {}]   ;;  %s1369_s1 = inlined_call_operand.vmem [shape: bf16[1,108,4], index: 1, kind: input, shape index: {}]   ;;  %s1370_s2 = inlined_call_operand.vmem [shape: f32[17664,4], index: 2, kind: output, shape index: {0}]   ;;  %s1371_s3 = inlined_call_operand.vmem [shape: f32[69,2,4], index: 3, kind: output, shape index: {1}]  }
   0x1 LB: > { %s1061_s13 = sadd.s32 4294967295, %s1033_s12   ;;  %p864_p0 = scmp.ge.s32.totalorder %s1033_s12, 1  ;;  %s1033_s12 = sphi %s1055_s12, %s14_s12  }
   0x2   : > { %p141_p1 = scmp.lt.s32.totalorder %s1033_s12, 70 }
   0x4   : > { %p142_p2 = pnand %p864_p0, %p141_p1 }
   0x5   : > { %v1004_v0 = vld [vmem:[%s1369_s1] sm:$0xff] (!%p142_p2)   ;;  %v1005_v1 = vld [vmem:[%s1369_s1 + $0x8] sm:$0xff] (!%p142_p2)   ;;  %s865_s18 = sshll.u32 (!%p142_p2), %s1061_s13, 5  ;;  %v1006_v2 = vld [vmem:[%s1369_s1 + $0x10] sm:$0xff] (!%p142_p2)   ;;  %vm353_vm0 = vcmask (!%p142_p2), 883712   ;;  %vm402_vm1 = vcmask (!%p142_p2), 1045504  }
   0x6   : > { %145 = sbr.rel (%p142_p2) target bundleno = 327 (0x147), region = 28  ;;  %934 = vmatprep.subr.bf16.mxu0 (!%p142_p2), %v1004_v0  ;;  %p170_p3 = scmp.lt.s32.totalorder (!%p142_p2), %s865_s18, 2207  ;;  %980 = vmatprep.subr.bf16.mxu1 (!%p142_p2), %v1004_v0  ;;  %v1007_v3 = vld [vmem:[%s1369_s1 + $0x18] sm:$0xff] (!%p142_p2)   ;;  %v1008_v5 = vld [vmem:[%s1369_s1 + $0x20] sm:$0xff] (!%p142_p2)   ;;  %v1009_v6 = vld [vmem:[%s1369_s1 + $0x28] sm:$0xff] (!%p142_p2)   ;;  %vm567_vm2 = vcmask (!%p142_p2), 31744  }
   0x7   : > { %935 = vmatpush3.bf16.msra.mxu0 (!%p142_p2), %v1004_v0  ;;  %987 = vmatpush3.bf16.msra.mxu1 (!%p142_p2), %v1004_v0  ;;  %v1010_v8 = vld [vmem:[%s1369_s1 + $0x30] sm:$0x3f] (!%p142_p2)   ;;  %p181_p4 = scmp.lt.s32.totalorder (!%p142_p2), %s1061_s13, 68  ;;  %vm669_vm3 = vcmask (!%p142_p2), 24576  }
   0x8   : > { %936 = vmatprep.subr.bf16.mxu0 (!%p142_p2), %v1005_v1  ;;  %981 = vmatprep.subr.bf16.mxu1 (!%p142_p2), %v1005_v1  ;;  %v404_v9 = vsel (!%p142_p2), %vm402_vm1, %v1010_v8, 0 }
   0xb   : > { %937 = vmatpush3.bf16.msra.mxu0 (!%p142_p2), %v1005_v1  ;;  %988 = vmatpush3.bf16.msra.mxu1 (!%p142_p2), %v1005_v1 }
   0xc   : > { %938 = vmatprep.subr.bf16.mxu0 (!%p142_p2), %v1006_v2  ;;  %982 = vmatprep.subr.bf16.mxu1 (!%p142_p2), %v1006_v2 }
   0xd   : > { %s1373_s18 = smov (!%p170_p3, %s865_s18), 2207  ;;  %s1375_s13 = smov (!%p181_p4, %s1061_s13), 68 }
   0xe   : > { %s866_s21 = sshll.u32 %s1373_s18, 2  ;;  %s868_s6 = sshll.u32 %s1373_s18, 3 }
   0xf   : > { %s1084_s26 = scalar_lea.vmem %s1368_s0, %s866_s21  ;;  %939 = vmatpush3.bf16.msra.mxu0 %v1006_v2  ;;  %989 = vmatpush3.bf16.msra.mxu1 %v1006_v2  ;;  %s1131_s9 = scalar_lea.vmem %s1370_s2, %s868_s6 }
  0x10   : > { %v1011_v4 = vld [vmem:[%s1084_s26] sm:$0xff]   ;;  %940 = vmatprep.subr.bf16.mxu0 %v1007_v3  ;;  %983 = vmatprep.subr.bf16.mxu1 %v1007_v3  ;;  %v1012_v10 = vld [vmem:[%s1084_s26 + $0x8] sm:$0xff]   ;;  %v1013_v11 = vld [vmem:[%s1084_s26 + $0x10] sm:$0xff]   ;;  %s869_s10 = sshll.u32 %s1375_s13, 1 }
  0x11   : > { %948 = vmatprep.mubr.msk.bf16.mxu0 %vm353_vm0, %v1011_v4  ;;  %v1019_v7 = vld [vmem:[%s1084_s26 + $0x40] sm:$0xff]   ;;  %v1020_v12 = vld [vmem:[%s1084_s26 + $0x48] sm:$0xff]   ;;  %v1021_v13 = vld [vmem:[%s1084_s26 + $0x50] sm:$0xff]   ;;  %s184_s15 = scalar_lea.vmem %s1371_s3, %s869_s10 }
  0x12   : > { %964 = vmatprep.mubr.msk.bf16.mxu1 %vm353_vm0, %v1019_v7  ;;  %v1014_v14 = vld [vmem:[%s1084_s26 + $0x18] sm:$0xff]   ;;  %v1015_v15 = vld [vmem:[%s1084_s26 + $0x20] sm:$0xff]   ;;  %v1016_v18 = vld [vmem:[%s1084_s26 + $0x28] sm:$0xff]  }
  0x13   : > { %941 = vmatpush3.bf16.msra.mxu0 %v1007_v3  ;;  %990 = vmatpush3.bf16.msra.mxu1 %v1007_v3  ;;  %v1022_v16 = vld [vmem:[%s1084_s26 + $0x58] sm:$0xff]   ;;  %v1023_v17 = vld [vmem:[%s1084_s26 + $0x60] sm:$0xff]   ;;  %v1017_v19 = vld [vmem:[%s1084_s26 + $0x30] sm:$0xff]  }
  0x14   : > { %942 = vmatprep.subr.bf16.mxu0 %v1008_v5  ;;  %984 = vmatprep.subr.bf16.mxu1 %v1008_v5  ;;  %v1024_v20 = vld [vmem:[%s1084_s26 + $0x68] sm:$0xff]   ;;  %v1025_v21 = vld [vmem:[%s1084_s26 + $0x70] sm:$0xff]   ;;  %v1018_v22 = vld [vmem:[%s1084_s26 + $0x38] sm:$0xff]  }
  0x15   : > { %v1026_v23 = vld [vmem:[%s1084_s26 + $0x78] sm:$0xff]  }
  0x17   : > { %943 = vmatpush3.bf16.msra.mxu0 %v1008_v5  ;;  %991 = vmatpush3.bf16.msra.mxu1 %v1008_v5 }
  0x18   : > { %944 = vmatprep.subr.bf16.mxu0 %v1009_v6  ;;  %985 = vmatprep.subr.bf16.mxu1 %v1009_v6 }
  0x1b   : > { %945 = vmatpush3.bf16.msra.mxu0 %v1009_v6  ;;  %992 = vmatpush3.bf16.msra.mxu1 %v1009_v6 }
  0x1c   : > { %994 = vmatprep.subr.msk.bf16.mxu0 %vm402_vm1, %v1010_v8  ;;  %995 = vmatprep.subr.msk.bf16.mxu1 %vm402_vm1, %v1010_v8 }
  0x1f   : > { %947 = vmatpush3.bf16.msra.mxu0 %v404_v9  ;;  %993 = vmatpush3.bf16.msra.mxu1 %v404_v9 }
  0x22   : > { %949 = vmatmul.mubr.msk.bf16.vlgmr.msra.gmra.mrb[0].mxu0 %vm353_vm0, %v1012_v10  ;;  %965 = vmatmul.mubr.msk.bf16.vlgmr.msra.gmra.mrb[0].mxu1 %vm353_vm0, %v1020_v12 }
  0x23   : > { %952 = vmatprep.mubr.msk.bf16.mxu0 %vm353_vm0, %v1013_v11  ;;  %968 = vmatprep.mubr.msk.bf16.mxu1 %vm353_vm0, %v1021_v13 }
  0x2a   : > { %953 = vmatmul.mubr.msk.bf16.gmra.mrb[4].mxu0 %vm353_vm0, %v1014_v14  ;;  %969 = vmatmul.mubr.msk.bf16.gmra.mrb[4].mxu1 %vm353_vm0, %v1022_v16 }
  0x2b   : > { %956 = vmatprep.mubr.msk.bf16.mxu0 %vm353_vm0, %v1015_v15  ;;  %972 = vmatprep.mubr.msk.bf16.mxu1 %vm353_vm0, %v1023_v17 }
  0x32   : > { %957 = vmatmul.mubr.msk.bf16.gmra.mrb[8].mxu0 %vm353_vm0, %v1016_v18  ;;  %973 = vmatmul.mubr.msk.bf16.gmra.mrb[8].mxu1 %vm353_vm0, %v1024_v20 }
  0x33   : > { %960 = vmatprep.mubr.msk.bf16.mxu0 %vm353_vm0, %v1017_v19  ;;  %976 = vmatprep.mubr.msk.bf16.mxu1 %vm353_vm0, %v1025_v21 }
  0x3a   : > { %961 = vmatmul.mubr.msk.bf16.gmra.mrb[12].mxu0 %vm353_vm0, %v1018_v22  ;;  %977 = vmatmul.mubr.msk.bf16.gmra.mrb[12].mxu1 %vm353_vm0, %v1026_v23 }
  0xf5   : > { %v950_v24 = vpop.f32.mrb[0].mxu0  ;;  %v1135_v26 = vpop.f32.mrb[0].mxu1 }
  0xf6   : > { %570 = vst.msk [vmem:[%s1131_s9 + $0x10] sm:$0xff] %vm567_vm2, %v950_v24  ;;  %v440_v25 = vpop.f32.mrb[1].mxu0  ;;  %586 = vst.msk [vmem:[%s1131_s9 + $0x90] sm:$0xff] %vm567_vm2, %v1135_v26  ;;  %v1142_v29 = vpop.f32.mrb[1].mxu1  ;;  %v673_v32 = vmul.f32 %v950_v24, %v950_v24  ;;  %v603_v38 = vsel %vm567_vm2, %v950_v24, 0.0 }
  0xf7   : > { %568 = vst.msk [vmem:[%s1131_s9] sm:$0xff] %vm567_vm2, %v440_v25  ;;  %v671_v27 = vmul.f32 %v440_v25, %v440_v25  ;;  %v951_v28 = vpop.f32.mrb[2].mxu0  ;;  %584 = vst.msk [vmem:[%s1131_s9 + $0x80] sm:$0xff] %vm567_vm2, %v1142_v29  ;;  %v1149_v31 = vpop.f32.mrb[2].mxu1  ;;  %v600_v33 = vsel %vm567_vm2, %v440_v25, 0.0 }
  0xf8   : > { %571 = vst.msk [vmem:[%s1131_s9 + $0x18] sm:$0xff] %vm567_vm2, %v951_v28  ;;  %v443_v30 = vpop.f32.mrb[3].mxu0  ;;  %587 = vst.msk [vmem:[%s1131_s9 + $0x98] sm:$0xff] %vm567_vm2, %v1149_v31  ;;  %v1158_v36 = vpop.f32.mrb[3].mxu1  ;;  %v674_v40 = vmul.f32 %v951_v28, %v951_v28  ;;  %v706_v44 = vsel %vm567_vm2, %v673_v32, 0.0  ;;  %v605_v45 = vsel %vm567_vm2, %v951_v28, 0.0 }
  0xf9   : > { %569 = vst.msk [vmem:[%s1131_s9 + $0x8] sm:$0xff] %vm567_vm2, %v443_v30  ;;  %v601_v34 = vsel %vm567_vm2, %v443_v30, 0.0  ;;  %v672_v35 = vmul.f32 %v443_v30, %v443_v30  ;;  %585 = vst.msk [vmem:[%s1131_s9 + $0x88] sm:$0xff] %vm567_vm2, %v1158_v36  ;;  %v703_v39 = vsel %vm567_vm2, %v671_v27, 0.0 }
  0xfa   : > { %v602_v37 = vadd.f32 %v601_v34, %v600_v33  ;;  %v708_v51 = vsel %vm567_vm2, %v674_v40, 0.0 }
  0xfb   : > { %v704_v41 = vsel %vm567_vm2, %v672_v35, 0.0 }
  0xfc   : > { %v604_v42 = vadd.f32 %v603_v38, %v602_v37  ;;  %v705_v43 = vadd.f32 %v704_v41, %v703_v39 }
  0xfd   : > { %v954_v46 = vpop.f32.mrb[4].mxu0  ;;  %v1170_v50 = vpop.f32.mrb[4].mxu1 }
  0xfe   : > { %v707_v47 = vadd.f32 %v706_v44, %v705_v43  ;;  %574 = vst.msk [vmem:[%s1131_s9 + $0x30] sm:$0xff] %vm567_vm2, %v954_v46  ;;  %v456_v48 = vpop.f32.mrb[5].mxu0  ;;  %v606_v49 = vadd.f32 %v605_v45, %v604_v42  ;;  %590 = vst.msk [vmem:[%s1131_s9 + $0xb0] sm:$0xff] %vm567_vm2, %v1170_v50  ;;  %v1179_v55 = vpop.f32.mrb[5].mxu1  ;;  %v677_v60 = vmul.f32 %v954_v46, %v954_v46  ;;  %v611_v3 = vsel %vm567_vm2, %v954_v46, 0.0 }
  0xff   : > { %572 = vst.msk [vmem:[%s1131_s9 + $0x20] sm:$0xff] %vm567_vm2, %v456_v48  ;;  %v607_v52 = vsel %vm567_vm2, %v456_v48, 0.0  ;;  %v675_v53 = vmul.f32 %v456_v48, %v456_v48  ;;  %v955_v54 = vpop.f32.mrb[6].mxu0  ;;  %588 = vst.msk [vmem:[%s1131_s9 + $0xa0] sm:$0xff] %vm567_vm2, %v1179_v55  ;;  %v1186_v59 = vpop.f32.mrb[6].mxu1 }
 0x100   : > { %v608_v56 = vadd.f32 %v607_v52, %v606_v49  ;;  %v709_v57 = vadd.f32 %v708_v51, %v707_v47  ;;  %575 = vst.msk [vmem:[%s1131_s9 + $0x38] sm:$0xff] %vm567_vm2, %v955_v54  ;;  %v459_v58 = vpop.f32.mrb[7].mxu0  ;;  %591 = vst.msk [vmem:[%s1131_s9 + $0xb8] sm:$0xff] %vm567_vm2, %v1186_v59  ;;  %v1195_v0 = vpop.f32.mrb[7].mxu1  ;;  %v678_v4 = vmul.f32 %v955_v54, %v955_v54  ;;  %v714_v8 = vsel %vm567_vm2, %v677_v60, 0.0 }
 0x101   : > { %v710_v61 = vsel %vm567_vm2, %v675_v53, 0.0  ;;  %573 = vst.msk [vmem:[%s1131_s9 + $0x28] sm:$0xff] %vm567_vm2, %v459_v58  ;;  %v609_v62 = vsel %vm567_vm2, %v459_v58, 0.0  ;;  %v676_v63 = vmul.f32 %v459_v58, %v459_v58  ;;  %589 = vst.msk [vmem:[%s1131_s9 + $0xa8] sm:$0xff] %vm567_vm2, %v1195_v0  ;;  %v613_v9 = vsel %vm567_vm2, %v955_v54, 0.0 }
 0x102   : > { %v711_v1 = vadd.f32 %v710_v61, %v709_v57  ;;  %v610_v2 = vadd.f32 %v609_v62, %v608_v56  ;;  %v716_v15 = vsel %vm567_vm2, %v678_v4, 0.0 }
 0x103   : > { %v712_v5 = vsel %vm567_vm2, %v676_v63, 0.0 }
 0x104   : > { %v612_v6 = vadd.f32 %v611_v3, %v610_v2  ;;  %v713_v7 = vadd.f32 %v712_v5, %v711_v1 }
 0x105   : > { %v958_v10 = vpop.f32.mrb[8].mxu0  ;;  %v1206_v14 = vpop.f32.mrb[8].mxu1 }
 0x106   : > { %v715_v11 = vadd.f32 %v714_v8, %v713_v7  ;;  %578 = vst.msk [vmem:[%s1131_s9 + $0x50] sm:$0xff] %vm567_vm2, %v958_v10  ;;  %v472_v12 = vpop.f32.mrb[9].mxu0  ;;  %v614_v13 = vadd.f32 %v613_v9, %v612_v6  ;;  %594 = vst.msk [vmem:[%s1131_s9 + $0xd0] sm:$0xff] %vm567_vm2, %v1206_v14  ;;  %v1215_v19 = vpop.f32.mrb[9].mxu1  ;;  %v681_v24 = vmul.f32 %v958_v10, %v958_v10  ;;  %v619_v34 = vsel %vm567_vm2, %v958_v10, 0.0 }
 0x107   : > { %576 = vst.msk [vmem:[%s1131_s9 + $0x40] sm:$0xff] %vm567_vm2, %v472_v12  ;;  %v615_v16 = vsel %vm567_vm2, %v472_v12, 0.0  ;;  %v679_v17 = vmul.f32 %v472_v12, %v472_v12  ;;  %v959_v18 = vpop.f32.mrb[10].mxu0  ;;  %592 = vst.msk [vmem:[%s1131_s9 + $0xc0] sm:$0xff] %vm567_vm2, %v1215_v19  ;;  %v1222_v23 = vpop.f32.mrb[10].mxu1  ;;  %v687_v6 = vmul.f32 %v1142_v29, %v1142_v29 }
 0x108   : > { %v616_v20 = vadd.f32 %v615_v16, %v614_v13  ;;  %v717_v21 = vadd.f32 %v716_v15, %v715_v11  ;;  %579 = vst.msk [vmem:[%s1131_s9 + $0x58] sm:$0xff] %vm567_vm2, %v959_v18  ;;  %v475_v22 = vpop.f32.mrb[11].mxu0  ;;  %595 = vst.msk [vmem:[%s1131_s9 + $0xd8] sm:$0xff] %vm567_vm2, %v1222_v23  ;;  %v1231_v30 = vpop.f32.mrb[11].mxu1  ;;  %v682_v35 = vmul.f32 %v959_v18, %v959_v18  ;;  %v722_v40 = vsel %vm567_vm2, %v681_v24, 0.0 }
 0x109   : > { %v718_v25 = vsel %vm567_vm2, %v679_v17, 0.0  ;;  %577 = vst.msk [vmem:[%s1131_s9 + $0x48] sm:$0xff] %vm567_vm2, %v475_v22  ;;  %v617_v27 = vsel %vm567_vm2, %v475_v22, 0.0  ;;  %v680_v28 = vmul.f32 %v475_v22, %v475_v22  ;;  %593 = vst.msk [vmem:[%s1131_s9 + $0xc8] sm:$0xff] %vm567_vm2, %v1231_v30  ;;  %v621_v41 = vsel %vm567_vm2, %v959_v18, 0.0 }
 0x10a   : > { %v719_v32 = vadd.f32 %v718_v25, %v717_v21  ;;  %v618_v33 = vadd.f32 %v617_v27, %v616_v20  ;;  %v724_v47 = vsel %vm567_vm2, %v682_v35, 0.0  ;;  %v631_v11 = vsel %vm567_vm2, %v1142_v29, 0.0 }
 0x10b   : > { %v720_v37 = vsel %vm567_vm2, %v680_v28, 0.0  ;;  %v734_v17 = vsel %vm567_vm2, %v687_v6, 0.0  ;;  %v688_v18 = vmul.f32 %v1158_v36, %v1158_v36  ;;  %v689_v29 = vmul.f32 %v1135_v26, %v1135_v26 }
 0x10c   : > { %v620_v38 = vadd.f32 %v619_v34, %v618_v33  ;;  %v721_v39 = vadd.f32 %v720_v37, %v719_v32  ;;  %v633_v24 = vsel %vm567_vm2, %v1158_v36, 0.0  ;;  %v635_v28 = vsel %vm567_vm2, %v1135_v26, 0.0 }
 0x10d   : > { %v962_v42 = vpop.f32.mrb[12].mxu0  ;;  %v1242_v46 = vpop.f32.mrb[12].mxu1  ;;  %v690_v32 = vmul.f32 %v1149_v31, %v1149_v31  ;;  %v736_v33 = vsel %vm567_vm2, %v688_v18, 0.0  ;;  %v691_v34 = vmul.f32 %v1179_v55, %v1179_v55  ;;  %v637_v36 = vsel %vm567_vm2, %v1149_v31, 0.0 }
 0x10e   : > { %v723_v43 = vadd.f32 %v722_v40, %v721_v39  ;;  %582 = vst.msk [vmem:[%s1131_s9 + $0x70] sm:$0xff] %vm567_vm2, %v962_v42  ;;  %v488_v44 = vpop.f32.mrb[13].mxu0  ;;  %v622_v45 = vadd.f32 %v621_v41, %v620_v38  ;;  %598 = vst.msk [vmem:[%s1131_s9 + $0xf0] sm:$0xff] %vm567_vm2, %v1242_v46  ;;  %v1251_v52 = vpop.f32.mrb[13].mxu1  ;;  %v685_v58 = vmul.f32 %v962_v42, %v962_v42  ;;  %v627_v3 = vsel %vm567_vm2, %v962_v42, 0.0 }
 0x10f   : > { %580 = vst.msk [vmem:[%s1131_s9 + $0x60] sm:$0xff] %vm567_vm2, %v488_v44  ;;  %v623_v48 = vsel %vm567_vm2, %v488_v44, 0.0  ;;  %v683_v49 = vmul.f32 %v488_v44, %v488_v44  ;;  %v963_v51 = vpop.f32.mrb[14].mxu0  ;;  %596 = vst.msk [vmem:[%s1131_s9 + $0xe0] sm:$0xff] %vm567_vm2, %v1251_v52  ;;  %v1258_v57 = vpop.f32.mrb[14].mxu1  ;;  %v738_v38 = vsel %vm567_vm2, %v689_v29, 0.0  ;;  %v697_v6 = vmul.f32 %v1206_v14, %v1206_v14 }
 0x110   : > { %v624_v53 = vadd.f32 %v623_v48, %v622_v45  ;;  %v725_v54 = vadd.f32 %v724_v47, %v723_v43  ;;  %583 = vst.msk [vmem:[%s1131_s9 + $0x78] sm:$0xff] %vm567_vm2, %v963_v51  ;;  %v491_v56 = vpop.f32.mrb[15].mxu0  ;;  %599 = vst.msk [vmem:[%s1131_s9 + $0xf8] sm:$0xff] %vm567_vm2, %v1258_v57  ;;  %v1267_v63 = vpop.f32.mrb[15].mxu1  ;;  %v686_v4 = vmul.f32 %v963_v51, %v963_v51  ;;  %v730_v9 = vsel %vm567_vm2, %v685_v58, 0.0 }
 0x111   : > { %v726_v60 = vsel %vm567_vm2, %v683_v49, 0.0  ;;  %581 = vst.msk [vmem:[%s1131_s9 + $0x68] sm:$0xff] %vm567_vm2, %v491_v56  ;;  %v625_v61 = vsel %vm567_vm2, %v491_v56, 0.0  ;;  %v684_v62 = vmul.f32 %v491_v56, %v491_v56  ;;  %597 = vst.msk [vmem:[%s1131_s9 + $0xe8] sm:$0xff] %vm567_vm2, %v1267_v63  ;;  %v629_v10 = vsel %vm567_vm2, %v963_v51, 0.0 }
 0x112   : > { %v727_v1 = vadd.f32 %v726_v60, %v725_v54  ;;  %v626_v2 = vadd.f32 %v625_v61, %v624_v53  ;;  %v702_v12 = vmul.f32 %v1258_v57, %v1258_v57  ;;  %v732_v16 = vsel %vm567_vm2, %v686_v4, 0.0 }
 0x113   : > { %v728_v5 = vsel %vm567_vm2, %v684_v62, 0.0  ;;  %v639_v39 = vsel %vm567_vm2, %v1179_v55, 0.0  ;;  %v740_v41 = vsel %vm567_vm2, %v690_v32, 0.0  ;;  %v742_v42 = vsel %vm567_vm2, %v691_v34, 0.0 }
 0x114   : > { %v628_v7 = vadd.f32 %v627_v3, %v626_v2  ;;  %v729_v8 = vadd.f32 %v728_v5, %v727_v1  ;;  %v1287_v20 = vsel %vm567_vm2, %v702_v12, 0.0  ;;  %v692_v43 = vmul.f32 %v1195_v0, %v1195_v0 }
 0x115   : > { %v693_v47 = vmul.f32 %v1170_v50, %v1170_v50  ;;  %v641_v31 = vsel %vm567_vm2, %v1195_v0, 0.0  ;;  %v643_v55 = vsel %vm567_vm2, %v1170_v50, 0.0  ;;  %v694_v51 = vmul.f32 %v1186_v59, %v1186_v59 }
 0x116   : > { %v731_v13 = vadd.f32 %v730_v9, %v729_v8  ;;  %v630_v15 = vadd.f32 %v629_v10, %v628_v7  ;;  %v744_v53 = vsel %vm567_vm2, %v692_v43, 0.0  ;;  %v695_v54 = vmul.f32 %v1215_v19, %v1215_v19 }
 0x117   : > { %v746_v60 = vsel %vm567_vm2, %v693_v47, 0.0  ;;  %v645_v0 = vsel %vm567_vm2, %v1186_v59, 0.0  ;;  %v647_v61 = vsel %vm567_vm2, %v1215_v19, 0.0  ;;  %v748_v1 = vsel %vm567_vm2, %v694_v51, 0.0 }
 0x118   : > { %v632_v21 = vadd.f32 %v631_v11, %v630_v15  ;;  %v733_v22 = vadd.f32 %v732_v16, %v731_v13  ;;  %v750_v2 = vsel %vm567_vm2, %v695_v54, 0.0  ;;  %v696_v3 = vmul.f32 %v1231_v30, %v1231_v30 }
 0x119   : > { %v649_v59 = vsel %vm567_vm2, %v1231_v30, 0.0  ;;  %v651_v19 = vsel %vm567_vm2, %v1206_v14, 0.0  ;;  %v698_v9 = vmul.f32 %v1222_v23, %v1222_v23  ;;  %v699_v11 = vmul.f32 %v1251_v52, %v1251_v52 }
 0x11a   : > { %v735_v25 = vadd.f32 %v734_v17, %v733_v22  ;;  %v634_v27 = vadd.f32 %v633_v24, %v632_v21  ;;  %v752_v10 = vsel %vm567_vm2, %v696_v3, 0.0  ;;  %v754_v15 = vsel %vm567_vm2, %v697_v6, 0.0 }
 0x11b   : > { %v653_v30 = vsel %vm567_vm2, %v1222_v23, 0.0  ;;  %v655_v16 = vsel %vm567_vm2, %v1251_v52, 0.0  ;;  %v756_v18 = vsel %vm567_vm2, %v698_v9, 0.0  ;;  %v758_v21 = vsel %vm567_vm2, %v699_v11, 0.0 }
 0x11c   : > { %v636_v35 = vadd.f32 %v635_v28, %v634_v27  ;;  %v737_v37 = vadd.f32 %v736_v33, %v735_v25  ;;  %v700_v22 = vmul.f32 %v1267_v63, %v1267_v63  ;;  %v701_v25 = vmul.f32 %v1242_v46, %v1242_v46 }
 0x11d   : > { %v657_v23 = vsel %vm567_vm2, %v1267_v63, 0.0  ;;  %v659_v28 = vsel %vm567_vm2, %v1242_v46, 0.0 }
 0x11e   : > { %v739_v40 = vadd.f32 %v738_v38, %v737_v37  ;;  %v638_v26 = vadd.f32 %v637_v36, %v636_v35  ;;  %v760_v32 = vsel %vm567_vm2, %v700_v22, 0.0  ;;  %v762_v35 = vsel %vm567_vm2, %v701_v25, 0.0 }
 0x11f   : > { %v661_v37 = vsel %vm567_vm2, %v1258_v57, 0.0 }
 0x120   : > { %v640_v44 = vadd.f32 %v639_v39, %v638_v26  ;;  %v741_v45 = vadd.f32 %v740_v41, %v739_v40 }
 0x122   : > { %v743_v48 = vadd.f32 %v742_v42, %v741_v45  ;;  %v642_v49 = vadd.f32 %v641_v31, %v640_v44 }
 0x124   : > { %v644_v56 = vadd.f32 %v643_v55, %v642_v49  ;;  %v745_v58 = vadd.f32 %v744_v53, %v743_v48 }
 0x126   : > { %v747_v62 = vadd.f32 %v746_v60, %v745_v58  ;;  %v646_v50 = vadd.f32 %v645_v0, %v644_v56 }
 0x128   : > { %v648_v4 = vadd.f32 %v647_v61, %v646_v50  ;;  %v749_v5 = vadd.f32 %v748_v1, %v747_v62 }
 0x12a   : > { %v751_v7 = vadd.f32 %v750_v2, %v749_v5  ;;  %v650_v8 = vadd.f32 %v649_v59, %v648_v4 }
 0x12c   : > { %v652_v12 = vadd.f32 %v651_v19, %v650_v8  ;;  %v753_v13 = vadd.f32 %v752_v10, %v751_v7 }
 0x12e   : > { %v755_v17 = vadd.f32 %v754_v15, %v753_v13  ;;  %v654_v14 = vadd.f32 %v653_v30, %v652_v12 }
 0x130   : > { %v656_v29 = vadd.f32 %v655_v16, %v654_v14  ;;  %v757_v24 = vadd.f32 %v756_v18, %v755_v17 }
 0x132   : > { %v759_v52 = vadd.f32 %v758_v21, %v757_v24  ;;  %v658_v27 = vadd.f32 %v657_v23, %v656_v29 }
 0x134   : > { %v660_v33 = vadd.f32 %v659_v28, %v658_v27  ;;  %v761_v34 = vadd.f32 %v760_v32, %v759_v52 }
 0x136   : > { %v662_v38 = vadd.f32 %v661_v37, %v660_v33  ;;  %v763_v36 = vadd.f32 %v762_v35, %v761_v34 }
 0x138   : > { %v663_v39 = vrot.slane %v662_v38, 4  ;;  %v765_v63 = vadd.f32 %v1287_v20, %v763_v36 }
 0x13a   : > { %v664_v40 = vadd.f32 %v663_v39, %v662_v38  ;;  %v766_v26 = vrot.slane %v765_v63, 4 }
 0x13c   : > { %v665_v41 = vrot.slane %v664_v40, 2  ;;  %v767_v46 = vadd.f32 %v766_v26, %v765_v63 }
 0x13e   : > { %v666_v42 = vadd.f32 %v665_v41, %v664_v40  ;;  %v768_v43 = vrot.slane %v767_v46, 2 }
 0x140   : > { %v667_v44 = vrot.slane %v666_v42, 1  ;;  %v769_v45 = vadd.f32 %v768_v43, %v767_v46 }
 0x142   : > { %v668_v57 = vadd.f32 %v667_v44, %v666_v42  ;;  %v770_v47 = vrot.slane %v769_v45, 1 }
 0x144   : > { %670 = vst.msk [vmem:[%s184_s15] sm:$0x1] %vm669_vm3, %v668_v57  ;;  %v771_v31 = vadd.f32 %v770_v47, %v769_v45 }
 0x146   : > { %772 = vst.msk [vmem:[%s184_s15 + $0x1] sm:$0x1] %vm669_vm3, %v771_v31 }
 0x147 PF: > { %s14_s12 = sadd.s32 1, %s1033_s12  }
 0x148   : > { %p11_p5 = scmp.ge.s32.totalorder %s14_s12, 71  }
 0x14a   :  { %13 = sbr.rel (!%p11_p5) target bundleno = 1 (0x1), region = 70 }

// kernel: aspp_s_forward.23
= control target key start
LH: loop header
LB: loop body
LE: loop exit
PB: predicated region body
PF: predicated region fallthrough
CT: control target
= control target key end

     0   :  { %s646_s12 = smov 0   ;;  %s841_s0 = inlined_call_operand.vmem [shape: f32[17664,4], index: 0, kind: input, shape index: {}]   ;;  %s842_s1 = inlined_call_operand.vmem [shape: f32[1,4], index: 1, kind: input, shape index: {}]   ;;  %s843_s2 = inlined_call_operand.vmem [shape: f32[1,4], index: 2, kind: input, shape index: {}]   ;;  %s844_s3 = inlined_call_operand.vmem [shape: bf16[17664,4], index: 3, kind: output, shape index: {}]  }
   0x1 LB: > { %s533_s13 = sadd.s32 4294967295, %s624_s12   ;;  %p537_p0 = scmp.ge.s32.totalorder %s624_s12, 1  ;;  %s624_s12 = sphi %s646_s12, %s13_s12  }
   0x2   : > { %p138_p1 = scmp.lt.s32.totalorder %s624_s12, 70 }
   0x4   : > { %p139_p2 = pnand %p537_p0, %p138_p1 }
   0x5   : > { %s538_s14 = sshll.u32 (!%p139_p2), %s533_s13, 5  ;;  %v660_v0 = vld [vmem:[%s842_s1] ss:$0 sm:$0xff] (!%p139_p2)  ;;  %vm444_vm0 = vcmask (!%p139_p2), 27648  }
   0x6   : > { %142 = sbr.rel (%p139_p2) target bundleno = 56 (0x38), region = 32  ;;  %p163_p3 = scmp.lt.s32.totalorder (!%p139_p2), %s538_s14, 2207  ;;  %v670_v1 = vld [vmem:[%s843_s2] ss:$0 sm:$0xff] (!%p139_p2) }
   0xd   : > { %s846_s14 = smov (!%p163_p3, %s538_s14), 2207 }
   0xe   : > { %s539_s15 = sshll.u32 %s846_s14, 3  ;;  %s541_s23 = sshll.u32 %s846_s14, 2 }
   0xf   : > { %s665_s20 = scalar_lea.vmem %s841_s0, %s539_s15  ;;  %s699_s26 = scalar_lea.vmem %s844_s3, %s541_s23 }
  0x10   : > { %v174_v2 = vld [vmem:[%s665_s20] sm:$0xff]  ;;  %v175_v3 = vld [vmem:[%s665_s20 + $0x8] sm:$0xff]  ;;  %v176_v4 = vld [vmem:[%s665_s20 + $0x10] sm:$0xff] }
  0x11   : > { %v213_v5 = vmul.f32 %v660_v0, %v174_v2  ;;  %v214_v6 = vmul.f32 %v660_v0, %v175_v3  ;;  %v215_v7 = vmul.f32 %v660_v0, %v176_v4  ;;  %v177_v8 = vld [vmem:[%s665_s20 + $0x18] sm:$0xff]  ;;  %v178_v9 = vld [vmem:[%s665_s20 + $0x20] sm:$0xff]  ;;  %v179_v10 = vld [vmem:[%s665_s20 + $0x28] sm:$0xff] }
  0x12   : > { %v216_v11 = vmul.f32 %v660_v0, %v177_v8  ;;  %v217_v12 = vmul.f32 %v660_v0, %v178_v9  ;;  %v218_v13 = vmul.f32 %v660_v0, %v179_v10  ;;  %v180_v14 = vld [vmem:[%s665_s20 + $0x30] sm:$0xff]  ;;  %v181_v15 = vld [vmem:[%s665_s20 + $0x38] sm:$0xff]  ;;  %v182_v32 = vld [vmem:[%s665_s20 + $0x40] sm:$0xff] }
  0x13   : > { %v252_v16 = vadd.f32 %v670_v1, %v213_v5  ;;  %v253_v17 = vadd.f32 %v670_v1, %v214_v6  ;;  %v254_v18 = vadd.f32 %v670_v1, %v215_v7  ;;  %v219_v19 = vmul.f32 %v660_v0, %v180_v14  ;;  %v183_v33 = vld [vmem:[%s665_s20 + $0x48] sm:$0xff]  ;;  %v184_v34 = vld [vmem:[%s665_s20 + $0x50] sm:$0xff]  ;;  %v185_v39 = vld [vmem:[%s665_s20 + $0x58] sm:$0xff] }
  0x14   : > { %v255_v20 = vadd.f32 %v670_v1, %v216_v11  ;;  %v256_v21 = vadd.f32 %v670_v1, %v217_v12  ;;  %v257_v22 = vadd.f32 %v670_v1, %v218_v13  ;;  %v220_v23 = vmul.f32 %v660_v0, %v181_v15  ;;  %v186_v40 = vld [vmem:[%s665_s20 + $0x60] sm:$0xff]  ;;  %v187_v41 = vld [vmem:[%s665_s20 + $0x68] sm:$0xff]  ;;  %v188_v46 = vld [vmem:[%s665_s20 + $0x70] sm:$0xff] }
  0x15   : > { %v284_v24 = vmax.f32 %v252_v16, 0.0  ;;  %v285_v25 = vmax.f32 %v253_v17, 0.0  ;;  %v286_v26 = vmax.f32 %v254_v18, 0.0  ;;  %v258_v27 = vadd.f32 %v670_v1, %v219_v19  ;;  %v189_v51 = vld [vmem:[%s665_s20 + $0x78] sm:$0xff]  ;;  %v190_v10 = vld [vmem:[%s665_s20 + $0x80] sm:$0xff]  ;;  %v191_v11 = vld [vmem:[%s665_s20 + $0x88] sm:$0xff] }
  0x16   : > { %v287_v28 = vmax.f32 %v255_v20, 0.0  ;;  %v288_v29 = vmax.f32 %v256_v21, 0.0  ;;  %v289_v30 = vmax.f32 %v257_v22, 0.0  ;;  %v259_v31 = vadd.f32 %v670_v1, %v220_v23  ;;  %v192_v12 = vld [vmem:[%s665_s20 + $0x90] sm:$0xff]  ;;  %v193_v17 = vld [vmem:[%s665_s20 + $0x98] sm:$0xff]  ;;  %v194_v18 = vld [vmem:[%s665_s20 + $0xa0] sm:$0xff] }
  0x17   : > { %v578_v35 = vpack.c.bf16 %v284_v24, %v284_v24  ;;  %v579_v36 = vpack.c.bf16 %v285_v25, %v285_v25  ;;  %v580_v37 = vpack.c.bf16 %v286_v26, %v286_v26  ;;  %v290_v38 = vmax.f32 %v258_v27, 0.0  ;;  %v195_v19 = vld [vmem:[%s665_s20 + $0xa8] sm:$0xff]  ;;  %v196_v24 = vld [vmem:[%s665_s20 + $0xb0] sm:$0xff] }
  0x18   : > { %v581_v42 = vpack.c.bf16 %v287_v28, %v287_v28  ;;  %v582_v43 = vpack.c.bf16 %v288_v29, %v288_v29  ;;  %v583_v44 = vpack.c.bf16 %v289_v30, %v289_v30  ;;  %v291_v45 = vmax.f32 %v259_v31, 0.0  ;;  %v197_v29 = vld [vmem:[%s665_s20 + $0xb8] sm:$0xff] }
  0x19   : > { %445 = vst.msk [vmem:[%s699_s26] sm:$0xf] %vm444_vm0, %v578_v35  ;;  %446 = vst.msk [vmem:[%s699_s26 + $0x4] sm:$0xf] %vm444_vm0, %v579_v36  ;;  %v584_v47 = vpack.c.bf16 %v290_v38, %v290_v38  ;;  %v221_v48 = vmul.f32 %v660_v0, %v182_v32  ;;  %v222_v49 = vmul.f32 %v660_v0, %v183_v33 }
  0x1a   : > { %447 = vst.msk [vmem:[%s699_s26 + $0x8] sm:$0xf] %vm444_vm0, %v580_v37  ;;  %v223_v50 = vmul.f32 %v660_v0, %v184_v34  ;;  %448 = vst.msk [vmem:[%s699_s26 + $0xc] sm:$0xf] %vm444_vm0, %v581_v42  ;;  %v585_v52 = vpack.c.bf16 %v291_v45, %v291_v45  ;;  %v224_v53 = vmul.f32 %v660_v0, %v185_v39 }
  0x1b   : > { %449 = vst.msk [vmem:[%s699_s26 + $0x10] sm:$0xf] %vm444_vm0, %v582_v43  ;;  %450 = vst.msk [vmem:[%s699_s26 + $0x14] sm:$0xf] %vm444_vm0, %v583_v44  ;;  %v225_v54 = vmul.f32 %v660_v0, %v186_v40  ;;  %v226_v55 = vmul.f32 %v660_v0, %v187_v41  ;;  %v260_v56 = vadd.f32 %v670_v1, %v221_v48 }
  0x1c   : > { %451 = vst.msk [vmem:[%s699_s26 + $0x18] sm:$0xf] %vm444_vm0, %v584_v47  ;;  %v261_v57 = vadd.f32 %v670_v1, %v222_v49  ;;  %v262_v58 = vadd.f32 %v670_v1, %v223_v50  ;;  %v227_v59 = vmul.f32 %v660_v0, %v188_v46  ;;  %452 = vst.msk [vmem:[%s699_s26 + $0x1c] sm:$0xf] %vm444_vm0, %v585_v52  ;;  %v198_v50 = vld [vmem:[%s665_s20 + $0xc0] sm:$0xff]  ;;  %v200_v52 = vld [vmem:[%s665_s20 + $0xd0] sm:$0xff] }
  0x1d   : > { %v263_v60 = vadd.f32 %v670_v1, %v224_v53  ;;  %v264_v61 = vadd.f32 %v670_v1, %v225_v54  ;;  %v265_v62 = vadd.f32 %v670_v1, %v226_v55  ;;  %v228_v63 = vmul.f32 %v660_v0, %v189_v51  ;;  %v199_v51 = vld [vmem:[%s665_s20 + $0xc8] sm:$0xff] }
  0x1e   : > { %v292_v2 = vmax.f32 %v260_v56, 0.0  ;;  %v293_v3 = vmax.f32 %v261_v57, 0.0  ;;  %v294_v4 = vmax.f32 %v262_v58, 0.0  ;;  %v266_v5 = vadd.f32 %v670_v1, %v227_v59  ;;  %v201_v57 = vld [vmem:[%s665_s20 + $0xd8] sm:$0xff]  ;;  %v202_v58 = vld [vmem:[%s665_s20 + $0xe0] sm:$0xff]  ;;  %v203_v59 = vld [vmem:[%s665_s20 + $0xe8] sm:$0xff] }
  0x1f   : > { %v295_v6 = vmax.f32 %v263_v60, 0.0  ;;  %v296_v7 = vmax.f32 %v264_v61, 0.0  ;;  %v297_v8 = vmax.f32 %v265_v62, 0.0  ;;  %v267_v9 = vadd.f32 %v670_v1, %v228_v63 }
  0x20   : > { %v586_v13 = vpack.c.bf16 %v292_v2, %v292_v2  ;;  %v587_v14 = vpack.c.bf16 %v293_v3, %v293_v3  ;;  %v588_v15 = vpack.c.bf16 %v294_v4, %v294_v4  ;;  %v298_v16 = vmax.f32 %v266_v5, 0.0  ;;  %v204_v2 = vld [vmem:[%s665_s20 + $0xf0] sm:$0xff] }
  0x21   : > { %v589_v20 = vpack.c.bf16 %v295_v6, %v295_v6  ;;  %v590_v21 = vpack.c.bf16 %v296_v7, %v296_v7  ;;  %v591_v22 = vpack.c.bf16 %v297_v8, %v297_v8  ;;  %v299_v23 = vmax.f32 %v267_v9, 0.0  ;;  %v205_v7 = vld [vmem:[%s665_s20 + $0xf8] sm:$0xff] }
  0x22   : > { %453 = vst.msk [vmem:[%s699_s26 + $0x20] sm:$0xf] %vm444_vm0, %v586_v13  ;;  %454 = vst.msk [vmem:[%s699_s26 + $0x24] sm:$0xf] %vm444_vm0, %v587_v14  ;;  %v592_v25 = vpack.c.bf16 %v298_v16, %v298_v16  ;;  %v229_v26 = vmul.f32 %v660_v0, %v190_v10  ;;  %v230_v27 = vmul.f32 %v660_v0, %v191_v11 }
  0x23   : > { %455 = vst.msk [vmem:[%s699_s26 + $0x28] sm:$0xf] %vm444_vm0, %v588_v15  ;;  %v231_v28 = vmul.f32 %v660_v0, %v192_v12  ;;  %456 = vst.msk [vmem:[%s699_s26 + $0x2c] sm:$0xf] %vm444_vm0, %v589_v20  ;;  %v593_v30 = vpack.c.bf16 %v299_v23, %v299_v23  ;;  %v232_v31 = vmul.f32 %v660_v0, %v193_v17 }
  0x24   : > { %457 = vst.msk [vmem:[%s699_s26 + $0x30] sm:$0xf] %vm444_vm0, %v590_v21  ;;  %458 = vst.msk [vmem:[%s699_s26 + $0x34] sm:$0xf] %vm444_vm0, %v591_v22  ;;  %v233_v32 = vmul.f32 %v660_v0, %v194_v18  ;;  %v234_v33 = vmul.f32 %v660_v0, %v195_v19  ;;  %v268_v34 = vadd.f32 %v670_v1, %v229_v26 }
  0x25   : > { %459 = vst.msk [vmem:[%s699_s26 + $0x38] sm:$0xf] %vm444_vm0, %v592_v25  ;;  %v269_v35 = vadd.f32 %v670_v1, %v230_v27  ;;  %v270_v36 = vadd.f32 %v670_v1, %v231_v28  ;;  %v235_v37 = vmul.f32 %v660_v0, %v196_v24  ;;  %460 = vst.msk [vmem:[%s699_s26 + $0x3c] sm:$0xf] %vm444_vm0, %v593_v30 }
  0x26   : > { %v271_v38 = vadd.f32 %v670_v1, %v232_v31  ;;  %v272_v39 = vadd.f32 %v670_v1, %v233_v32  ;;  %v273_v40 = vadd.f32 %v670_v1, %v234_v33  ;;  %v236_v41 = vmul.f32 %v660_v0, %v197_v29 }
  0x27   : > { %v300_v42 = vmax.f32 %v268_v34, 0.0  ;;  %v301_v43 = vmax.f32 %v269_v35, 0.0  ;;  %v302_v44 = vmax.f32 %v270_v36, 0.0  ;;  %v274_v45 = vadd.f32 %v670_v1, %v235_v37 }
  0x28   : > { %v303_v46 = vmax.f32 %v271_v38, 0.0  ;;  %v304_v47 = vmax.f32 %v272_v39, 0.0  ;;  %v305_v48 = vmax.f32 %v273_v40, 0.0  ;;  %v275_v49 = vadd.f32 %v670_v1, %v236_v41 }
  0x29   : > { %v594_v53 = vpack.c.bf16 %v300_v42, %v300_v42  ;;  %v595_v54 = vpack.c.bf16 %v301_v43, %v301_v43  ;;  %v596_v55 = vpack.c.bf16 %v302_v44, %v302_v44  ;;  %v306_v56 = vmax.f32 %v274_v45, 0.0 }
  0x2a   : > { %v597_v60 = vpack.c.bf16 %v303_v46, %v303_v46  ;;  %v598_v61 = vpack.c.bf16 %v304_v47, %v304_v47  ;;  %v599_v62 = vpack.c.bf16 %v305_v48, %v305_v48  ;;  %v307_v63 = vmax.f32 %v275_v49, 0.0 }
  0x2b   : > { %461 = vst.msk [vmem:[%s699_s26 + $0x40] sm:$0xf] %vm444_vm0, %v594_v53  ;;  %462 = vst.msk [vmem:[%s699_s26 + $0x44] sm:$0xf] %vm444_vm0, %v595_v54  ;;  %v600_v3 = vpack.c.bf16 %v306_v56, %v306_v56  ;;  %v237_v4 = vmul.f32 %v660_v0, %v198_v50  ;;  %v238_v5 = vmul.f32 %v660_v0, %v199_v51 }
  0x2c   : > { %463 = vst.msk [vmem:[%s699_s26 + $0x48] sm:$0xf] %vm444_vm0, %v596_v55  ;;  %v239_v6 = vmul.f32 %v660_v0, %v200_v52  ;;  %464 = vst.msk [vmem:[%s699_s26 + $0x4c] sm:$0xf] %vm444_vm0, %v597_v60  ;;  %v601_v8 = vpack.c.bf16 %v307_v63, %v307_v63  ;;  %v240_v9 = vmul.f32 %v660_v0, %v201_v57 }
  0x2d   : > { %465 = vst.msk [vmem:[%s699_s26 + $0x50] sm:$0xf] %vm444_vm0, %v598_v61  ;;  %466 = vst.msk [vmem:[%s699_s26 + $0x54] sm:$0xf] %vm444_vm0, %v599_v62  ;;  %v241_v10 = vmul.f32 %v660_v0, %v202_v58  ;;  %v242_v11 = vmul.f32 %v660_v0, %v203_v59  ;;  %v276_v12 = vadd.f32 %v670_v1, %v237_v4 }
  0x2e   : > { %467 = vst.msk [vmem:[%s699_s26 + $0x58] sm:$0xf] %vm444_vm0, %v600_v3  ;;  %v277_v13 = vadd.f32 %v670_v1, %v238_v5  ;;  %v278_v14 = vadd.f32 %v670_v1, %v239_v6  ;;  %v243_v15 = vmul.f32 %v660_v0, %v204_v2  ;;  %468 = vst.msk [vmem:[%s699_s26 + $0x5c] sm:$0xf] %vm444_vm0, %v601_v8 }
  0x2f   : > { %v279_v16 = vadd.f32 %v670_v1, %v240_v9  ;;  %v280_v17 = vadd.f32 %v670_v1, %v241_v10  ;;  %v281_v18 = vadd.f32 %v670_v1, %v242_v11  ;;  %v244_v19 = vmul.f32 %v660_v0, %v205_v7 }
  0x30   : > { %v308_v20 = vmax.f32 %v276_v12, 0.0  ;;  %v309_v21 = vmax.f32 %v277_v13, 0.0  ;;  %v310_v22 = vmax.f32 %v278_v14, 0.0  ;;  %v282_v23 = vadd.f32 %v670_v1, %v243_v15 }
  0x31   : > { %v311_v24 = vmax.f32 %v279_v16, 0.0  ;;  %v312_v25 = vmax.f32 %v280_v17, 0.0  ;;  %v313_v26 = vmax.f32 %v281_v18, 0.0  ;;  %v283_v27 = vadd.f32 %v670_v1, %v244_v19 }
  0x32   : > { %v602_v28 = vpack.c.bf16 %v308_v20, %v308_v20  ;;  %v603_v29 = vpack.c.bf16 %v309_v21, %v309_v21  ;;  %v604_v0 = vpack.c.bf16 %v310_v22, %v310_v22  ;;  %v314_v30 = vmax.f32 %v282_v23, 0.0 }
  0x33   : > { %v605_v31 = vpack.c.bf16 %v311_v24, %v311_v24  ;;  %v606_v32 = vpack.c.bf16 %v312_v25, %v312_v25  ;;  %v607_v33 = vpack.c.bf16 %v313_v26, %v313_v26  ;;  %v315_v34 = vmax.f32 %v283_v27, 0.0 }
  0x34   : > { %469 = vst.msk [vmem:[%s699_s26 + $0x60] sm:$0xf] %vm444_vm0, %v602_v28  ;;  %470 = vst.msk [vmem:[%s699_s26 + $0x64] sm:$0xf] %vm444_vm0, %v603_v29  ;;  %v608_v35 = vpack.c.bf16 %v314_v30, %v314_v30 }
  0x35   : > { %471 = vst.msk [vmem:[%s699_s26 + $0x68] sm:$0xf] %vm444_vm0, %v604_v0  ;;  %472 = vst.msk [vmem:[%s699_s26 + $0x6c] sm:$0xf] %vm444_vm0, %v605_v31  ;;  %v609_v1 = vpack.c.bf16 %v315_v34, %v315_v34 }
  0x36   : > { %473 = vst.msk [vmem:[%s699_s26 + $0x70] sm:$0xf] %vm444_vm0, %v606_v32  ;;  %474 = vst.msk [vmem:[%s699_s26 + $0x74] sm:$0xf] %vm444_vm0, %v607_v33 }
  0x37   : > { %475 = vst.msk [vmem:[%s699_s26 + $0x78] sm:$0xf] %vm444_vm0, %v608_v35  ;;  %476 = vst.msk [vmem:[%s699_s26 + $0x7c] sm:$0xf] %vm444_vm0, %v609_v1 }
  0x38 PF: > { %s13_s12 = sadd.s32 1, %s624_s12  }
  0x39   : > { %p10_p4 = scmp.ge.s32.totalorder %s13_s12, 71  }
  0x3b   :  { %12 = sbr.rel (!%p10_p4) target bundleno = 1 (0x1), region = 62 }

// kernel: aspp_s_forward.24
= control target key start
LH: loop header
LB: loop body
LE: loop exit
PB: predicated region body
PF: predicated region fallthrough
CT: control target
= control target key end

     0   :  { %s1055_s12 = smov 0   ;;  %s1368_s0 = inlined_call_operand.vmem [shape: bf16[10752,108], index: 0, kind: input, shape index: {}]   ;;  %s1369_s1 = inlined_call_operand.vmem [shape: bf16[1,108,4], index: 1, kind: input, shape index: {}]   ;;  %s1370_s2 = inlined_call_operand.vmem [shape: f32[10752,4], index: 2, kind: output, shape index: {0}]   ;;  %s1371_s3 = inlined_call_operand.vmem [shape: f32[42,2,4], index: 3, kind: output, shape index: {1}]  }
   0x1 LB: > { %s1061_s13 = sadd.s32 4294967295, %s1033_s12   ;;  %p864_p0 = scmp.ge.s32.totalorder %s1033_s12, 1  ;;  %s1033_s12 = sphi %s1055_s12, %s14_s12  }
   0x2   : > { %p141_p1 = scmp.lt.s32.totalorder %s1033_s12, 43 }
   0x4   : > { %p142_p2 = pnand %p864_p0, %p141_p1 }
   0x5   : > { %v1004_v0 = vld [vmem:[%s1369_s1] sm:$0xff] (!%p142_p2)   ;;  %v1005_v1 = vld [vmem:[%s1369_s1 + $0x8] sm:$0xff] (!%p142_p2)   ;;  %s865_s18 = sshll.u32 (!%p142_p2), %s1061_s13, 5  ;;  %v1006_v2 = vld [vmem:[%s1369_s1 + $0x10] sm:$0xff] (!%p142_p2)   ;;  %vm353_vm0 = vcmask (!%p142_p2), 883712   ;;  %vm402_vm1 = vcmask (!%p142_p2), 1045504  }
   0x6   : > { %145 = sbr.rel (%p142_p2) target bundleno = 327 (0x147), region = 28  ;;  %934 = vmatprep.subr.bf16.mxu0 (!%p142_p2), %v1004_v0  ;;  %p170_p3 = scmp.lt.s32.totalorder (!%p142_p2), %s865_s18, 1343  ;;  %980 = vmatprep.subr.bf16.mxu1 (!%p142_p2), %v1004_v0  ;;  %v1007_v3 = vld [vmem:[%s1369_s1 + $0x18] sm:$0xff] (!%p142_p2)   ;;  %v1008_v5 = vld [vmem:[%s1369_s1 + $0x20] sm:$0xff] (!%p142_p2)   ;;  %v1009_v6 = vld [vmem:[%s1369_s1 + $0x28] sm:$0xff] (!%p142_p2)   ;;  %vm567_vm2 = vcmask (!%p142_p2), 31744  }
   0x7   : > { %935 = vmatpush3.bf16.msra.mxu0 (!%p142_p2), %v1004_v0  ;;  %987 = vmatpush3.bf16.msra.mxu1 (!%p142_p2), %v1004_v0  ;;  %v1010_v8 = vld [vmem:[%s1369_s1 + $0x30] sm:$0x3f] (!%p142_p2)   ;;  %p181_p4 = scmp.lt.s32.totalorder (!%p142_p2), %s1061_s13, 41  ;;  %vm669_vm3 = vcmask (!%p142_p2), 24576  }
   0x8   : > { %936 = vmatprep.subr.bf16.mxu0 (!%p142_p2), %v1005_v1  ;;  %981 = vmatprep.subr.bf16.mxu1 (!%p142_p2), %v1005_v1  ;;  %v404_v9 = vsel (!%p142_p2), %vm402_vm1, %v1010_v8, 0 }
   0xb   : > { %937 = vmatpush3.bf16.msra.mxu0 (!%p142_p2), %v1005_v1  ;;  %988 = vmatpush3.bf16.msra.mxu1 (!%p142_p2), %v1005_v1 }
   0xc   : > { %938 = vmatprep.subr.bf16.mxu0 (!%p142_p2), %v1006_v2  ;;  %982 = vmatprep.subr.bf16.mxu1 (!%p142_p2), %v1006_v2 }
   0xd   : > { %s1373_s18 = smov (!%p170_p3, %s865_s18), 1343  ;;  %s1375_s13 = smov (!%p181_p4, %s1061_s13), 41 }
   0xe   : > { %s866_s21 = sshll.u32 %s1373_s18, 2  ;;  %s868_s6 = sshll.u32 %s1373_s18, 3 }
   0xf   : > { %s1084_s26 = scalar_lea.vmem %s1368_s0, %s866_s21  ;;  %939 = vmatpush3.bf16.msra.mxu0 %v1006_v2  ;;  %989 = vmatpush3.bf16.msra.mxu1 %v1006_v2  ;;  %s1131_s9 = scalar_lea.vmem %s1370_s2, %s868_s6 }
  0x10   : > { %v1011_v4 = vld [vmem:[%s1084_s26] sm:$0xff]   ;;  %940 = vmatprep.subr.bf16.mxu0 %v1007_v3  ;;  %983 = vmatprep.subr.bf16.mxu1 %v1007_v3  ;;  %v1012_v10 = vld [vmem:[%s1084_s26 + $0x8] sm:$0xff]   ;;  %v1013_v11 = vld [vmem:[%s1084_s26 + $0x10] sm:$0xff]   ;;  %s869_s10 = sshll.u32 %s1375_s13, 1 }
  0x11   : > { %948 = vmatprep.mubr.msk.bf16.mxu0 %vm353_vm0, %v1011_v4  ;;  %v1019_v7 = vld [vmem:[%s1084_s26 + $0x40] sm:$0xff]   ;;  %v1020_v12 = vld [vmem:[%s1084_s26 + $0x48] sm:$0xff]   ;;  %v1021_v13 = vld [vmem:[%s1084_s26 + $0x50] sm:$0xff]   ;;  %s184_s15 = scalar_lea.vmem %s1371_s3, %s869_s10 }
  0x12   : > { %964 = vmatprep.mubr.msk.bf16.mxu1 %vm353_vm0, %v1019_v7  ;;  %v1014_v14 = vld [vmem:[%s1084_s26 + $0x18] sm:$0xff]   ;;  %v1015_v15 = vld [vmem:[%s1084_s26 + $0x20] sm:$0xff]   ;;  %v1016_v18 = vld [vmem:[%s1084_s26 + $0x28] sm:$0xff]  }
  0x13   : > { %941 = vmatpush3.bf16.msra.mxu0 %v1007_v3  ;;  %990 = vmatpush3.bf16.msra.mxu1 %v1007_v3  ;;  %v1022_v16 = vld [vmem:[%s1084_s26 + $0x58] sm:$0xff]   ;;  %v1023_v17 = vld [vmem:[%s1084_s26 + $0x60] sm:$0xff]   ;;  %v1017_v19 = vld [vmem:[%s1084_s26 + $0x30] sm:$0xff]  }
  0x14   : > { %942 = vmatprep.subr.bf16.mxu0 %v1008_v5  ;;  %984 = vmatprep.subr.bf16.mxu1 %v1008_v5  ;;  %v1024_v20 = vld [vmem:[%s1084_s26 + $0x68] sm:$0xff]   ;;  %v1025_v21 = vld [vmem:[%s1084_s26 + $0x70] sm:$0xff]   ;;  %v1018_v22 = vld [vmem:[%s1084_s26 + $0x38] sm:$0xff]  }
  0x15   : > { %v1026_v23 = vld [vmem:[%s1084_s26 + $0x78] sm:$0xff]  }
  0x17   : > { %943 = vmatpush3.bf16.msra.mxu0 %v1008_v5  ;;  %991 = vmatpush3.bf16.msra.mxu1 %v1008_v5 }
  0x18   : > { %944 = vmatprep.subr.bf16.mxu0 %v1009_v6  ;;  %985 = vmatprep.subr.bf16.mxu1 %v1009_v6 }
  0x1b   : > { %945 = vmatpush3.bf16.msra.mxu0 %v1009_v6  ;;  %992 = vmatpush3.bf16.msra.mxu1 %v1009_v6 }
  0x1c   : > { %994 = vmatprep.subr.msk.bf16.mxu0 %vm402_vm1, %v1010_v8  ;;  %995 = vmatprep.subr.msk.bf16.mxu1 %vm402_vm1, %v1010_v8 }
  0x1f   : > { %947 = vmatpush3.bf16.msra.mxu0 %v404_v9  ;;  %993 = vmatpush3.bf16.msra.mxu1 %v404_v9 }
  0x22   : > { %949 = vmatmul.mubr.msk.bf16.vlgmr.msra.gmra.mrb[0].mxu0 %vm353_vm0, %v1012_v10  ;;  %965 = vmatmul.mubr.msk.bf16.vlgmr.msra.gmra.mrb[0].mxu1 %vm353_vm0, %v1020_v12 }
  0x23   : > { %952 = vmatprep.mubr.msk.bf16.mxu0 %vm353_vm0, %v1013_v11  ;;  %968 = vmatprep.mubr.msk.bf16.mxu1 %vm353_vm0, %v1021_v13 }
  0x2a   : > { %953 = vmatmul.mubr.msk.bf16.gmra.mrb[4].mxu0 %vm353_vm0, %v1014_v14  ;;  %969 = vmatmul.mubr.msk.bf16.gmra.mrb[4].mxu1 %vm353_vm0, %v1022_v16 }
  0x2b   : > { %956 = vmatprep.mubr.msk.bf16.mxu0 %vm353_vm0, %v1015_v15  ;;  %972 = vmatprep.mubr.msk.bf16.mxu1 %vm353_vm0, %v1023_v17 }
  0x32   : > { %957 = vmatmul.mubr.msk.bf16.gmra.mrb[8].mxu0 %vm353_vm0, %v1016_v18  ;;  %973 = vmatmul.mubr.msk.bf16.gmra.mrb[8].mxu1 %vm353_vm0, %v1024_v20 }
  0x33   : > { %960 = vmatprep.mubr.msk.bf16.mxu0 %vm353_vm0, %v1017_v19  ;;  %976 = vmatprep.mubr.msk.bf16.mxu1 %vm353_vm0, %v1025_v21 }
  0x3a   : > { %961 = vmatmul.mubr.msk.bf16.gmra.mrb[12].mxu0 %vm353_vm0, %v1018_v22  ;;  %977 = vmatmul.mubr.msk.bf16.gmra.mrb[12].mxu1 %vm353_vm0, %v1026_v23 }
  0xf5   : > { %v950_v24 = vpop.f32.mrb[0].mxu0  ;;  %v1135_v26 = vpop.f32.mrb[0].mxu1 }
  0xf6   : > { %570 = vst.msk [vmem:[%s1131_s9 + $0x10] sm:$0xff] %vm567_vm2, %v950_v24  ;;  %v440_v25 = vpop.f32.mrb[1].mxu0  ;;  %586 = vst.msk [vmem:[%s1131_s9 + $0x90] sm:$0xff] %vm567_vm2, %v1135_v26  ;;  %v1142_v29 = vpop.f32.mrb[1].mxu1  ;;  %v673_v32 = vmul.f32 %v950_v24, %v950_v24  ;;  %v603_v38 = vsel %vm567_vm2, %v950_v24, 0.0 }
  0xf7   : > { %568 = vst.msk [vmem:[%s1131_s9] sm:$0xff] %vm567_vm2, %v440_v25  ;;  %v671_v27 = vmul.f32 %v440_v25, %v440_v25  ;;  %v951_v28 = vpop.f32.mrb[2].mxu0  ;;  %584 = vst.msk [vmem:[%s1131_s9 + $0x80] sm:$0xff] %vm567_vm2, %v1142_v29  ;;  %v1149_v31 = vpop.f32.mrb[2].mxu1  ;;  %v600_v33 = vsel %vm567_vm2, %v440_v25, 0.0 }
  0xf8   : > { %571 = vst.msk [vmem:[%s1131_s9 + $0x18] sm:$0xff] %vm567_vm2, %v951_v28  ;;  %v443_v30 = vpop.f32.mrb[3].mxu0  ;;  %587 = vst.msk [vmem:[%s1131_s9 + $0x98] sm:$0xff] %vm567_vm2, %v1149_v31  ;;  %v1158_v36 = vpop.f32.mrb[3].mxu1  ;;  %v674_v40 = vmul.f32 %v951_v28, %v951_v28  ;;  %v706_v44 = vsel %vm567_vm2, %v673_v32, 0.0  ;;  %v605_v45 = vsel %vm567_vm2, %v951_v28, 0.0 }
  0xf9   : > { %569 = vst.msk [vmem:[%s1131_s9 + $0x8] sm:$0xff] %vm567_vm2, %v443_v30  ;;  %v601_v34 = vsel %vm567_vm2, %v443_v30, 0.0  ;;  %v672_v35 = vmul.f32 %v443_v30, %v443_v30  ;;  %585 = vst.msk [vmem:[%s1131_s9 + $0x88] sm:$0xff] %vm567_vm2, %v1158_v36  ;;  %v703_v39 = vsel %vm567_vm2, %v671_v27, 0.0 }
  0xfa   : > { %v602_v37 = vadd.f32 %v601_v34, %v600_v33  ;;  %v708_v51 = vsel %vm567_vm2, %v674_v40, 0.0 }
  0xfb   : > { %v704_v41 = vsel %vm567_vm2, %v672_v35, 0.0 }
  0xfc   : > { %v604_v42 = vadd.f32 %v603_v38, %v602_v37  ;;  %v705_v43 = vadd.f32 %v704_v41, %v703_v39 }
  0xfd   : > { %v954_v46 = vpop.f32.mrb[4].mxu0  ;;  %v1170_v50 = vpop.f32.mrb[4].mxu1 }
  0xfe   : > { %v707_v47 = vadd.f32 %v706_v44, %v705_v43  ;;  %574 = vst.msk [vmem:[%s1131_s9 + $0x30] sm:$0xff] %vm567_vm2, %v954_v46  ;;  %v456_v48 = vpop.f32.mrb[5].mxu0  ;;  %v606_v49 = vadd.f32 %v605_v45, %v604_v42  ;;  %590 = vst.msk [vmem:[%s1131_s9 + $0xb0] sm:$0xff] %vm567_vm2, %v1170_v50  ;;  %v1179_v55 = vpop.f32.mrb[5].mxu1  ;;  %v677_v60 = vmul.f32 %v954_v46, %v954_v46  ;;  %v611_v3 = vsel %vm567_vm2, %v954_v46, 0.0 }
  0xff   : > { %572 = vst.msk [vmem:[%s1131_s9 + $0x20] sm:$0xff] %vm567_vm2, %v456_v48  ;;  %v607_v52 = vsel %vm567_vm2, %v456_v48, 0.0  ;;  %v675_v53 = vmul.f32 %v456_v48, %v456_v48  ;;  %v955_v54 = vpop.f32.mrb[6].mxu0  ;;  %588 = vst.msk [vmem:[%s1131_s9 + $0xa0] sm:$0xff] %vm567_vm2, %v1179_v55  ;;  %v1186_v59 = vpop.f32.mrb[6].mxu1 }
 0x100   : > { %v608_v56 = vadd.f32 %v607_v52, %v606_v49  ;;  %v709_v57 = vadd.f32 %v708_v51, %v707_v47  ;;  %575 = vst.msk [vmem:[%s1131_s9 + $0x38] sm:$0xff] %vm567_vm2, %v955_v54  ;;  %v459_v58 = vpop.f32.mrb[7].mxu0  ;;  %591 = vst.msk [vmem:[%s1131_s9 + $0xb8] sm:$0xff] %vm567_vm2, %v1186_v59  ;;  %v1195_v0 = vpop.f32.mrb[7].mxu1  ;;  %v678_v4 = vmul.f32 %v955_v54, %v955_v54  ;;  %v714_v8 = vsel %vm567_vm2, %v677_v60, 0.0 }
 0x101   : > { %v710_v61 = vsel %vm567_vm2, %v675_v53, 0.0  ;;  %573 = vst.msk [vmem:[%s1131_s9 + $0x28] sm:$0xff] %vm567_vm2, %v459_v58  ;;  %v609_v62 = vsel %vm567_vm2, %v459_v58, 0.0  ;;  %v676_v63 = vmul.f32 %v459_v58, %v459_v58  ;;  %589 = vst.msk [vmem:[%s1131_s9 + $0xa8] sm:$0xff] %vm567_vm2, %v1195_v0  ;;  %v613_v9 = vsel %vm567_vm2, %v955_v54, 0.0 }
 0x102   : > { %v711_v1 = vadd.f32 %v710_v61, %v709_v57  ;;  %v610_v2 = vadd.f32 %v609_v62, %v608_v56  ;;  %v716_v15 = vsel %vm567_vm2, %v678_v4, 0.0 }
 0x103   : > { %v712_v5 = vsel %vm567_vm2, %v676_v63, 0.0 }
 0x104   : > { %v612_v6 = vadd.f32 %v611_v3, %v610_v2  ;;  %v713_v7 = vadd.f32 %v712_v5, %v711_v1 }
 0x105   : > { %v958_v10 = vpop.f32.mrb[8].mxu0  ;;  %v1206_v14 = vpop.f32.mrb[8].mxu1 }
 0x106   : > { %v715_v11 = vadd.f32 %v714_v8, %v713_v7  ;;  %578 = vst.msk [vmem:[%s1131_s9 + $0x50] sm:$0xff] %vm567_vm2, %v958_v10  ;;  %v472_v12 = vpop.f32.mrb[9].mxu0  ;;  %v614_v13 = vadd.f32 %v613_v9, %v612_v6  ;;  %594 = vst.msk [vmem:[%s1131_s9 + $0xd0] sm:$0xff] %vm567_vm2, %v1206_v14  ;;  %v1215_v19 = vpop.f32.mrb[9].mxu1  ;;  %v681_v24 = vmul.f32 %v958_v10, %v958_v10  ;;  %v619_v34 = vsel %vm567_vm2, %v958_v10, 0.0 }
 0x107   : > { %576 = vst.msk [vmem:[%s1131_s9 + $0x40] sm:$0xff] %vm567_vm2, %v472_v12  ;;  %v615_v16 = vsel %vm567_vm2, %v472_v12, 0.0  ;;  %v679_v17 = vmul.f32 %v472_v12, %v472_v12  ;;  %v959_v18 = vpop.f32.mrb[10].mxu0  ;;  %592 = vst.msk [vmem:[%s1131_s9 + $0xc0] sm:$0xff] %vm567_vm2, %v1215_v19  ;;  %v1222_v23 = vpop.f32.mrb[10].mxu1  ;;  %v687_v6 = vmul.f32 %v1142_v29, %v1142_v29 }
 0x108   : > { %v616_v20 = vadd.f32 %v615_v16, %v614_v13  ;;  %v717_v21 = vadd.f32 %v716_v15, %v715_v11  ;;  %579 = vst.msk [vmem:[%s1131_s9 + $0x58] sm:$0xff] %vm567_vm2, %v959_v18  ;;  %v475_v22 = vpop.f32.mrb[11].mxu0  ;;  %595 = vst.msk [vmem:[%s1131_s9 + $0xd8] sm:$0xff] %vm567_vm2, %v1222_v23  ;;  %v1231_v30 = vpop.f32.mrb[11].mxu1  ;;  %v682_v35 = vmul.f32 %v959_v18, %v959_v18  ;;  %v722_v40 = vsel %vm567_vm2, %v681_v24, 0.0 }
 0x109   : > { %v718_v25 = vsel %vm567_vm2, %v679_v17, 0.0  ;;  %577 = vst.msk [vmem:[%s1131_s9 + $0x48] sm:$0xff] %vm567_vm2, %v475_v22  ;;  %v617_v27 = vsel %vm567_vm2, %v475_v22, 0.0  ;;  %v680_v28 = vmul.f32 %v475_v22, %v475_v22  ;;  %593 = vst.msk [vmem:[%s1131_s9 + $0xc8] sm:$0xff] %vm567_vm2, %v1231_v30  ;;  %v621_v41 = vsel %vm567_vm2, %v959_v18, 0.0 }
 0x10a   : > { %v719_v32 = vadd.f32 %v718_v25, %v717_v21  ;;  %v618_v33 = vadd.f32 %v617_v27, %v616_v20  ;;  %v724_v47 = vsel %vm567_vm2, %v682_v35, 0.0  ;;  %v631_v11 = vsel %vm567_vm2, %v1142_v29, 0.0 }
 0x10b   : > { %v720_v37 = vsel %vm567_vm2, %v680_v28, 0.0  ;;  %v734_v17 = vsel %vm567_vm2, %v687_v6, 0.0  ;;  %v688_v18 = vmul.f32 %v1158_v36, %v1158_v36  ;;  %v689_v29 = vmul.f32 %v1135_v26, %v1135_v26 }
 0x10c   : > { %v620_v38 = vadd.f32 %v619_v34, %v618_v33  ;;  %v721_v39 = vadd.f32 %v720_v37, %v719_v32  ;;  %v633_v24 = vsel %vm567_vm2, %v1158_v36, 0.0  ;;  %v635_v28 = vsel %vm567_vm2, %v1135_v26, 0.0 }
 0x10d   : > { %v962_v42 = vpop.f32.mrb[12].mxu0  ;;  %v1242_v46 = vpop.f32.mrb[12].mxu1  ;;  %v690_v32 = vmul.f32 %v1149_v31, %v1149_v31  ;;  %v736_v33 = vsel %vm567_vm2, %v688_v18, 0.0  ;;  %v691_v34 = vmul.f32 %v1179_v55, %v1179_v55  ;;  %v637_v36 = vsel %vm567_vm2, %v1149_v31, 0.0 }
 0x10e   : > { %v723_v43 = vadd.f32 %v722_v40, %v721_v39  ;;  %582 = vst.msk [vmem:[%s1131_s9 + $0x70] sm:$0xff] %vm567_vm2, %v962_v42  ;;  %v488_v44 = vpop.f32.mrb[13].mxu0  ;;  %v622_v45 = vadd.f32 %v621_v41, %v620_v38  ;;  %598 = vst.msk [vmem:[%s1131_s9 + $0xf0] sm:$0xff] %vm567_vm2, %v1242_v46  ;;  %v1251_v52 = vpop.f32.mrb[13].mxu1  ;;  %v685_v58 = vmul.f32 %v962_v42, %v962_v42  ;;  %v627_v3 = vsel %vm567_vm2, %v962_v42, 0.0 }
 0x10f   : > { %580 = vst.msk [vmem:[%s1131_s9 + $0x60] sm:$0xff] %vm567_vm2, %v488_v44  ;;  %v623_v48 = vsel %vm567_vm2, %v488_v44, 0.0  ;;  %v683_v49 = vmul.f32 %v488_v44, %v488_v44  ;;  %v963_v51 = vpop.f32.mrb[14].mxu0  ;;  %596 = vst.msk [vmem:[%s1131_s9 + $0xe0] sm:$0xff] %vm567_vm2, %v1251_v52  ;;  %v1258_v57 = vpop.f32.mrb[14].mxu1  ;;  %v738_v38 = vsel %vm567_vm2, %v689_v29, 0.0  ;;  %v697_v6 = vmul.f32 %v1206_v14, %v1206_v14 }
 0x110   : > { %v624_v53 = vadd.f32 %v623_v48, %v622_v45  ;;  %v725_v54 = vadd.f32 %v724_v47, %v723_v43  ;;  %583 = vst.msk [vmem:[%s1131_s9 + $0x78] sm:$0xff] %vm567_vm2, %v963_v51  ;;  %v491_v56 = vpop.f32.mrb[15].mxu0  ;;  %599 = vst.msk [vmem:[%s1131_s9 + $0xf8] sm:$0xff] %vm567_vm2, %v1258_v57  ;;  %v1267_v63 = vpop.f32.mrb[15].mxu1  ;;  %v686_v4 = vmul.f32 %v963_v51, %v963_v51  ;;  %v730_v9 = vsel %vm567_vm2, %v685_v58, 0.0 }
 0x111   : > { %v726_v60 = vsel %vm567_vm2, %v683_v49, 0.0  ;;  %581 = vst.msk [vmem:[%s1131_s9 + $0x68] sm:$0xff] %vm567_vm2, %v491_v56  ;;  %v625_v61 = vsel %vm567_vm2, %v491_v56, 0.0  ;;  %v684_v62 = vmul.f32 %v491_v56, %v491_v56  ;;  %597 = vst.msk [vmem:[%s1131_s9 + $0xe8] sm:$0xff] %vm567_vm2, %v1267_v63  ;;  %v629_v10 = vsel %vm567_vm2, %v963_v51, 0.0 }
 0x112   : > { %v727_v1 = vadd.f32 %v726_v60, %v725_v54  ;;  %v626_v2 = vadd.f32 %v625_v61, %v624_v53  ;;  %v702_v12 = vmul.f32 %v1258_v57, %v1258_v57  ;;  %v732_v16 = vsel %vm567_vm2, %v686_v4, 0.0 }
 0x113   : > { %v728_v5 = vsel %vm567_vm2, %v684_v62, 0.0  ;;  %v639_v39 = vsel %vm567_vm2, %v1179_v55, 0.0  ;;  %v740_v41 = vsel %vm567_vm2, %v690_v32, 0.0  ;;  %v742_v42 = vsel %vm567_vm2, %v691_v34, 0.0 }
 0x114   : > { %v628_v7 = vadd.f32 %v627_v3, %v626_v2  ;;  %v729_v8 = vadd.f32 %v728_v5, %v727_v1  ;;  %v1287_v20 = vsel %vm567_vm2, %v702_v12, 0.0  ;;  %v692_v43 = vmul.f32 %v1195_v0, %v1195_v0 }
 0x115   : > { %v693_v47 = vmul.f32 %v1170_v50, %v1170_v50  ;;  %v641_v31 = vsel %vm567_vm2, %v1195_v0, 0.0  ;;  %v643_v55 = vsel %vm567_vm2, %v1170_v50, 0.0  ;;  %v694_v51 = vmul.f32 %v1186_v59, %v1186_v59 }
 0x116   : > { %v731_v13 = vadd.f32 %v730_v9, %v729_v8  ;;  %v630_v15 = vadd.f32 %v629_v10, %v628_v7  ;;  %v744_v53 = vsel %vm567_vm2, %v692_v43, 0.0  ;;  %v695_v54 = vmul.f32 %v1215_v19, %v1215_v19 }
 0x117   : > { %v746_v60 = vsel %vm567_vm2, %v693_v47, 0.0  ;;  %v645_v0 = vsel %vm567_vm2, %v1186_v59, 0.0  ;;  %v647_v61 = vsel %vm567_vm2, %v1215_v19, 0.0  ;;  %v748_v1 = vsel %vm567_vm2, %v694_v51, 0.0 }
 0x118   : > { %v632_v21 = vadd.f32 %v631_v11, %v630_v15  ;;  %v733_v22 = vadd.f32 %v732_v16, %v731_v13  ;;  %v750_v2 = vsel %vm567_vm2, %v695_v54, 0.0  ;;  %v696_v3 = vmul.f32 %v1231_v30, %v1231_v30 }
 0x119   : > { %v649_v59 = vsel %vm567_vm2, %v1231_v30, 0.0  ;;  %v651_v19 = vsel %vm567_vm2, %v1206_v14, 0.0  ;;  %v698_v9 = vmul.f32 %v1222_v23, %v1222_v23  ;;  %v699_v11 = vmul.f32 %v1251_v52, %v1251_v52 }
 0x11a   : > { %v735_v25 = vadd.f32 %v734_v17, %v733_v22  ;;  %v634_v27 = vadd.f32 %v633_v24, %v632_v21  ;;  %v752_v10 = vsel %vm567_vm2, %v696_v3, 0.0  ;;  %v754_v15 = vsel %vm567_vm2, %v697_v6, 0.0 }
 0x11b   : > { %v653_v30 = vsel %vm567_vm2, %v1222_v23, 0.0  ;;  %v655_v16 = vsel %vm567_vm2, %v1251_v52, 0.0  ;;  %v756_v18 = vsel %vm567_vm2, %v698_v9, 0.0  ;;  %v758_v21 = vsel %vm567_vm2, %v699_v11, 0.0 }
 0x11c   : > { %v636_v35 = vadd.f32 %v635_v28, %v634_v27  ;;  %v737_v37 = vadd.f32 %v736_v33, %v735_v25  ;;  %v700_v22 = vmul.f32 %v1267_v63, %v1267_v63  ;;  %v701_v25 = vmul.f32 %v1242_v46, %v1242_v46 }
 0x11d   : > { %v657_v23 = vsel %vm567_vm2, %v1267_v63, 0.0  ;;  %v659_v28 = vsel %vm567_vm2, %v1242_v46, 0.0 }
 0x11e   : > { %v739_v40 = vadd.f32 %v738_v38, %v737_v37  ;;  %v638_v26 = vadd.f32 %v637_v36, %v636_v35  ;;  %v760_v32 = vsel %vm567_vm2, %v700_v22, 0.0  ;;  %v762_v35 = vsel %vm567_vm2, %v701_v25, 0.0 }
 0x11f   : > { %v661_v37 = vsel %vm567_vm2, %v1258_v57, 0.0 }
 0x120   : > { %v640_v44 = vadd.f32 %v639_v39, %v638_v26  ;;  %v741_v45 = vadd.f32 %v740_v41, %v739_v40 }
 0x122   : > { %v743_v48 = vadd.f32 %v742_v42, %v741_v45  ;;  %v642_v49 = vadd.f32 %v641_v31, %v640_v44 }
 0x124   : > { %v644_v56 = vadd.f32 %v643_v55, %v642_v49  ;;  %v745_v58 = vadd.f32 %v744_v53, %v743_v48 }
 0x126   : > { %v747_v62 = vadd.f32 %v746_v60, %v745_v58  ;;  %v646_v50 = vadd.f32 %v645_v0, %v644_v56 }
 0x128   : > { %v648_v4 = vadd.f32 %v647_v61, %v646_v50  ;;  %v749_v5 = vadd.f32 %v748_v1, %v747_v62 }
 0x12a   : > { %v751_v7 = vadd.f32 %v750_v2, %v749_v5  ;;  %v650_v8 = vadd.f32 %v649_v59, %v648_v4 }
 0x12c   : > { %v652_v12 = vadd.f32 %v651_v19, %v650_v8  ;;  %v753_v13 = vadd.f32 %v752_v10, %v751_v7 }
 0x12e   : > { %v755_v17 = vadd.f32 %v754_v15, %v753_v13  ;;  %v654_v14 = vadd.f32 %v653_v30, %v652_v12 }
 0x130   : > { %v656_v29 = vadd.f32 %v655_v16, %v654_v14  ;;  %v757_v24 = vadd.f32 %v756_v18, %v755_v17 }
 0x132   : > { %v759_v52 = vadd.f32 %v758_v21, %v757_v24  ;;  %v658_v27 = vadd.f32 %v657_v23, %v656_v29 }
 0x134   : > { %v660_v33 = vadd.f32 %v659_v28, %v658_v27  ;;  %v761_v34 = vadd.f32 %v760_v32, %v759_v52 }
 0x136   : > { %v662_v38 = vadd.f32 %v661_v37, %v660_v33  ;;  %v763_v36 = vadd.f32 %v762_v35, %v761_v34 }
 0x138   : > { %v663_v39 = vrot.slane %v662_v38, 4  ;;  %v765_v63 = vadd.f32 %v1287_v20, %v763_v36 }
 0x13a   : > { %v664_v40 = vadd.f32 %v663_v39, %v662_v38  ;;  %v766_v26 = vrot.slane %v765_v63, 4 }
 0x13c   : > { %v665_v41 = vrot.slane %v664_v40, 2  ;;  %v767_v46 = vadd.f32 %v766_v26, %v765_v63 }
 0x13e   : > { %v666_v42 = vadd.f32 %v665_v41, %v664_v40  ;;  %v768_v43 = vrot.slane %v767_v46, 2 }
 0x140   : > { %v667_v44 = vrot.slane %v666_v42, 1  ;;  %v769_v45 = vadd.f32 %v768_v43, %v767_v46 }
 0x142   : > { %v668_v57 = vadd.f32 %v667_v44, %v666_v42  ;;  %v770_v47 = vrot.slane %v769_v45, 1 }
 0x144   : > { %670 = vst.msk [vmem:[%s184_s15] sm:$0x1] %vm669_vm3, %v668_v57  ;;  %v771_v31 = vadd.f32 %v770_v47, %v769_v45 }
 0x146   : > { %772 = vst.msk [vmem:[%s184_s15 + $0x1] sm:$0x1] %vm669_vm3, %v771_v31 }
 0x147 PF: > { %s14_s12 = sadd.s32 1, %s1033_s12  }
 0x148   : > { %p11_p5 = scmp.ge.s32.totalorder %s14_s12, 44  }
 0x14a   :  { %13 = sbr.rel (!%p11_p5) target bundleno = 1 (0x1), region = 70 }

// kernel: aspp_s_forward.25
= control target key start
LH: loop header
LB: loop body
LE: loop exit
PB: predicated region body
PF: predicated region fallthrough
CT: control target
= control target key end

     0   :  { %s646_s12 = smov 0   ;;  %s841_s0 = inlined_call_operand.vmem [shape: f32[10752,4], index: 0, kind: input, shape index: {}]   ;;  %s842_s1 = inlined_call_operand.vmem [shape: f32[1,4], index: 1, kind: input, shape index: {}]   ;;  %s843_s2 = inlined_call_operand.vmem [shape: f32[1,4], index: 2, kind: input, shape index: {}]   ;;  %s844_s3 = inlined_call_operand.vmem [shape: bf16[10752,4], index: 3, kind: output, shape index: {}]  }
   0x1 LB: > { %s533_s13 = sadd.s32 4294967295, %s624_s12   ;;  %p537_p0 = scmp.ge.s32.totalorder %s624_s12, 1  ;;  %s624_s12 = sphi %s646_s12, %s13_s12  }
   0x2   : > { %p138_p1 = scmp.lt.s32.totalorder %s624_s12, 43 }
   0x4   : > { %p139_p2 = pnand %p537_p0, %p138_p1 }
   0x5   : > { %s538_s14 = sshll.u32 (!%p139_p2), %s533_s13, 5  ;;  %v660_v0 = vld [vmem:[%s842_s1] ss:$0 sm:$0xff] (!%p139_p2)  ;;  %vm444_vm0 = vcmask (!%p139_p2), 27648  }
   0x6   : > { %142 = sbr.rel (%p139_p2) target bundleno = 56 (0x38), region = 32  ;;  %p163_p3 = scmp.lt.s32.totalorder (!%p139_p2), %s538_s14, 1343  ;;  %v670_v1 = vld [vmem:[%s843_s2] ss:$0 sm:$0xff] (!%p139_p2) }
   0xd   : > { %s846_s14 = smov (!%p163_p3, %s538_s14), 1343 }
   0xe   : > { %s539_s15 = sshll.u32 %s846_s14, 3  ;;  %s541_s23 = sshll.u32 %s846_s14, 2 }
   0xf   : > { %s665_s20 = scalar_lea.vmem %s841_s0, %s539_s15  ;;  %s699_s26 = scalar_lea.vmem %s844_s3, %s541_s23 }
  0x10   : > { %v174_v2 = vld [vmem:[%s665_s20] sm:$0xff]  ;;  %v175_v3 = vld [vmem:[%s665_s20 + $0x8] sm:$0xff]  ;;  %v176_v4 = vld [vmem:[%s665_s20 + $0x10] sm:$0xff] }
  0x11   : > { %v213_v5 = vmul.f32 %v660_v0, %v174_v2  ;;  %v214_v6 = vmul.f32 %v660_v0, %v175_v3  ;;  %v215_v7 = vmul.f32 %v660_v0, %v176_v4  ;;  %v177_v8 = vld [vmem:[%s665_s20 + $0x18] sm:$0xff]  ;;  %v178_v9 = vld [vmem:[%s665_s20 + $0x20] sm:$0xff]  ;;  %v179_v10 = vld [vmem:[%s665_s20 + $0x28] sm:$0xff] }
  0x12   : > { %v216_v11 = vmul.f32 %v660_v0, %v177_v8  ;;  %v217_v12 = vmul.f32 %v660_v0, %v178_v9  ;;  %v218_v13 = vmul.f32 %v660_v0, %v179_v10  ;;  %v180_v14 = vld [vmem:[%s665_s20 + $0x30] sm:$0xff]  ;;  %v181_v15 = vld [vmem:[%s665_s20 + $0x38] sm:$0xff]  ;;  %v182_v32 = vld [vmem:[%s665_s20 + $0x40] sm:$0xff] }
  0x13   : > { %v252_v16 = vadd.f32 %v670_v1, %v213_v5  ;;  %v253_v17 = vadd.f32 %v670_v1, %v214_v6  ;;  %v254_v18 = vadd.f32 %v670_v1, %v215_v7  ;;  %v219_v19 = vmul.f32 %v660_v0, %v180_v14  ;;  %v183_v33 = vld [vmem:[%s665_s20 + $0x48] sm:$0xff]  ;;  %v184_v34 = vld [vmem:[%s665_s20 + $0x50] sm:$0xff]  ;;  %v185_v39 = vld [vmem:[%s665_s20 + $0x58] sm:$0xff] }
  0x14   : > { %v255_v20 = vadd.f32 %v670_v1, %v216_v11  ;;  %v256_v21 = vadd.f32 %v670_v1, %v217_v12  ;;  %v257_v22 = vadd.f32 %v670_v1, %v218_v13  ;;  %v220_v23 = vmul.f32 %v660_v0, %v181_v15  ;;  %v186_v40 = vld [vmem:[%s665_s20 + $0x60] sm:$0xff]  ;;  %v187_v41 = vld [vmem:[%s665_s20 + $0x68] sm:$0xff]  ;;  %v188_v46 = vld [vmem:[%s665_s20 + $0x70] sm:$0xff] }
  0x15   : > { %v284_v24 = vmax.f32 %v252_v16, 0.0  ;;  %v285_v25 = vmax.f32 %v253_v17, 0.0  ;;  %v286_v26 = vmax.f32 %v254_v18, 0.0  ;;  %v258_v27 = vadd.f32 %v670_v1, %v219_v19  ;;  %v189_v51 = vld [vmem:[%s665_s20 + $0x78] sm:$0xff]  ;;  %v190_v10 = vld [vmem:[%s665_s20 + $0x80] sm:$0xff]  ;;  %v191_v11 = vld [vmem:[%s665_s20 + $0x88] sm:$0xff] }
  0x16   : > { %v287_v28 = vmax.f32 %v255_v20, 0.0  ;;  %v288_v29 = vmax.f32 %v256_v21, 0.0  ;;  %v289_v30 = vmax.f32 %v257_v22, 0.0  ;;  %v259_v31 = vadd.f32 %v670_v1, %v220_v23  ;;  %v192_v12 = vld [vmem:[%s665_s20 + $0x90] sm:$0xff]  ;;  %v193_v17 = vld [vmem:[%s665_s20 + $0x98] sm:$0xff]  ;;  %v194_v18 = vld [vmem:[%s665_s20 + $0xa0] sm:$0xff] }
  0x17   : > { %v578_v35 = vpack.c.bf16 %v284_v24, %v284_v24  ;;  %v579_v36 = vpack.c.bf16 %v285_v25, %v285_v25  ;;  %v580_v37 = vpack.c.bf16 %v286_v26, %v286_v26  ;;  %v290_v38 = vmax.f32 %v258_v27, 0.0  ;;  %v195_v19 = vld [vmem:[%s665_s20 + $0xa8] sm:$0xff]  ;;  %v196_v24 = vld [vmem:[%s665_s20 + $0xb0] sm:$0xff] }
  0x18   : > { %v581_v42 = vpack.c.bf16 %v287_v28, %v287_v28  ;;  %v582_v43 = vpack.c.bf16 %v288_v29, %v288_v29  ;;  %v583_v44 = vpack.c.bf16 %v289_v30, %v289_v30  ;;  %v291_v45 = vmax.f32 %v259_v31, 0.0  ;;  %v197_v29 = vld [vmem:[%s665_s20 + $0xb8] sm:$0xff] }
  0x19   : > { %445 = vst.msk [vmem:[%s699_s26] sm:$0xf] %vm444_vm0, %v578_v35  ;;  %446 = vst.msk [vmem:[%s699_s26 + $0x4] sm:$0xf] %vm444_vm0, %v579_v36  ;;  %v584_v47 = vpack.c.bf16 %v290_v38, %v290_v38  ;;  %v221_v48 = vmul.f32 %v660_v0, %v182_v32  ;;  %v222_v49 = vmul.f32 %v660_v0, %v183_v33 }
  0x1a   : > { %447 = vst.msk [vmem:[%s699_s26 + $0x8] sm:$0xf] %vm444_vm0, %v580_v37  ;;  %v223_v50 = vmul.f32 %v660_v0, %v184_v34  ;;  %448 = vst.msk [vmem:[%s699_s26 + $0xc] sm:$0xf] %vm444_vm0, %v581_v42  ;;  %v585_v52 = vpack.c.bf16 %v291_v45, %v291_v45  ;;  %v224_v53 = vmul.f32 %v660_v0, %v185_v39 }
  0x1b   : > { %449 = vst.msk [vmem:[%s699_s26 + $0x10] sm:$0xf] %vm444_vm0, %v582_v43  ;;  %450 = vst.msk [vmem:[%s699_s26 + $0x14] sm:$0xf] %vm444_vm0, %v583_v44  ;;  %v225_v54 = vmul.f32 %v660_v0, %v186_v40  ;;  %v226_v55 = vmul.f32 %v660_v0, %v187_v41  ;;  %v260_v56 = vadd.f32 %v670_v1, %v221_v48 }
  0x1c   : > { %451 = vst.msk [vmem:[%s699_s26 + $0x18] sm:$0xf] %vm444_vm0, %v584_v47  ;;  %v261_v57 = vadd.f32 %v670_v1, %v222_v49  ;;  %v262_v58 = vadd.f32 %v670_v1, %v223_v50  ;;  %v227_v59 = vmul.f32 %v660_v0, %v188_v46  ;;  %452 = vst.msk [vmem:[%s699_s26 + $0x1c] sm:$0xf] %vm444_vm0, %v585_v52  ;;  %v198_v50 = vld [vmem:[%s665_s20 + $0xc0] sm:$0xff]  ;;  %v200_v52 = vld [vmem:[%s665_s20 + $0xd0] sm:$0xff] }
  0x1d   : > { %v263_v60 = vadd.f32 %v670_v1, %v224_v53  ;;  %v264_v61 = vadd.f32 %v670_v1, %v225_v54  ;;  %v265_v62 = vadd.f32 %v670_v1, %v226_v55  ;;  %v228_v63 = vmul.f32 %v660_v0, %v189_v51  ;;  %v199_v51 = vld [vmem:[%s665_s20 + $0xc8] sm:$0xff] }
  0x1e   : > { %v292_v2 = vmax.f32 %v260_v56, 0.0  ;;  %v293_v3 = vmax.f32 %v261_v57, 0.0  ;;  %v294_v4 = vmax.f32 %v262_v58, 0.0  ;;  %v266_v5 = vadd.f32 %v670_v1, %v227_v59  ;;  %v201_v57 = vld [vmem:[%s665_s20 + $0xd8] sm:$0xff]  ;;  %v202_v58 = vld [vmem:[%s665_s20 + $0xe0] sm:$0xff]  ;;  %v203_v59 = vld [vmem:[%s665_s20 + $0xe8] sm:$0xff] }
  0x1f   : > { %v295_v6 = vmax.f32 %v263_v60, 0.0  ;;  %v296_v7 = vmax.f32 %v264_v61, 0.0  ;;  %v297_v8 = vmax.f32 %v265_v62, 0.0  ;;  %v267_v9 = vadd.f32 %v670_v1, %v228_v63 }
  0x20   : > { %v586_v13 = vpack.c.bf16 %v292_v2, %v292_v2  ;;  %v587_v14 = vpack.c.bf16 %v293_v3, %v293_v3  ;;  %v588_v15 = vpack.c.bf16 %v294_v4, %v294_v4  ;;  %v298_v16 = vmax.f32 %v266_v5, 0.0  ;;  %v204_v2 = vld [vmem:[%s665_s20 + $0xf0] sm:$0xff] }
  0x21   : > { %v589_v20 = vpack.c.bf16 %v295_v6, %v295_v6  ;;  %v590_v21 = vpack.c.bf16 %v296_v7, %v296_v7  ;;  %v591_v22 = vpack.c.bf16 %v297_v8, %v297_v8  ;;  %v299_v23 = vmax.f32 %v267_v9, 0.0  ;;  %v205_v7 = vld [vmem:[%s665_s20 + $0xf8] sm:$0xff] }
  0x22   : > { %453 = vst.msk [vmem:[%s699_s26 + $0x20] sm:$0xf] %vm444_vm0, %v586_v13  ;;  %454 = vst.msk [vmem:[%s699_s26 + $0x24] sm:$0xf] %vm444_vm0, %v587_v14  ;;  %v592_v25 = vpack.c.bf16 %v298_v16, %v298_v16  ;;  %v229_v26 = vmul.f32 %v660_v0, %v190_v10  ;;  %v230_v27 = vmul.f32 %v660_v0, %v191_v11 }
  0x23   : > { %455 = vst.msk [vmem:[%s699_s26 + $0x28] sm:$0xf] %vm444_vm0, %v588_v15  ;;  %v231_v28 = vmul.f32 %v660_v0, %v192_v12  ;;  %456 = vst.msk [vmem:[%s699_s26 + $0x2c] sm:$0xf] %vm444_vm0, %v589_v20  ;;  %v593_v30 = vpack.c.bf16 %v299_v23, %v299_v23  ;;  %v232_v31 = vmul.f32 %v660_v0, %v193_v17 }
  0x24   : > { %457 = vst.msk [vmem:[%s699_s26 + $0x30] sm:$0xf] %vm444_vm0, %v590_v21  ;;  %458 = vst.msk [vmem:[%s699_s26 + $0x34] sm:$0xf] %vm444_vm0, %v591_v22  ;;  %v233_v32 = vmul.f32 %v660_v0, %v194_v18  ;;  %v234_v33 = vmul.f32 %v660_v0, %v195_v19  ;;  %v268_v34 = vadd.f32 %v670_v1, %v229_v26 }
  0x25   : > { %459 = vst.msk [vmem:[%s699_s26 + $0x38] sm:$0xf] %vm444_vm0, %v592_v25  ;;  %v269_v35 = vadd.f32 %v670_v1, %v230_v27  ;;  %v270_v36 = vadd.f32 %v670_v1, %v231_v28  ;;  %v235_v37 = vmul.f32 %v660_v0, %v196_v24  ;;  %460 = vst.msk [vmem:[%s699_s26 + $0x3c] sm:$0xf] %vm444_vm0, %v593_v30 }
  0x26   : > { %v271_v38 = vadd.f32 %v670_v1, %v232_v31  ;;  %v272_v39 = vadd.f32 %v670_v1, %v233_v32  ;;  %v273_v40 = vadd.f32 %v670_v1, %v234_v33  ;;  %v236_v41 = vmul.f32 %v660_v0, %v197_v29 }
  0x27   : > { %v300_v42 = vmax.f32 %v268_v34, 0.0  ;;  %v301_v43 = vmax.f32 %v269_v35, 0.0  ;;  %v302_v44 = vmax.f32 %v270_v36, 0.0  ;;  %v274_v45 = vadd.f32 %v670_v1, %v235_v37 }
  0x28   : > { %v303_v46 = vmax.f32 %v271_v38, 0.0  ;;  %v304_v47 = vmax.f32 %v272_v39, 0.0  ;;  %v305_v48 = vmax.f32 %v273_v40, 0.0  ;;  %v275_v49 = vadd.f32 %v670_v1, %v236_v41 }
  0x29   : > { %v594_v53 = vpack.c.bf16 %v300_v42, %v300_v42  ;;  %v595_v54 = vpack.c.bf16 %v301_v43, %v301_v43  ;;  %v596_v55 = vpack.c.bf16 %v302_v44, %v302_v44  ;;  %v306_v56 = vmax.f32 %v274_v45, 0.0 }
  0x2a   : > { %v597_v60 = vpack.c.bf16 %v303_v46, %v303_v46  ;;  %v598_v61 = vpack.c.bf16 %v304_v47, %v304_v47  ;;  %v599_v62 = vpack.c.bf16 %v305_v48, %v305_v48  ;;  %v307_v63 = vmax.f32 %v275_v49, 0.0 }
  0x2b   : > { %461 = vst.msk [vmem:[%s699_s26 + $0x40] sm:$0xf] %vm444_vm0, %v594_v53  ;;  %462 = vst.msk [vmem:[%s699_s26 + $0x44] sm:$0xf] %vm444_vm0, %v595_v54  ;;  %v600_v3 = vpack.c.bf16 %v306_v56, %v306_v56  ;;  %v237_v4 = vmul.f32 %v660_v0, %v198_v50  ;;  %v238_v5 = vmul.f32 %v660_v0, %v199_v51 }
  0x2c   : > { %463 = vst.msk [vmem:[%s699_s26 + $0x48] sm:$0xf] %vm444_vm0, %v596_v55  ;;  %v239_v6 = vmul.f32 %v660_v0, %v200_v52  ;;  %464 = vst.msk [vmem:[%s699_s26 + $0x4c] sm:$0xf] %vm444_vm0, %v597_v60  ;;  %v601_v8 = vpack.c.bf16 %v307_v63, %v307_v63  ;;  %v240_v9 = vmul.f32 %v660_v0, %v201_v57 }
  0x2d   : > { %465 = vst.msk [vmem:[%s699_s26 + $0x50] sm:$0xf] %vm444_vm0, %v598_v61  ;;  %466 = vst.msk [vmem:[%s699_s26 + $0x54] sm:$0xf] %vm444_vm0, %v599_v62  ;;  %v241_v10 = vmul.f32 %v660_v0, %v202_v58  ;;  %v242_v11 = vmul.f32 %v660_v0, %v203_v59  ;;  %v276_v12 = vadd.f32 %v670_v1, %v237_v4 }
  0x2e   : > { %467 = vst.msk [vmem:[%s699_s26 + $0x58] sm:$0xf] %vm444_vm0, %v600_v3  ;;  %v277_v13 = vadd.f32 %v670_v1, %v238_v5  ;;  %v278_v14 = vadd.f32 %v670_v1, %v239_v6  ;;  %v243_v15 = vmul.f32 %v660_v0, %v204_v2  ;;  %468 = vst.msk [vmem:[%s699_s26 + $0x5c] sm:$0xf] %vm444_vm0, %v601_v8 }
  0x2f   : > { %v279_v16 = vadd.f32 %v670_v1, %v240_v9  ;;  %v280_v17 = vadd.f32 %v670_v1, %v241_v10  ;;  %v281_v18 = vadd.f32 %v670_v1, %v242_v11  ;;  %v244_v19 = vmul.f32 %v660_v0, %v205_v7 }
  0x30   : > { %v308_v20 = vmax.f32 %v276_v12, 0.0  ;;  %v309_v21 = vmax.f32 %v277_v13, 0.0  ;;  %v310_v22 = vmax.f32 %v278_v14, 0.0  ;;  %v282_v23 = vadd.f32 %v670_v1, %v243_v15 }
  0x31   : > { %v311_v24 = vmax.f32 %v279_v16, 0.0  ;;  %v312_v25 = vmax.f32 %v280_v17, 0.0  ;;  %v313_v26 = vmax.f32 %v281_v18, 0.0  ;;  %v283_v27 = vadd.f32 %v670_v1, %v244_v19 }
  0x32   : > { %v602_v28 = vpack.c.bf16 %v308_v20, %v308_v20  ;;  %v603_v29 = vpack.c.bf16 %v309_v21, %v309_v21  ;;  %v604_v0 = vpack.c.bf16 %v310_v22, %v310_v22  ;;  %v314_v30 = vmax.f32 %v282_v23, 0.0 }
  0x33   : > { %v605_v31 = vpack.c.bf16 %v311_v24, %v311_v24  ;;  %v606_v32 = vpack.c.bf16 %v312_v25, %v312_v25  ;;  %v607_v33 = vpack.c.bf16 %v313_v26, %v313_v26  ;;  %v315_v34 = vmax.f32 %v283_v27, 0.0 }
  0x34   : > { %469 = vst.msk [vmem:[%s699_s26 + $0x60] sm:$0xf] %vm444_vm0, %v602_v28  ;;  %470 = vst.msk [vmem:[%s699_s26 + $0x64] sm:$0xf] %vm444_vm0, %v603_v29  ;;  %v608_v35 = vpack.c.bf16 %v314_v30, %v314_v30 }
  0x35   : > { %471 = vst.msk [vmem:[%s699_s26 + $0x68] sm:$0xf] %vm444_vm0, %v604_v0  ;;  %472 = vst.msk [vmem:[%s699_s26 + $0x6c] sm:$0xf] %vm444_vm0, %v605_v31  ;;  %v609_v1 = vpack.c.bf16 %v315_v34, %v315_v34 }
  0x36   : > { %473 = vst.msk [vmem:[%s699_s26 + $0x70] sm:$0xf] %vm444_vm0, %v606_v32  ;;  %474 = vst.msk [vmem:[%s699_s26 + $0x74] sm:$0xf] %vm444_vm0, %v607_v33 }
  0x37   : > { %475 = vst.msk [vmem:[%s699_s26 + $0x78] sm:$0xf] %vm444_vm0, %v608_v35  ;;  %476 = vst.msk [vmem:[%s699_s26 + $0x7c] sm:$0xf] %vm444_vm0, %v609_v1 }
  0x38 PF: > { %s13_s12 = sadd.s32 1, %s624_s12  }
  0x39   : > { %p10_p4 = scmp.ge.s32.totalorder %s13_s12, 44  }
  0x3b   :  { %12 = sbr.rel (!%p10_p4) target bundleno = 1 (0x1), region = 62 }

// kernel: aspp_s_forward.26
= control target key start
LH: loop header
LB: loop body
LE: loop exit
PB: predicated region body
PF: predicated region fallthrough
CT: control target
= control target key end

     0   :  { %s1055_s12 = smov 0   ;;  %s1368_s0 = inlined_call_operand.vmem [shape: bf16[5888,108], index: 0, kind: input, shape index: {}]   ;;  %s1369_s1 = inlined_call_operand.vmem [shape: bf16[1,108,4], index: 1, kind: input, shape index: {}]   ;;  %s1370_s2 = inlined_call_operand.vmem [shape: f32[5888,4], index: 2, kind: output, shape index: {0}]   ;;  %s1371_s3 = inlined_call_operand.vmem [shape: f32[23,2,4], index: 3, kind: output, shape index: {1}]  }
   0x1 LB: > { %s1061_s13 = sadd.s32 4294967295, %s1033_s12   ;;  %p864_p0 = scmp.ge.s32.totalorder %s1033_s12, 1  ;;  %s1033_s12 = sphi %s1055_s12, %s14_s12  }
   0x2   : > { %p141_p1 = scmp.lt.s32.totalorder %s1033_s12, 24 }
   0x4   : > { %p142_p2 = pnand %p864_p0, %p141_p1 }
   0x5   : > { %v1004_v0 = vld [vmem:[%s1369_s1] sm:$0xff] (!%p142_p2)   ;;  %v1005_v1 = vld [vmem:[%s1369_s1 + $0x8] sm:$0xff] (!%p142_p2)   ;;  %s865_s18 = sshll.u32 (!%p142_p2), %s1061_s13, 5  ;;  %v1006_v2 = vld [vmem:[%s1369_s1 + $0x10] sm:$0xff] (!%p142_p2)   ;;  %vm353_vm0 = vcmask (!%p142_p2), 883712   ;;  %vm402_vm1 = vcmask (!%p142_p2), 1045504  }
   0x6   : > { %145 = sbr.rel (%p142_p2) target bundleno = 327 (0x147), region = 28  ;;  %934 = vmatprep.subr.bf16.mxu0 (!%p142_p2), %v1004_v0  ;;  %p170_p3 = scmp.lt.s32.totalorder (!%p142_p2), %s865_s18, 735  ;;  %980 = vmatprep.subr.bf16.mxu1 (!%p142_p2), %v1004_v0  ;;  %v1007_v3 = vld [vmem:[%s1369_s1 + $0x18] sm:$0xff] (!%p142_p2)   ;;  %v1008_v5 = vld [vmem:[%s1369_s1 + $0x20] sm:$0xff] (!%p142_p2)   ;;  %v1009_v6 = vld [vmem:[%s1369_s1 + $0x28] sm:$0xff] (!%p142_p2)   ;;  %vm567_vm2 = vcmask (!%p142_p2), 31744  }
   0x7   : > { %935 = vmatpush3.bf16.msra.mxu0 (!%p142_p2), %v1004_v0  ;;  %987 = vmatpush3.bf16.msra.mxu1 (!%p142_p2), %v1004_v0  ;;  %v1010_v8 = vld [vmem:[%s1369_s1 + $0x30] sm:$0x3f] (!%p142_p2)   ;;  %p181_p4 = scmp.lt.s32.totalorder (!%p142_p2), %s1061_s13, 22  ;;  %vm669_vm3 = vcmask (!%p142_p2), 24576  }
   0x8   : > { %936 = vmatprep.subr.bf16.mxu0 (!%p142_p2), %v1005_v1  ;;  %981 = vmatprep.subr.bf16.mxu1 (!%p142_p2), %v1005_v1  ;;  %v404_v9 = vsel (!%p142_p2), %vm402_vm1, %v1010_v8, 0 }
   0xb   : > { %937 = vmatpush3.bf16.msra.mxu0 (!%p142_p2), %v1005_v1  ;;  %988 = vmatpush3.bf16.msra.mxu1 (!%p142_p2), %v1005_v1 }
   0xc   : > { %938 = vmatprep.subr.bf16.mxu0 (!%p142_p2), %v1006_v2  ;;  %982 = vmatprep.subr.bf16.mxu1 (!%p142_p2), %v1006_v2 }
   0xd   : > { %s1373_s18 = smov (!%p170_p3, %s865_s18), 735  ;;  %s1375_s13 = smov (!%p181_p4, %s1061_s13), 22 }
   0xe   : > { %s866_s21 = sshll.u32 %s1373_s18, 2  ;;  %s868_s6 = sshll.u32 %s1373_s18, 3 }
   0xf   : > { %s1084_s26 = scalar_lea.vmem %s1368_s0, %s866_s21  ;;  %939 = vmatpush3.bf16.msra.mxu0 %v1006_v2  ;;  %989 = vmatpush3.bf16.msra.mxu1 %v1006_v2  ;;  %s1131_s9 = scalar_lea.vmem %s1370_s2, %s868_s6 }
  0x10   : > { %v1011_v4 = vld [vmem:[%s1084_s26] sm:$0xff]   ;;  %940 = vmatprep.subr.bf16.mxu0 %v1007_v3  ;;  %983 = vmatprep.subr.bf16.mxu1 %v1007_v3  ;;  %v1012_v10 = vld [vmem:[%s1084_s26 + $0x8] sm:$0xff]   ;;  %v1013_v11 = vld [vmem:[%s1084_s26 + $0x10] sm:$0xff]   ;;  %s869_s10 = sshll.u32 %s1375_s13, 1 }
  0x11   : > { %948 = vmatprep.mubr.msk.bf16.mxu0 %vm353_vm0, %v1011_v4  ;;  %v1019_v7 = vld [vmem:[%s1084_s26 + $0x40] sm:$0xff]   ;;  %v1020_v12 = vld [vmem:[%s1084_s26 + $0x48] sm:$0xff]   ;;  %v1021_v13 = vld [vmem:[%s1084_s26 + $0x50] sm:$0xff]   ;;  %s184_s15 = scalar_lea.vmem %s1371_s3, %s869_s10 }
  0x12   : > { %964 = vmatprep.mubr.msk.bf16.mxu1 %vm353_vm0, %v1019_v7  ;;  %v1014_v14 = vld [vmem:[%s1084_s26 + $0x18] sm:$0xff]   ;;  %v1015_v15 = vld [vmem:[%s1084_s26 + $0x20] sm:$0xff]   ;;  %v1016_v18 = vld [vmem:[%s1084_s26 + $0x28] sm:$0xff]  }
  0x13   : > { %941 = vmatpush3.bf16.msra.mxu0 %v1007_v3  ;;  %990 = vmatpush3.bf16.msra.mxu1 %v1007_v3  ;;  %v1022_v16 = vld [vmem:[%s1084_s26 + $0x58] sm:$0xff]   ;;  %v1023_v17 = vld [vmem:[%s1084_s26 + $0x60] sm:$0xff]   ;;  %v1017_v19 = vld [vmem:[%s1084_s26 + $0x30] sm:$0xff]  }
  0x14   : > { %942 = vmatprep.subr.bf16.mxu0 %v1008_v5  ;;  %984 = vmatprep.subr.bf16.mxu1 %v1008_v5  ;;  %v1024_v20 = vld [vmem:[%s1084_s26 + $0x68] sm:$0xff]   ;;  %v1025_v21 = vld [vmem:[%s1084_s26 + $0x70] sm:$0xff]   ;;  %v1018_v22 = vld [vmem:[%s1084_s26 + $0x38] sm:$0xff]  }
  0x15   : > { %v1026_v23 = vld [vmem:[%s1084_s26 + $0x78] sm:$0xff]  }
  0x17   : > { %943 = vmatpush3.bf16.msra.mxu0 %v1008_v5  ;;  %991 = vmatpush3.bf16.msra.mxu1 %v1008_v5 }
  0x18   : > { %944 = vmatprep.subr.bf16.mxu0 %v1009_v6  ;;  %985 = vmatprep.subr.bf16.mxu1 %v1009_v6 }
  0x1b   : > { %945 = vmatpush3.bf16.msra.mxu0 %v1009_v6  ;;  %992 = vmatpush3.bf16.msra.mxu1 %v1009_v6 }
  0x1c   : > { %994 = vmatprep.subr.msk.bf16.mxu0 %vm402_vm1, %v1010_v8  ;;  %995 = vmatprep.subr.msk.bf16.mxu1 %vm402_vm1, %v1010_v8 }
  0x1f   : > { %947 = vmatpush3.bf16.msra.mxu0 %v404_v9  ;;  %993 = vmatpush3.bf16.msra.mxu1 %v404_v9 }
  0x22   : > { %949 = vmatmul.mubr.msk.bf16.vlgmr.msra.gmra.mrb[0].mxu0 %vm353_vm0, %v1012_v10  ;;  %965 = vmatmul.mubr.msk.bf16.vlgmr.msra.gmra.mrb[0].mxu1 %vm353_vm0, %v1020_v12 }
  0x23   : > { %952 = vmatprep.mubr.msk.bf16.mxu0 %vm353_vm0, %v1013_v11  ;;  %968 = vmatprep.mubr.msk.bf16.mxu1 %vm353_vm0, %v1021_v13 }
  0x2a   : > { %953 = vmatmul.mubr.msk.bf16.gmra.mrb[4].mxu0 %vm353_vm0, %v1014_v14  ;;  %969 = vmatmul.mubr.msk.bf16.gmra.mrb[4].mxu1 %vm353_vm0, %v1022_v16 }
  0x2b   : > { %956 = vmatprep.mubr.msk.bf16.mxu0 %vm353_vm0, %v1015_v15  ;;  %972 = vmatprep.mubr.msk.bf16.mxu1 %vm353_vm0, %v1023_v17 }
  0x32   : > { %957 = vmatmul.mubr.msk.bf16.gmra.mrb[8].mxu0 %vm353_vm0, %v1016_v18  ;;  %973 = vmatmul.mubr.msk.bf16.gmra.mrb[8].mxu1 %vm353_vm0, %v1024_v20 }
  0x33   : > { %960 = vmatprep.mubr.msk.bf16.mxu0 %vm353_vm0, %v1017_v19  ;;  %976 = vmatprep.mubr.msk.bf16.mxu1 %vm353_vm0, %v1025_v21 }
  0x3a   : > { %961 = vmatmul.mubr.msk.bf16.gmra.mrb[12].mxu0 %vm353_vm0, %v1018_v22  ;;  %977 = vmatmul.mubr.msk.bf16.gmra.mrb[12].mxu1 %vm353_vm0, %v1026_v23 }
  0xf5   : > { %v950_v24 = vpop.f32.mrb[0].mxu0  ;;  %v1135_v26 = vpop.f32.mrb[0].mxu1 }
  0xf6   : > { %570 = vst.msk [vmem:[%s1131_s9 + $0x10] sm:$0xff] %vm567_vm2, %v950_v24  ;;  %v440_v25 = vpop.f32.mrb[1].mxu0  ;;  %586 = vst.msk [vmem:[%s1131_s9 + $0x90] sm:$0xff] %vm567_vm2, %v1135_v26  ;;  %v1142_v29 = vpop.f32.mrb[1].mxu1  ;;  %v673_v32 = vmul.f32 %v950_v24, %v950_v24  ;;  %v603_v38 = vsel %vm567_vm2, %v950_v24, 0.0 }
  0xf7   : > { %568 = vst.msk [vmem:[%s1131_s9] sm:$0xff] %vm567_vm2, %v440_v25  ;;  %v671_v27 = vmul.f32 %v440_v25, %v440_v25  ;;  %v951_v28 = vpop.f32.mrb[2].mxu0  ;;  %584 = vst.msk [vmem:[%s1131_s9 + $0x80] sm:$0xff] %vm567_vm2, %v1142_v29  ;;  %v1149_v31 = vpop.f32.mrb[2].mxu1  ;;  %v600_v33 = vsel %vm567_vm2, %v440_v25, 0.0 }
  0xf8   : > { %571 = vst.msk [vmem:[%s1131_s9 + $0x18] sm:$0xff] %vm567_vm2, %v951_v28  ;;  %v443_v30 = vpop.f32.mrb[3].mxu0  ;;  %587 = vst.msk [vmem:[%s1131_s9 + $0x98] sm:$0xff] %vm567_vm2, %v1149_v31  ;;  %v1158_v36 = vpop.f32.mrb[3].mxu1  ;;  %v674_v40 = vmul.f32 %v951_v28, %v951_v28  ;;  %v706_v44 = vsel %vm567_vm2, %v673_v32, 0.0  ;;  %v605_v45 = vsel %vm567_vm2, %v951_v28, 0.0 }
  0xf9   : > { %569 = vst.msk [vmem:[%s1131_s9 + $0x8] sm:$0xff] %vm567_vm2, %v443_v30  ;;  %v601_v34 = vsel %vm567_vm2, %v443_v30, 0.0  ;;  %v672_v35 = vmul.f32 %v443_v30, %v443_v30  ;;  %585 = vst.msk [vmem:[%s1131_s9 + $0x88] sm:$0xff] %vm567_vm2, %v1158_v36  ;;  %v703_v39 = vsel %vm567_vm2, %v671_v27, 0.0 }
  0xfa   : > { %v602_v37 = vadd.f32 %v601_v34, %v600_v33  ;;  %v708_v51 = vsel %vm567_vm2, %v674_v40, 0.0 }
  0xfb   : > { %v704_v41 = vsel %vm567_vm2, %v672_v35, 0.0 }
  0xfc   : > { %v604_v42 = vadd.f32 %v603_v38, %v602_v37  ;;  %v705_v43 = vadd.f32 %v704_v41, %v703_v39 }
  0xfd   : > { %v954_v46 = vpop.f32.mrb[4].mxu0  ;;  %v1170_v50 = vpop.f32.mrb[4].mxu1 }
  0xfe   : > { %v707_v47 = vadd.f32 %v706_v44, %v705_v43  ;;  %574 = vst.msk [vmem:[%s1131_s9 + $0x30] sm:$0xff] %vm567_vm2, %v954_v46  ;;  %v456_v48 = vpop.f32.mrb[5].mxu0  ;;  %v606_v49 = vadd.f32 %v605_v45, %v604_v42  ;;  %590 = vst.msk [vmem:[%s1131_s9 + $0xb0] sm:$0xff] %vm567_vm2, %v1170_v50  ;;  %v1179_v55 = vpop.f32.mrb[5].mxu1  ;;  %v677_v60 = vmul.f32 %v954_v46, %v954_v46  ;;  %v611_v3 = vsel %vm567_vm2, %v954_v46, 0.0 }
  0xff   : > { %572 = vst.msk [vmem:[%s1131_s9 + $0x20] sm:$0xff] %vm567_vm2, %v456_v48  ;;  %v607_v52 = vsel %vm567_vm2, %v456_v48, 0.0  ;;  %v675_v53 = vmul.f32 %v456_v48, %v456_v48  ;;  %v955_v54 = vpop.f32.mrb[6].mxu0  ;;  %588 = vst.msk [vmem:[%s1131_s9 + $0xa0] sm:$0xff] %vm567_vm2, %v1179_v55  ;;  %v1186_v59 = vpop.f32.mrb[6].mxu1 }
 0x100   : > { %v608_v56 = vadd.f32 %v607_v52, %v606_v49  ;;  %v709_v57 = vadd.f32 %v708_v51, %v707_v47  ;;  %575 = vst.msk [vmem:[%s1131_s9 + $0x38] sm:$0xff] %vm567_vm2, %v955_v54  ;;  %v459_v58 = vpop.f32.mrb[7].mxu0  ;;  %591 = vst.msk [vmem:[%s1131_s9 + $0xb8] sm:$0xff] %vm567_vm2, %v1186_v59  ;;  %v1195_v0 = vpop.f32.mrb[7].mxu1  ;;  %v678_v4 = vmul.f32 %v955_v54, %v955_v54  ;;  %v714_v8 = vsel %vm567_vm2, %v677_v60, 0.0 }
 0x101   : > { %v710_v61 = vsel %vm567_vm2, %v675_v53, 0.0  ;;  %573 = vst.msk [vmem:[%s1131_s9 + $0x28] sm:$0xff] %vm567_vm2, %v459_v58  ;;  %v609_v62 = vsel %vm567_vm2, %v459_v58, 0.0  ;;  %v676_v63 = vmul.f32 %v459_v58, %v459_v58  ;;  %589 = vst.msk [vmem:[%s1131_s9 + $0xa8] sm:$0xff] %vm567_vm2, %v1195_v0  ;;  %v613_v9 = vsel %vm567_vm2, %v955_v54, 0.0 }
 0x102   : > { %v711_v1 = vadd.f32 %v710_v61, %v709_v57  ;;  %v610_v2 = vadd.f32 %v609_v62, %v608_v56  ;;  %v716_v15 = vsel %vm567_vm2, %v678_v4, 0.0 }
 0x103   : > { %v712_v5 = vsel %vm567_vm2, %v676_v63, 0.0 }
 0x104   : > { %v612_v6 = vadd.f32 %v611_v3, %v610_v2  ;;  %v713_v7 = vadd.f32 %v712_v5, %v711_v1 }
 0x105   : > { %v958_v10 = vpop.f32.mrb[8].mxu0  ;;  %v1206_v14 = vpop.f32.mrb[8].mxu1 }
 0x106   : > { %v715_v11 = vadd.f32 %v714_v8, %v713_v7  ;;  %578 = vst.msk [vmem:[%s1131_s9 + $0x50] sm:$0xff] %vm567_vm2, %v958_v10  ;;  %v472_v12 = vpop.f32.mrb[9].mxu0  ;;  %v614_v13 = vadd.f32 %v613_v9, %v612_v6  ;;  %594 = vst.msk [vmem:[%s1131_s9 + $0xd0] sm:$0xff] %vm567_vm2, %v1206_v14  ;;  %v1215_v19 = vpop.f32.mrb[9].mxu1  ;;  %v681_v24 = vmul.f32 %v958_v10, %v958_v10  ;;  %v619_v34 = vsel %vm567_vm2, %v958_v10, 0.0 }
 0x107   : > { %576 = vst.msk [vmem:[%s1131_s9 + $0x40] sm:$0xff] %vm567_vm2, %v472_v12  ;;  %v615_v16 = vsel %vm567_vm2, %v472_v12, 0.0  ;;  %v679_v17 = vmul.f32 %v472_v12, %v472_v12  ;;  %v959_v18 = vpop.f32.mrb[10].mxu0  ;;  %592 = vst.msk [vmem:[%s1131_s9 + $0xc0] sm:$0xff] %vm567_vm2, %v1215_v19  ;;  %v1222_v23 = vpop.f32.mrb[10].mxu1  ;;  %v687_v6 = vmul.f32 %v1142_v29, %v1142_v29 }
 0x108   : > { %v616_v20 = vadd.f32 %v615_v16, %v614_v13  ;;  %v717_v21 = vadd.f32 %v716_v15, %v715_v11  ;;  %579 = vst.msk [vmem:[%s1131_s9 + $0x58] sm:$0xff] %vm567_vm2, %v959_v18  ;;  %v475_v22 = vpop.f32.mrb[11].mxu0  ;;  %595 = vst.msk [vmem:[%s1131_s9 + $0xd8] sm:$0xff] %vm567_vm2, %v1222_v23  ;;  %v1231_v30 = vpop.f32.mrb[11].mxu1  ;;  %v682_v35 = vmul.f32 %v959_v18, %v959_v18  ;;  %v722_v40 = vsel %vm567_vm2, %v681_v24, 0.0 }
 0x109   : > { %v718_v25 = vsel %vm567_vm2, %v679_v17, 0.0  ;;  %577 = vst.msk [vmem:[%s1131_s9 + $0x48] sm:$0xff] %vm567_vm2, %v475_v22  ;;  %v617_v27 = vsel %vm567_vm2, %v475_v22, 0.0  ;;  %v680_v28 = vmul.f32 %v475_v22, %v475_v22  ;;  %593 = vst.msk [vmem:[%s1131_s9 + $0xc8] sm:$0xff] %vm567_vm2, %v1231_v30  ;;  %v621_v41 = vsel %vm567_vm2, %v959_v18, 0.0 }
 0x10a   : > { %v719_v32 = vadd.f32 %v718_v25, %v717_v21  ;;  %v618_v33 = vadd.f32 %v617_v27, %v616_v20  ;;  %v724_v47 = vsel %vm567_vm2, %v682_v35, 0.0  ;;  %v631_v11 = vsel %vm567_vm2, %v1142_v29, 0.0 }
 0x10b   : > { %v720_v37 = vsel %vm567_vm2, %v680_v28, 0.0  ;;  %v734_v17 = vsel %vm567_vm2, %v687_v6, 0.0  ;;  %v688_v18 = vmul.f32 %v1158_v36, %v1158_v36  ;;  %v689_v29 = vmul.f32 %v1135_v26, %v1135_v26 }
 0x10c   : > { %v620_v38 = vadd.f32 %v619_v34, %v618_v33  ;;  %v721_v39 = vadd.f32 %v720_v37, %v719_v32  ;;  %v633_v24 = vsel %vm567_vm2, %v1158_v36, 0.0  ;;  %v635_v28 = vsel %vm567_vm2, %v1135_v26, 0.0 }
 0x10d   : > { %v962_v42 = vpop.f32.mrb[12].mxu0  ;;  %v1242_v46 = vpop.f32.mrb[12].mxu1  ;;  %v690_v32 = vmul.f32 %v1149_v31, %v1149_v31  ;;  %v736_v33 = vsel %vm567_vm2, %v688_v18, 0.0  ;;  %v691_v34 = vmul.f32 %v1179_v55, %v1179_v55  ;;  %v637_v36 = vsel %vm567_vm2, %v1149_v31, 0.0 }
 0x10e   : > { %v723_v43 = vadd.f32 %v722_v40, %v721_v39  ;;  %582 = vst.msk [vmem:[%s1131_s9 + $0x70] sm:$0xff] %vm567_vm2, %v962_v42  ;;  %v488_v44 = vpop.f32.mrb[13].mxu0  ;;  %v622_v45 = vadd.f32 %v621_v41, %v620_v38  ;;  %598 = vst.msk [vmem:[%s1131_s9 + $0xf0] sm:$0xff] %vm567_vm2, %v1242_v46  ;;  %v1251_v52 = vpop.f32.mrb[13].mxu1  ;;  %v685_v58 = vmul.f32 %v962_v42, %v962_v42  ;;  %v627_v3 = vsel %vm567_vm2, %v962_v42, 0.0 }
 0x10f   : > { %580 = vst.msk [vmem:[%s1131_s9 + $0x60] sm:$0xff] %vm567_vm2, %v488_v44  ;;  %v623_v48 = vsel %vm567_vm2, %v488_v44, 0.0  ;;  %v683_v49 = vmul.f32 %v488_v44, %v488_v44  ;;  %v963_v51 = vpop.f32.mrb[14].mxu0  ;;  %596 = vst.msk [vmem:[%s1131_s9 + $0xe0] sm:$0xff] %vm567_vm2, %v1251_v52  ;;  %v1258_v57 = vpop.f32.mrb[14].mxu1  ;;  %v738_v38 = vsel %vm567_vm2, %v689_v29, 0.0  ;;  %v697_v6 = vmul.f32 %v1206_v14, %v1206_v14 }
 0x110   : > { %v624_v53 = vadd.f32 %v623_v48, %v622_v45  ;;  %v725_v54 = vadd.f32 %v724_v47, %v723_v43  ;;  %583 = vst.msk [vmem:[%s1131_s9 + $0x78] sm:$0xff] %vm567_vm2, %v963_v51  ;;  %v491_v56 = vpop.f32.mrb[15].mxu0  ;;  %599 = vst.msk [vmem:[%s1131_s9 + $0xf8] sm:$0xff] %vm567_vm2, %v1258_v57  ;;  %v1267_v63 = vpop.f32.mrb[15].mxu1  ;;  %v686_v4 = vmul.f32 %v963_v51, %v963_v51  ;;  %v730_v9 = vsel %vm567_vm2, %v685_v58, 0.0 }
 0x111   : > { %v726_v60 = vsel %vm567_vm2, %v683_v49, 0.0  ;;  %581 = vst.msk [vmem:[%s1131_s9 + $0x68] sm:$0xff] %vm567_vm2, %v491_v56  ;;  %v625_v61 = vsel %vm567_vm2, %v491_v56, 0.0  ;;  %v684_v62 = vmul.f32 %v491_v56, %v491_v56  ;;  %597 = vst.msk [vmem:[%s1131_s9 + $0xe8] sm:$0xff] %vm567_vm2, %v1267_v63  ;;  %v629_v10 = vsel %vm567_vm2, %v963_v51, 0.0 }
 0x112   : > { %v727_v1 = vadd.f32 %v726_v60, %v725_v54  ;;  %v626_v2 = vadd.f32 %v625_v61, %v624_v53  ;;  %v702_v12 = vmul.f32 %v1258_v57, %v1258_v57  ;;  %v732_v16 = vsel %vm567_vm2, %v686_v4, 0.0 }
 0x113   : > { %v728_v5 = vsel %vm567_vm2, %v684_v62, 0.0  ;;  %v639_v39 = vsel %vm567_vm2, %v1179_v55, 0.0  ;;  %v740_v41 = vsel %vm567_vm2, %v690_v32, 0.0  ;;  %v742_v42 = vsel %vm567_vm2, %v691_v34, 0.0 }
 0x114   : > { %v628_v7 = vadd.f32 %v627_v3, %v626_v2  ;;  %v729_v8 = vadd.f32 %v728_v5, %v727_v1  ;;  %v1287_v20 = vsel %vm567_vm2, %v702_v12, 0.0  ;;  %v692_v43 = vmul.f32 %v1195_v0, %v1195_v0 }
 0x115   : > { %v693_v47 = vmul.f32 %v1170_v50, %v1170_v50  ;;  %v641_v31 = vsel %vm567_vm2, %v1195_v0, 0.0  ;;  %v643_v55 = vsel %vm567_vm2, %v1170_v50, 0.0  ;;  %v694_v51 = vmul.f32 %v1186_v59, %v1186_v59 }
 0x116   : > { %v731_v13 = vadd.f32 %v730_v9, %v729_v8  ;;  %v630_v15 = vadd.f32 %v629_v10, %v628_v7  ;;  %v744_v53 = vsel %vm567_vm2, %v692_v43, 0.0  ;;  %v695_v54 = vmul.f32 %v1215_v19, %v1215_v19 }
 0x117   : > { %v746_v60 = vsel %vm567_vm2, %v693_v47, 0.0  ;;  %v645_v0 = vsel %vm567_vm2, %v1186_v59, 0.0  ;;  %v647_v61 = vsel %vm567_vm2, %v1215_v19, 0.0  ;;  %v748_v1 = vsel %vm567_vm2, %v694_v51, 0.0 }
 0x118   : > { %v632_v21 = vadd.f32 %v631_v11, %v630_v15  ;;  %v733_v22 = vadd.f32 %v732_v16, %v731_v13  ;;  %v750_v2 = vsel %vm567_vm2, %v695_v54, 0.0  ;;  %v696_v3 = vmul.f32 %v1231_v30, %v1231_v30 }
 0x119   : > { %v649_v59 = vsel %vm567_vm2, %v1231_v30, 0.0  ;;  %v651_v19 = vsel %vm567_vm2, %v1206_v14, 0.0  ;;  %v698_v9 = vmul.f32 %v1222_v23, %v1222_v23  ;;  %v699_v11 = vmul.f32 %v1251_v52, %v1251_v52 }
 0x11a   : > { %v735_v25 = vadd.f32 %v734_v17, %v733_v22  ;;  %v634_v27 = vadd.f32 %v633_v24, %v632_v21  ;;  %v752_v10 = vsel %vm567_vm2, %v696_v3, 0.0  ;;  %v754_v15 = vsel %vm567_vm2, %v697_v6, 0.0 }
 0x11b   : > { %v653_v30 = vsel %vm567_vm2, %v1222_v23, 0.0  ;;  %v655_v16 = vsel %vm567_vm2, %v1251_v52, 0.0  ;;  %v756_v18 = vsel %vm567_vm2, %v698_v9, 0.0  ;;  %v758_v21 = vsel %vm567_vm2, %v699_v11, 0.0 }
 0x11c   : > { %v636_v35 = vadd.f32 %v635_v28, %v634_v27  ;;  %v737_v37 = vadd.f32 %v736_v33, %v735_v25  ;;  %v700_v22 = vmul.f32 %v1267_v63, %v1267_v63  ;;  %v701_v25 = vmul.f32 %v1242_v46, %v1242_v46 }
 0x11d   : > { %v657_v23 = vsel %vm567_vm2, %v1267_v63, 0.0  ;;  %v659_v28 = vsel %vm567_vm2, %v1242_v46, 0.0 }
 0x11e   : > { %v739_v40 = vadd.f32 %v738_v38, %v737_v37  ;;  %v638_v26 = vadd.f32 %v637_v36, %v636_v35  ;;  %v760_v32 = vsel %vm567_vm2, %v700_v22, 0.0  ;;  %v762_v35 = vsel %vm567_vm2, %v701_v25, 0.0 }
 0x11f   : > { %v661_v37 = vsel %vm567_vm2, %v1258_v57, 0.0 }
 0x120   : > { %v640_v44 = vadd.f32 %v639_v39, %v638_v26  ;;  %v741_v45 = vadd.f32 %v740_v41, %v739_v40 }
 0x122   : > { %v743_v48 = vadd.f32 %v742_v42, %v741_v45  ;;  %v642_v49 = vadd.f32 %v641_v31, %v640_v44 }
 0x124   : > { %v644_v56 = vadd.f32 %v643_v55, %v642_v49  ;;  %v745_v58 = vadd.f32 %v744_v53, %v743_v48 }
 0x126   : > { %v747_v62 = vadd.f32 %v746_v60, %v745_v58  ;;  %v646_v50 = vadd.f32 %v645_v0, %v644_v56 }
 0x128   : > { %v648_v4 = vadd.f32 %v647_v61, %v646_v50  ;;  %v749_v5 = vadd.f32 %v748_v1, %v747_v62 }
 0x12a   : > { %v751_v7 = vadd.f32 %v750_v2, %v749_v5  ;;  %v650_v8 = vadd.f32 %v649_v59, %v648_v4 }
 0x12c   : > { %v652_v12 = vadd.f32 %v651_v19, %v650_v8  ;;  %v753_v13 = vadd.f32 %v752_v10, %v751_v7 }
 0x12e   : > { %v755_v17 = vadd.f32 %v754_v15, %v753_v13  ;;  %v654_v14 = vadd.f32 %v653_v30, %v652_v12 }
 0x130   : > { %v656_v29 = vadd.f32 %v655_v16, %v654_v14  ;;  %v757_v24 = vadd.f32 %v756_v18, %v755_v17 }
 0x132   : > { %v759_v52 = vadd.f32 %v758_v21, %v757_v24  ;;  %v658_v27 = vadd.f32 %v657_v23, %v656_v29 }
 0x134   : > { %v660_v33 = vadd.f32 %v659_v28, %v658_v27  ;;  %v761_v34 = vadd.f32 %v760_v32, %v759_v52 }
 0x136   : > { %v662_v38 = vadd.f32 %v661_v37, %v660_v33  ;;  %v763_v36 = vadd.f32 %v762_v35, %v761_v34 }
 0x138   : > { %v663_v39 = vrot.slane %v662_v38, 4  ;;  %v765_v63 = vadd.f32 %v1287_v20, %v763_v36 }
 0x13a   : > { %v664_v40 = vadd.f32 %v663_v39, %v662_v38  ;;  %v766_v26 = vrot.slane %v765_v63, 4 }
 0x13c   : > { %v665_v41 = vrot.slane %v664_v40, 2  ;;  %v767_v46 = vadd.f32 %v766_v26, %v765_v63 }
 0x13e   : > { %v666_v42 = vadd.f32 %v665_v41, %v664_v40  ;;  %v768_v43 = vrot.slane %v767_v46, 2 }
 0x140   : > { %v667_v44 = vrot.slane %v666_v42, 1  ;;  %v769_v45 = vadd.f32 %v768_v43, %v767_v46 }
 0x142   : > { %v668_v57 = vadd.f32 %v667_v44, %v666_v42  ;;  %v770_v47 = vrot.slane %v769_v45, 1 }
 0x144   : > { %670 = vst.msk [vmem:[%s184_s15] sm:$0x1] %vm669_vm3, %v668_v57  ;;  %v771_v31 = vadd.f32 %v770_v47, %v769_v45 }
 0x146   : > { %772 = vst.msk [vmem:[%s184_s15 + $0x1] sm:$0x1] %vm669_vm3, %v771_v31 }
 0x147 PF: > { %s14_s12 = sadd.s32 1, %s1033_s12  }
 0x148   : > { %p11_p5 = scmp.ge.s32.totalorder %s14_s12, 25  }
 0x14a   :  { %13 = sbr.rel (!%p11_p5) target bundleno = 1 (0x1), region = 70 }

// kernel: aspp_s_forward.27
= control target key start
LH: loop header
LB: loop body
LE: loop exit
PB: predicated region body
PF: predicated region fallthrough
CT: control target
= control target key end

     0   :  { %s889_s15 = smov 0   ;;  %s1109_s0 = inlined_call_operand.vmem [shape: f32[5888,4], index: 0, kind: input, shape index: {}]   ;;  %s1110_s1 = inlined_call_operand.vmem [shape: f32[1,4], index: 1, kind: input, shape index: {}]   ;;  %s1111_s2 = inlined_call_operand.vmem [shape: f32[1,4], index: 2, kind: input, shape index: {}]   ;;  %s1112_s3 = inlined_call_operand.vmem [shape: bf16[5888,4], index: 3, kind: input, shape index: {}]   ;;  %s1113_s4 = inlined_call_operand.vmem [shape: bf16[5888,4], index: 4, kind: output, shape index: {}]  }
   0x1 LB: > { %s690_s16 = sadd.s32 4294967295, %s862_s15   ;;  %p694_p0 = scmp.ge.s32.totalorder %s862_s15, 1  ;;  %s862_s15 = sphi %s889_s15, %s14_s15  }
   0x2   : > { %p174_p1 = scmp.lt.s32.totalorder %s862_s15, 24 }
   0x4   : > { %p175_p2 = pnand %p694_p0, %p174_p1 }
   0x5   : > { %s695_s17 = sshll.u32 (!%p175_p2), %s690_s16, 5  ;;  %v904_v0 = vld [vmem:[%s1110_s1] ss:$0 sm:$0xff] (!%p175_p2)  ;;  %vm589_vm0 = vcmask (!%p175_p2), 27648  }
   0x6   : > { %178 = sbr.rel (%p175_p2) target bundleno = 72 (0x48), region = 36  ;;  %p206_p3 = scmp.lt.s32.totalorder (!%p175_p2), %s695_s17, 735  ;;  %v921_v1 = vld [vmem:[%s1111_s2] ss:$0 sm:$0xff] (!%p175_p2) }
   0xd   : > { %s1115_s17 = smov (!%p206_p3, %s695_s17), 735 }
   0xe   : > { %s696_s18 = sshll.u32 %s1115_s17, 3  ;;  %s698_s19 = sshll.u32 %s1115_s17, 2 }
   0xf   : > { %s909_s24 = scalar_lea.vmem %s1109_s0, %s696_s18  ;;  %s916_s27 = scalar_lea.vmem %s1112_s3, %s698_s19 }
  0x10   : > { %v223_v2 = vld [vmem:[%s909_s24] sm:$0xff]  ;;  %v224_v4 = vld [vmem:[%s909_s24 + $0x8] sm:$0xff]  ;;  %v225_v9 = vld [vmem:[%s909_s24 + $0x10] sm:$0xff]  ;;  %s954_s6 = scalar_lea.vmem %s1113_s4, %s698_s19 }
  0x11   : > { %v770_v3 = vld [vmem:[%s916_s27] sm:$0xff]   ;;  %v262_v5 = vmul.f32 %v904_v0, %v223_v2  ;;  %v263_v7 = vmul.f32 %v904_v0, %v224_v4  ;;  %v833_v10 = vld [vmem:[%s916_s27 + $0x8] sm:$0xff]   ;;  %v226_v11 = vld [vmem:[%s909_s24 + $0x18] sm:$0xff]  ;;  %v264_v12 = vmul.f32 %v904_v0, %v225_v9 }
  0x12   : > { %v771_v6 = vunpack.c.l.bf16 %v770_v3  ;;  %v772_v8 = vunpack.c.h.bf16 %v770_v3  ;;  %v775_v13 = vunpack.c.l.bf16 %v833_v10  ;;  %v265_v14 = vmul.f32 %v904_v0, %v226_v11  ;;  %v227_v16 = vld [vmem:[%s909_s24 + $0x20] sm:$0xff]  ;;  %v834_v17 = vld [vmem:[%s916_s27 + $0x10] sm:$0xff]   ;;  %v228_v18 = vld [vmem:[%s909_s24 + $0x28] sm:$0xff] }
  0x13   : > { %v776_v15 = vunpack.c.h.bf16 %v833_v10  ;;  %v301_v19 = vadd.f32 %v921_v1, %v262_v5  ;;  %v302_v20 = vadd.f32 %v921_v1, %v263_v7  ;;  %v266_v21 = vmul.f32 %v904_v0, %v227_v16  ;;  %v229_v23 = vld [vmem:[%s909_s24 + $0x30] sm:$0xff]  ;;  %v835_v24 = vld [vmem:[%s916_s27 + $0x18] sm:$0xff]   ;;  %v231_v46 = vld [vmem:[%s909_s24 + $0x40] sm:$0xff] }
  0x14   : > { %v779_v22 = vunpack.c.l.bf16 %v834_v17  ;;  %v303_v25 = vadd.f32 %v921_v1, %v264_v12  ;;  %v304_v26 = vadd.f32 %v921_v1, %v265_v14  ;;  %v267_v27 = vmul.f32 %v904_v0, %v228_v18  ;;  %v230_v33 = vld [vmem:[%s909_s24 + $0x38] sm:$0xff]  ;;  %v836_v51 = vld [vmem:[%s916_s27 + $0x20] sm:$0xff]   ;;  %v232_v52 = vld [vmem:[%s909_s24 + $0x48] sm:$0xff] }
  0x15   : > { %v780_v28 = vunpack.c.h.bf16 %v834_v17  ;;  %v397_v29 = vadd.f32 %v771_v6, %v301_v19  ;;  %v398_v30 = vadd.f32 %v772_v8, %v302_v20  ;;  %v305_v31 = vadd.f32 %v921_v1, %v266_v21  ;;  %v233_v57 = vld [vmem:[%s909_s24 + $0x50] sm:$0xff]  ;;  %v837_v62 = vld [vmem:[%s916_s27 + $0x28] sm:$0xff]   ;;  %v234_v63 = vld [vmem:[%s909_s24 + $0x58] sm:$0xff] }
  0x16   : > { %v268_v32 = vmul.f32 %v904_v0, %v229_v23  ;;  %v399_v34 = vadd.f32 %v775_v13, %v303_v25  ;;  %v400_v35 = vadd.f32 %v776_v15, %v304_v26  ;;  %v306_v36 = vadd.f32 %v921_v1, %v267_v27  ;;  %v235_v6 = vld [vmem:[%s909_s24 + $0x60] sm:$0xff]  ;;  %v838_v11 = vld [vmem:[%s916_s27 + $0x30] sm:$0xff]   ;;  %v236_v12 = vld [vmem:[%s909_s24 + $0x68] sm:$0xff] }
  0x17   : > { %v783_v37 = vunpack.c.l.bf16 %v835_v24  ;;  %v429_v38 = vmax.f32 %v397_v29, 0.0  ;;  %v430_v39 = vmax.f32 %v398_v30, 0.0  ;;  %v401_v40 = vadd.f32 %v779_v22, %v305_v31  ;;  %v237_v25 = vld [vmem:[%s909_s24 + $0x70] sm:$0xff]  ;;  %v839_v30 = vld [vmem:[%s916_s27 + $0x38] sm:$0xff]  }
  0x18   : > { %v307_v41 = vadd.f32 %v921_v1, %v268_v32  ;;  %v431_v42 = vmax.f32 %v399_v34, 0.0  ;;  %v432_v43 = vmax.f32 %v400_v35, 0.0  ;;  %v402_v44 = vadd.f32 %v780_v28, %v306_v36  ;;  %v238_v35 = vld [vmem:[%s909_s24 + $0x78] sm:$0xff] }
  0x19   : > { %v269_v45 = vmul.f32 %v904_v0, %v230_v33  ;;  %v737_v47 = vpack.c.bf16 %v429_v38, %v429_v38  ;;  %v738_v48 = vpack.c.bf16 %v430_v39, %v430_v39  ;;  %v433_v49 = vmax.f32 %v401_v40, 0.0  ;;  %v239_v40 = vld [vmem:[%s909_s24 + $0x80] sm:$0xff] }
  0x1a   : > { %v403_v50 = vadd.f32 %v783_v37, %v307_v41  ;;  %v739_v53 = vpack.c.bf16 %v431_v42, %v431_v42  ;;  %v740_v54 = vpack.c.bf16 %v432_v43, %v432_v43  ;;  %v434_v55 = vmax.f32 %v402_v44, 0.0 }
  0x1b   : > { %v308_v56 = vadd.f32 %v921_v1, %v269_v45  ;;  %590 = vst.msk [vmem:[%s954_s6] sm:$0xf] %vm589_vm0, %v737_v47  ;;  %591 = vst.msk [vmem:[%s954_s6 + $0x4] sm:$0xf] %vm589_vm0, %v738_v48  ;;  %v741_v58 = vpack.c.bf16 %v433_v49, %v433_v49  ;;  %v784_v60 = vunpack.c.h.bf16 %v835_v24  ;;  %v270_v61 = vmul.f32 %v904_v0, %v231_v46  ;;  %v840_v45 = vld [vmem:[%s916_s27 + $0x40] sm:$0xff]  }
  0x1c   : > { %v435_v59 = vmax.f32 %v403_v50, 0.0  ;;  %592 = vst.msk [vmem:[%s954_s6 + $0x8] sm:$0xf] %vm589_vm0, %v739_v53  ;;  %593 = vst.msk [vmem:[%s954_s6 + $0xc] sm:$0xf] %vm589_vm0, %v740_v54  ;;  %v742_v2 = vpack.c.bf16 %v434_v55, %v434_v55  ;;  %v787_v3 = vunpack.c.l.bf16 %v836_v51  ;;  %v271_v4 = vmul.f32 %v904_v0, %v232_v52  ;;  %v240_v50 = vld [vmem:[%s909_s24 + $0x88] sm:$0xff] }
  0x1d   : > { %v788_v5 = vunpack.c.h.bf16 %v836_v51  ;;  %594 = vst.msk [vmem:[%s954_s6 + $0x10] sm:$0xf] %vm589_vm0, %v741_v58  ;;  %v404_v8 = vadd.f32 %v784_v60, %v308_v56  ;;  %v309_v9 = vadd.f32 %v921_v1, %v270_v61  ;;  %v272_v10 = vmul.f32 %v904_v0, %v233_v57  ;;  %v241_v55 = vld [vmem:[%s909_s24 + $0x90] sm:$0xff]  ;;  %v841_v56 = vld [vmem:[%s916_s27 + $0x48] sm:$0xff]   ;;  %v242_v61 = vld [vmem:[%s909_s24 + $0x98] sm:$0xff] }
  0x1e   : > { %v743_v7 = vpack.c.bf16 %v435_v59, %v435_v59  ;;  %595 = vst.msk [vmem:[%s954_s6 + $0x14] sm:$0xf] %vm589_vm0, %v742_v2  ;;  %v310_v13 = vadd.f32 %v921_v1, %v271_v4  ;;  %v791_v14 = vunpack.c.l.bf16 %v837_v62  ;;  %v273_v15 = vmul.f32 %v904_v0, %v234_v63  ;;  %v243_v4 = vld [vmem:[%s909_s24 + $0xa0] sm:$0xff] }
  0x1f   : > { %v792_v16 = vunpack.c.h.bf16 %v837_v62  ;;  %v436_v17 = vmax.f32 %v404_v8, 0.0  ;;  %v405_v18 = vadd.f32 %v787_v3, %v309_v9  ;;  %v311_v19 = vadd.f32 %v921_v1, %v272_v10  ;;  %v842_v9 = vld [vmem:[%s916_s27 + $0x50] sm:$0xff]  }
  0x20   : > { %596 = vst.msk [vmem:[%s954_s6 + $0x18] sm:$0xf] %vm589_vm0, %v743_v7  ;;  %v274_v20 = vmul.f32 %v904_v0, %v235_v6  ;;  %v406_v21 = vadd.f32 %v788_v5, %v310_v13  ;;  %v312_v22 = vadd.f32 %v921_v1, %v273_v15  ;;  %v795_v23 = vunpack.c.l.bf16 %v838_v11 }
  0x21   : > { %v275_v24 = vmul.f32 %v904_v0, %v236_v12  ;;  %v744_v26 = vpack.c.bf16 %v436_v17, %v436_v17  ;;  %v437_v27 = vmax.f32 %v405_v18, 0.0  ;;  %v407_v28 = vadd.f32 %v791_v14, %v311_v19  ;;  %v244_v14 = vld [vmem:[%s909_s24 + $0xa8] sm:$0xff] }
  0x22   : > { %v313_v29 = vadd.f32 %v921_v1, %v274_v20  ;;  %v438_v31 = vmax.f32 %v406_v21, 0.0  ;;  %v408_v32 = vadd.f32 %v792_v16, %v312_v22  ;;  %v796_v34 = vunpack.c.h.bf16 %v838_v11 }
  0x23   : > { %v314_v33 = vadd.f32 %v921_v1, %v275_v24  ;;  %597 = vst.msk [vmem:[%s954_s6 + $0x1c] sm:$0xf] %vm589_vm0, %v744_v26  ;;  %v745_v36 = vpack.c.bf16 %v437_v27, %v437_v27  ;;  %v439_v37 = vmax.f32 %v407_v28, 0.0  ;;  %v276_v39 = vmul.f32 %v904_v0, %v237_v25  ;;  %v843_v28 = vld [vmem:[%s916_s27 + $0x58] sm:$0xff]  }
  0x24   : > { %v409_v38 = vadd.f32 %v795_v23, %v313_v29  ;;  %v746_v41 = vpack.c.bf16 %v438_v31, %v438_v31  ;;  %v440_v42 = vmax.f32 %v408_v32, 0.0  ;;  %v799_v44 = vunpack.c.l.bf16 %v839_v30  ;;  %v245_v23 = vld [vmem:[%s909_s24 + $0xb0] sm:$0xff]  ;;  %v246_v29 = vld [vmem:[%s909_s24 + $0xb8] sm:$0xff] }
  0x25   : > { %v410_v43 = vadd.f32 %v796_v34, %v314_v33  ;;  %598 = vst.msk [vmem:[%s954_s6 + $0x20] sm:$0xf] %vm589_vm0, %v745_v36  ;;  %v747_v46 = vpack.c.bf16 %v439_v37, %v439_v37  ;;  %v315_v48 = vadd.f32 %v921_v1, %v276_v39  ;;  %v277_v49 = vmul.f32 %v904_v0, %v238_v35 }
  0x26   : > { %v441_v47 = vmax.f32 %v409_v38, 0.0  ;;  %599 = vst.msk [vmem:[%s954_s6 + $0x24] sm:$0xf] %vm589_vm0, %v746_v41  ;;  %v748_v51 = vpack.c.bf16 %v440_v42, %v440_v42  ;;  %v800_v53 = vunpack.c.h.bf16 %v839_v30  ;;  %v278_v54 = vmul.f32 %v904_v0, %v239_v40  ;;  %v247_v38 = vld [vmem:[%s909_s24 + $0xc0] sm:$0xff] }
  0x27   : > { %v442_v52 = vmax.f32 %v410_v43, 0.0  ;;  %600 = vst.msk [vmem:[%s954_s6 + $0x28] sm:$0xf] %vm589_vm0, %v747_v46  ;;  %v411_v58 = vadd.f32 %v799_v44, %v315_v48  ;;  %v316_v59 = vadd.f32 %v921_v1, %v277_v49  ;;  %v803_v60 = vunpack.c.l.bf16 %v840_v45  ;;  %v844_v43 = vld [vmem:[%s916_s27 + $0x60] sm:$0xff]   ;;  %v248_v48 = vld [vmem:[%s909_s24 + $0xc8] sm:$0xff] }
  0x28   : > { %v749_v57 = vpack.c.bf16 %v441_v47, %v441_v47  ;;  %601 = vst.msk [vmem:[%s954_s6 + $0x2c] sm:$0xf] %vm589_vm0, %v748_v51  ;;  %v317_v63 = vadd.f32 %v921_v1, %v278_v54  ;;  %v279_v2 = vmul.f32 %v904_v0, %v240_v50  ;;  %v804_v3 = vunpack.c.h.bf16 %v840_v45  ;;  %v845_v54 = vld [vmem:[%s916_s27 + $0x68] sm:$0xff]  }
  0x29   : > { %v750_v62 = vpack.c.bf16 %v442_v52, %v442_v52  ;;  %v443_v5 = vmax.f32 %v411_v58, 0.0  ;;  %v412_v6 = vadd.f32 %v800_v53, %v316_v59  ;;  %v280_v7 = vmul.f32 %v904_v0, %v241_v55  ;;  %v249_v53 = vld [vmem:[%s909_s24 + $0xd0] sm:$0xff]  ;;  %v250_v59 = vld [vmem:[%s909_s24 + $0xd8] sm:$0xff] }
  0x2a   : > { %602 = vst.msk [vmem:[%s954_s6 + $0x30] sm:$0xf] %vm589_vm0, %v749_v57  ;;  %v807_v8 = vunpack.c.l.bf16 %v841_v56  ;;  %v413_v10 = vadd.f32 %v803_v60, %v317_v63  ;;  %v318_v11 = vadd.f32 %v921_v1, %v279_v2  ;;  %v281_v12 = vmul.f32 %v904_v0, %v242_v61  ;;  %v251_v2 = vld [vmem:[%s909_s24 + $0xe0] sm:$0xff] }
  0x2b   : > { %603 = vst.msk [vmem:[%s954_s6 + $0x34] sm:$0xf] %vm589_vm0, %v750_v62  ;;  %v808_v13 = vunpack.c.h.bf16 %v841_v56  ;;  %v751_v15 = vpack.c.bf16 %v443_v5, %v443_v5  ;;  %v444_v16 = vmax.f32 %v412_v6, 0.0  ;;  %v319_v17 = vadd.f32 %v921_v1, %v280_v7 }
  0x2c   : > { %v282_v18 = vmul.f32 %v904_v0, %v243_v4  ;;  %v445_v19 = vmax.f32 %v413_v10, 0.0  ;;  %v414_v20 = vadd.f32 %v804_v3, %v318_v11  ;;  %v320_v21 = vadd.f32 %v921_v1, %v281_v12  ;;  %v846_v11 = vld [vmem:[%s916_s27 + $0x70] sm:$0xff]   ;;  %v252_v12 = vld [vmem:[%s909_s24 + $0xe8] sm:$0xff] }
  0x2d   : > { %v811_v22 = vunpack.c.l.bf16 %v842_v9  ;;  %604 = vst.msk [vmem:[%s954_s6 + $0x38] sm:$0xf] %vm589_vm0, %v751_v15  ;;  %v752_v24 = vpack.c.bf16 %v444_v16, %v444_v16  ;;  %v415_v25 = vadd.f32 %v807_v8, %v319_v17  ;;  %v283_v27 = vmul.f32 %v904_v0, %v244_v14 }
  0x2e   : > { %v321_v26 = vadd.f32 %v921_v1, %v282_v18  ;;  %v753_v30 = vpack.c.bf16 %v445_v19, %v445_v19  ;;  %v446_v31 = vmax.f32 %v414_v20, 0.0  ;;  %v416_v32 = vadd.f32 %v808_v13, %v320_v21  ;;  %v253_v21 = vld [vmem:[%s909_s24 + $0xf0] sm:$0xff] }
  0x2f   : > { %v812_v33 = vunpack.c.h.bf16 %v842_v9  ;;  %605 = vst.msk [vmem:[%s954_s6 + $0x3c] sm:$0xf] %vm589_vm0, %v752_v24  ;;  %v447_v34 = vmax.f32 %v415_v25, 0.0  ;;  %v322_v36 = vadd.f32 %v921_v1, %v283_v27  ;;  %v284_v37 = vmul.f32 %v904_v0, %v245_v23  ;;  %v254_v27 = vld [vmem:[%s909_s24 + $0xf8] sm:$0xff] }
  0x30   : > { %v417_v35 = vadd.f32 %v811_v22, %v321_v26  ;;  %606 = vst.msk [vmem:[%s954_s6 + $0x40] sm:$0xf] %vm589_vm0, %v753_v30  ;;  %v754_v39 = vpack.c.bf16 %v446_v31, %v446_v31  ;;  %v448_v40 = vmax.f32 %v416_v32, 0.0  ;;  %v815_v41 = vunpack.c.l.bf16 %v843_v28  ;;  %v847_v26 = vld [vmem:[%s916_s27 + $0x78] sm:$0xff]  }
  0x31   : > { %v285_v42 = vmul.f32 %v904_v0, %v246_v29  ;;  %v755_v44 = vpack.c.bf16 %v447_v34, %v447_v34  ;;  %v418_v46 = vadd.f32 %v812_v33, %v322_v36  ;;  %v323_v47 = vadd.f32 %v921_v1, %v284_v37 }
  0x32   : > { %v449_v45 = vmax.f32 %v417_v35, 0.0  ;;  %607 = vst.msk [vmem:[%s954_s6 + $0x44] sm:$0xf] %vm589_vm0, %v754_v39  ;;  %v756_v49 = vpack.c.bf16 %v448_v40, %v448_v40  ;;  %v816_v51 = vunpack.c.h.bf16 %v843_v28  ;;  %v286_v52 = vmul.f32 %v904_v0, %v247_v38 }
  0x33   : > { %v324_v50 = vadd.f32 %v921_v1, %v285_v42  ;;  %608 = vst.msk [vmem:[%s954_s6 + $0x48] sm:$0xf] %vm589_vm0, %v755_v44  ;;  %v450_v56 = vmax.f32 %v418_v46, 0.0  ;;  %v419_v57 = vadd.f32 %v815_v41, %v323_v47  ;;  %v819_v58 = vunpack.c.l.bf16 %v844_v43 }
  0x34   : > { %v757_v55 = vpack.c.bf16 %v449_v45, %v449_v45  ;;  %609 = vst.msk [vmem:[%s954_s6 + $0x4c] sm:$0xf] %vm589_vm0, %v756_v49  ;;  %v325_v61 = vadd.f32 %v921_v1, %v286_v52  ;;  %v287_v62 = vmul.f32 %v904_v0, %v248_v48  ;;  %v820_v63 = vunpack.c.h.bf16 %v844_v43 }
  0x35   : > { %v420_v60 = vadd.f32 %v816_v51, %v324_v50  ;;  %v758_v3 = vpack.c.bf16 %v450_v56, %v450_v56  ;;  %v451_v4 = vmax.f32 %v419_v57, 0.0  ;;  %v288_v5 = vmul.f32 %v904_v0, %v249_v53 }
  0x36   : > { %610 = vst.msk [vmem:[%s954_s6 + $0x50] sm:$0xf] %vm589_vm0, %v757_v55  ;;  %v823_v6 = vunpack.c.l.bf16 %v845_v54  ;;  %v421_v8 = vadd.f32 %v819_v58, %v325_v61  ;;  %v326_v9 = vadd.f32 %v921_v1, %v287_v62  ;;  %v289_v10 = vmul.f32 %v904_v0, %v250_v59 }
  0x37   : > { %v452_v7 = vmax.f32 %v420_v60, 0.0  ;;  %611 = vst.msk [vmem:[%s954_s6 + $0x54] sm:$0xf] %vm589_vm0, %v758_v3  ;;  %v759_v13 = vpack.c.bf16 %v451_v4, %v451_v4  ;;  %v327_v14 = vadd.f32 %v921_v1, %v288_v5  ;;  %v824_v15 = vunpack.c.h.bf16 %v845_v54 }
  0x38   : > { %v290_v16 = vmul.f32 %v904_v0, %v251_v2  ;;  %v453_v18 = vmax.f32 %v421_v8, 0.0  ;;  %v422_v19 = vadd.f32 %v820_v63, %v326_v9  ;;  %v328_v20 = vadd.f32 %v921_v1, %v289_v10 }
  0x39   : > { %v760_v17 = vpack.c.bf16 %v452_v7, %v452_v7  ;;  %612 = vst.msk [vmem:[%s954_s6 + $0x58] sm:$0xf] %vm589_vm0, %v759_v13  ;;  %v423_v22 = vadd.f32 %v823_v6, %v327_v14  ;;  %v827_v24 = vunpack.c.l.bf16 %v846_v11  ;;  %v291_v25 = vmul.f32 %v904_v0, %v252_v12 }
  0x3a   : > { %v329_v23 = vadd.f32 %v921_v1, %v290_v16  ;;  %v761_v28 = vpack.c.bf16 %v453_v18, %v453_v18  ;;  %v454_v29 = vmax.f32 %v422_v19, 0.0  ;;  %v424_v30 = vadd.f32 %v824_v15, %v328_v20 }
  0x3b   : > { %613 = vst.msk [vmem:[%s954_s6 + $0x5c] sm:$0xf] %vm589_vm0, %v760_v17  ;;  %v828_v31 = vunpack.c.h.bf16 %v846_v11  ;;  %v455_v32 = vmax.f32 %v423_v22, 0.0  ;;  %v330_v34 = vadd.f32 %v921_v1, %v291_v25  ;;  %v292_v35 = vmul.f32 %v904_v0, %v253_v21 }
  0x3c   : > { %v425_v33 = vadd.f32 %v827_v24, %v329_v23  ;;  %614 = vst.msk [vmem:[%s954_s6 + $0x60] sm:$0xf] %vm589_vm0, %v761_v28  ;;  %v762_v36 = vpack.c.bf16 %v454_v29, %v454_v29  ;;  %v456_v37 = vmax.f32 %v424_v30, 0.0  ;;  %v831_v38 = vunpack.c.l.bf16 %v847_v26 }
  0x3d   : > { %v293_v39 = vmul.f32 %v904_v0, %v254_v27  ;;  %v763_v40 = vpack.c.bf16 %v455_v32, %v455_v32  ;;  %v426_v42 = vadd.f32 %v828_v31, %v330_v34  ;;  %v331_v43 = vadd.f32 %v921_v1, %v292_v35 }
  0x3e   : > { %v457_v41 = vmax.f32 %v425_v33, 0.0  ;;  %615 = vst.msk [vmem:[%s954_s6 + $0x64] sm:$0xf] %vm589_vm0, %v762_v36  ;;  %v764_v44 = vpack.c.bf16 %v456_v37, %v456_v37  ;;  %v832_v46 = vunpack.c.h.bf16 %v847_v26 }
  0x3f   : > { %v332_v45 = vadd.f32 %v921_v1, %v293_v39  ;;  %616 = vst.msk [vmem:[%s954_s6 + $0x68] sm:$0xf] %vm589_vm0, %v763_v40  ;;  %v458_v48 = vmax.f32 %v426_v42, 0.0  ;;  %v427_v49 = vadd.f32 %v831_v38, %v331_v43 }
  0x40   : > { %v765_v47 = vpack.c.bf16 %v457_v41, %v457_v41  ;;  %617 = vst.msk [vmem:[%s954_s6 + $0x6c] sm:$0xf] %vm589_vm0, %v764_v44 }
  0x41   : > { %v428_v0 = vadd.f32 %v832_v46, %v332_v45  ;;  %v766_v50 = vpack.c.bf16 %v458_v48, %v458_v48  ;;  %v459_v51 = vmax.f32 %v427_v49, 0.0 }
  0x42   : > { %618 = vst.msk [vmem:[%s954_s6 + $0x70] sm:$0xf] %vm589_vm0, %v765_v47 }
  0x43   : > { %v460_v52 = vmax.f32 %v428_v0, 0.0  ;;  %619 = vst.msk [vmem:[%s954_s6 + $0x74] sm:$0xf] %vm589_vm0, %v766_v50  ;;  %v767_v53 = vpack.c.bf16 %v459_v51, %v459_v51 }
  0x45   : > { %v768_v54 = vpack.c.bf16 %v460_v52, %v460_v52  ;;  %620 = vst.msk [vmem:[%s954_s6 + $0x78] sm:$0xf] %vm589_vm0, %v767_v53 }
  0x47   : > { %621 = vst.msk [vmem:[%s954_s6 + $0x7c] sm:$0xf] %vm589_vm0, %v768_v54 }
  0x48 PF: > { %s14_s15 = sadd.s32 1, %s862_s15  }
  0x49   : > { %p11_p4 = scmp.ge.s32.totalorder %s14_s15, 25  }
  0x4b   :  { %13 = sbr.rel (!%p11_p4) target bundleno = 1 (0x1), region = 69 }

// kernel: aspp_s_forward.28
= control target key start
LH: loop header
LB: loop body
LE: loop exit
PB: predicated region body
PF: predicated region fallthrough
CT: control target
= control target key end

     0   :  { %s1055_s12 = smov 0   ;;  %s1368_s0 = inlined_call_operand.vmem [shape: bf16[2816,108], index: 0, kind: input, shape index: {}]   ;;  %s1369_s1 = inlined_call_operand.vmem [shape: bf16[1,108,4], index: 1, kind: input, shape index: {}]   ;;  %s1370_s2 = inlined_call_operand.vmem [shape: f32[2816,4], index: 2, kind: output, shape index: {0}]   ;;  %s1371_s3 = inlined_call_operand.vmem [shape: f32[11,2,4], index: 3, kind: output, shape index: {1}]  }
   0x1 LB: > { %s1061_s13 = sadd.s32 4294967295, %s1033_s12   ;;  %p864_p0 = scmp.ge.s32.totalorder %s1033_s12, 1  ;;  %s1033_s12 = sphi %s1055_s12, %s14_s12  }
   0x2   : > { %p141_p1 = scmp.lt.s32.totalorder %s1033_s12, 12 }
   0x4   : > { %p142_p2 = pnand %p864_p0, %p141_p1 }
   0x5   : > { %v1004_v0 = vld [vmem:[%s1369_s1] sm:$0xff] (!%p142_p2)   ;;  %v1005_v1 = vld [vmem:[%s1369_s1 + $0x8] sm:$0xff] (!%p142_p2)   ;;  %s865_s18 = sshll.u32 (!%p142_p2), %s1061_s13, 5  ;;  %v1006_v2 = vld [vmem:[%s1369_s1 + $0x10] sm:$0xff] (!%p142_p2)   ;;  %vm353_vm0 = vcmask (!%p142_p2), 883712   ;;  %vm402_vm1 = vcmask (!%p142_p2), 1045504  }
   0x6   : > { %145 = sbr.rel (%p142_p2) target bundleno = 327 (0x147), region = 28  ;;  %934 = vmatprep.subr.bf16.mxu0 (!%p142_p2), %v1004_v0  ;;  %p170_p3 = scmp.lt.s32.totalorder (!%p142_p2), %s865_s18, 351  ;;  %980 = vmatprep.subr.bf16.mxu1 (!%p142_p2), %v1004_v0  ;;  %v1007_v3 = vld [vmem:[%s1369_s1 + $0x18] sm:$0xff] (!%p142_p2)   ;;  %v1008_v5 = vld [vmem:[%s1369_s1 + $0x20] sm:$0xff] (!%p142_p2)   ;;  %v1009_v6 = vld [vmem:[%s1369_s1 + $0x28] sm:$0xff] (!%p142_p2)   ;;  %vm567_vm2 = vcmask (!%p142_p2), 31744  }
   0x7   : > { %935 = vmatpush3.bf16.msra.mxu0 (!%p142_p2), %v1004_v0  ;;  %987 = vmatpush3.bf16.msra.mxu1 (!%p142_p2), %v1004_v0  ;;  %v1010_v8 = vld [vmem:[%s1369_s1 + $0x30] sm:$0x3f] (!%p142_p2)   ;;  %p181_p4 = scmp.lt.s32.totalorder (!%p142_p2), %s1061_s13, 10  ;;  %vm669_vm3 = vcmask (!%p142_p2), 24576  }
   0x8   : > { %936 = vmatprep.subr.bf16.mxu0 (!%p142_p2), %v1005_v1  ;;  %981 = vmatprep.subr.bf16.mxu1 (!%p142_p2), %v1005_v1  ;;  %v404_v9 = vsel (!%p142_p2), %vm402_vm1, %v1010_v8, 0 }
   0xb   : > { %937 = vmatpush3.bf16.msra.mxu0 (!%p142_p2), %v1005_v1  ;;  %988 = vmatpush3.bf16.msra.mxu1 (!%p142_p2), %v1005_v1 }
   0xc   : > { %938 = vmatprep.subr.bf16.mxu0 (!%p142_p2), %v1006_v2  ;;  %982 = vmatprep.subr.bf16.mxu1 (!%p142_p2), %v1006_v2 }
   0xd   : > { %s1373_s18 = smov (!%p170_p3, %s865_s18), 351  ;;  %s1375_s13 = smov (!%p181_p4, %s1061_s13), 10 }
   0xe   : > { %s866_s21 = sshll.u32 %s1373_s18, 2  ;;  %s868_s6 = sshll.u32 %s1373_s18, 3 }
   0xf   : > { %s1084_s26 = scalar_lea.vmem %s1368_s0, %s866_s21  ;;  %939 = vmatpush3.bf16.msra.mxu0 %v1006_v2  ;;  %989 = vmatpush3.bf16.msra.mxu1 %v1006_v2  ;;  %s1131_s9 = scalar_lea.vmem %s1370_s2, %s868_s6 }
  0x10   : > { %v1011_v4 = vld [vmem:[%s1084_s26] sm:$0xff]   ;;  %940 = vmatprep.subr.bf16.mxu0 %v1007_v3  ;;  %983 = vmatprep.subr.bf16.mxu1 %v1007_v3  ;;  %v1012_v10 = vld [vmem:[%s1084_s26 + $0x8] sm:$0xff]   ;;  %v1013_v11 = vld [vmem:[%s1084_s26 + $0x10] sm:$0xff]   ;;  %s869_s10 = sshll.u32 %s1375_s13, 1 }
  0x11   : > { %948 = vmatprep.mubr.msk.bf16.mxu0 %vm353_vm0, %v1011_v4  ;;  %v1019_v7 = vld [vmem:[%s1084_s26 + $0x40] sm:$0xff]   ;;  %v1020_v12 = vld [vmem:[%s1084_s26 + $0x48] sm:$0xff]   ;;  %v1021_v13 = vld [vmem:[%s1084_s26 + $0x50] sm:$0xff]   ;;  %s184_s15 = scalar_lea.vmem %s1371_s3, %s869_s10 }
  0x12   : > { %964 = vmatprep.mubr.msk.bf16.mxu1 %vm353_vm0, %v1019_v7  ;;  %v1014_v14 = vld [vmem:[%s1084_s26 + $0x18] sm:$0xff]   ;;  %v1015_v15 = vld [vmem:[%s1084_s26 + $0x20] sm:$0xff]   ;;  %v1016_v18 = vld [vmem:[%s1084_s26 + $0x28] sm:$0xff]  }
  0x13   : > { %941 = vmatpush3.bf16.msra.mxu0 %v1007_v3  ;;  %990 = vmatpush3.bf16.msra.mxu1 %v1007_v3  ;;  %v1022_v16 = vld [vmem:[%s1084_s26 + $0x58] sm:$0xff]   ;;  %v1023_v17 = vld [vmem:[%s1084_s26 + $0x60] sm:$0xff]   ;;  %v1017_v19 = vld [vmem:[%s1084_s26 + $0x30] sm:$0xff]  }
  0x14   : > { %942 = vmatprep.subr.bf16.mxu0 %v1008_v5  ;;  %984 = vmatprep.subr.bf16.mxu1 %v1008_v5  ;;  %v1024_v20 = vld [vmem:[%s1084_s26 + $0x68] sm:$0xff]   ;;  %v1025_v21 = vld [vmem:[%s1084_s26 + $0x70] sm:$0xff]   ;;  %v1018_v22 = vld [vmem:[%s1084_s26 + $0x38] sm:$0xff]  }
  0x15   : > { %v1026_v23 = vld [vmem:[%s1084_s26 + $0x78] sm:$0xff]  }
  0x17   : > { %943 = vmatpush3.bf16.msra.mxu0 %v1008_v5  ;;  %991 = vmatpush3.bf16.msra.mxu1 %v1008_v5 }
  0x18   : > { %944 = vmatprep.subr.bf16.mxu0 %v1009_v6  ;;  %985 = vmatprep.subr.bf16.mxu1 %v1009_v6 }
  0x1b   : > { %945 = vmatpush3.bf16.msra.mxu0 %v1009_v6  ;;  %992 = vmatpush3.bf16.msra.mxu1 %v1009_v6 }
  0x1c   : > { %994 = vmatprep.subr.msk.bf16.mxu0 %vm402_vm1, %v1010_v8  ;;  %995 = vmatprep.subr.msk.bf16.mxu1 %vm402_vm1, %v1010_v8 }
  0x1f   : > { %947 = vmatpush3.bf16.msra.mxu0 %v404_v9  ;;  %993 = vmatpush3.bf16.msra.mxu1 %v404_v9 }
  0x22   : > { %949 = vmatmul.mubr.msk.bf16.vlgmr.msra.gmra.mrb[0].mxu0 %vm353_vm0, %v1012_v10  ;;  %965 = vmatmul.mubr.msk.bf16.vlgmr.msra.gmra.mrb[0].mxu1 %vm353_vm0, %v1020_v12 }
  0x23   : > { %952 = vmatprep.mubr.msk.bf16.mxu0 %vm353_vm0, %v1013_v11  ;;  %968 = vmatprep.mubr.msk.bf16.mxu1 %vm353_vm0, %v1021_v13 }
  0x2a   : > { %953 = vmatmul.mubr.msk.bf16.gmra.mrb[4].mxu0 %vm353_vm0, %v1014_v14  ;;  %969 = vmatmul.mubr.msk.bf16.gmra.mrb[4].mxu1 %vm353_vm0, %v1022_v16 }
  0x2b   : > { %956 = vmatprep.mubr.msk.bf16.mxu0 %vm353_vm0, %v1015_v15  ;;  %972 = vmatprep.mubr.msk.bf16.mxu1 %vm353_vm0, %v1023_v17 }
  0x32   : > { %957 = vmatmul.mubr.msk.bf16.gmra.mrb[8].mxu0 %vm353_vm0, %v1016_v18  ;;  %973 = vmatmul.mubr.msk.bf16.gmra.mrb[8].mxu1 %vm353_vm0, %v1024_v20 }
  0x33   : > { %960 = vmatprep.mubr.msk.bf16.mxu0 %vm353_vm0, %v1017_v19  ;;  %976 = vmatprep.mubr.msk.bf16.mxu1 %vm353_vm0, %v1025_v21 }
  0x3a   : > { %961 = vmatmul.mubr.msk.bf16.gmra.mrb[12].mxu0 %vm353_vm0, %v1018_v22  ;;  %977 = vmatmul.mubr.msk.bf16.gmra.mrb[12].mxu1 %vm353_vm0, %v1026_v23 }
  0xf5   : > { %v950_v24 = vpop.f32.mrb[0].mxu0  ;;  %v1135_v26 = vpop.f32.mrb[0].mxu1 }
  0xf6   : > { %570 = vst.msk [vmem:[%s1131_s9 + $0x10] sm:$0xff] %vm567_vm2, %v950_v24  ;;  %v440_v25 = vpop.f32.mrb[1].mxu0  ;;  %586 = vst.msk [vmem:[%s1131_s9 + $0x90] sm:$0xff] %vm567_vm2, %v1135_v26  ;;  %v1142_v29 = vpop.f32.mrb[1].mxu1  ;;  %v673_v32 = vmul.f32 %v950_v24, %v950_v24  ;;  %v603_v38 = vsel %vm567_vm2, %v950_v24, 0.0 }
  0xf7   : > { %568 = vst.msk [vmem:[%s1131_s9] sm:$0xff] %vm567_vm2, %v440_v25  ;;  %v671_v27 = vmul.f32 %v440_v25, %v440_v25  ;;  %v951_v28 = vpop.f32.mrb[2].mxu0  ;;  %584 = vst.msk [vmem:[%s1131_s9 + $0x80] sm:$0xff] %vm567_vm2, %v1142_v29  ;;  %v1149_v31 = vpop.f32.mrb[2].mxu1  ;;  %v600_v33 = vsel %vm567_vm2, %v440_v25, 0.0 }
  0xf8   : > { %571 = vst.msk [vmem:[%s1131_s9 + $0x18] sm:$0xff] %vm567_vm2, %v951_v28  ;;  %v443_v30 = vpop.f32.mrb[3].mxu0  ;;  %587 = vst.msk [vmem:[%s1131_s9 + $0x98] sm:$0xff] %vm567_vm2, %v1149_v31  ;;  %v1158_v36 = vpop.f32.mrb[3].mxu1  ;;  %v674_v40 = vmul.f32 %v951_v28, %v951_v28  ;;  %v706_v44 = vsel %vm567_vm2, %v673_v32, 0.0  ;;  %v605_v45 = vsel %vm567_vm2, %v951_v28, 0.0 }
  0xf9   : > { %569 = vst.msk [vmem:[%s1131_s9 + $0x8] sm:$0xff] %vm567_vm2, %v443_v30  ;;  %v601_v34 = vsel %vm567_vm2, %v443_v30, 0.0  ;;  %v672_v35 = vmul.f32 %v443_v30, %v443_v30  ;;  %585 = vst.msk [vmem:[%s1131_s9 + $0x88] sm:$0xff] %vm567_vm2, %v1158_v36  ;;  %v703_v39 = vsel %vm567_vm2, %v671_v27, 0.0 }
  0xfa   : > { %v602_v37 = vadd.f32 %v601_v34, %v600_v33  ;;  %v708_v51 = vsel %vm567_vm2, %v674_v40, 0.0 }
  0xfb   : > { %v704_v41 = vsel %vm567_vm2, %v672_v35, 0.0 }
  0xfc   : > { %v604_v42 = vadd.f32 %v603_v38, %v602_v37  ;;  %v705_v43 = vadd.f32 %v704_v41, %v703_v39 }
  0xfd   : > { %v954_v46 = vpop.f32.mrb[4].mxu0  ;;  %v1170_v50 = vpop.f32.mrb[4].mxu1 }
  0xfe   : > { %v707_v47 = vadd.f32 %v706_v44, %v705_v43  ;;  %574 = vst.msk [vmem:[%s1131_s9 + $0x30] sm:$0xff] %vm567_vm2, %v954_v46  ;;  %v456_v48 = vpop.f32.mrb[5].mxu0  ;;  %v606_v49 = vadd.f32 %v605_v45, %v604_v42  ;;  %590 = vst.msk [vmem:[%s1131_s9 + $0xb0] sm:$0xff] %vm567_vm2, %v1170_v50  ;;  %v1179_v55 = vpop.f32.mrb[5].mxu1  ;;  %v677_v60 = vmul.f32 %v954_v46, %v954_v46  ;;  %v611_v3 = vsel %vm567_vm2, %v954_v46, 0.0 }
  0xff   : > { %572 = vst.msk [vmem:[%s1131_s9 + $0x20] sm:$0xff] %vm567_vm2, %v456_v48  ;;  %v607_v52 = vsel %vm567_vm2, %v456_v48, 0.0  ;;  %v675_v53 = vmul.f32 %v456_v48, %v456_v48  ;;  %v955_v54 = vpop.f32.mrb[6].mxu0  ;;  %588 = vst.msk [vmem:[%s1131_s9 + $0xa0] sm:$0xff] %vm567_vm2, %v1179_v55  ;;  %v1186_v59 = vpop.f32.mrb[6].mxu1 }
 0x100   : > { %v608_v56 = vadd.f32 %v607_v52, %v606_v49  ;;  %v709_v57 = vadd.f32 %v708_v51, %v707_v47  ;;  %575 = vst.msk [vmem:[%s1131_s9 + $0x38] sm:$0xff] %vm567_vm2, %v955_v54  ;;  %v459_v58 = vpop.f32.mrb[7].mxu0  ;;  %591 = vst.msk [vmem:[%s1131_s9 + $0xb8] sm:$0xff] %vm567_vm2, %v1186_v59  ;;  %v1195_v0 = vpop.f32.mrb[7].mxu1  ;;  %v678_v4 = vmul.f32 %v955_v54, %v955_v54  ;;  %v714_v8 = vsel %vm567_vm2, %v677_v60, 0.0 }
 0x101   : > { %v710_v61 = vsel %vm567_vm2, %v675_v53, 0.0  ;;  %573 = vst.msk [vmem:[%s1131_s9 + $0x28] sm:$0xff] %vm567_vm2, %v459_v58  ;;  %v609_v62 = vsel %vm567_vm2, %v459_v58, 0.0  ;;  %v676_v63 = vmul.f32 %v459_v58, %v459_v58  ;;  %589 = vst.msk [vmem:[%s1131_s9 + $0xa8] sm:$0xff] %vm567_vm2, %v1195_v0  ;;  %v613_v9 = vsel %vm567_vm2, %v955_v54, 0.0 }
 0x102   : > { %v711_v1 = vadd.f32 %v710_v61, %v709_v57  ;;  %v610_v2 = vadd.f32 %v609_v62, %v608_v56  ;;  %v716_v15 = vsel %vm567_vm2, %v678_v4, 0.0 }
 0x103   : > { %v712_v5 = vsel %vm567_vm2, %v676_v63, 0.0 }
 0x104   : > { %v612_v6 = vadd.f32 %v611_v3, %v610_v2  ;;  %v713_v7 = vadd.f32 %v712_v5, %v711_v1 }
 0x105   : > { %v958_v10 = vpop.f32.mrb[8].mxu0  ;;  %v1206_v14 = vpop.f32.mrb[8].mxu1 }
 0x106   : > { %v715_v11 = vadd.f32 %v714_v8, %v713_v7  ;;  %578 = vst.msk [vmem:[%s1131_s9 + $0x50] sm:$0xff] %vm567_vm2, %v958_v10  ;;  %v472_v12 = vpop.f32.mrb[9].mxu0  ;;  %v614_v13 = vadd.f32 %v613_v9, %v612_v6  ;;  %594 = vst.msk [vmem:[%s1131_s9 + $0xd0] sm:$0xff] %vm567_vm2, %v1206_v14  ;;  %v1215_v19 = vpop.f32.mrb[9].mxu1  ;;  %v681_v24 = vmul.f32 %v958_v10, %v958_v10  ;;  %v619_v34 = vsel %vm567_vm2, %v958_v10, 0.0 }
 0x107   : > { %576 = vst.msk [vmem:[%s1131_s9 + $0x40] sm:$0xff] %vm567_vm2, %v472_v12  ;;  %v615_v16 = vsel %vm567_vm2, %v472_v12, 0.0  ;;  %v679_v17 = vmul.f32 %v472_v12, %v472_v12  ;;  %v959_v18 = vpop.f32.mrb[10].mxu0  ;;  %592 = vst.msk [vmem:[%s1131_s9 + $0xc0] sm:$0xff] %vm567_vm2, %v1215_v19  ;;  %v1222_v23 = vpop.f32.mrb[10].mxu1  ;;  %v687_v6 = vmul.f32 %v1142_v29, %v1142_v29 }
 0x108   : > { %v616_v20 = vadd.f32 %v615_v16, %v614_v13  ;;  %v717_v21 = vadd.f32 %v716_v15, %v715_v11  ;;  %579 = vst.msk [vmem:[%s1131_s9 + $0x58] sm:$0xff] %vm567_vm2, %v959_v18  ;;  %v475_v22 = vpop.f32.mrb[11].mxu0  ;;  %595 = vst.msk [vmem:[%s1131_s9 + $0xd8] sm:$0xff] %vm567_vm2, %v1222_v23  ;;  %v1231_v30 = vpop.f32.mrb[11].mxu1  ;;  %v682_v35 = vmul.f32 %v959_v18, %v959_v18  ;;  %v722_v40 = vsel %vm567_vm2, %v681_v24, 0.0 }
 0x109   : > { %v718_v25 = vsel %vm567_vm2, %v679_v17, 0.0  ;;  %577 = vst.msk [vmem:[%s1131_s9 + $0x48] sm:$0xff] %vm567_vm2, %v475_v22  ;;  %v617_v27 = vsel %vm567_vm2, %v475_v22, 0.0  ;;  %v680_v28 = vmul.f32 %v475_v22, %v475_v22  ;;  %593 = vst.msk [vmem:[%s1131_s9 + $0xc8] sm:$0xff] %vm567_vm2, %v1231_v30  ;;  %v621_v41 = vsel %vm567_vm2, %v959_v18, 0.0 }
 0x10a   : > { %v719_v32 = vadd.f32 %v718_v25, %v717_v21  ;;  %v618_v33 = vadd.f32 %v617_v27, %v616_v20  ;;  %v724_v47 = vsel %vm567_vm2, %v682_v35, 0.0  ;;  %v631_v11 = vsel %vm567_vm2, %v1142_v29, 0.0 }
 0x10b   : > { %v720_v37 = vsel %vm567_vm2, %v680_v28, 0.0  ;;  %v734_v17 = vsel %vm567_vm2, %v687_v6, 0.0  ;;  %v688_v18 = vmul.f32 %v1158_v36, %v1158_v36  ;;  %v689_v29 = vmul.f32 %v1135_v26, %v1135_v26 }
 0x10c   : > { %v620_v38 = vadd.f32 %v619_v34, %v618_v33  ;;  %v721_v39 = vadd.f32 %v720_v37, %v719_v32  ;;  %v633_v24 = vsel %vm567_vm2, %v1158_v36, 0.0  ;;  %v635_v28 = vsel %vm567_vm2, %v1135_v26, 0.0 }
 0x10d   : > { %v962_v42 = vpop.f32.mrb[12].mxu0  ;;  %v1242_v46 = vpop.f32.mrb[12].mxu1  ;;  %v690_v32 = vmul.f32 %v1149_v31, %v1149_v31  ;;  %v736_v33 = vsel %vm567_vm2, %v688_v18, 0.0  ;;  %v691_v34 = vmul.f32 %v1179_v55, %v1179_v55  ;;  %v637_v36 = vsel %vm567_vm2, %v1149_v31, 0.0 }
 0x10e   : > { %v723_v43 = vadd.f32 %v722_v40, %v721_v39  ;;  %582 = vst.msk [vmem:[%s1131_s9 + $0x70] sm:$0xff] %vm567_vm2, %v962_v42  ;;  %v488_v44 = vpop.f32.mrb[13].mxu0  ;;  %v622_v45 = vadd.f32 %v621_v41, %v620_v38  ;;  %598 = vst.msk [vmem:[%s1131_s9 + $0xf0] sm:$0xff] %vm567_vm2, %v1242_v46  ;;  %v1251_v52 = vpop.f32.mrb[13].mxu1  ;;  %v685_v58 = vmul.f32 %v962_v42, %v962_v42  ;;  %v627_v3 = vsel %vm567_vm2, %v962_v42, 0.0 }
 0x10f   : > { %580 = vst.msk [vmem:[%s1131_s9 + $0x60] sm:$0xff] %vm567_vm2, %v488_v44  ;;  %v623_v48 = vsel %vm567_vm2, %v488_v44, 0.0  ;;  %v683_v49 = vmul.f32 %v488_v44, %v488_v44  ;;  %v963_v51 = vpop.f32.mrb[14].mxu0  ;;  %596 = vst.msk [vmem:[%s1131_s9 + $0xe0] sm:$0xff] %vm567_vm2, %v1251_v52  ;;  %v1258_v57 = vpop.f32.mrb[14].mxu1  ;;  %v738_v38 = vsel %vm567_vm2, %v689_v29, 0.0  ;;  %v697_v6 = vmul.f32 %v1206_v14, %v1206_v14 }
 0x110   : > { %v624_v53 = vadd.f32 %v623_v48, %v622_v45  ;;  %v725_v54 = vadd.f32 %v724_v47, %v723_v43  ;;  %583 = vst.msk [vmem:[%s1131_s9 + $0x78] sm:$0xff] %vm567_vm2, %v963_v51  ;;  %v491_v56 = vpop.f32.mrb[15].mxu0  ;;  %599 = vst.msk [vmem:[%s1131_s9 + $0xf8] sm:$0xff] %vm567_vm2, %v1258_v57  ;;  %v1267_v63 = vpop.f32.mrb[15].mxu1  ;;  %v686_v4 = vmul.f32 %v963_v51, %v963_v51  ;;  %v730_v9 = vsel %vm567_vm2, %v685_v58, 0.0 }
 0x111   : > { %v726_v60 = vsel %vm567_vm2, %v683_v49, 0.0  ;;  %581 = vst.msk [vmem:[%s1131_s9 + $0x68] sm:$0xff] %vm567_vm2, %v491_v56  ;;  %v625_v61 = vsel %vm567_vm2, %v491_v56, 0.0  ;;  %v684_v62 = vmul.f32 %v491_v56, %v491_v56  ;;  %597 = vst.msk [vmem:[%s1131_s9 + $0xe8] sm:$0xff] %vm567_vm2, %v1267_v63  ;;  %v629_v10 = vsel %vm567_vm2, %v963_v51, 0.0 }
 0x112   : > { %v727_v1 = vadd.f32 %v726_v60, %v725_v54  ;;  %v626_v2 = vadd.f32 %v625_v61, %v624_v53  ;;  %v702_v12 = vmul.f32 %v1258_v57, %v1258_v57  ;;  %v732_v16 = vsel %vm567_vm2, %v686_v4, 0.0 }
 0x113   : > { %v728_v5 = vsel %vm567_vm2, %v684_v62, 0.0  ;;  %v639_v39 = vsel %vm567_vm2, %v1179_v55, 0.0  ;;  %v740_v41 = vsel %vm567_vm2, %v690_v32, 0.0  ;;  %v742_v42 = vsel %vm567_vm2, %v691_v34, 0.0 }
 0x114   : > { %v628_v7 = vadd.f32 %v627_v3, %v626_v2  ;;  %v729_v8 = vadd.f32 %v728_v5, %v727_v1  ;;  %v1287_v20 = vsel %vm567_vm2, %v702_v12, 0.0  ;;  %v692_v43 = vmul.f32 %v1195_v0, %v1195_v0 }
 0x115   : > { %v693_v47 = vmul.f32 %v1170_v50, %v1170_v50  ;;  %v641_v31 = vsel %vm567_vm2, %v1195_v0, 0.0  ;;  %v643_v55 = vsel %vm567_vm2, %v1170_v50, 0.0  ;;  %v694_v51 = vmul.f32 %v1186_v59, %v1186_v59 }
 0x116   : > { %v731_v13 = vadd.f32 %v730_v9, %v729_v8  ;;  %v630_v15 = vadd.f32 %v629_v10, %v628_v7  ;;  %v744_v53 = vsel %vm567_vm2, %v692_v43, 0.0  ;;  %v695_v54 = vmul.f32 %v1215_v19, %v1215_v19 }
 0x117   : > { %v746_v60 = vsel %vm567_vm2, %v693_v47, 0.0  ;;  %v645_v0 = vsel %vm567_vm2, %v1186_v59, 0.0  ;;  %v647_v61 = vsel %vm567_vm2, %v1215_v19, 0.0  ;;  %v748_v1 = vsel %vm567_vm2, %v694_v51, 0.0 }
 0x118   : > { %v632_v21 = vadd.f32 %v631_v11, %v630_v15  ;;  %v733_v22 = vadd.f32 %v732_v16, %v731_v13  ;;  %v750_v2 = vsel %vm567_vm2, %v695_v54, 0.0  ;;  %v696_v3 = vmul.f32 %v1231_v30, %v1231_v30 }
 0x119   : > { %v649_v59 = vsel %vm567_vm2, %v1231_v30, 0.0  ;;  %v651_v19 = vsel %vm567_vm2, %v1206_v14, 0.0  ;;  %v698_v9 = vmul.f32 %v1222_v23, %v1222_v23  ;;  %v699_v11 = vmul.f32 %v1251_v52, %v1251_v52 }
 0x11a   : > { %v735_v25 = vadd.f32 %v734_v17, %v733_v22  ;;  %v634_v27 = vadd.f32 %v633_v24, %v632_v21  ;;  %v752_v10 = vsel %vm567_vm2, %v696_v3, 0.0  ;;  %v754_v15 = vsel %vm567_vm2, %v697_v6, 0.0 }
 0x11b   : > { %v653_v30 = vsel %vm567_vm2, %v1222_v23, 0.0  ;;  %v655_v16 = vsel %vm567_vm2, %v1251_v52, 0.0  ;;  %v756_v18 = vsel %vm567_vm2, %v698_v9, 0.0  ;;  %v758_v21 = vsel %vm567_vm2, %v699_v11, 0.0 }
 0x11c   : > { %v636_v35 = vadd.f32 %v635_v28, %v634_v27  ;;  %v737_v37 = vadd.f32 %v736_v33, %v735_v25  ;;  %v700_v22 = vmul.f32 %v1267_v63, %v1267_v63  ;;  %v701_v25 = vmul.f32 %v1242_v46, %v1242_v46 }
 0x11d   : > { %v657_v23 = vsel %vm567_vm2, %v1267_v63, 0.0  ;;  %v659_v28 = vsel %vm567_vm2, %v1242_v46, 0.0 }
 0x11e   : > { %v739_v40 = vadd.f32 %v738_v38, %v737_v37  ;;  %v638_v26 = vadd.f32 %v637_v36, %v636_v35  ;;  %v760_v32 = vsel %vm567_vm2, %v700_v22, 0.0  ;;  %v762_v35 = vsel %vm567_vm2, %v701_v25, 0.0 }
 0x11f   : > { %v661_v37 = vsel %vm567_vm2, %v1258_v57, 0.0 }
 0x120   : > { %v640_v44 = vadd.f32 %v639_v39, %v638_v26  ;;  %v741_v45 = vadd.f32 %v740_v41, %v739_v40 }
 0x122   : > { %v743_v48 = vadd.f32 %v742_v42, %v741_v45  ;;  %v642_v49 = vadd.f32 %v641_v31, %v640_v44 }
 0x124   : > { %v644_v56 = vadd.f32 %v643_v55, %v642_v49  ;;  %v745_v58 = vadd.f32 %v744_v53, %v743_v48 }
 0x126   : > { %v747_v62 = vadd.f32 %v746_v60, %v745_v58  ;;  %v646_v50 = vadd.f32 %v645_v0, %v644_v56 }
 0x128   : > { %v648_v4 = vadd.f32 %v647_v61, %v646_v50  ;;  %v749_v5 = vadd.f32 %v748_v1, %v747_v62 }
 0x12a   : > { %v751_v7 = vadd.f32 %v750_v2, %v749_v5  ;;  %v650_v8 = vadd.f32 %v649_v59, %v648_v4 }
 0x12c   : > { %v652_v12 = vadd.f32 %v651_v19, %v650_v8  ;;  %v753_v13 = vadd.f32 %v752_v10, %v751_v7 }
 0x12e   : > { %v755_v17 = vadd.f32 %v754_v15, %v753_v13  ;;  %v654_v14 = vadd.f32 %v653_v30, %v652_v12 }
 0x130   : > { %v656_v29 = vadd.f32 %v655_v16, %v654_v14  ;;  %v757_v24 = vadd.f32 %v756_v18, %v755_v17 }
 0x132   : > { %v759_v52 = vadd.f32 %v758_v21, %v757_v24  ;;  %v658_v27 = vadd.f32 %v657_v23, %v656_v29 }
 0x134   : > { %v660_v33 = vadd.f32 %v659_v28, %v658_v27  ;;  %v761_v34 = vadd.f32 %v760_v32, %v759_v52 }
 0x136   : > { %v662_v38 = vadd.f32 %v661_v37, %v660_v33  ;;  %v763_v36 = vadd.f32 %v762_v35, %v761_v34 }
 0x138   : > { %v663_v39 = vrot.slane %v662_v38, 4  ;;  %v765_v63 = vadd.f32 %v1287_v20, %v763_v36 }
 0x13a   : > { %v664_v40 = vadd.f32 %v663_v39, %v662_v38  ;;  %v766_v26 = vrot.slane %v765_v63, 4 }
 0x13c   : > { %v665_v41 = vrot.slane %v664_v40, 2  ;;  %v767_v46 = vadd.f32 %v766_v26, %v765_v63 }
 0x13e   : > { %v666_v42 = vadd.f32 %v665_v41, %v664_v40  ;;  %v768_v43 = vrot.slane %v767_v46, 2 }
 0x140   : > { %v667_v44 = vrot.slane %v666_v42, 1  ;;  %v769_v45 = vadd.f32 %v768_v43, %v767_v46 }
 0x142   : > { %v668_v57 = vadd.f32 %v667_v44, %v666_v42  ;;  %v770_v47 = vrot.slane %v769_v45, 1 }
 0x144   : > { %670 = vst.msk [vmem:[%s184_s15] sm:$0x1] %vm669_vm3, %v668_v57  ;;  %v771_v31 = vadd.f32 %v770_v47, %v769_v45 }
 0x146   : > { %772 = vst.msk [vmem:[%s184_s15 + $0x1] sm:$0x1] %vm669_vm3, %v771_v31 }
 0x147 PF: > { %s14_s12 = sadd.s32 1, %s1033_s12  }
 0x148   : > { %p11_p5 = scmp.ge.s32.totalorder %s14_s12, 13  }
 0x14a   :  { %13 = sbr.rel (!%p11_p5) target bundleno = 1 (0x1), region = 70 }

// kernel: aspp_s_forward.29
= control target key start
LH: loop header
LB: loop body
LE: loop exit
PB: predicated region body
PF: predicated region fallthrough
CT: control target
= control target key end

     0   :  { %s646_s12 = smov 0   ;;  %s841_s0 = inlined_call_operand.vmem [shape: f32[2816,4], index: 0, kind: input, shape index: {}]   ;;  %s842_s1 = inlined_call_operand.vmem [shape: f32[1,4], index: 1, kind: input, shape index: {}]   ;;  %s843_s2 = inlined_call_operand.vmem [shape: f32[1,4], index: 2, kind: input, shape index: {}]   ;;  %s844_s3 = inlined_call_operand.vmem [shape: bf16[2816,4], index: 3, kind: output, shape index: {}]  }
   0x1 LB: > { %s533_s13 = sadd.s32 4294967295, %s624_s12   ;;  %p537_p0 = scmp.ge.s32.totalorder %s624_s12, 1  ;;  %s624_s12 = sphi %s646_s12, %s13_s12  }
   0x2   : > { %p138_p1 = scmp.lt.s32.totalorder %s624_s12, 12 }
   0x4   : > { %p139_p2 = pnand %p537_p0, %p138_p1 }
   0x5   : > { %s538_s14 = sshll.u32 (!%p139_p2), %s533_s13, 5  ;;  %v660_v0 = vld [vmem:[%s842_s1] ss:$0 sm:$0xff] (!%p139_p2)  ;;  %vm444_vm0 = vcmask (!%p139_p2), 27648  }
   0x6   : > { %142 = sbr.rel (%p139_p2) target bundleno = 56 (0x38), region = 32  ;;  %p163_p3 = scmp.lt.s32.totalorder (!%p139_p2), %s538_s14, 351  ;;  %v670_v1 = vld [vmem:[%s843_s2] ss:$0 sm:$0xff] (!%p139_p2) }
   0xd   : > { %s846_s14 = smov (!%p163_p3, %s538_s14), 351 }
   0xe   : > { %s539_s15 = sshll.u32 %s846_s14, 3  ;;  %s541_s23 = sshll.u32 %s846_s14, 2 }
   0xf   : > { %s665_s20 = scalar_lea.vmem %s841_s0, %s539_s15  ;;  %s699_s26 = scalar_lea.vmem %s844_s3, %s541_s23 }
  0x10   : > { %v174_v2 = vld [vmem:[%s665_s20] sm:$0xff]  ;;  %v175_v3 = vld [vmem:[%s665_s20 + $0x8] sm:$0xff]  ;;  %v176_v4 = vld [vmem:[%s665_s20 + $0x10] sm:$0xff] }
  0x11   : > { %v213_v5 = vmul.f32 %v660_v0, %v174_v2  ;;  %v214_v6 = vmul.f32 %v660_v0, %v175_v3  ;;  %v215_v7 = vmul.f32 %v660_v0, %v176_v4  ;;  %v177_v8 = vld [vmem:[%s665_s20 + $0x18] sm:$0xff]  ;;  %v178_v9 = vld [vmem:[%s665_s20 + $0x20] sm:$0xff]  ;;  %v179_v10 = vld [vmem:[%s665_s20 + $0x28] sm:$0xff] }
  0x12   : > { %v216_v11 = vmul.f32 %v660_v0, %v177_v8  ;;  %v217_v12 = vmul.f32 %v660_v0, %v178_v9  ;;  %v218_v13 = vmul.f32 %v660_v0, %v179_v10  ;;  %v180_v14 = vld [vmem:[%s665_s20 + $0x30] sm:$0xff]  ;;  %v181_v15 = vld [vmem:[%s665_s20 + $0x38] sm:$0xff]  ;;  %v182_v32 = vld [vmem:[%s665_s20 + $0x40] sm:$0xff] }
  0x13   : > { %v252_v16 = vadd.f32 %v670_v1, %v213_v5  ;;  %v253_v17 = vadd.f32 %v670_v1, %v214_v6  ;;  %v254_v18 = vadd.f32 %v670_v1, %v215_v7  ;;  %v219_v19 = vmul.f32 %v660_v0, %v180_v14  ;;  %v183_v33 = vld [vmem:[%s665_s20 + $0x48] sm:$0xff]  ;;  %v184_v34 = vld [vmem:[%s665_s20 + $0x50] sm:$0xff]  ;;  %v185_v39 = vld [vmem:[%s665_s20 + $0x58] sm:$0xff] }
  0x14   : > { %v255_v20 = vadd.f32 %v670_v1, %v216_v11  ;;  %v256_v21 = vadd.f32 %v670_v1, %v217_v12  ;;  %v257_v22 = vadd.f32 %v670_v1, %v218_v13  ;;  %v220_v23 = vmul.f32 %v660_v0, %v181_v15  ;;  %v186_v40 = vld [vmem:[%s665_s20 + $0x60] sm:$0xff]  ;;  %v187_v41 = vld [vmem:[%s665_s20 + $0x68] sm:$0xff]  ;;  %v188_v46 = vld [vmem:[%s665_s20 + $0x70] sm:$0xff] }
  0x15   : > { %v284_v24 = vmax.f32 %v252_v16, 0.0  ;;  %v285_v25 = vmax.f32 %v253_v17, 0.0  ;;  %v286_v26 = vmax.f32 %v254_v18, 0.0  ;;  %v258_v27 = vadd.f32 %v670_v1, %v219_v19  ;;  %v189_v51 = vld [vmem:[%s665_s20 + $0x78] sm:$0xff]  ;;  %v190_v10 = vld [vmem:[%s665_s20 + $0x80] sm:$0xff]  ;;  %v191_v11 = vld [vmem:[%s665_s20 + $0x88] sm:$0xff] }
  0x16   : > { %v287_v28 = vmax.f32 %v255_v20, 0.0  ;;  %v288_v29 = vmax.f32 %v256_v21, 0.0  ;;  %v289_v30 = vmax.f32 %v257_v22, 0.0  ;;  %v259_v31 = vadd.f32 %v670_v1, %v220_v23  ;;  %v192_v12 = vld [vmem:[%s665_s20 + $0x90] sm:$0xff]  ;;  %v193_v17 = vld [vmem:[%s665_s20 + $0x98] sm:$0xff]  ;;  %v194_v18 = vld [vmem:[%s665_s20 + $0xa0] sm:$0xff] }
  0x17   : > { %v578_v35 = vpack.c.bf16 %v284_v24, %v284_v24  ;;  %v579_v36 = vpack.c.bf16 %v285_v25, %v285_v25  ;;  %v580_v37 = vpack.c.bf16 %v286_v26, %v286_v26  ;;  %v290_v38 = vmax.f32 %v258_v27, 0.0  ;;  %v195_v19 = vld [vmem:[%s665_s20 + $0xa8] sm:$0xff]  ;;  %v196_v24 = vld [vmem:[%s665_s20 + $0xb0] sm:$0xff] }
  0x18   : > { %v581_v42 = vpack.c.bf16 %v287_v28, %v287_v28  ;;  %v582_v43 = vpack.c.bf16 %v288_v29, %v288_v29  ;;  %v583_v44 = vpack.c.bf16 %v289_v30, %v289_v30  ;;  %v291_v45 = vmax.f32 %v259_v31, 0.0  ;;  %v197_v29 = vld [vmem:[%s665_s20 + $0xb8] sm:$0xff] }
  0x19   : > { %445 = vst.msk [vmem:[%s699_s26] sm:$0xf] %vm444_vm0, %v578_v35  ;;  %446 = vst.msk [vmem:[%s699_s26 + $0x4] sm:$0xf] %vm444_vm0, %v579_v36  ;;  %v584_v47 = vpack.c.bf16 %v290_v38, %v290_v38  ;;  %v221_v48 = vmul.f32 %v660_v0, %v182_v32  ;;  %v222_v49 = vmul.f32 %v660_v0, %v183_v33 }
  0x1a   : > { %447 = vst.msk [vmem:[%s699_s26 + $0x8] sm:$0xf] %vm444_vm0, %v580_v37  ;;  %v223_v50 = vmul.f32 %v660_v0, %v184_v34  ;;  %448 = vst.msk [vmem:[%s699_s26 + $0xc] sm:$0xf] %vm444_vm0, %v581_v42  ;;  %v585_v52 = vpack.c.bf16 %v291_v45, %v291_v45  ;;  %v224_v53 = vmul.f32 %v660_v0, %v185_v39 }
  0x1b   : > { %449 = vst.msk [vmem:[%s699_s26 + $0x10] sm:$0xf] %vm444_vm0, %v582_v43  ;;  %450 = vst.msk [vmem:[%s699_s26 + $0x14] sm:$0xf] %vm444_vm0, %v583_v44  ;;  %v225_v54 = vmul.f32 %v660_v0, %v186_v40  ;;  %v226_v55 = vmul.f32 %v660_v0, %v187_v41  ;;  %v260_v56 = vadd.f32 %v670_v1, %v221_v48 }
  0x1c   : > { %451 = vst.msk [vmem:[%s699_s26 + $0x18] sm:$0xf] %vm444_vm0, %v584_v47  ;;  %v261_v57 = vadd.f32 %v670_v1, %v222_v49  ;;  %v262_v58 = vadd.f32 %v670_v1, %v223_v50  ;;  %v227_v59 = vmul.f32 %v660_v0, %v188_v46  ;;  %452 = vst.msk [vmem:[%s699_s26 + $0x1c] sm:$0xf] %vm444_vm0, %v585_v52  ;;  %v198_v50 = vld [vmem:[%s665_s20 + $0xc0] sm:$0xff]  ;;  %v200_v52 = vld [vmem:[%s665_s20 + $0xd0] sm:$0xff] }
  0x1d   : > { %v263_v60 = vadd.f32 %v670_v1, %v224_v53  ;;  %v264_v61 = vadd.f32 %v670_v1, %v225_v54  ;;  %v265_v62 = vadd.f32 %v670_v1, %v226_v55  ;;  %v228_v63 = vmul.f32 %v660_v0, %v189_v51  ;;  %v199_v51 = vld [vmem:[%s665_s20 + $0xc8] sm:$0xff] }
  0x1e   : > { %v292_v2 = vmax.f32 %v260_v56, 0.0  ;;  %v293_v3 = vmax.f32 %v261_v57, 0.0  ;;  %v294_v4 = vmax.f32 %v262_v58, 0.0  ;;  %v266_v5 = vadd.f32 %v670_v1, %v227_v59  ;;  %v201_v57 = vld [vmem:[%s665_s20 + $0xd8] sm:$0xff]  ;;  %v202_v58 = vld [vmem:[%s665_s20 + $0xe0] sm:$0xff]  ;;  %v203_v59 = vld [vmem:[%s665_s20 + $0xe8] sm:$0xff] }
  0x1f   : > { %v295_v6 = vmax.f32 %v263_v60, 0.0  ;;  %v296_v7 = vmax.f32 %v264_v61, 0.0  ;;  %v297_v8 = vmax.f32 %v265_v62, 0.0  ;;  %v267_v9 = vadd.f32 %v670_v1, %v228_v63 }
  0x20   : > { %v586_v13 = vpack.c.bf16 %v292_v2, %v292_v2  ;;  %v587_v14 = vpack.c.bf16 %v293_v3, %v293_v3  ;;  %v588_v15 = vpack.c.bf16 %v294_v4, %v294_v4  ;;  %v298_v16 = vmax.f32 %v266_v5, 0.0  ;;  %v204_v2 = vld [vmem:[%s665_s20 + $0xf0] sm:$0xff] }
  0x21   : > { %v589_v20 = vpack.c.bf16 %v295_v6, %v295_v6  ;;  %v590_v21 = vpack.c.bf16 %v296_v7, %v296_v7  ;;  %v591_v22 = vpack.c.bf16 %v297_v8, %v297_v8  ;;  %v299_v23 = vmax.f32 %v267_v9, 0.0  ;;  %v205_v7 = vld [vmem:[%s665_s20 + $0xf8] sm:$0xff] }
  0x22   : > { %453 = vst.msk [vmem:[%s699_s26 + $0x20] sm:$0xf] %vm444_vm0, %v586_v13  ;;  %454 = vst.msk [vmem:[%s699_s26 + $0x24] sm:$0xf] %vm444_vm0, %v587_v14  ;;  %v592_v25 = vpack.c.bf16 %v298_v16, %v298_v16  ;;  %v229_v26 = vmul.f32 %v660_v0, %v190_v10  ;;  %v230_v27 = vmul.f32 %v660_v0, %v191_v11 }
  0x23   : > { %455 = vst.msk [vmem:[%s699_s26 + $0x28] sm:$0xf] %vm444_vm0, %v588_v15  ;;  %v231_v28 = vmul.f32 %v660_v0, %v192_v12  ;;  %456 = vst.msk [vmem:[%s699_s26 + $0x2c] sm:$0xf] %vm444_vm0, %v589_v20  ;;  %v593_v30 = vpack.c.bf16 %v299_v23, %v299_v23  ;;  %v232_v31 = vmul.f32 %v660_v0, %v193_v17 }
  0x24   : > { %457 = vst.msk [vmem:[%s699_s26 + $0x30] sm:$0xf] %vm444_vm0, %v590_v21  ;;  %458 = vst.msk [vmem:[%s699_s26 + $0x34] sm:$0xf] %vm444_vm0, %v591_v22  ;;  %v233_v32 = vmul.f32 %v660_v0, %v194_v18  ;;  %v234_v33 = vmul.f32 %v660_v0, %v195_v19  ;;  %v268_v34 = vadd.f32 %v670_v1, %v229_v26 }
  0x25   : > { %459 = vst.msk [vmem:[%s699_s26 + $0x38] sm:$0xf] %vm444_vm0, %v592_v25  ;;  %v269_v35 = vadd.f32 %v670_v1, %v230_v27  ;;  %v270_v36 = vadd.f32 %v670_v1, %v231_v28  ;;  %v235_v37 = vmul.f32 %v660_v0, %v196_v24  ;;  %460 = vst.msk [vmem:[%s699_s26 + $0x3c] sm:$0xf] %vm444_vm0, %v593_v30 }
  0x26   : > { %v271_v38 = vadd.f32 %v670_v1, %v232_v31  ;;  %v272_v39 = vadd.f32 %v670_v1, %v233_v32  ;;  %v273_v40 = vadd.f32 %v670_v1, %v234_v33  ;;  %v236_v41 = vmul.f32 %v660_v0, %v197_v29 }
  0x27   : > { %v300_v42 = vmax.f32 %v268_v34, 0.0  ;;  %v301_v43 = vmax.f32 %v269_v35, 0.0  ;;  %v302_v44 = vmax.f32 %v270_v36, 0.0  ;;  %v274_v45 = vadd.f32 %v670_v1, %v235_v37 }
  0x28   : > { %v303_v46 = vmax.f32 %v271_v38, 0.0  ;;  %v304_v47 = vmax.f32 %v272_v39, 0.0  ;;  %v305_v48 = vmax.f32 %v273_v40, 0.0  ;;  %v275_v49 = vadd.f32 %v670_v1, %v236_v41 }
  0x29   : > { %v594_v53 = vpack.c.bf16 %v300_v42, %v300_v42  ;;  %v595_v54 = vpack.c.bf16 %v301_v43, %v301_v43  ;;  %v596_v55 = vpack.c.bf16 %v302_v44, %v302_v44  ;;  %v306_v56 = vmax.f32 %v274_v45, 0.0 }
  0x2a   : > { %v597_v60 = vpack.c.bf16 %v303_v46, %v303_v46  ;;  %v598_v61 = vpack.c.bf16 %v304_v47, %v304_v47  ;;  %v599_v62 = vpack.c.bf16 %v305_v48, %v305_v48  ;;  %v307_v63 = vmax.f32 %v275_v49, 0.0 }
  0x2b   : > { %461 = vst.msk [vmem:[%s699_s26 + $0x40] sm:$0xf] %vm444_vm0, %v594_v53  ;;  %462 = vst.msk [vmem:[%s699_s26 + $0x44] sm:$0xf] %vm444_vm0, %v595_v54  ;;  %v600_v3 = vpack.c.bf16 %v306_v56, %v306_v56  ;;  %v237_v4 = vmul.f32 %v660_v0, %v198_v50  ;;  %v238_v5 = vmul.f32 %v660_v0, %v199_v51 }
  0x2c   : > { %463 = vst.msk [vmem:[%s699_s26 + $0x48] sm:$0xf] %vm444_vm0, %v596_v55  ;;  %v239_v6 = vmul.f32 %v660_v0, %v200_v52  ;;  %464 = vst.msk [vmem:[%s699_s26 + $0x4c] sm:$0xf] %vm444_vm0, %v597_v60  ;;  %v601_v8 = vpack.c.bf16 %v307_v63, %v307_v63  ;;  %v240_v9 = vmul.f32 %v660_v0, %v201_v57 }
  0x2d   : > { %465 = vst.msk [vmem:[%s699_s26 + $0x50] sm:$0xf] %vm444_vm0, %v598_v61  ;;  %466 = vst.msk [vmem:[%s699_s26 + $0x54] sm:$0xf] %vm444_vm0, %v599_v62  ;;  %v241_v10 = vmul.f32 %v660_v0, %v202_v58  ;;  %v242_v11 = vmul.f32 %v660_v0, %v203_v59  ;;  %v276_v12 = vadd.f32 %v670_v1, %v237_v4 }
  0x2e   : > { %467 = vst.msk [vmem:[%s699_s26 + $0x58] sm:$0xf] %vm444_vm0, %v600_v3  ;;  %v277_v13 = vadd.f32 %v670_v1, %v238_v5  ;;  %v278_v14 = vadd.f32 %v670_v1, %v239_v6  ;;  %v243_v15 = vmul.f32 %v660_v0, %v204_v2  ;;  %468 = vst.msk [vmem:[%s699_s26 + $0x5c] sm:$0xf] %vm444_vm0, %v601_v8 }
  0x2f   : > { %v279_v16 = vadd.f32 %v670_v1, %v240_v9  ;;  %v280_v17 = vadd.f32 %v670_v1, %v241_v10  ;;  %v281_v18 = vadd.f32 %v670_v1, %v242_v11  ;;  %v244_v19 = vmul.f32 %v660_v0, %v205_v7 }
  0x30   : > { %v308_v20 = vmax.f32 %v276_v12, 0.0  ;;  %v309_v21 = vmax.f32 %v277_v13, 0.0  ;;  %v310_v22 = vmax.f32 %v278_v14, 0.0  ;;  %v282_v23 = vadd.f32 %v670_v1, %v243_v15 }
  0x31   : > { %v311_v24 = vmax.f32 %v279_v16, 0.0  ;;  %v312_v25 = vmax.f32 %v280_v17, 0.0  ;;  %v313_v26 = vmax.f32 %v281_v18, 0.0  ;;  %v283_v27 = vadd.f32 %v670_v1, %v244_v19 }
  0x32   : > { %v602_v28 = vpack.c.bf16 %v308_v20, %v308_v20  ;;  %v603_v29 = vpack.c.bf16 %v309_v21, %v309_v21  ;;  %v604_v0 = vpack.c.bf16 %v310_v22, %v310_v22  ;;  %v314_v30 = vmax.f32 %v282_v23, 0.0 }
  0x33   : > { %v605_v31 = vpack.c.bf16 %v311_v24, %v311_v24  ;;  %v606_v32 = vpack.c.bf16 %v312_v25, %v312_v25  ;;  %v607_v33 = vpack.c.bf16 %v313_v26, %v313_v26  ;;  %v315_v34 = vmax.f32 %v283_v27, 0.0 }
  0x34   : > { %469 = vst.msk [vmem:[%s699_s26 + $0x60] sm:$0xf] %vm444_vm0, %v602_v28  ;;  %470 = vst.msk [vmem:[%s699_s26 + $0x64] sm:$0xf] %vm444_vm0, %v603_v29  ;;  %v608_v35 = vpack.c.bf16 %v314_v30, %v314_v30 }
  0x35   : > { %471 = vst.msk [vmem:[%s699_s26 + $0x68] sm:$0xf] %vm444_vm0, %v604_v0  ;;  %472 = vst.msk [vmem:[%s699_s26 + $0x6c] sm:$0xf] %vm444_vm0, %v605_v31  ;;  %v609_v1 = vpack.c.bf16 %v315_v34, %v315_v34 }
  0x36   : > { %473 = vst.msk [vmem:[%s699_s26 + $0x70] sm:$0xf] %vm444_vm0, %v606_v32  ;;  %474 = vst.msk [vmem:[%s699_s26 + $0x74] sm:$0xf] %vm444_vm0, %v607_v33 }
  0x37   : > { %475 = vst.msk [vmem:[%s699_s26 + $0x78] sm:$0xf] %vm444_vm0, %v608_v35  ;;  %476 = vst.msk [vmem:[%s699_s26 + $0x7c] sm:$0xf] %vm444_vm0, %v609_v1 }
  0x38 PF: > { %s13_s12 = sadd.s32 1, %s624_s12  }
  0x39   : > { %p10_p4 = scmp.ge.s32.totalorder %s13_s12, 13  }
  0x3b   :  { %12 = sbr.rel (!%p10_p4) target bundleno = 1 (0x1), region = 62 }

// kernel: aspp_s_forward.30
= control target key start
LH: loop header
LB: loop body
LE: loop exit
PB: predicated region body
PF: predicated region fallthrough
CT: control target
= control target key end

     0   :  { %s1055_s12 = smov 0   ;;  %s1368_s0 = inlined_call_operand.vmem [shape: bf16[1024,108], index: 0, kind: input, shape index: {}]   ;;  %s1369_s1 = inlined_call_operand.vmem [shape: bf16[1,108,4], index: 1, kind: input, shape index: {}]   ;;  %s1370_s2 = inlined_call_operand.vmem [shape: f32[1024,4], index: 2, kind: output, shape index: {0}]   ;;  %s1371_s3 = inlined_call_operand.vmem [shape: f32[4,2,4], index: 3, kind: output, shape index: {1}]  }
   0x1 LB: > { %s1061_s13 = sadd.s32 4294967295, %s1033_s12   ;;  %p864_p0 = scmp.ge.s32.totalorder %s1033_s12, 1  ;;  %s1033_s12 = sphi %s1055_s12, %s14_s12  }
   0x2   : > { %p141_p1 = scmp.lt.s32.totalorder %s1033_s12, 5 }
   0x4   : > { %p142_p2 = pnand %p864_p0, %p141_p1 }
   0x5   : > { %v1004_v0 = vld [vmem:[%s1369_s1] sm:$0xff] (!%p142_p2)   ;;  %v1005_v1 = vld [vmem:[%s1369_s1 + $0x8] sm:$0xff] (!%p142_p2)   ;;  %s865_s18 = sshll.u32 (!%p142_p2), %s1061_s13, 5  ;;  %v1006_v2 = vld [vmem:[%s1369_s1 + $0x10] sm:$0xff] (!%p142_p2)   ;;  %vm353_vm0 = vcmask (!%p142_p2), 883712   ;;  %vm402_vm1 = vcmask (!%p142_p2), 1045504  }
   0x6   : > { %145 = sbr.rel (%p142_p2) target bundleno = 327 (0x147), region = 28  ;;  %934 = vmatprep.subr.bf16.mxu0 (!%p142_p2), %v1004_v0  ;;  %p170_p3 = scmp.lt.s32.totalorder (!%p142_p2), %s865_s18, 127  ;;  %980 = vmatprep.subr.bf16.mxu1 (!%p142_p2), %v1004_v0  ;;  %v1007_v3 = vld [vmem:[%s1369_s1 + $0x18] sm:$0xff] (!%p142_p2)   ;;  %v1008_v5 = vld [vmem:[%s1369_s1 + $0x20] sm:$0xff] (!%p142_p2)   ;;  %v1009_v6 = vld [vmem:[%s1369_s1 + $0x28] sm:$0xff] (!%p142_p2)   ;;  %vm567_vm2 = vcmask (!%p142_p2), 31744  }
   0x7   : > { %935 = vmatpush3.bf16.msra.mxu0 (!%p142_p2), %v1004_v0  ;;  %987 = vmatpush3.bf16.msra.mxu1 (!%p142_p2), %v1004_v0  ;;  %v1010_v8 = vld [vmem:[%s1369_s1 + $0x30] sm:$0x3f] (!%p142_p2)   ;;  %p181_p4 = scmp.lt.s32.totalorder (!%p142_p2), %s1061_s13, 3  ;;  %vm669_vm3 = vcmask (!%p142_p2), 24576  }
   0x8   : > { %936 = vmatprep.subr.bf16.mxu0 (!%p142_p2), %v1005_v1  ;;  %981 = vmatprep.subr.bf16.mxu1 (!%p142_p2), %v1005_v1  ;;  %v404_v9 = vsel (!%p142_p2), %vm402_vm1, %v1010_v8, 0 }
   0xb   : > { %937 = vmatpush3.bf16.msra.mxu0 (!%p142_p2), %v1005_v1  ;;  %988 = vmatpush3.bf16.msra.mxu1 (!%p142_p2), %v1005_v1 }
   0xc   : > { %938 = vmatprep.subr.bf16.mxu0 (!%p142_p2), %v1006_v2  ;;  %982 = vmatprep.subr.bf16.mxu1 (!%p142_p2), %v1006_v2 }
   0xd   : > { %s1373_s18 = smov (!%p170_p3, %s865_s18), 127  ;;  %s1375_s13 = smov (!%p181_p4, %s1061_s13), 3 }
   0xe   : > { %s866_s21 = sshll.u32 %s1373_s18, 2  ;;  %s868_s6 = sshll.u32 %s1373_s18, 3 }
   0xf   : > { %s1084_s26 = scalar_lea.vmem %s1368_s0, %s866_s21  ;;  %939 = vmatpush3.bf16.msra.mxu0 %v1006_v2  ;;  %989 = vmatpush3.bf16.msra.mxu1 %v1006_v2  ;;  %s1131_s9 = scalar_lea.vmem %s1370_s2, %s868_s6 }
  0x10   : > { %v1011_v4 = vld [vmem:[%s1084_s26] sm:$0xff]   ;;  %940 = vmatprep.subr.bf16.mxu0 %v1007_v3  ;;  %983 = vmatprep.subr.bf16.mxu1 %v1007_v3  ;;  %v1012_v10 = vld [vmem:[%s1084_s26 + $0x8] sm:$0xff]   ;;  %v1013_v11 = vld [vmem:[%s1084_s26 + $0x10] sm:$0xff]   ;;  %s869_s10 = sshll.u32 %s1375_s13, 1 }
  0x11   : > { %948 = vmatprep.mubr.msk.bf16.mxu0 %vm353_vm0, %v1011_v4  ;;  %v1019_v7 = vld [vmem:[%s1084_s26 + $0x40] sm:$0xff]   ;;  %v1020_v12 = vld [vmem:[%s1084_s26 + $0x48] sm:$0xff]   ;;  %v1021_v13 = vld [vmem:[%s1084_s26 + $0x50] sm:$0xff]   ;;  %s184_s15 = scalar_lea.vmem %s1371_s3, %s869_s10 }
  0x12   : > { %964 = vmatprep.mubr.msk.bf16.mxu1 %vm353_vm0, %v1019_v7  ;;  %v1014_v14 = vld [vmem:[%s1084_s26 + $0x18] sm:$0xff]   ;;  %v1015_v15 = vld [vmem:[%s1084_s26 + $0x20] sm:$0xff]   ;;  %v1016_v18 = vld [vmem:[%s1084_s26 + $0x28] sm:$0xff]  }
  0x13   : > { %941 = vmatpush3.bf16.msra.mxu0 %v1007_v3  ;;  %990 = vmatpush3.bf16.msra.mxu1 %v1007_v3  ;;  %v1022_v16 = vld [vmem:[%s1084_s26 + $0x58] sm:$0xff]   ;;  %v1023_v17 = vld [vmem:[%s1084_s26 + $0x60] sm:$0xff]   ;;  %v1017_v19 = vld [vmem:[%s1084_s26 + $0x30] sm:$0xff]  }
  0x14   : > { %942 = vmatprep.subr.bf16.mxu0 %v1008_v5  ;;  %984 = vmatprep.subr.bf16.mxu1 %v1008_v5  ;;  %v1024_v20 = vld [vmem:[%s1084_s26 + $0x68] sm:$0xff]   ;;  %v1025_v21 = vld [vmem:[%s1084_s26 + $0x70] sm:$0xff]   ;;  %v1018_v22 = vld [vmem:[%s1084_s26 + $0x38] sm:$0xff]  }
  0x15   : > { %v1026_v23 = vld [vmem:[%s1084_s26 + $0x78] sm:$0xff]  }
  0x17   : > { %943 = vmatpush3.bf16.msra.mxu0 %v1008_v5  ;;  %991 = vmatpush3.bf16.msra.mxu1 %v1008_v5 }
  0x18   : > { %944 = vmatprep.subr.bf16.mxu0 %v1009_v6  ;;  %985 = vmatprep.subr.bf16.mxu1 %v1009_v6 }
  0x1b   : > { %945 = vmatpush3.bf16.msra.mxu0 %v1009_v6  ;;  %992 = vmatpush3.bf16.msra.mxu1 %v1009_v6 }
  0x1c   : > { %994 = vmatprep.subr.msk.bf16.mxu0 %vm402_vm1, %v1010_v8  ;;  %995 = vmatprep.subr.msk.bf16.mxu1 %vm402_vm1, %v1010_v8 }
  0x1f   : > { %947 = vmatpush3.bf16.msra.mxu0 %v404_v9  ;;  %993 = vmatpush3.bf16.msra.mxu1 %v404_v9 }
  0x22   : > { %949 = vmatmul.mubr.msk.bf16.vlgmr.msra.gmra.mrb[0].mxu0 %vm353_vm0, %v1012_v10  ;;  %965 = vmatmul.mubr.msk.bf16.vlgmr.msra.gmra.mrb[0].mxu1 %vm353_vm0, %v1020_v12 }
  0x23   : > { %952 = vmatprep.mubr.msk.bf16.mxu0 %vm353_vm0, %v1013_v11  ;;  %968 = vmatprep.mubr.msk.bf16.mxu1 %vm353_vm0, %v1021_v13 }
  0x2a   : > { %953 = vmatmul.mubr.msk.bf16.gmra.mrb[4].mxu0 %vm353_vm0, %v1014_v14  ;;  %969 = vmatmul.mubr.msk.bf16.gmra.mrb[4].mxu1 %vm353_vm0, %v1022_v16 }
  0x2b   : > { %956 = vmatprep.mubr.msk.bf16.mxu0 %vm353_vm0, %v1015_v15  ;;  %972 = vmatprep.mubr.msk.bf16.mxu1 %vm353_vm0, %v1023_v17 }
  0x32   : > { %957 = vmatmul.mubr.msk.bf16.gmra.mrb[8].mxu0 %vm353_vm0, %v1016_v18  ;;  %973 = vmatmul.mubr.msk.bf16.gmra.mrb[8].mxu1 %vm353_vm0, %v1024_v20 }
  0x33   : > { %960 = vmatprep.mubr.msk.bf16.mxu0 %vm353_vm0, %v1017_v19  ;;  %976 = vmatprep.mubr.msk.bf16.mxu1 %vm353_vm0, %v1025_v21 }
  0x3a   : > { %961 = vmatmul.mubr.msk.bf16.gmra.mrb[12].mxu0 %vm353_vm0, %v1018_v22  ;;  %977 = vmatmul.mubr.msk.bf16.gmra.mrb[12].mxu1 %vm353_vm0, %v1026_v23 }
  0xf5   : > { %v950_v24 = vpop.f32.mrb[0].mxu0  ;;  %v1135_v26 = vpop.f32.mrb[0].mxu1 }
  0xf6   : > { %570 = vst.msk [vmem:[%s1131_s9 + $0x10] sm:$0xff] %vm567_vm2, %v950_v24  ;;  %v440_v25 = vpop.f32.mrb[1].mxu0  ;;  %586 = vst.msk [vmem:[%s1131_s9 + $0x90] sm:$0xff] %vm567_vm2, %v1135_v26  ;;  %v1142_v29 = vpop.f32.mrb[1].mxu1  ;;  %v673_v32 = vmul.f32 %v950_v24, %v950_v24  ;;  %v603_v38 = vsel %vm567_vm2, %v950_v24, 0.0 }
  0xf7   : > { %568 = vst.msk [vmem:[%s1131_s9] sm:$0xff] %vm567_vm2, %v440_v25  ;;  %v671_v27 = vmul.f32 %v440_v25, %v440_v25  ;;  %v951_v28 = vpop.f32.mrb[2].mxu0  ;;  %584 = vst.msk [vmem:[%s1131_s9 + $0x80] sm:$0xff] %vm567_vm2, %v1142_v29  ;;  %v1149_v31 = vpop.f32.mrb[2].mxu1  ;;  %v600_v33 = vsel %vm567_vm2, %v440_v25, 0.0 }
  0xf8   : > { %571 = vst.msk [vmem:[%s1131_s9 + $0x18] sm:$0xff] %vm567_vm2, %v951_v28  ;;  %v443_v30 = vpop.f32.mrb[3].mxu0  ;;  %587 = vst.msk [vmem:[%s1131_s9 + $0x98] sm:$0xff] %vm567_vm2, %v1149_v31  ;;  %v1158_v36 = vpop.f32.mrb[3].mxu1  ;;  %v674_v40 = vmul.f32 %v951_v28, %v951_v28  ;;  %v706_v44 = vsel %vm567_vm2, %v673_v32, 0.0  ;;  %v605_v45 = vsel %vm567_vm2, %v951_v28, 0.0 }
  0xf9   : > { %569 = vst.msk [vmem:[%s1131_s9 + $0x8] sm:$0xff] %vm567_vm2, %v443_v30  ;;  %v601_v34 = vsel %vm567_vm2, %v443_v30, 0.0  ;;  %v672_v35 = vmul.f32 %v443_v30, %v443_v30  ;;  %585 = vst.msk [vmem:[%s1131_s9 + $0x88] sm:$0xff] %vm567_vm2, %v1158_v36  ;;  %v703_v39 = vsel %vm567_vm2, %v671_v27, 0.0 }
  0xfa   : > { %v602_v37 = vadd.f32 %v601_v34, %v600_v33  ;;  %v708_v51 = vsel %vm567_vm2, %v674_v40, 0.0 }
  0xfb   : > { %v704_v41 = vsel %vm567_vm2, %v672_v35, 0.0 }
  0xfc   : > { %v604_v42 = vadd.f32 %v603_v38, %v602_v37  ;;  %v705_v43 = vadd.f32 %v704_v41, %v703_v39 }
  0xfd   : > { %v954_v46 = vpop.f32.mrb[4].mxu0  ;;  %v1170_v50 = vpop.f32.mrb[4].mxu1 }
  0xfe   : > { %v707_v47 = vadd.f32 %v706_v44, %v705_v43  ;;  %574 = vst.msk [vmem:[%s1131_s9 + $0x30] sm:$0xff] %vm567_vm2, %v954_v46  ;;  %v456_v48 = vpop.f32.mrb[5].mxu0  ;;  %v606_v49 = vadd.f32 %v605_v45, %v604_v42  ;;  %590 = vst.msk [vmem:[%s1131_s9 + $0xb0] sm:$0xff] %vm567_vm2, %v1170_v50  ;;  %v1179_v55 = vpop.f32.mrb[5].mxu1  ;;  %v677_v60 = vmul.f32 %v954_v46, %v954_v46  ;;  %v611_v3 = vsel %vm567_vm2, %v954_v46, 0.0 }
  0xff   : > { %572 = vst.msk [vmem:[%s1131_s9 + $0x20] sm:$0xff] %vm567_vm2, %v456_v48  ;;  %v607_v52 = vsel %vm567_vm2, %v456_v48, 0.0  ;;  %v675_v53 = vmul.f32 %v456_v48, %v456_v48  ;;  %v955_v54 = vpop.f32.mrb[6].mxu0  ;;  %588 = vst.msk [vmem:[%s1131_s9 + $0xa0] sm:$0xff] %vm567_vm2, %v1179_v55  ;;  %v1186_v59 = vpop.f32.mrb[6].mxu1 }
 0x100   : > { %v608_v56 = vadd.f32 %v607_v52, %v606_v49  ;;  %v709_v57 = vadd.f32 %v708_v51, %v707_v47  ;;  %575 = vst.msk [vmem:[%s1131_s9 + $0x38] sm:$0xff] %vm567_vm2, %v955_v54  ;;  %v459_v58 = vpop.f32.mrb[7].mxu0  ;;  %591 = vst.msk [vmem:[%s1131_s9 + $0xb8] sm:$0xff] %vm567_vm2, %v1186_v59  ;;  %v1195_v0 = vpop.f32.mrb[7].mxu1  ;;  %v678_v4 = vmul.f32 %v955_v54, %v955_v54  ;;  %v714_v8 = vsel %vm567_vm2, %v677_v60, 0.0 }
 0x101   : > { %v710_v61 = vsel %vm567_vm2, %v675_v53, 0.0  ;;  %573 = vst.msk [vmem:[%s1131_s9 + $0x28] sm:$0xff] %vm567_vm2, %v459_v58  ;;  %v609_v62 = vsel %vm567_vm2, %v459_v58, 0.0  ;;  %v676_v63 = vmul.f32 %v459_v58, %v459_v58  ;;  %589 = vst.msk [vmem:[%s1131_s9 + $0xa8] sm:$0xff] %vm567_vm2, %v1195_v0  ;;  %v613_v9 = vsel %vm567_vm2, %v955_v54, 0.0 }
 0x102   : > { %v711_v1 = vadd.f32 %v710_v61, %v709_v57  ;;  %v610_v2 = vadd.f32 %v609_v62, %v608_v56  ;;  %v716_v15 = vsel %vm567_vm2, %v678_v4, 0.0 }
 0x103   : > { %v712_v5 = vsel %vm567_vm2, %v676_v63, 0.0 }
 0x104   : > { %v612_v6 = vadd.f32 %v611_v3, %v610_v2  ;;  %v713_v7 = vadd.f32 %v712_v5, %v711_v1 }
 0x105   : > { %v958_v10 = vpop.f32.mrb[8].mxu0  ;;  %v1206_v14 = vpop.f32.mrb[8].mxu1 }
 0x106   : > { %v715_v11 = vadd.f32 %v714_v8, %v713_v7  ;;  %578 = vst.msk [vmem:[%s1131_s9 + $0x50] sm:$0xff] %vm567_vm2, %v958_v10  ;;  %v472_v12 = vpop.f32.mrb[9].mxu0  ;;  %v614_v13 = vadd.f32 %v613_v9, %v612_v6  ;;  %594 = vst.msk [vmem:[%s1131_s9 + $0xd0] sm:$0xff] %vm567_vm2, %v1206_v14  ;;  %v1215_v19 = vpop.f32.mrb[9].mxu1  ;;  %v681_v24 = vmul.f32 %v958_v10, %v958_v10  ;;  %v619_v34 = vsel %vm567_vm2, %v958_v10, 0.0 }
 0x107   : > { %576 = vst.msk [vmem:[%s1131_s9 + $0x40] sm:$0xff] %vm567_vm2, %v472_v12  ;;  %v615_v16 = vsel %vm567_vm2, %v472_v12, 0.0  ;;  %v679_v17 = vmul.f32 %v472_v12, %v472_v12  ;;  %v959_v18 = vpop.f32.mrb[10].mxu0  ;;  %592 = vst.msk [vmem:[%s1131_s9 + $0xc0] sm:$0xff] %vm567_vm2, %v1215_v19  ;;  %v1222_v23 = vpop.f32.mrb[10].mxu1  ;;  %v687_v6 = vmul.f32 %v1142_v29, %v1142_v29 }
 0x108   : > { %v616_v20 = vadd.f32 %v615_v16, %v614_v13  ;;  %v717_v21 = vadd.f32 %v716_v15, %v715_v11  ;;  %579 = vst.msk [vmem:[%s1131_s9 + $0x58] sm:$0xff] %vm567_vm2, %v959_v18  ;;  %v475_v22 = vpop.f32.mrb[11].mxu0  ;;  %595 = vst.msk [vmem:[%s1131_s9 + $0xd8] sm:$0xff] %vm567_vm2, %v1222_v23  ;;  %v1231_v30 = vpop.f32.mrb[11].mxu1  ;;  %v682_v35 = vmul.f32 %v959_v18, %v959_v18  ;;  %v722_v40 = vsel %vm567_vm2, %v681_v24, 0.0 }
 0x109   : > { %v718_v25 = vsel %vm567_vm2, %v679_v17, 0.0  ;;  %577 = vst.msk [vmem:[%s1131_s9 + $0x48] sm:$0xff] %vm567_vm2, %v475_v22  ;;  %v617_v27 = vsel %vm567_vm2, %v475_v22, 0.0  ;;  %v680_v28 = vmul.f32 %v475_v22, %v475_v22  ;;  %593 = vst.msk [vmem:[%s1131_s9 + $0xc8] sm:$0xff] %vm567_vm2, %v1231_v30  ;;  %v621_v41 = vsel %vm567_vm2, %v959_v18, 0.0 }
 0x10a   : > { %v719_v32 = vadd.f32 %v718_v25, %v717_v21  ;;  %v618_v33 = vadd.f32 %v617_v27, %v616_v20  ;;  %v724_v47 = vsel %vm567_vm2, %v682_v35, 0.0  ;;  %v631_v11 = vsel %vm567_vm2, %v1142_v29, 0.0 }
 0x10b   : > { %v720_v37 = vsel %vm567_vm2, %v680_v28, 0.0  ;;  %v734_v17 = vsel %vm567_vm2, %v687_v6, 0.0  ;;  %v688_v18 = vmul.f32 %v1158_v36, %v1158_v36  ;;  %v689_v29 = vmul.f32 %v1135_v26, %v1135_v26 }
 0x10c   : > { %v620_v38 = vadd.f32 %v619_v34, %v618_v33  ;;  %v721_v39 = vadd.f32 %v720_v37, %v719_v32  ;;  %v633_v24 = vsel %vm567_vm2, %v1158_v36, 0.0  ;;  %v635_v28 = vsel %vm567_vm2, %v1135_v26, 0.0 }
 0x10d   : > { %v962_v42 = vpop.f32.mrb[12].mxu0  ;;  %v1242_v46 = vpop.f32.mrb[12].mxu1  ;;  %v690_v32 = vmul.f32 %v1149_v31, %v1149_v31  ;;  %v736_v33 = vsel %vm567_vm2, %v688_v18, 0.0  ;;  %v691_v34 = vmul.f32 %v1179_v55, %v1179_v55  ;;  %v637_v36 = vsel %vm567_vm2, %v1149_v31, 0.0 }
 0x10e   : > { %v723_v43 = vadd.f32 %v722_v40, %v721_v39  ;;  %582 = vst.msk [vmem:[%s1131_s9 + $0x70] sm:$0xff] %vm567_vm2, %v962_v42  ;;  %v488_v44 = vpop.f32.mrb[13].mxu0  ;;  %v622_v45 = vadd.f32 %v621_v41, %v620_v38  ;;  %598 = vst.msk [vmem:[%s1131_s9 + $0xf0] sm:$0xff] %vm567_vm2, %v1242_v46  ;;  %v1251_v52 = vpop.f32.mrb[13].mxu1  ;;  %v685_v58 = vmul.f32 %v962_v42, %v962_v42  ;;  %v627_v3 = vsel %vm567_vm2, %v962_v42, 0.0 }
 0x10f   : > { %580 = vst.msk [vmem:[%s1131_s9 + $0x60] sm:$0xff] %vm567_vm2, %v488_v44  ;;  %v623_v48 = vsel %vm567_vm2, %v488_v44, 0.0  ;;  %v683_v49 = vmul.f32 %v488_v44, %v488_v44  ;;  %v963_v51 = vpop.f32.mrb[14].mxu0  ;;  %596 = vst.msk [vmem:[%s1131_s9 + $0xe0] sm:$0xff] %vm567_vm2, %v1251_v52  ;;  %v1258_v57 = vpop.f32.mrb[14].mxu1  ;;  %v738_v38 = vsel %vm567_vm2, %v689_v29, 0.0  ;;  %v697_v6 = vmul.f32 %v1206_v14, %v1206_v14 }
 0x110   : > { %v624_v53 = vadd.f32 %v623_v48, %v622_v45  ;;  %v725_v54 = vadd.f32 %v724_v47, %v723_v43  ;;  %583 = vst.msk [vmem:[%s1131_s9 + $0x78] sm:$0xff] %vm567_vm2, %v963_v51  ;;  %v491_v56 = vpop.f32.mrb[15].mxu0  ;;  %599 = vst.msk [vmem:[%s1131_s9 + $0xf8] sm:$0xff] %vm567_vm2, %v1258_v57  ;;  %v1267_v63 = vpop.f32.mrb[15].mxu1  ;;  %v686_v4 = vmul.f32 %v963_v51, %v963_v51  ;;  %v730_v9 = vsel %vm567_vm2, %v685_v58, 0.0 }
 0x111   : > { %v726_v60 = vsel %vm567_vm2, %v683_v49, 0.0  ;;  %581 = vst.msk [vmem:[%s1131_s9 + $0x68] sm:$0xff] %vm567_vm2, %v491_v56  ;;  %v625_v61 = vsel %vm567_vm2, %v491_v56, 0.0  ;;  %v684_v62 = vmul.f32 %v491_v56, %v491_v56  ;;  %597 = vst.msk [vmem:[%s1131_s9 + $0xe8] sm:$0xff] %vm567_vm2, %v1267_v63  ;;  %v629_v10 = vsel %vm567_vm2, %v963_v51, 0.0 }
 0x112   : > { %v727_v1 = vadd.f32 %v726_v60, %v725_v54  ;;  %v626_v2 = vadd.f32 %v625_v61, %v624_v53  ;;  %v702_v12 = vmul.f32 %v1258_v57, %v1258_v57  ;;  %v732_v16 = vsel %vm567_vm2, %v686_v4, 0.0 }
 0x113   : > { %v728_v5 = vsel %vm567_vm2, %v684_v62, 0.0  ;;  %v639_v39 = vsel %vm567_vm2, %v1179_v55, 0.0  ;;  %v740_v41 = vsel %vm567_vm2, %v690_v32, 0.0  ;;  %v742_v42 = vsel %vm567_vm2, %v691_v34, 0.0 }
 0x114   : > { %v628_v7 = vadd.f32 %v627_v3, %v626_v2  ;;  %v729_v8 = vadd.f32 %v728_v5, %v727_v1  ;;  %v1287_v20 = vsel %vm567_vm2, %v702_v12, 0.0  ;;  %v692_v43 = vmul.f32 %v1195_v0, %v1195_v0 }
 0x115   : > { %v693_v47 = vmul.f32 %v1170_v50, %v1170_v50  ;;  %v641_v31 = vsel %vm567_vm2, %v1195_v0, 0.0  ;;  %v643_v55 = vsel %vm567_vm2, %v1170_v50, 0.0  ;;  %v694_v51 = vmul.f32 %v1186_v59, %v1186_v59 }
 0x116   : > { %v731_v13 = vadd.f32 %v730_v9, %v729_v8  ;;  %v630_v15 = vadd.f32 %v629_v10, %v628_v7  ;;  %v744_v53 = vsel %vm567_vm2, %v692_v43, 0.0  ;;  %v695_v54 = vmul.f32 %v1215_v19, %v1215_v19 }
 0x117   : > { %v746_v60 = vsel %vm567_vm2, %v693_v47, 0.0  ;;  %v645_v0 = vsel %vm567_vm2, %v1186_v59, 0.0  ;;  %v647_v61 = vsel %vm567_vm2, %v1215_v19, 0.0  ;;  %v748_v1 = vsel %vm567_vm2, %v694_v51, 0.0 }
 0x118   : > { %v632_v21 = vadd.f32 %v631_v11, %v630_v15  ;;  %v733_v22 = vadd.f32 %v732_v16, %v731_v13  ;;  %v750_v2 = vsel %vm567_vm2, %v695_v54, 0.0  ;;  %v696_v3 = vmul.f32 %v1231_v30, %v1231_v30 }
 0x119   : > { %v649_v59 = vsel %vm567_vm2, %v1231_v30, 0.0  ;;  %v651_v19 = vsel %vm567_vm2, %v1206_v14, 0.0  ;;  %v698_v9 = vmul.f32 %v1222_v23, %v1222_v23  ;;  %v699_v11 = vmul.f32 %v1251_v52, %v1251_v52 }
 0x11a   : > { %v735_v25 = vadd.f32 %v734_v17, %v733_v22  ;;  %v634_v27 = vadd.f32 %v633_v24, %v632_v21  ;;  %v752_v10 = vsel %vm567_vm2, %v696_v3, 0.0  ;;  %v754_v15 = vsel %vm567_vm2, %v697_v6, 0.0 }
 0x11b   : > { %v653_v30 = vsel %vm567_vm2, %v1222_v23, 0.0  ;;  %v655_v16 = vsel %vm567_vm2, %v1251_v52, 0.0  ;;  %v756_v18 = vsel %vm567_vm2, %v698_v9, 0.0  ;;  %v758_v21 = vsel %vm567_vm2, %v699_v11, 0.0 }
 0x11c   : > { %v636_v35 = vadd.f32 %v635_v28, %v634_v27  ;;  %v737_v37 = vadd.f32 %v736_v33, %v735_v25  ;;  %v700_v22 = vmul.f32 %v1267_v63, %v1267_v63  ;;  %v701_v25 = vmul.f32 %v1242_v46, %v1242_v46 }
 0x11d   : > { %v657_v23 = vsel %vm567_vm2, %v1267_v63, 0.0  ;;  %v659_v28 = vsel %vm567_vm2, %v1242_v46, 0.0 }
 0x11e   : > { %v739_v40 = vadd.f32 %v738_v38, %v737_v37  ;;  %v638_v26 = vadd.f32 %v637_v36, %v636_v35  ;;  %v760_v32 = vsel %vm567_vm2, %v700_v22, 0.0  ;;  %v762_v35 = vsel %vm567_vm2, %v701_v25, 0.0 }
 0x11f   : > { %v661_v37 = vsel %vm567_vm2, %v1258_v57, 0.0 }
 0x120   : > { %v640_v44 = vadd.f32 %v639_v39, %v638_v26  ;;  %v741_v45 = vadd.f32 %v740_v41, %v739_v40 }
 0x122   : > { %v743_v48 = vadd.f32 %v742_v42, %v741_v45  ;;  %v642_v49 = vadd.f32 %v641_v31, %v640_v44 }
 0x124   : > { %v644_v56 = vadd.f32 %v643_v55, %v642_v49  ;;  %v745_v58 = vadd.f32 %v744_v53, %v743_v48 }
 0x126   : > { %v747_v62 = vadd.f32 %v746_v60, %v745_v58  ;;  %v646_v50 = vadd.f32 %v645_v0, %v644_v56 }
 0x128   : > { %v648_v4 = vadd.f32 %v647_v61, %v646_v50  ;;  %v749_v5 = vadd.f32 %v748_v1, %v747_v62 }
 0x12a   : > { %v751_v7 = vadd.f32 %v750_v2, %v749_v5  ;;  %v650_v8 = vadd.f32 %v649_v59, %v648_v4 }
 0x12c   : > { %v652_v12 = vadd.f32 %v651_v19, %v650_v8  ;;  %v753_v13 = vadd.f32 %v752_v10, %v751_v7 }
 0x12e   : > { %v755_v17 = vadd.f32 %v754_v15, %v753_v13  ;;  %v654_v14 = vadd.f32 %v653_v30, %v652_v12 }
 0x130   : > { %v656_v29 = vadd.f32 %v655_v16, %v654_v14  ;;  %v757_v24 = vadd.f32 %v756_v18, %v755_v17 }
 0x132   : > { %v759_v52 = vadd.f32 %v758_v21, %v757_v24  ;;  %v658_v27 = vadd.f32 %v657_v23, %v656_v29 }
 0x134   : > { %v660_v33 = vadd.f32 %v659_v28, %v658_v27  ;;  %v761_v34 = vadd.f32 %v760_v32, %v759_v52 }
 0x136   : > { %v662_v38 = vadd.f32 %v661_v37, %v660_v33  ;;  %v763_v36 = vadd.f32 %v762_v35, %v761_v34 }
 0x138   : > { %v663_v39 = vrot.slane %v662_v38, 4  ;;  %v765_v63 = vadd.f32 %v1287_v20, %v763_v36 }
 0x13a   : > { %v664_v40 = vadd.f32 %v663_v39, %v662_v38  ;;  %v766_v26 = vrot.slane %v765_v63, 4 }
 0x13c   : > { %v665_v41 = vrot.slane %v664_v40, 2  ;;  %v767_v46 = vadd.f32 %v766_v26, %v765_v63 }
 0x13e   : > { %v666_v42 = vadd.f32 %v665_v41, %v664_v40  ;;  %v768_v43 = vrot.slane %v767_v46, 2 }
 0x140   : > { %v667_v44 = vrot.slane %v666_v42, 1  ;;  %v769_v45 = vadd.f32 %v768_v43, %v767_v46 }
 0x142   : > { %v668_v57 = vadd.f32 %v667_v44, %v666_v42  ;;  %v770_v47 = vrot.slane %v769_v45, 1 }
 0x144   : > { %670 = vst.msk [vmem:[%s184_s15] sm:$0x1] %vm669_vm3, %v668_v57  ;;  %v771_v31 = vadd.f32 %v770_v47, %v769_v45 }
 0x146   : > { %772 = vst.msk [vmem:[%s184_s15 + $0x1] sm:$0x1] %vm669_vm3, %v771_v31 }
 0x147 PF: > { %s14_s12 = sadd.s32 1, %s1033_s12  }
 0x148   : > { %p11_p5 = scmp.ge.s32.totalorder %s14_s12, 6  }
 0x14a   :  { %13 = sbr.rel (!%p11_p5) target bundleno = 1 (0x1), region = 70 }

// kernel: aspp_s_forward.31
= control target key start
LH: loop header
LB: loop body
LE: loop exit
PB: predicated region body
PF: predicated region fallthrough
CT: control target
= control target key end

     0   :  { %s889_s15 = smov 0   ;;  %s1109_s0 = inlined_call_operand.vmem [shape: f32[1024,4], index: 0, kind: input, shape index: {}]   ;;  %s1110_s1 = inlined_call_operand.vmem [shape: f32[1,4], index: 1, kind: input, shape index: {}]   ;;  %s1111_s2 = inlined_call_operand.vmem [shape: f32[1,4], index: 2, kind: input, shape index: {}]   ;;  %s1112_s3 = inlined_call_operand.vmem [shape: bf16[1024,4], index: 3, kind: input, shape index: {}]   ;;  %s1113_s4 = inlined_call_operand.vmem [shape: bf16[1024,4], index: 4, kind: output, shape index: {}]  }
   0x1 LB: > { %s690_s16 = sadd.s32 4294967295, %s862_s15   ;;  %p694_p0 = scmp.ge.s32.totalorder %s862_s15, 1  ;;  %s862_s15 = sphi %s889_s15, %s14_s15  }
   0x2   : > { %p174_p1 = scmp.lt.s32.totalorder %s862_s15, 5 }
   0x4   : > { %p175_p2 = pnand %p694_p0, %p174_p1 }
   0x5   : > { %s695_s17 = sshll.u32 (!%p175_p2), %s690_s16, 5  ;;  %v904_v0 = vld [vmem:[%s1110_s1] ss:$0 sm:$0xff] (!%p175_p2)  ;;  %vm589_vm0 = vcmask (!%p175_p2), 27648  }
   0x6   : > { %178 = sbr.rel (%p175_p2) target bundleno = 72 (0x48), region = 36  ;;  %p206_p3 = scmp.lt.s32.totalorder (!%p175_p2), %s695_s17, 127  ;;  %v921_v1 = vld [vmem:[%s1111_s2] ss:$0 sm:$0xff] (!%p175_p2) }
   0xd   : > { %s1115_s17 = smov (!%p206_p3, %s695_s17), 127 }
   0xe   : > { %s696_s18 = sshll.u32 %s1115_s17, 3  ;;  %s698_s19 = sshll.u32 %s1115_s17, 2 }
   0xf   : > { %s909_s24 = scalar_lea.vmem %s1109_s0, %s696_s18  ;;  %s916_s27 = scalar_lea.vmem %s1112_s3, %s698_s19 }
  0x10   : > { %v223_v2 = vld [vmem:[%s909_s24] sm:$0xff]  ;;  %v224_v4 = vld [vmem:[%s909_s24 + $0x8] sm:$0xff]  ;;  %v225_v9 = vld [vmem:[%s909_s24 + $0x10] sm:$0xff]  ;;  %s954_s6 = scalar_lea.vmem %s1113_s4, %s698_s19 }
  0x11   : > { %v770_v3 = vld [vmem:[%s916_s27] sm:$0xff]   ;;  %v262_v5 = vmul.f32 %v904_v0, %v223_v2  ;;  %v263_v7 = vmul.f32 %v904_v0, %v224_v4  ;;  %v833_v10 = vld [vmem:[%s916_s27 + $0x8] sm:$0xff]   ;;  %v226_v11 = vld [vmem:[%s909_s24 + $0x18] sm:$0xff]  ;;  %v264_v12 = vmul.f32 %v904_v0, %v225_v9 }
  0x12   : > { %v771_v6 = vunpack.c.l.bf16 %v770_v3  ;;  %v772_v8 = vunpack.c.h.bf16 %v770_v3  ;;  %v775_v13 = vunpack.c.l.bf16 %v833_v10  ;;  %v265_v14 = vmul.f32 %v904_v0, %v226_v11  ;;  %v227_v16 = vld [vmem:[%s909_s24 + $0x20] sm:$0xff]  ;;  %v834_v17 = vld [vmem:[%s916_s27 + $0x10] sm:$0xff]   ;;  %v228_v18 = vld [vmem:[%s909_s24 + $0x28] sm:$0xff] }
  0x13   : > { %v776_v15 = vunpack.c.h.bf16 %v833_v10  ;;  %v301_v19 = vadd.f32 %v921_v1, %v262_v5  ;;  %v302_v20 = vadd.f32 %v921_v1, %v263_v7  ;;  %v266_v21 = vmul.f32 %v904_v0, %v227_v16  ;;  %v229_v23 = vld [vmem:[%s909_s24 + $0x30] sm:$0xff]  ;;  %v835_v24 = vld [vmem:[%s916_s27 + $0x18] sm:$0xff]   ;;  %v231_v46 = vld [vmem:[%s909_s24 + $0x40] sm:$0xff] }
  0x14   : > { %v779_v22 = vunpack.c.l.bf16 %v834_v17  ;;  %v303_v25 = vadd.f32 %v921_v1, %v264_v12  ;;  %v304_v26 = vadd.f32 %v921_v1, %v265_v14  ;;  %v267_v27 = vmul.f32 %v904_v0, %v228_v18  ;;  %v230_v33 = vld [vmem:[%s909_s24 + $0x38] sm:$0xff]  ;;  %v836_v51 = vld [vmem:[%s916_s27 + $0x20] sm:$0xff]   ;;  %v232_v52 = vld [vmem:[%s909_s24 + $0x48] sm:$0xff] }
  0x15   : > { %v780_v28 = vunpack.c.h.bf16 %v834_v17  ;;  %v397_v29 = vadd.f32 %v771_v6, %v301_v19  ;;  %v398_v30 = vadd.f32 %v772_v8, %v302_v20  ;;  %v305_v31 = vadd.f32 %v921_v1, %v266_v21  ;;  %v233_v57 = vld [vmem:[%s909_s24 + $0x50] sm:$0xff]  ;;  %v837_v62 = vld [vmem:[%s916_s27 + $0x28] sm:$0xff]   ;;  %v234_v63 = vld [vmem:[%s909_s24 + $0x58] sm:$0xff] }
  0x16   : > { %v268_v32 = vmul.f32 %v904_v0, %v229_v23  ;;  %v399_v34 = vadd.f32 %v775_v13, %v303_v25  ;;  %v400_v35 = vadd.f32 %v776_v15, %v304_v26  ;;  %v306_v36 = vadd.f32 %v921_v1, %v267_v27  ;;  %v235_v6 = vld [vmem:[%s909_s24 + $0x60] sm:$0xff]  ;;  %v838_v11 = vld [vmem:[%s916_s27 + $0x30] sm:$0xff]   ;;  %v236_v12 = vld [vmem:[%s909_s24 + $0x68] sm:$0xff] }
  0x17   : > { %v783_v37 = vunpack.c.l.bf16 %v835_v24  ;;  %v429_v38 = vmax.f32 %v397_v29, 0.0  ;;  %v430_v39 = vmax.f32 %v398_v30, 0.0  ;;  %v401_v40 = vadd.f32 %v779_v22, %v305_v31  ;;  %v237_v25 = vld [vmem:[%s909_s24 + $0x70] sm:$0xff]  ;;  %v839_v30 = vld [vmem:[%s916_s27 + $0x38] sm:$0xff]  }
  0x18   : > { %v307_v41 = vadd.f32 %v921_v1, %v268_v32  ;;  %v431_v42 = vmax.f32 %v399_v34, 0.0  ;;  %v432_v43 = vmax.f32 %v400_v35, 0.0  ;;  %v402_v44 = vadd.f32 %v780_v28, %v306_v36  ;;  %v238_v35 = vld [vmem:[%s909_s24 + $0x78] sm:$0xff] }
  0x19   : > { %v269_v45 = vmul.f32 %v904_v0, %v230_v33  ;;  %v737_v47 = vpack.c.bf16 %v429_v38, %v429_v38  ;;  %v738_v48 = vpack.c.bf16 %v430_v39, %v430_v39  ;;  %v433_v49 = vmax.f32 %v401_v40, 0.0  ;;  %v239_v40 = vld [vmem:[%s909_s24 + $0x80] sm:$0xff] }
  0x1a   : > { %v403_v50 = vadd.f32 %v783_v37, %v307_v41  ;;  %v739_v53 = vpack.c.bf16 %v431_v42, %v431_v42  ;;  %v740_v54 = vpack.c.bf16 %v432_v43, %v432_v43  ;;  %v434_v55 = vmax.f32 %v402_v44, 0.0 }
  0x1b   : > { %v308_v56 = vadd.f32 %v921_v1, %v269_v45  ;;  %590 = vst.msk [vmem:[%s954_s6] sm:$0xf] %vm589_vm0, %v737_v47  ;;  %591 = vst.msk [vmem:[%s954_s6 + $0x4] sm:$0xf] %vm589_vm0, %v738_v48  ;;  %v741_v58 = vpack.c.bf16 %v433_v49, %v433_v49  ;;  %v784_v60 = vunpack.c.h.bf16 %v835_v24  ;;  %v270_v61 = vmul.f32 %v904_v0, %v231_v46  ;;  %v840_v45 = vld [vmem:[%s916_s27 + $0x40] sm:$0xff]  }
  0x1c   : > { %v435_v59 = vmax.f32 %v403_v50, 0.0  ;;  %592 = vst.msk [vmem:[%s954_s6 + $0x8] sm:$0xf] %vm589_vm0, %v739_v53  ;;  %593 = vst.msk [vmem:[%s954_s6 + $0xc] sm:$0xf] %vm589_vm0, %v740_v54  ;;  %v742_v2 = vpack.c.bf16 %v434_v55, %v434_v55  ;;  %v787_v3 = vunpack.c.l.bf16 %v836_v51  ;;  %v271_v4 = vmul.f32 %v904_v0, %v232_v52  ;;  %v240_v50 = vld [vmem:[%s909_s24 + $0x88] sm:$0xff] }
  0x1d   : > { %v788_v5 = vunpack.c.h.bf16 %v836_v51  ;;  %594 = vst.msk [vmem:[%s954_s6 + $0x10] sm:$0xf] %vm589_vm0, %v741_v58  ;;  %v404_v8 = vadd.f32 %v784_v60, %v308_v56  ;;  %v309_v9 = vadd.f32 %v921_v1, %v270_v61  ;;  %v272_v10 = vmul.f32 %v904_v0, %v233_v57  ;;  %v241_v55 = vld [vmem:[%s909_s24 + $0x90] sm:$0xff]  ;;  %v841_v56 = vld [vmem:[%s916_s27 + $0x48] sm:$0xff]   ;;  %v242_v61 = vld [vmem:[%s909_s24 + $0x98] sm:$0xff] }
  0x1e   : > { %v743_v7 = vpack.c.bf16 %v435_v59, %v435_v59  ;;  %595 = vst.msk [vmem:[%s954_s6 + $0x14] sm:$0xf] %vm589_vm0, %v742_v2  ;;  %v310_v13 = vadd.f32 %v921_v1, %v271_v4  ;;  %v791_v14 = vunpack.c.l.bf16 %v837_v62  ;;  %v273_v15 = vmul.f32 %v904_v0, %v234_v63  ;;  %v243_v4 = vld [vmem:[%s909_s24 + $0xa0] sm:$0xff] }
  0x1f   : > { %v792_v16 = vunpack.c.h.bf16 %v837_v62  ;;  %v436_v17 = vmax.f32 %v404_v8, 0.0  ;;  %v405_v18 = vadd.f32 %v787_v3, %v309_v9  ;;  %v311_v19 = vadd.f32 %v921_v1, %v272_v10  ;;  %v842_v9 = vld [vmem:[%s916_s27 + $0x50] sm:$0xff]  }
  0x20   : > { %596 = vst.msk [vmem:[%s954_s6 + $0x18] sm:$0xf] %vm589_vm0, %v743_v7  ;;  %v274_v20 = vmul.f32 %v904_v0, %v235_v6  ;;  %v406_v21 = vadd.f32 %v788_v5, %v310_v13  ;;  %v312_v22 = vadd.f32 %v921_v1, %v273_v15  ;;  %v795_v23 = vunpack.c.l.bf16 %v838_v11 }
  0x21   : > { %v275_v24 = vmul.f32 %v904_v0, %v236_v12  ;;  %v744_v26 = vpack.c.bf16 %v436_v17, %v436_v17  ;;  %v437_v27 = vmax.f32 %v405_v18, 0.0  ;;  %v407_v28 = vadd.f32 %v791_v14, %v311_v19  ;;  %v244_v14 = vld [vmem:[%s909_s24 + $0xa8] sm:$0xff] }
  0x22   : > { %v313_v29 = vadd.f32 %v921_v1, %v274_v20  ;;  %v438_v31 = vmax.f32 %v406_v21, 0.0  ;;  %v408_v32 = vadd.f32 %v792_v16, %v312_v22  ;;  %v796_v34 = vunpack.c.h.bf16 %v838_v11 }
  0x23   : > { %v314_v33 = vadd.f32 %v921_v1, %v275_v24  ;;  %597 = vst.msk [vmem:[%s954_s6 + $0x1c] sm:$0xf] %vm589_vm0, %v744_v26  ;;  %v745_v36 = vpack.c.bf16 %v437_v27, %v437_v27  ;;  %v439_v37 = vmax.f32 %v407_v28, 0.0  ;;  %v276_v39 = vmul.f32 %v904_v0, %v237_v25  ;;  %v843_v28 = vld [vmem:[%s916_s27 + $0x58] sm:$0xff]  }
  0x24   : > { %v409_v38 = vadd.f32 %v795_v23, %v313_v29  ;;  %v746_v41 = vpack.c.bf16 %v438_v31, %v438_v31  ;;  %v440_v42 = vmax.f32 %v408_v32, 0.0  ;;  %v799_v44 = vunpack.c.l.bf16 %v839_v30  ;;  %v245_v23 = vld [vmem:[%s909_s24 + $0xb0] sm:$0xff]  ;;  %v246_v29 = vld [vmem:[%s909_s24 + $0xb8] sm:$0xff] }
  0x25   : > { %v410_v43 = vadd.f32 %v796_v34, %v314_v33  ;;  %598 = vst.msk [vmem:[%s954_s6 + $0x20] sm:$0xf] %vm589_vm0, %v745_v36  ;;  %v747_v46 = vpack.c.bf16 %v439_v37, %v439_v37  ;;  %v315_v48 = vadd.f32 %v921_v1, %v276_v39  ;;  %v277_v49 = vmul.f32 %v904_v0, %v238_v35 }
  0x26   : > { %v441_v47 = vmax.f32 %v409_v38, 0.0  ;;  %599 = vst.msk [vmem:[%s954_s6 + $0x24] sm:$0xf] %vm589_vm0, %v746_v41  ;;  %v748_v51 = vpack.c.bf16 %v440_v42, %v440_v42  ;;  %v800_v53 = vunpack.c.h.bf16 %v839_v30  ;;  %v278_v54 = vmul.f32 %v904_v0, %v239_v40  ;;  %v247_v38 = vld [vmem:[%s909_s24 + $0xc0] sm:$0xff] }
  0x27   : > { %v442_v52 = vmax.f32 %v410_v43, 0.0  ;;  %600 = vst.msk [vmem:[%s954_s6 + $0x28] sm:$0xf] %vm589_vm0, %v747_v46  ;;  %v411_v58 = vadd.f32 %v799_v44, %v315_v48  ;;  %v316_v59 = vadd.f32 %v921_v1, %v277_v49  ;;  %v803_v60 = vunpack.c.l.bf16 %v840_v45  ;;  %v844_v43 = vld [vmem:[%s916_s27 + $0x60] sm:$0xff]   ;;  %v248_v48 = vld [vmem:[%s909_s24 + $0xc8] sm:$0xff] }
  0x28   : > { %v749_v57 = vpack.c.bf16 %v441_v47, %v441_v47  ;;  %601 = vst.msk [vmem:[%s954_s6 + $0x2c] sm:$0xf] %vm589_vm0, %v748_v51  ;;  %v317_v63 = vadd.f32 %v921_v1, %v278_v54  ;;  %v279_v2 = vmul.f32 %v904_v0, %v240_v50  ;;  %v804_v3 = vunpack.c.h.bf16 %v840_v45  ;;  %v845_v54 = vld [vmem:[%s916_s27 + $0x68] sm:$0xff]  }
  0x29   : > { %v750_v62 = vpack.c.bf16 %v442_v52, %v442_v52  ;;  %v443_v5 = vmax.f32 %v411_v58, 0.0  ;;  %v412_v6 = vadd.f32 %v800_v53, %v316_v59  ;;  %v280_v7 = vmul.f32 %v904_v0, %v241_v55  ;;  %v249_v53 = vld [vmem:[%s909_s24 + $0xd0] sm:$0xff]  ;;  %v250_v59 = vld [vmem:[%s909_s24 + $0xd8] sm:$0xff] }
  0x2a   : > { %602 = vst.msk [vmem:[%s954_s6 + $0x30] sm:$0xf] %vm589_vm0, %v749_v57  ;;  %v807_v8 = vunpack.c.l.bf16 %v841_v56  ;;  %v413_v10 = vadd.f32 %v803_v60, %v317_v63  ;;  %v318_v11 = vadd.f32 %v921_v1, %v279_v2  ;;  %v281_v12 = vmul.f32 %v904_v0, %v242_v61  ;;  %v251_v2 = vld [vmem:[%s909_s24 + $0xe0] sm:$0xff] }
  0x2b   : > { %603 = vst.msk [vmem:[%s954_s6 + $0x34] sm:$0xf] %vm589_vm0, %v750_v62  ;;  %v808_v13 = vunpack.c.h.bf16 %v841_v56  ;;  %v751_v15 = vpack.c.bf16 %v443_v5, %v443_v5  ;;  %v444_v16 = vmax.f32 %v412_v6, 0.0  ;;  %v319_v17 = vadd.f32 %v921_v1, %v280_v7 }
  0x2c   : > { %v282_v18 = vmul.f32 %v904_v0, %v243_v4  ;;  %v445_v19 = vmax.f32 %v413_v10, 0.0  ;;  %v414_v20 = vadd.f32 %v804_v3, %v318_v11  ;;  %v320_v21 = vadd.f32 %v921_v1, %v281_v12  ;;  %v846_v11 = vld [vmem:[%s916_s27 + $0x70] sm:$0xff]   ;;  %v252_v12 = vld [vmem:[%s909_s24 + $0xe8] sm:$0xff] }
  0x2d   : > { %v811_v22 = vunpack.c.l.bf16 %v842_v9  ;;  %604 = vst.msk [vmem:[%s954_s6 + $0x38] sm:$0xf] %vm589_vm0, %v751_v15  ;;  %v752_v24 = vpack.c.bf16 %v444_v16, %v444_v16  ;;  %v415_v25 = vadd.f32 %v807_v8, %v319_v17  ;;  %v283_v27 = vmul.f32 %v904_v0, %v244_v14 }
  0x2e   : > { %v321_v26 = vadd.f32 %v921_v1, %v282_v18  ;;  %v753_v30 = vpack.c.bf16 %v445_v19, %v445_v19  ;;  %v446_v31 = vmax.f32 %v414_v20, 0.0  ;;  %v416_v32 = vadd.f32 %v808_v13, %v320_v21  ;;  %v253_v21 = vld [vmem:[%s909_s24 + $0xf0] sm:$0xff] }
  0x2f   : > { %v812_v33 = vunpack.c.h.bf16 %v842_v9  ;;  %605 = vst.msk [vmem:[%s954_s6 + $0x3c] sm:$0xf] %vm589_vm0, %v752_v24  ;;  %v447_v34 = vmax.f32 %v415_v25, 0.0  ;;  %v322_v36 = vadd.f32 %v921_v1, %v283_v27  ;;  %v284_v37 = vmul.f32 %v904_v0, %v245_v23  ;;  %v254_v27 = vld [vmem:[%s909_s24 + $0xf8] sm:$0xff] }
  0x30   : > { %v417_v35 = vadd.f32 %v811_v22, %v321_v26  ;;  %606 = vst.msk [vmem:[%s954_s6 + $0x40] sm:$0xf] %vm589_vm0, %v753_v30  ;;  %v754_v39 = vpack.c.bf16 %v446_v31, %v446_v31  ;;  %v448_v40 = vmax.f32 %v416_v32, 0.0  ;;  %v815_v41 = vunpack.c.l.bf16 %v843_v28  ;;  %v847_v26 = vld [vmem:[%s916_s27 + $0x78] sm:$0xff]  }
  0x31   : > { %v285_v42 = vmul.f32 %v904_v0, %v246_v29  ;;  %v755_v44 = vpack.c.bf16 %v447_v34, %v447_v34  ;;  %v418_v46 = vadd.f32 %v812_v33, %v322_v36  ;;  %v323_v47 = vadd.f32 %v921_v1, %v284_v37 }
  0x32   : > { %v449_v45 = vmax.f32 %v417_v35, 0.0  ;;  %607 = vst.msk [vmem:[%s954_s6 + $0x44] sm:$0xf] %vm589_vm0, %v754_v39  ;;  %v756_v49 = vpack.c.bf16 %v448_v40, %v448_v40  ;;  %v816_v51 = vunpack.c.h.bf16 %v843_v28  ;;  %v286_v52 = vmul.f32 %v904_v0, %v247_v38 }
  0x33   : > { %v324_v50 = vadd.f32 %v921_v1, %v285_v42  ;;  %608 = vst.msk [vmem:[%s954_s6 + $0x48] sm:$0xf] %vm589_vm0, %v755_v44  ;;  %v450_v56 = vmax.f32 %v418_v46, 0.0  ;;  %v419_v57 = vadd.f32 %v815_v41, %v323_v47  ;;  %v819_v58 = vunpack.c.l.bf16 %v844_v43 }
  0x34   : > { %v757_v55 = vpack.c.bf16 %v449_v45, %v449_v45  ;;  %609 = vst.msk [vmem:[%s954_s6 + $0x4c] sm:$0xf] %vm589_vm0, %v756_v49  ;;  %v325_v61 = vadd.f32 %v921_v1, %v286_v52  ;;  %v287_v62 = vmul.f32 %v904_v0, %v248_v48  ;;  %v820_v63 = vunpack.c.h.bf16 %v844_v43 }
  0x35   : > { %v420_v60 = vadd.f32 %v816_v51, %v324_v50  ;;  %v758_v3 = vpack.c.bf16 %v450_v56, %v450_v56  ;;  %v451_v4 = vmax.f32 %v419_v57, 0.0  ;;  %v288_v5 = vmul.f32 %v904_v0, %v249_v53 }
  0x36   : > { %610 = vst.msk [vmem:[%s954_s6 + $0x50] sm:$0xf] %vm589_vm0, %v757_v55  ;;  %v823_v6 = vunpack.c.l.bf16 %v845_v54  ;;  %v421_v8 = vadd.f32 %v819_v58, %v325_v61  ;;  %v326_v9 = vadd.f32 %v921_v1, %v287_v62  ;;  %v289_v10 = vmul.f32 %v904_v0, %v250_v59 }
  0x37   : > { %v452_v7 = vmax.f32 %v420_v60, 0.0  ;;  %611 = vst.msk [vmem:[%s954_s6 + $0x54] sm:$0xf] %vm589_vm0, %v758_v3  ;;  %v759_v13 = vpack.c.bf16 %v451_v4, %v451_v4  ;;  %v327_v14 = vadd.f32 %v921_v1, %v288_v5  ;;  %v824_v15 = vunpack.c.h.bf16 %v845_v54 }
  0x38   : > { %v290_v16 = vmul.f32 %v904_v0, %v251_v2  ;;  %v453_v18 = vmax.f32 %v421_v8, 0.0  ;;  %v422_v19 = vadd.f32 %v820_v63, %v326_v9  ;;  %v328_v20 = vadd.f32 %v921_v1, %v289_v10 }
  0x39   : > { %v760_v17 = vpack.c.bf16 %v452_v7, %v452_v7  ;;  %612 = vst.msk [vmem:[%s954_s6 + $0x58] sm:$0xf] %vm589_vm0, %v759_v13  ;;  %v423_v22 = vadd.f32 %v823_v6, %v327_v14  ;;  %v827_v24 = vunpack.c.l.bf16 %v846_v11  ;;  %v291_v25 = vmul.f32 %v904_v0, %v252_v12 }
  0x3a   : > { %v329_v23 = vadd.f32 %v921_v1, %v290_v16  ;;  %v761_v28 = vpack.c.bf16 %v453_v18, %v453_v18  ;;  %v454_v29 = vmax.f32 %v422_v19, 0.0  ;;  %v424_v30 = vadd.f32 %v824_v15, %v328_v20 }
  0x3b   : > { %613 = vst.msk [vmem:[%s954_s6 + $0x5c] sm:$0xf] %vm589_vm0, %v760_v17  ;;  %v828_v31 = vunpack.c.h.bf16 %v846_v11  ;;  %v455_v32 = vmax.f32 %v423_v22, 0.0  ;;  %v330_v34 = vadd.f32 %v921_v1, %v291_v25  ;;  %v292_v35 = vmul.f32 %v904_v0, %v253_v21 }
  0x3c   : > { %v425_v33 = vadd.f32 %v827_v24, %v329_v23  ;;  %614 = vst.msk [vmem:[%s954_s6 + $0x60] sm:$0xf] %vm589_vm0, %v761_v28  ;;  %v762_v36 = vpack.c.bf16 %v454_v29, %v454_v29  ;;  %v456_v37 = vmax.f32 %v424_v30, 0.0  ;;  %v831_v38 = vunpack.c.l.bf16 %v847_v26 }
  0x3d   : > { %v293_v39 = vmul.f32 %v904_v0, %v254_v27  ;;  %v763_v40 = vpack.c.bf16 %v455_v32, %v455_v32  ;;  %v426_v42 = vadd.f32 %v828_v31, %v330_v34  ;;  %v331_v43 = vadd.f32 %v921_v1, %v292_v35 }
  0x3e   : > { %v457_v41 = vmax.f32 %v425_v33, 0.0  ;;  %615 = vst.msk [vmem:[%s954_s6 + $0x64] sm:$0xf] %vm589_vm0, %v762_v36  ;;  %v764_v44 = vpack.c.bf16 %v456_v37, %v456_v37  ;;  %v832_v46 = vunpack.c.h.bf16 %v847_v26 }
  0x3f   : > { %v332_v45 = vadd.f32 %v921_v1, %v293_v39  ;;  %616 = vst.msk [vmem:[%s954_s6 + $0x68] sm:$0xf] %vm589_vm0, %v763_v40  ;;  %v458_v48 = vmax.f32 %v426_v42, 0.0  ;;  %v427_v49 = vadd.f32 %v831_v38, %v331_v43 }
  0x40   : > { %v765_v47 = vpack.c.bf16 %v457_v41, %v457_v41  ;;  %617 = vst.msk [vmem:[%s954_s6 + $0x6c] sm:$0xf] %vm589_vm0, %v764_v44 }
  0x41   : > { %v428_v0 = vadd.f32 %v832_v46, %v332_v45  ;;  %v766_v50 = vpack.c.bf16 %v458_v48, %v458_v48  ;;  %v459_v51 = vmax.f32 %v427_v49, 0.0 }
  0x42   : > { %618 = vst.msk [vmem:[%s954_s6 + $0x70] sm:$0xf] %vm589_vm0, %v765_v47 }
  0x43   : > { %v460_v52 = vmax.f32 %v428_v0, 0.0  ;;  %619 = vst.msk [vmem:[%s954_s6 + $0x74] sm:$0xf] %vm589_vm0, %v766_v50  ;;  %v767_v53 = vpack.c.bf16 %v459_v51, %v459_v51 }
  0x45   : > { %v768_v54 = vpack.c.bf16 %v460_v52, %v460_v52  ;;  %620 = vst.msk [vmem:[%s954_s6 + $0x78] sm:$0xf] %vm589_vm0, %v767_v53 }
  0x47   : > { %621 = vst.msk [vmem:[%s954_s6 + $0x7c] sm:$0xf] %vm589_vm0, %v768_v54 }
  0x48 PF: > { %s14_s15 = sadd.s32 1, %s862_s15  }
  0x49   : > { %p11_p4 = scmp.ge.s32.totalorder %s14_s15, 6  }
  0x4b   :  { %13 = sbr.rel (!%p11_p4) target bundleno = 1 (0x1), region = 69 }

// kernel: aspp_s_forward.34
= control target key start
LH: loop header
LB: loop body
LE: loop exit
PB: predicated region body
PF: predicated region fallthrough
CT: control target
= control target key end

     0   :  { %vm20_vm0 = vcmask 1041408   ;;  %v103_v0 = vmov 0.0   ;;  %vm104_vm1 = vmmov 0   ;;  %vm16_vm2 = vcmask 31744   ;;  %s140_s1 = inlined_call_operand.vmem [shape: bf16[1,4,6], index: 1, kind: input, shape index: {}]   ;;  %s141_s0 = inlined_call_operand.vmem [shape: bf16[8,4], index: 0, kind: input, shape index: {}]   ;;  %s142_s2 = inlined_call_operand.vmem [shape: f32[8,6], index: 2, kind: output, shape index: {0}]   ;;  %s143_s3 = inlined_call_operand.vmem [shape: f32[1,2,6], index: 3, kind: output, shape index: {1}]  }
   0x1   :  { %95 = vmatprep.subr.bf16.mxu0 %v103_v0  ;;  %v15_v1 = vld [vmem:[%s140_s1] sm:$0x3]  ;;  %97 = vmatprep.mubr.msk.bf16.mxu0 %vm104_vm1, %v103_v0  ;;  %vm64_vm3 = vcmask 48128   ;;  %vm73_vm4 = vcmask 40960  }
   0x2   :  { %v22_v2 = vsel %vm20_vm0, %v15_v1, 0  ;;  %v14_v3 = vld [vmem:[%s141_s0] sm:$0xf] }
   0x3   :  { %96 = vmatpush3.bf16.msra.mxu0 %v22_v2 }
   0x6   :  { %98 = vmatmul.mubr.msk.bf16.vlgmr.msra.gmra.mrb[0].mxu0 %vm16_vm2, %v14_v3 }
  0xd9   :  { %v58_v4 = vpop.f32.mrb[0].mxu0 }
  0xda   :  { %65 = vst.msk [vmem:[%s142_s2] sm:$0xff] %vm64_vm3, %v58_v4  ;;  %v66_v5 = vsel %vm64_vm3, %v58_v4, 0.0  ;;  %v75_v6 = vmul.f32 %v58_v4, %v58_v4  ;;  %v99_v7 = vpop.f32.mrb[1].mxu0 }
  0xdb   :  { %v67_v8 = vrot.slane %v66_v5, 4  ;;  %v61_v9 = vpop.f32.mrb[2].mxu0 }
  0xdc   :  { %v76_v10 = vsel %vm64_vm3, %v75_v6, 0.0  ;;  %v100_v11 = vpop.f32.mrb[3].mxu0 }
  0xdd   :  { %v68_v12 = vadd.f32 %v67_v8, %v66_v5  ;;  %v77_v13 = vrot.slane %v76_v10, 4 }
  0xdf   :  { %v69_v14 = vrot.slane %v68_v12, 2  ;;  %v78_v15 = vadd.f32 %v77_v13, %v76_v10 }
  0xe1   :  { %v70_v16 = vadd.f32 %v69_v14, %v68_v12  ;;  %v79_v17 = vrot.slane %v78_v15, 2 }
  0xe3   :  { %v71_v18 = vrot.slane %v70_v16, 1  ;;  %v80_v19 = vadd.f32 %v79_v17, %v78_v15 }
  0xe5   :  { %v72_v20 = vadd.f32 %v71_v18, %v70_v16  ;;  %v81_v21 = vrot.slane %v80_v19, 1 }
  0xe7   :  { %74 = vst.msk [vmem:[%s143_s3] sm:$0x1] %vm73_vm4, %v72_v20  ;;  %v82_v22 = vadd.f32 %v81_v21, %v80_v19 }
  0xe9   :  { %83 = vst.msk [vmem:[%s143_s3 + $0x1] sm:$0x1] %vm73_vm4, %v82_v22 }

// kernel: aspp_s_forward.35
= control target key start
LH: loop header
LB: loop body
LE: loop exit
PB: predicated region body
PF: predicated region fallthrough
CT: control target
= control target key end

     0   :  { %vm32_vm0 = vcmask 44032   ;;  %s72_s0 = inlined_call_operand.vmem [shape: f32[8,6], index: 0, kind: input, shape index: {}]   ;;  %s73_s1 = inlined_call_operand.vmem [shape: f32[1,6], index: 1, kind: input, shape index: {}]   ;;  %s74_s2 = inlined_call_operand.vmem [shape: f32[1,6], index: 2, kind: input, shape index: {}]   ;;  %s75_s3 = inlined_call_operand.vmem [shape: bf16[8,6], index: 3, kind: output, shape index: {}]  }
   0x1   :  { %v14_v0 = vld [vmem:[%s72_s0] sm:$0xff] }
   0x2   :  { %v38_v1 = vld [vmem:[%s73_s1] ss:$0 sm:$0xff] }
   0x3   :  { %v39_v2 = vld [vmem:[%s74_s2] ss:$0 sm:$0xff]  ;;  %v22_v3 = vmul.f32 %v38_v1, %v14_v0 }
   0x5   :  { %v30_v4 = vadd.f32 %v39_v2, %v22_v3 }
   0x7   :  { %v31_v5 = vpack.c.bf16 %v30_v4, %v30_v4 }
   0x9   :  { %33 = vst.msk [vmem:[%s75_s3] sm:$0xf] %vm32_vm0, %v31_v5 }

// kernel: aspp_s_forward.32
= control target key start
LH: loop header
LB: loop body
LE: loop exit
PB: predicated region body
PF: predicated region fallthrough
CT: control target
= control target key end

     0   :  { %vm164_vm0 = vcmask 883712   ;;  %vm207_vm1 = vcmask 1045504   ;;  %vm355_vm2 = vcmask 31744   ;;  %vm442_vm3 = vcmask 24576   ;;  %s1005_s1 = inlined_call_operand.vmem [shape: bf16[1,108,4], index: 1, kind: input, shape index: {}]   ;;  %s1006_s0 = inlined_call_operand.vmem [shape: bf16[216,108], index: 0, kind: input, shape index: {}]   ;;  %s1007_s2 = inlined_call_operand.vmem [shape: f32[216,4], index: 2, kind: output, shape index: {0}]   ;;  %s1008_s3 = inlined_call_operand.vmem [shape: f32[1,2,4], index: 3, kind: output, shape index: {1}]  }
   0x1   :  { %v653_v0 = vld [vmem:[%s1005_s1] sm:$0xff]   ;;  %v654_v1 = vld [vmem:[%s1005_s1 + $0x8] sm:$0xff]   ;;  %v655_v2 = vld [vmem:[%s1005_s1 + $0x10] sm:$0xff]  }
   0x2   :  { %595 = vmatprep.subr.bf16.mxu0 %v653_v0  ;;  %637 = vmatprep.subr.bf16.mxu1 %v653_v0  ;;  %v660_v3 = vld [vmem:[%s1006_s0] sm:$0xff]   ;;  %v656_v4 = vld [vmem:[%s1005_s1 + $0x18] sm:$0xff]   ;;  %v658_v7 = vld [vmem:[%s1005_s1 + $0x28] sm:$0xff]  }
   0x3   :  { %596 = vmatpush3.bf16.msra.mxu0 %v653_v0  ;;  %644 = vmatpush3.bf16.msra.mxu1 %v653_v0  ;;  %v657_v5 = vld [vmem:[%s1005_s1 + $0x20] sm:$0xff]   ;;  %v659_v8 = vld [vmem:[%s1005_s1 + $0x30] sm:$0x3f]   ;;  %v661_v10 = vld [vmem:[%s1006_s0 + $0x8] sm:$0xff]  }
   0x4   :  { %597 = vmatprep.subr.bf16.mxu0 %v654_v1  ;;  %638 = vmatprep.subr.bf16.mxu1 %v654_v1  ;;  %v668_v6 = vld [vmem:[%s1006_s0 + $0x40] sm:$0xff]   ;;  %v209_v9 = vsel %vm207_vm1, %v659_v8, 0  ;;  %v669_v11 = vld [vmem:[%s1006_s0 + $0x48] sm:$0xff]   ;;  %v662_v12 = vld [vmem:[%s1006_s0 + $0x10] sm:$0xff]  }
   0x5   :  { %609 = vmatprep.mubr.msk.bf16.mxu0 %vm164_vm0, %v660_v3  ;;  %625 = vmatprep.mubr.msk.bf16.mxu1 %vm164_vm0, %v668_v6  ;;  %v670_v13 = vld [vmem:[%s1006_s0 + $0x50] sm:$0xff]   ;;  %v663_v14 = vld [vmem:[%s1006_s0 + $0x18] sm:$0xff]   ;;  %v664_v16 = vld [vmem:[%s1006_s0 + $0x20] sm:$0xff]  }
   0x6   :  { %v671_v15 = vld [vmem:[%s1006_s0 + $0x58] sm:$0xff]   ;;  %v672_v17 = vld [vmem:[%s1006_s0 + $0x60] sm:$0xff]   ;;  %v665_v18 = vld [vmem:[%s1006_s0 + $0x28] sm:$0xff]  }
   0x7   :  { %598 = vmatpush3.bf16.msra.mxu0 %v654_v1  ;;  %645 = vmatpush3.bf16.msra.mxu1 %v654_v1  ;;  %v673_v19 = vld [vmem:[%s1006_s0 + $0x68] ss:$0 sps:$4 sm:$0xff]   ;;  %v666_v20 = vld [vmem:[%s1006_s0 + $0x30] sm:$0xff]   ;;  %v667_v21 = vld [vmem:[%s1006_s0 + $0x38] sm:$0xff]  }
   0x8   :  { %599 = vmatprep.subr.bf16.mxu0 %v655_v2  ;;  %639 = vmatprep.subr.bf16.mxu1 %v655_v2 }
   0xb   :  { %600 = vmatpush3.bf16.msra.mxu0 %v655_v2  ;;  %646 = vmatpush3.bf16.msra.mxu1 %v655_v2 }
   0xc   :  { %601 = vmatprep.subr.bf16.mxu0 %v656_v4  ;;  %640 = vmatprep.subr.bf16.mxu1 %v656_v4 }
   0xf   :  { %602 = vmatpush3.bf16.msra.mxu0 %v656_v4  ;;  %647 = vmatpush3.bf16.msra.mxu1 %v656_v4 }
  0x10   :  { %603 = vmatprep.subr.bf16.mxu0 %v657_v5  ;;  %641 = vmatprep.subr.bf16.mxu1 %v657_v5 }
  0x13   :  { %604 = vmatpush3.bf16.msra.mxu0 %v657_v5  ;;  %648 = vmatpush3.bf16.msra.mxu1 %v657_v5 }
  0x14   :  { %605 = vmatprep.subr.bf16.mxu0 %v658_v7  ;;  %642 = vmatprep.subr.bf16.mxu1 %v658_v7 }
  0x17   :  { %606 = vmatpush3.bf16.msra.mxu0 %v658_v7  ;;  %649 = vmatpush3.bf16.msra.mxu1 %v658_v7 }
  0x18   :  { %651 = vmatprep.subr.msk.bf16.mxu0 %vm207_vm1, %v659_v8  ;;  %652 = vmatprep.subr.msk.bf16.mxu1 %vm207_vm1, %v659_v8 }
  0x1b   :  { %608 = vmatpush3.bf16.msra.mxu0 %v209_v9  ;;  %650 = vmatpush3.bf16.msra.mxu1 %v209_v9 }
  0x1e   :  { %610 = vmatmul.mubr.msk.bf16.vlgmr.msra.gmra.mrb[0].mxu0 %vm164_vm0, %v661_v10  ;;  %626 = vmatmul.mubr.msk.bf16.vlgmr.msra.gmra.mrb[0].mxu1 %vm164_vm0, %v669_v11 }
  0x1f   :  { %613 = vmatprep.mubr.msk.bf16.mxu0 %vm164_vm0, %v662_v12  ;;  %629 = vmatprep.mubr.msk.bf16.mxu1 %vm164_vm0, %v670_v13 }
  0x26   :  { %614 = vmatmul.mubr.msk.bf16.gmra.mrb[4].mxu0 %vm164_vm0, %v663_v14  ;;  %630 = vmatmul.mubr.msk.bf16.gmra.mrb[4].mxu1 %vm164_vm0, %v671_v15 }
  0x27   :  { %617 = vmatprep.mubr.msk.bf16.mxu0 %vm164_vm0, %v664_v16  ;;  %633 = vmatprep.mubr.msk.bf16.mxu1 %vm164_vm0, %v672_v17 }
  0x2e   :  { %618 = vmatmul.mubr.msk.bf16.gmra.mrb[8].mxu0 %vm164_vm0, %v665_v18  ;;  %634 = vmatmul.mubr.msk.bf16.gmra.mrb[8].mxu1 %vm164_vm0, %v673_v19 }
  0x2f   :  { %621 = vmatprep.mubr.msk.bf16.mxu0 %vm164_vm0, %v666_v20 }
  0x36   :  { %622 = vmatmul.mubr.msk.bf16.gmra.mrb[12].mxu0 %vm164_vm0, %v667_v21 }
  0xf1   :  { %v611_v22 = vpop.f32.mrb[0].mxu0  ;;  %v771_v23 = vpop.f32.mrb[0].mxu1 }
  0xf2   :  { %358 = vst.msk [vmem:[%s1007_s2 + $0x10] sm:$0xff] %vm355_vm2, %v611_v22  ;;  %v245_v24 = vpop.f32.mrb[1].mxu0  ;;  %374 = vst.msk [vmem:[%s1007_s2 + $0x90] sm:$0xff] %vm355_vm2, %v771_v23  ;;  %v782_v25 = vpop.f32.mrb[1].mxu1  ;;  %v446_v31 = vmul.f32 %v611_v22, %v611_v22  ;;  %v386_v36 = vsel %vm355_vm2, %v611_v22, 0.0 }
  0xf3   :  { %356 = vst.msk [vmem:[%s1007_s2] sm:$0xff] %vm355_vm2, %v245_v24  ;;  %v444_v26 = vmul.f32 %v245_v24, %v245_v24  ;;  %v612_v27 = vpop.f32.mrb[2].mxu0  ;;  %372 = vst.msk [vmem:[%s1007_s2 + $0x80] sm:$0xff] %vm355_vm2, %v782_v25  ;;  %v793_v28 = vpop.f32.mrb[2].mxu1  ;;  %v383_v32 = vsel %vm355_vm2, %v245_v24, 0.0 }
  0xf4   :  { %359 = vst.msk [vmem:[%s1007_s2 + $0x18] sm:$0xff] %vm355_vm2, %v612_v27  ;;  %v248_v29 = vpop.f32.mrb[3].mxu0  ;;  %375 = vst.msk [vmem:[%s1007_s2 + $0x98] sm:$0xff] %vm355_vm2, %v793_v28  ;;  %v804_v30 = vpop.f32.mrb[3].mxu1  ;;  %v447_v38 = vmul.f32 %v612_v27, %v612_v27  ;;  %v474_v42 = vsel %vm355_vm2, %v446_v31, 0.0  ;;  %v388_v43 = vsel %vm355_vm2, %v612_v27, 0.0 }
  0xf5   :  { %357 = vst.msk [vmem:[%s1007_s2 + $0x8] sm:$0xff] %vm355_vm2, %v248_v29  ;;  %v384_v33 = vsel %vm355_vm2, %v248_v29, 0.0  ;;  %v445_v34 = vmul.f32 %v248_v29, %v248_v29  ;;  %373 = vst.msk [vmem:[%s1007_s2 + $0x88] sm:$0xff] %vm355_vm2, %v804_v30  ;;  %v471_v37 = vsel %vm355_vm2, %v444_v26, 0.0 }
  0xf6   :  { %v385_v35 = vadd.f32 %v384_v33, %v383_v32  ;;  %v476_v50 = vsel %vm355_vm2, %v447_v38, 0.0 }
  0xf7   :  { %v472_v39 = vsel %vm355_vm2, %v445_v34, 0.0 }
  0xf8   :  { %v387_v40 = vadd.f32 %v386_v36, %v385_v35  ;;  %v473_v41 = vadd.f32 %v472_v39, %v471_v37 }
  0xf9   :  { %v615_v44 = vpop.f32.mrb[4].mxu0  ;;  %v822_v45 = vpop.f32.mrb[4].mxu1 }
  0xfa   :  { %v475_v46 = vadd.f32 %v474_v42, %v473_v41  ;;  %362 = vst.msk [vmem:[%s1007_s2 + $0x30] sm:$0xff] %vm355_vm2, %v615_v44  ;;  %v261_v47 = vpop.f32.mrb[5].mxu0  ;;  %v389_v48 = vadd.f32 %v388_v43, %v387_v40  ;;  %378 = vst.msk [vmem:[%s1007_s2 + $0xb0] sm:$0xff] %vm355_vm2, %v822_v45  ;;  %v833_v49 = vpop.f32.mrb[5].mxu1  ;;  %v450_v59 = vmul.f32 %v615_v44, %v615_v44  ;;  %v394_v1 = vsel %vm355_vm2, %v615_v44, 0.0 }
  0xfb   :  { %360 = vst.msk [vmem:[%s1007_s2 + $0x20] sm:$0xff] %vm355_vm2, %v261_v47  ;;  %v390_v51 = vsel %vm355_vm2, %v261_v47, 0.0  ;;  %v448_v52 = vmul.f32 %v261_v47, %v261_v47  ;;  %v616_v53 = vpop.f32.mrb[6].mxu0  ;;  %376 = vst.msk [vmem:[%s1007_s2 + $0xa0] sm:$0xff] %vm355_vm2, %v833_v49  ;;  %v846_v54 = vpop.f32.mrb[6].mxu1 }
  0xfc   :  { %v391_v55 = vadd.f32 %v390_v51, %v389_v48  ;;  %v477_v56 = vadd.f32 %v476_v50, %v475_v46  ;;  %363 = vst.msk [vmem:[%s1007_s2 + $0x38] sm:$0xff] %vm355_vm2, %v616_v53  ;;  %v264_v57 = vpop.f32.mrb[7].mxu0  ;;  %379 = vst.msk [vmem:[%s1007_s2 + $0xb8] sm:$0xff] %vm355_vm2, %v846_v54  ;;  %v857_v58 = vpop.f32.mrb[7].mxu1  ;;  %v451_v2 = vmul.f32 %v616_v53, %v616_v53  ;;  %v482_v6 = vsel %vm355_vm2, %v450_v59, 0.0 }
  0xfd   :  { %v478_v60 = vsel %vm355_vm2, %v448_v52, 0.0  ;;  %361 = vst.msk [vmem:[%s1007_s2 + $0x28] sm:$0xff] %vm355_vm2, %v264_v57  ;;  %v392_v61 = vsel %vm355_vm2, %v264_v57, 0.0  ;;  %v449_v62 = vmul.f32 %v264_v57, %v264_v57  ;;  %377 = vst.msk [vmem:[%s1007_s2 + $0xa8] sm:$0xff] %vm355_vm2, %v857_v58  ;;  %v396_v7 = vsel %vm355_vm2, %v616_v53, 0.0 }
  0xfe   :  { %v479_v63 = vadd.f32 %v478_v60, %v477_v56  ;;  %v393_v0 = vadd.f32 %v392_v61, %v391_v55  ;;  %v484_v14 = vsel %vm355_vm2, %v451_v2, 0.0 }
  0xff   :  { %v480_v3 = vsel %vm355_vm2, %v449_v62, 0.0 }
 0x100   :  { %v395_v4 = vadd.f32 %v394_v1, %v393_v0  ;;  %v481_v5 = vadd.f32 %v480_v3, %v479_v63  ;;  %v460_v0 = vmul.f32 %v782_v25, %v782_v25 }
 0x101   :  { %v619_v8 = vpop.f32.mrb[8].mxu0  ;;  %v874_v9 = vpop.f32.mrb[8].mxu1 }
 0x102   :  { %v483_v10 = vadd.f32 %v482_v6, %v481_v5  ;;  %366 = vst.msk [vmem:[%s1007_s2 + $0x50] sm:$0xff] %vm355_vm2, %v619_v8  ;;  %v277_v11 = vpop.f32.mrb[9].mxu0  ;;  %v397_v12 = vadd.f32 %v396_v7, %v395_v4  ;;  %382 = vst.msk [vmem:[%s1007_s2 + $0xd0] sm:$0xff] %vm355_vm2, %v874_v9  ;;  %v885_v13 = vpop.f32.mrb[9].mxu1  ;;  %v454_v24 = vmul.f32 %v619_v8, %v619_v8  ;;  %v402_v33 = vsel %vm355_vm2, %v619_v8, 0.0 }
 0x103   :  { %364 = vst.msk [vmem:[%s1007_s2 + $0x40] sm:$0xff] %vm355_vm2, %v277_v11  ;;  %v398_v15 = vsel %vm355_vm2, %v277_v11, 0.0  ;;  %v452_v16 = vmul.f32 %v277_v11, %v277_v11  ;;  %v620_v17 = vpop.f32.mrb[10].mxu0  ;;  %380 = vst.msk [vmem:[%s1007_s2 + $0xc0] sm:$0xff] %vm355_vm2, %v885_v13  ;;  %v636_v18 = vpop.f32.mrb[10].mxu1  ;;  %v414_v5 = vsel %vm355_vm2, %v782_v25, 0.0  ;;  %v461_v11 = vmul.f32 %v804_v30, %v804_v30 }
 0x104   :  { %v399_v19 = vadd.f32 %v398_v15, %v397_v12  ;;  %v485_v20 = vadd.f32 %v484_v14, %v483_v10  ;;  %367 = vst.msk [vmem:[%s1007_s2 + $0x58] sm:$0xff] %vm355_vm2, %v620_v17  ;;  %v280_v21 = vpop.f32.mrb[11].mxu0  ;;  %v902_v22 = vpop.f32.mrb[11].mxu1  ;;  %v455_v34 = vmul.f32 %v620_v17, %v620_v17  ;;  %v490_v38 = vsel %vm355_vm2, %v454_v24, 0.0 }
 0x105   :  { %v486_v26 = vsel %vm355_vm2, %v452_v16, 0.0  ;;  %365 = vst.msk [vmem:[%s1007_s2 + $0x48] sm:$0xff] %vm355_vm2, %v280_v21  ;;  %v400_v27 = vsel %vm355_vm2, %v280_v21, 0.0  ;;  %v453_v29 = vmul.f32 %v280_v21, %v280_v21  ;;  %381 = vst.msk [vmem:[%s1007_s2 + $0xc8] sm:$0xff] %vm355_vm2, %v902_v22  ;;  %v404_v39 = vsel %vm355_vm2, %v620_v17, 0.0 }
 0x106   :  { %v487_v31 = vadd.f32 %v486_v26, %v485_v20  ;;  %v401_v32 = vadd.f32 %v400_v27, %v399_v19  ;;  %v492_v44 = vsel %vm355_vm2, %v455_v34, 0.0  ;;  %v502_v10 = vsel %vm355_vm2, %v460_v0, 0.0 }
 0x107   :  { %v488_v35 = vsel %vm355_vm2, %v453_v29, 0.0  ;;  %v462_v15 = vmul.f32 %v771_v23, %v771_v23  ;;  %v416_v16 = vsel %vm355_vm2, %v804_v30, 0.0  ;;  %v418_v25 = vsel %vm355_vm2, %v771_v23, 0.0 }
 0x108   :  { %v403_v36 = vadd.f32 %v402_v33, %v401_v32  ;;  %v489_v37 = vadd.f32 %v488_v35, %v487_v31  ;;  %v463_v19 = vmul.f32 %v793_v28, %v793_v28  ;;  %v504_v20 = vsel %vm355_vm2, %v461_v11, 0.0 }
 0x109   :  { %v623_v40 = vpop.f32.mrb[12].mxu0  ;;  %v464_v21 = vmul.f32 %v833_v49, %v833_v49  ;;  %v506_v27 = vsel %vm355_vm2, %v462_v15, 0.0  ;;  %v420_v30 = vsel %vm355_vm2, %v793_v28, 0.0  ;;  %v422_v29 = vsel %vm355_vm2, %v833_v49, 0.0 }
 0x10a   :  { %v491_v41 = vadd.f32 %v490_v38, %v489_v37  ;;  %370 = vst.msk [vmem:[%s1007_s2 + $0x70] sm:$0xff] %vm355_vm2, %v623_v40  ;;  %v293_v42 = vpop.f32.mrb[13].mxu0  ;;  %v405_v43 = vadd.f32 %v404_v39, %v403_v36  ;;  %v458_v53 = vmul.f32 %v623_v40, %v623_v40  ;;  %v410_v61 = vsel %vm355_vm2, %v623_v40, 0.0 }
 0x10b   :  { %368 = vst.msk [vmem:[%s1007_s2 + $0x60] sm:$0xff] %vm355_vm2, %v293_v42  ;;  %v406_v46 = vsel %vm355_vm2, %v293_v42, 0.0  ;;  %v456_v47 = vmul.f32 %v293_v42, %v293_v42  ;;  %v624_v48 = vpop.f32.mrb[14].mxu0  ;;  %v508_v32 = vsel %vm355_vm2, %v463_v19, 0.0  ;;  %v510_v33 = vsel %vm355_vm2, %v464_v21, 0.0 }
 0x10c   :  { %v407_v50 = vadd.f32 %v406_v46, %v405_v43  ;;  %v493_v51 = vadd.f32 %v492_v44, %v491_v41  ;;  %371 = vst.msk [vmem:[%s1007_s2 + $0x78] sm:$0xff] %vm355_vm2, %v624_v48  ;;  %v296_v52 = vpop.f32.mrb[15].mxu0  ;;  %v459_v62 = vmul.f32 %v624_v48, %v624_v48  ;;  %v498_v3 = vsel %vm355_vm2, %v458_v53, 0.0 }
 0x10d   :  { %v494_v55 = vsel %vm355_vm2, %v456_v47, 0.0  ;;  %369 = vst.msk [vmem:[%s1007_s2 + $0x68] sm:$0xff] %vm355_vm2, %v296_v52  ;;  %v408_v56 = vsel %vm355_vm2, %v296_v52, 0.0  ;;  %v457_v57 = vmul.f32 %v296_v52, %v296_v52  ;;  %v412_v4 = vsel %vm355_vm2, %v624_v48, 0.0 }
 0x10e   :  { %v495_v59 = vadd.f32 %v494_v55, %v493_v51  ;;  %v409_v60 = vadd.f32 %v408_v56, %v407_v50  ;;  %v500_v8 = vsel %vm355_vm2, %v459_v62, 0.0  ;;  %v465_v34 = vmul.f32 %v857_v58, %v857_v58 }
 0x10f   :  { %v496_v63 = vsel %vm355_vm2, %v457_v57, 0.0  ;;  %v466_v37 = vmul.f32 %v822_v45, %v822_v45  ;;  %v424_v28 = vsel %vm355_vm2, %v857_v58, 0.0  ;;  %v426_v49 = vsel %vm355_vm2, %v822_v45, 0.0 }
 0x110   :  { %v411_v1 = vadd.f32 %v410_v61, %v409_v60  ;;  %v497_v2 = vadd.f32 %v496_v63, %v495_v59  ;;  %v467_v40 = vmul.f32 %v846_v54, %v846_v54  ;;  %v512_v41 = vsel %vm355_vm2, %v465_v34, 0.0 }
 0x111   :  { %v468_v42 = vmul.f32 %v885_v13, %v885_v13  ;;  %v514_v46 = vsel %vm355_vm2, %v466_v37, 0.0  ;;  %v428_v58 = vsel %vm355_vm2, %v846_v54, 0.0  ;;  %v430_v47 = vsel %vm355_vm2, %v885_v13, 0.0 }
 0x112   :  { %v499_v6 = vadd.f32 %v498_v3, %v497_v2  ;;  %v413_v7 = vadd.f32 %v412_v4, %v411_v1  ;;  %v516_v50 = vsel %vm355_vm2, %v467_v40, 0.0  ;;  %v469_v52 = vmul.f32 %v902_v22, %v902_v22 }
 0x113   :  { %v518_v51 = vsel %vm355_vm2, %v468_v42, 0.0  ;;  %v470_v56 = vmul.f32 %v874_v9, %v874_v9  ;;  %v432_v54 = vsel %vm355_vm2, %v902_v22, 0.0  ;;  %v434_v13 = vsel %vm355_vm2, %v874_v9, 0.0 }
 0x114   :  { %v415_v12 = vadd.f32 %v414_v5, %v413_v7  ;;  %v501_v14 = vadd.f32 %v500_v8, %v499_v6  ;;  %v520_v60 = vsel %vm355_vm2, %v469_v52, 0.0 }
 0x115   :  { %v522_v63 = vsel %vm355_vm2, %v470_v56, 0.0 }
 0x116   :  { %v503_v17 = vadd.f32 %v502_v10, %v501_v14  ;;  %v417_v18 = vadd.f32 %v416_v16, %v415_v12 }
 0x118   :  { %v419_v24 = vadd.f32 %v418_v25, %v417_v18  ;;  %v505_v26 = vadd.f32 %v504_v20, %v503_v17 }
 0x11a   :  { %v507_v31 = vadd.f32 %v506_v27, %v505_v26  ;;  %v421_v23 = vadd.f32 %v420_v30, %v419_v24 }
 0x11c   :  { %v423_v35 = vadd.f32 %v422_v29, %v421_v23  ;;  %v509_v36 = vadd.f32 %v508_v32, %v507_v31 }
 0x11e   :  { %v511_v38 = vadd.f32 %v510_v33, %v509_v36  ;;  %v425_v39 = vadd.f32 %v424_v28, %v423_v35 }
 0x120   :  { %v427_v43 = vadd.f32 %v426_v49, %v425_v39  ;;  %v513_v44 = vadd.f32 %v512_v41, %v511_v38 }
 0x122   :  { %v515_v48 = vadd.f32 %v514_v46, %v513_v44  ;;  %v429_v45 = vadd.f32 %v428_v58, %v427_v43 }
 0x124   :  { %v431_v53 = vadd.f32 %v430_v47, %v429_v45  ;;  %v517_v55 = vadd.f32 %v516_v50, %v515_v48 }
 0x126   :  { %v519_v57 = vadd.f32 %v518_v51, %v517_v55  ;;  %v433_v59 = vadd.f32 %v432_v54, %v431_v53 }
 0x128   :  { %v435_v61 = vadd.f32 %v434_v13, %v433_v59  ;;  %v521_v62 = vadd.f32 %v520_v60, %v519_v57 }
 0x12a   :  { %v436_v0 = vrot.slane %v435_v61, 4  ;;  %v523_v1 = vadd.f32 %v522_v63, %v521_v62 }
 0x12c   :  { %v437_v2 = vadd.f32 %v436_v0, %v435_v61  ;;  %v524_v3 = vrot.slane %v523_v1, 4 }
 0x12e   :  { %v438_v4 = vrot.slane %v437_v2, 2  ;;  %v525_v5 = vadd.f32 %v524_v3, %v523_v1 }
 0x130   :  { %v439_v6 = vadd.f32 %v438_v4, %v437_v2  ;;  %v526_v7 = vrot.slane %v525_v5, 2 }
 0x132   :  { %v440_v22 = vrot.slane %v439_v6, 1  ;;  %v527_v8 = vadd.f32 %v526_v7, %v525_v5 }
 0x134   :  { %v441_v10 = vadd.f32 %v440_v22, %v439_v6  ;;  %v528_v11 = vrot.slane %v527_v8, 1 }
 0x136   :  { %443 = vst.msk [vmem:[%s1008_s3] sm:$0x1] %vm442_vm3, %v441_v10  ;;  %v529_v9 = vadd.f32 %v528_v11, %v527_v8 }
 0x138   :  { %530 = vst.msk [vmem:[%s1008_s3 + $0x1] sm:$0x1] %vm442_vm3, %v529_v9 }

// kernel: aspp_s_forward.33
= control target key start
LH: loop header
LB: loop body
LE: loop exit
PB: predicated region body
PF: predicated region fallthrough
CT: control target
= control target key end

     0   :  { %vm245_vm0 = vcmask 27648   ;;  %s606_s0 = inlined_call_operand.vmem [shape: f32[216,4], index: 0, kind: input, shape index: {}]   ;;  %s607_s1 = inlined_call_operand.vmem [shape: f32[1,4], index: 1, kind: input, shape index: {}]   ;;  %s608_s2 = inlined_call_operand.vmem [shape: f32[1,4], index: 2, kind: input, shape index: {}]   ;;  %s609_s3 = inlined_call_operand.vmem [shape: bf16[216,4], index: 3, kind: output, shape index: {}]  }
   0x1   :  { %v14_v0 = vld [vmem:[%s606_s0] sm:$0xff]  ;;  %v15_v4 = vld [vmem:[%s606_s0 + $0x8] sm:$0xff]  ;;  %v16_v5 = vld [vmem:[%s606_s0 + $0x10] sm:$0xff] }
   0x2   :  { %v359_v1 = vld [vmem:[%s607_s1] ss:$0 sm:$0xff]  ;;  %v17_v6 = vld [vmem:[%s606_s0 + $0x18] sm:$0xff]  ;;  %v19_v11 = vld [vmem:[%s606_s0 + $0x28] sm:$0xff] }
   0x3   :  { %v364_v2 = vld [vmem:[%s608_s2] ss:$0 sm:$0xff]  ;;  %v48_v3 = vmul.f32 %v359_v1, %v14_v0  ;;  %v49_v7 = vmul.f32 %v359_v1, %v15_v4  ;;  %v50_v8 = vmul.f32 %v359_v1, %v16_v5  ;;  %v51_v9 = vmul.f32 %v359_v1, %v17_v6  ;;  %v20_v12 = vld [vmem:[%s606_s0 + $0x30] sm:$0xff]  ;;  %v21_v17 = vld [vmem:[%s606_s0 + $0x38] sm:$0xff] }
   0x4   :  { %v18_v10 = vld [vmem:[%s606_s0 + $0x20] sm:$0xff]  ;;  %v53_v15 = vmul.f32 %v359_v1, %v19_v11  ;;  %v54_v16 = vmul.f32 %v359_v1, %v20_v12  ;;  %v55_v21 = vmul.f32 %v359_v1, %v21_v17  ;;  %v23_v35 = vld [vmem:[%s606_s0 + $0x48] sm:$0xff]  ;;  %v24_v36 = vld [vmem:[%s606_s0 + $0x50] sm:$0xff] }
   0x5   :  { %v82_v13 = vadd.f32 %v364_v2, %v48_v3  ;;  %v52_v14 = vmul.f32 %v359_v1, %v18_v10  ;;  %v83_v18 = vadd.f32 %v364_v2, %v49_v7  ;;  %v84_v19 = vadd.f32 %v364_v2, %v50_v8  ;;  %v22_v30 = vld [vmem:[%s606_s0 + $0x40] sm:$0xff]  ;;  %v25_v37 = vld [vmem:[%s606_s0 + $0x58] sm:$0xff]  ;;  %v27_v43 = vld [vmem:[%s606_s0 + $0x68] sm:$0xff] }
   0x6   :  { %v85_v20 = vadd.f32 %v364_v2, %v51_v9  ;;  %v87_v24 = vadd.f32 %v364_v2, %v53_v15  ;;  %v88_v25 = vadd.f32 %v364_v2, %v54_v16  ;;  %v89_v29 = vadd.f32 %v364_v2, %v55_v21  ;;  %v26_v42 = vld [vmem:[%s606_s0 + $0x60] sm:$0xff]  ;;  %v28_v44 = vld [vmem:[%s606_s0 + $0x70] sm:$0xff]  ;;  %v29_v49 = vld [vmem:[%s606_s0 + $0x78] sm:$0xff] }
   0x7   :  { %v109_v22 = vmax.f32 %v82_v13, 0.0  ;;  %v86_v23 = vadd.f32 %v364_v2, %v52_v14  ;;  %v110_v26 = vmax.f32 %v83_v18, 0.0  ;;  %v111_v27 = vmax.f32 %v84_v19, 0.0  ;;  %v30_v8 = vld [vmem:[%s606_s0 + $0x80] sm:$0xff]  ;;  %v31_v13 = vld [vmem:[%s606_s0 + $0x88] sm:$0xff]  ;;  %v32_v14 = vld [vmem:[%s606_s0 + $0x90] sm:$0xff] }
   0x8   :  { %v112_v28 = vmax.f32 %v85_v20, 0.0  ;;  %v114_v33 = vmax.f32 %v87_v24, 0.0  ;;  %v115_v34 = vmax.f32 %v88_v25, 0.0  ;;  %v116_v41 = vmax.f32 %v89_v29, 0.0  ;;  %v33_v15 = vld [vmem:[%s606_s0 + $0x98] sm:$0xff]  ;;  %v34_v20 = vld [vmem:[%s606_s0 + $0xa0] sm:$0xff] }
   0x9   :  { %v306_v31 = vpack.c.bf16 %v109_v22, %v109_v22  ;;  %v113_v32 = vmax.f32 %v86_v23, 0.0  ;;  %v307_v38 = vpack.c.bf16 %v110_v26, %v110_v26  ;;  %v308_v39 = vpack.c.bf16 %v111_v27, %v111_v27  ;;  %v35_v21 = vld [vmem:[%s606_s0 + $0xa8] sm:$0xff]  ;;  %v36_v22 = vld [vmem:[%s606_s0 + $0xb0] sm:$0xff]  ;;  %v37_v27 = vld [vmem:[%s606_s0 + $0xb8] sm:$0xff] }
   0xa   :  { %v309_v40 = vpack.c.bf16 %v112_v28, %v112_v28  ;;  %v311_v46 = vpack.c.bf16 %v114_v33, %v114_v33  ;;  %v312_v47 = vpack.c.bf16 %v115_v34, %v115_v34  ;;  %v56_v48 = vmul.f32 %v359_v1, %v22_v30 }
   0xb   :  { %246 = vst.msk [vmem:[%s609_s3] sm:$0xf] %vm245_vm0, %v306_v31  ;;  %v310_v45 = vpack.c.bf16 %v113_v32, %v113_v32  ;;  %247 = vst.msk [vmem:[%s609_s3 + $0x4] sm:$0xf] %vm245_vm0, %v307_v38  ;;  %v313_v50 = vpack.c.bf16 %v116_v41, %v116_v41  ;;  %v57_v51 = vmul.f32 %v359_v1, %v23_v35 }
   0xc   :  { %248 = vst.msk [vmem:[%s609_s3 + $0x8] sm:$0xf] %vm245_vm0, %v308_v39  ;;  %249 = vst.msk [vmem:[%s609_s3 + $0xc] sm:$0xf] %vm245_vm0, %v309_v40  ;;  %v58_v52 = vmul.f32 %v359_v1, %v24_v36  ;;  %v59_v53 = vmul.f32 %v359_v1, %v25_v37  ;;  %v90_v54 = vadd.f32 %v364_v2, %v56_v48  ;;  %v38_v48 = vld [vmem:[%s606_s0 + $0xc0] sm:$0xff] }
   0xd   :  { %250 = vst.msk [vmem:[%s609_s3 + $0x10] sm:$0xf] %vm245_vm0, %v310_v45  ;;  %251 = vst.msk [vmem:[%s609_s3 + $0x14] sm:$0xf] %vm245_vm0, %v311_v46  ;;  %v60_v55 = vmul.f32 %v359_v1, %v26_v42  ;;  %v61_v56 = vmul.f32 %v359_v1, %v27_v43  ;;  %v62_v57 = vmul.f32 %v359_v1, %v28_v44 }
   0xe   :  { %252 = vst.msk [vmem:[%s609_s3 + $0x18] sm:$0xf] %vm245_vm0, %v312_v47  ;;  %253 = vst.msk [vmem:[%s609_s3 + $0x1c] sm:$0xf] %vm245_vm0, %v313_v50  ;;  %v91_v58 = vadd.f32 %v364_v2, %v57_v51  ;;  %v92_v59 = vadd.f32 %v364_v2, %v58_v52  ;;  %v93_v60 = vadd.f32 %v364_v2, %v59_v53  ;;  %v117_v62 = vmax.f32 %v90_v54, 0.0  ;;  %v39_v53 = vld [vmem:[%s606_s0 + $0xc8] sm:$0xff] }
   0xf   :  { %v63_v61 = vmul.f32 %v359_v1, %v29_v49  ;;  %v94_v63 = vadd.f32 %v364_v2, %v60_v55  ;;  %v95_v0 = vadd.f32 %v364_v2, %v61_v56  ;;  %v96_v3 = vadd.f32 %v364_v2, %v62_v57  ;;  %v40_v54 = vld [vmem:[%s606_s0 + $0xd0] sm:$0xff] }
  0x10   :  { %v118_v4 = vmax.f32 %v91_v58, 0.0  ;;  %v119_v5 = vmax.f32 %v92_v59, 0.0  ;;  %v120_v6 = vmax.f32 %v93_v60, 0.0  ;;  %v314_v9 = vpack.c.bf16 %v117_v62, %v117_v62 }
  0x11   :  { %v97_v7 = vadd.f32 %v364_v2, %v63_v61  ;;  %v121_v10 = vmax.f32 %v94_v63, 0.0  ;;  %v122_v11 = vmax.f32 %v95_v0, 0.0  ;;  %v123_v12 = vmax.f32 %v96_v3, 0.0 }
  0x12   :  { %v315_v16 = vpack.c.bf16 %v118_v4, %v118_v4  ;;  %v316_v17 = vpack.c.bf16 %v119_v5, %v119_v5  ;;  %v317_v18 = vpack.c.bf16 %v120_v6, %v120_v6  ;;  %254 = vst.msk [vmem:[%s609_s3 + $0x20] sm:$0xf] %vm245_vm0, %v314_v9  ;;  %v64_v26 = vmul.f32 %v359_v1, %v30_v8 }
  0x13   :  { %v124_v19 = vmax.f32 %v97_v7, 0.0  ;;  %v318_v23 = vpack.c.bf16 %v121_v10, %v121_v10  ;;  %v319_v24 = vpack.c.bf16 %v122_v11, %v122_v11  ;;  %v320_v25 = vpack.c.bf16 %v123_v12, %v123_v12 }
  0x14   :  { %255 = vst.msk [vmem:[%s609_s3 + $0x24] sm:$0xf] %vm245_vm0, %v315_v16  ;;  %256 = vst.msk [vmem:[%s609_s3 + $0x28] sm:$0xf] %vm245_vm0, %v316_v17  ;;  %v65_v29 = vmul.f32 %v359_v1, %v31_v13  ;;  %v66_v30 = vmul.f32 %v359_v1, %v32_v14  ;;  %v67_v31 = vmul.f32 %v359_v1, %v33_v15 }
  0x15   :  { %257 = vst.msk [vmem:[%s609_s3 + $0x2c] sm:$0xf] %vm245_vm0, %v317_v18  ;;  %v321_v28 = vpack.c.bf16 %v124_v19, %v124_v19  ;;  %258 = vst.msk [vmem:[%s609_s3 + $0x30] sm:$0xf] %vm245_vm0, %v318_v23  ;;  %v98_v32 = vadd.f32 %v364_v2, %v64_v26  ;;  %v68_v33 = vmul.f32 %v359_v1, %v34_v20 }
  0x16   :  { %259 = vst.msk [vmem:[%s609_s3 + $0x34] sm:$0xf] %vm245_vm0, %v319_v24  ;;  %260 = vst.msk [vmem:[%s609_s3 + $0x38] sm:$0xf] %vm245_vm0, %v320_v25  ;;  %v69_v34 = vmul.f32 %v359_v1, %v35_v21  ;;  %v70_v35 = vmul.f32 %v359_v1, %v36_v22  ;;  %v99_v36 = vadd.f32 %v364_v2, %v65_v29 }
  0x17   :  { %261 = vst.msk [vmem:[%s609_s3 + $0x3c] sm:$0xf] %vm245_vm0, %v321_v28  ;;  %v100_v37 = vadd.f32 %v364_v2, %v66_v30  ;;  %v101_v38 = vadd.f32 %v364_v2, %v67_v31  ;;  %v71_v39 = vmul.f32 %v359_v1, %v37_v27  ;;  %v125_v40 = vmax.f32 %v98_v32, 0.0 }
  0x18   :  { %v102_v41 = vadd.f32 %v364_v2, %v68_v33  ;;  %v103_v42 = vadd.f32 %v364_v2, %v69_v34  ;;  %v104_v43 = vadd.f32 %v364_v2, %v70_v35  ;;  %v126_v44 = vmax.f32 %v99_v36, 0.0 }
  0x19   :  { %v127_v45 = vmax.f32 %v100_v37, 0.0  ;;  %v128_v46 = vmax.f32 %v101_v38, 0.0  ;;  %v105_v47 = vadd.f32 %v364_v2, %v71_v39  ;;  %v322_v49 = vpack.c.bf16 %v125_v40, %v125_v40 }
  0x1a   :  { %v129_v50 = vmax.f32 %v102_v41, 0.0  ;;  %v130_v51 = vmax.f32 %v103_v42, 0.0  ;;  %v131_v52 = vmax.f32 %v104_v43, 0.0  ;;  %v323_v55 = vpack.c.bf16 %v126_v44, %v126_v44 }
  0x1b   :  { %v324_v56 = vpack.c.bf16 %v127_v45, %v127_v45  ;;  %v325_v57 = vpack.c.bf16 %v128_v46, %v128_v46  ;;  %v132_v58 = vmax.f32 %v105_v47, 0.0  ;;  %262 = vst.msk [vmem:[%s609_s3 + $0x40] sm:$0xf] %vm245_vm0, %v322_v49  ;;  %v72_v62 = vmul.f32 %v359_v1, %v38_v48 }
  0x1c   :  { %v326_v59 = vpack.c.bf16 %v129_v50, %v129_v50  ;;  %v327_v60 = vpack.c.bf16 %v130_v51, %v130_v51  ;;  %v328_v61 = vpack.c.bf16 %v131_v52, %v131_v52  ;;  %263 = vst.msk [vmem:[%s609_s3 + $0x44] sm:$0xf] %vm245_vm0, %v323_v55  ;;  %v73_v0 = vmul.f32 %v359_v1, %v39_v53 }
  0x1d   :  { %264 = vst.msk [vmem:[%s609_s3 + $0x48] sm:$0xf] %vm245_vm0, %v324_v56  ;;  %265 = vst.msk [vmem:[%s609_s3 + $0x4c] sm:$0xf] %vm245_vm0, %v325_v57  ;;  %v329_v63 = vpack.c.bf16 %v132_v58, %v132_v58  ;;  %v74_v3 = vmul.f32 %v359_v1, %v40_v54  ;;  %v106_v4 = vadd.f32 %v364_v2, %v72_v62 }
  0x1e   :  { %266 = vst.msk [vmem:[%s609_s3 + $0x50] sm:$0xf] %vm245_vm0, %v326_v59  ;;  %267 = vst.msk [vmem:[%s609_s3 + $0x54] sm:$0xf] %vm245_vm0, %v327_v60  ;;  %v107_v1 = vadd.f32 %v364_v2, %v73_v0 }
  0x1f   :  { %268 = vst.msk [vmem:[%s609_s3 + $0x58] sm:$0xf] %vm245_vm0, %v328_v61  ;;  %269 = vst.msk [vmem:[%s609_s3 + $0x5c] sm:$0xf] %vm245_vm0, %v329_v63  ;;  %v108_v5 = vadd.f32 %v364_v2, %v74_v3  ;;  %v133_v6 = vmax.f32 %v106_v4, 0.0 }
  0x20   :  { %v134_v7 = vmax.f32 %v107_v1, 0.0 }
  0x21   :  { %v135_v8 = vmax.f32 %v108_v5, 0.0  ;;  %v330_v9 = vpack.c.bf16 %v133_v6, %v133_v6 }
  0x22   :  { %v331_v10 = vpack.c.bf16 %v134_v7, %v134_v7 }
  0x23   :  { %v332_v11 = vpack.c.bf16 %v135_v8, %v135_v8  ;;  %270 = vst.msk [vmem:[%s609_s3 + $0x60] sm:$0xf] %vm245_vm0, %v330_v9 }
  0x24   :  { %271 = vst.msk [vmem:[%s609_s3 + $0x64] sm:$0xf] %vm245_vm0, %v331_v10 }
  0x25   :  { %272 = vst.msk [vmem:[%s609_s3 + $0x68] sm:$0xf] %vm245_vm0, %v332_v11 }

// kernel: aspp_s_forward.36
= control target key start
LH: loop header
LB: loop body
LE: loop exit
PB: predicated region body
PF: predicated region fallthrough
CT: control target
= control target key end

     0   :  { %v189_v0 = vmov 0.0   ;;  %vm190_vm0 = vmmov 0   ;;  %vm74_vm1 = vcmask 1045504   ;;  %vm70_vm2 = vcmask 883712   ;;  %s244_s1 = inlined_call_operand.vmem [shape: bf16[1,108,6], index: 1, kind: input, shape index: {}]   ;;  %s245_s0 = inlined_call_operand.vmem [shape: bf16[8,108], index: 0, kind: input, shape index: {}]   ;;  %s246_s2 = inlined_call_operand.vmem [shape: f32[8,6], index: 2, kind: output, shape index: {0}]   ;;  %s247_s3 = inlined_call_operand.vmem [shape: f32[1,2,6], index: 3, kind: output, shape index: {1}]  }
   0x1   :  { %162 = vmatprep.subr.bf16.mxu0 %v189_v0  ;;  %v182_v1 = vld [vmem:[%s244_s1] sm:$0xff]   ;;  %176 = vmatprep.mubr.msk.bf16.mxu0 %vm190_vm0, %v189_v0  ;;  %v183_v2 = vld [vmem:[%s244_s1 + $0x8] sm:$0xff]   ;;  %v184_v3 = vld [vmem:[%s244_s1 + $0x10] sm:$0xff]   ;;  %vm118_vm3 = vcmask 48128   ;;  %vm127_vm4 = vcmask 40960  }
   0x2   :  { %163 = vmatpush3.bf16.msra.mxu0 %v182_v1  ;;  %v185_v4 = vld [vmem:[%s244_s1 + $0x18] sm:$0xff]   ;;  %v186_v5 = vld [vmem:[%s244_s1 + $0x20] sm:$0xff]   ;;  %v187_v6 = vld [vmem:[%s244_s1 + $0x28] sm:$0xff]  }
   0x3   :  { %164 = vmatprep.subr.bf16.mxu0 %v189_v0  ;;  %v188_v7 = vld [vmem:[%s244_s1 + $0x30] sm:$0x3f]   ;;  %v14_v9 = vld [vmem:[%s245_s0] sm:$0xf] }
   0x4   :  { %v76_v8 = vsel %vm74_vm1, %v188_v7, 0 }
   0x6   :  { %165 = vmatpush3.bf16.msra.mxu0 %v183_v2 }
   0x7   :  { %166 = vmatprep.subr.bf16.mxu0 %v189_v0 }
   0xa   :  { %167 = vmatpush3.bf16.msra.mxu0 %v184_v3 }
   0xb   :  { %168 = vmatprep.subr.bf16.mxu0 %v189_v0 }
   0xe   :  { %169 = vmatpush3.bf16.msra.mxu0 %v185_v4 }
   0xf   :  { %170 = vmatprep.subr.bf16.mxu0 %v189_v0 }
  0x12   :  { %171 = vmatpush3.bf16.msra.mxu0 %v186_v5 }
  0x13   :  { %172 = vmatprep.subr.bf16.mxu0 %v189_v0 }
  0x16   :  { %173 = vmatpush3.bf16.msra.mxu0 %v187_v6 }
  0x17   :  { %174 = vmatprep.subr.bf16.mxu0 %v189_v0 }
  0x1a   :  { %175 = vmatpush3.bf16.msra.mxu0 %v76_v8 }
  0x1d   :  { %177 = vmatmul.mubr.msk.bf16.vlgmr.msra.gmra.mrb[0].mxu0 %vm70_vm2, %v14_v9 }
  0xf0   :  { %v112_v10 = vpop.f32.mrb[0].mxu0 }
  0xf1   :  { %119 = vst.msk [vmem:[%s246_s2] sm:$0xff] %vm118_vm3, %v112_v10  ;;  %v120_v11 = vsel %vm118_vm3, %v112_v10, 0.0  ;;  %v129_v12 = vmul.f32 %v112_v10, %v112_v10  ;;  %v178_v13 = vpop.f32.mrb[1].mxu0 }
  0xf2   :  { %v121_v14 = vrot.slane %v120_v11, 4  ;;  %v115_v15 = vpop.f32.mrb[2].mxu0 }
  0xf3   :  { %v130_v16 = vsel %vm118_vm3, %v129_v12, 0.0  ;;  %v179_v17 = vpop.f32.mrb[3].mxu0 }
  0xf4   :  { %v122_v18 = vadd.f32 %v121_v14, %v120_v11  ;;  %v131_v19 = vrot.slane %v130_v16, 4 }
  0xf6   :  { %v123_v20 = vrot.slane %v122_v18, 2  ;;  %v132_v21 = vadd.f32 %v131_v19, %v130_v16 }
  0xf8   :  { %v124_v22 = vadd.f32 %v123_v20, %v122_v18  ;;  %v133_v23 = vrot.slane %v132_v21, 2 }
  0xfa   :  { %v125_v24 = vrot.slane %v124_v22, 1  ;;  %v134_v25 = vadd.f32 %v133_v23, %v132_v21 }
  0xfc   :  { %v126_v26 = vadd.f32 %v125_v24, %v124_v22  ;;  %v135_v27 = vrot.slane %v134_v25, 1 }
  0xfe   :  { %128 = vst.msk [vmem:[%s247_s3] sm:$0x1] %vm127_vm4, %v126_v26  ;;  %v136_v28 = vadd.f32 %v135_v27, %v134_v25 }
 0x100   :  { %137 = vst.msk [vmem:[%s247_s3 + $0x1] sm:$0x1] %vm127_vm4, %v136_v28 }

// kernel: aspp_s_forward.37
= control target key start
LH: loop header
LB: loop body
LE: loop exit
PB: predicated region body
PF: predicated region fallthrough
CT: control target
= control target key end

     0   :  { %vm39_vm0 = vcmask 44032   ;;  %s87_s0 = inlined_call_operand.vmem [shape: f32[8,6], index: 0, kind: input, shape index: {}]   ;;  %s88_s1 = inlined_call_operand.vmem [shape: f32[1,6], index: 1, kind: input, shape index: {}]   ;;  %s89_s2 = inlined_call_operand.vmem [shape: f32[1,6], index: 2, kind: input, shape index: {}]   ;;  %s90_s3 = inlined_call_operand.vmem [shape: bf16[8,6], index: 3, kind: input, shape index: {}]   ;;  %s91_s4 = inlined_call_operand.vmem [shape: bf16[8,6], index: 4, kind: output, shape index: {}]  }
   0x1   :  { %v17_v0 = vld [vmem:[%s87_s0] sm:$0xff] }
   0x2   :  { %v45_v1 = vld [vmem:[%s88_s1] ss:$0 sm:$0xff] }
   0x3   :  { %v46_v2 = vld [vmem:[%s89_s2] ss:$0 sm:$0xff]  ;;  %v25_v3 = vmul.f32 %v45_v1, %v17_v0 }
   0x4   :  { %v34_v4 = vld [vmem:[%s90_s3] sm:$0xf] }
   0x5   :  { %v35_v5 = vunpack.c.l.bf16 %v34_v4  ;;  %v33_v6 = vadd.f32 %v46_v2, %v25_v3 }
   0x7   :  { %v36_v7 = vadd.f32 %v35_v5, %v33_v6 }
   0x9   :  { %v37_v8 = vmax.f32 %v36_v7, 0.0 }
   0xb   :  { %v38_v9 = vpack.c.bf16 %v37_v8, %v37_v8 }
   0xd   :  { %40 = vst.msk [vmem:[%s91_s4] sm:$0xf] %vm39_vm0, %v38_v9 }

// kernel: aspp_s_forward.38
= control target key start
LH: loop header
LB: loop body
LE: loop exit
PB: predicated region body
PF: predicated region fallthrough
CT: control target
= control target key end

     0   :  { %v410_v0 = vmov 0   ;;  %vm108_vm0 = vcmask 277504   ;;  %vm112_vm1 = vcmask 1040384   ;;  %s548_s2 = inlined_call_operand.vmem [shape: bf16[2,162,128], index: 2, kind: input, shape index: {}]   ;;  %s549_s0 = inlined_call_operand.vmem [shape: bf16[8,162], index: 0, kind: input, shape index: {}, may-alias: {0,1}]   ;;  %s550_s1 = inlined_call_operand.vmem [shape: bf16[8,162], index: 1, kind: input, shape index: {}, may-alias: {0,1}]   ;;  %s551_s3 = inlined_call_operand.vmem [shape: f32[8,256], index: 3, kind: output, shape index: {0}]   ;;  %s552_s4 = inlined_call_operand.vmem [shape: f32[1,2,256], index: 4, kind: output, shape index: {1}]  }
   0x1   :  { %116 = vmatprep.subr.bf16.mxu0 %v410_v0  ;;  %270 = vmatprep.subr.bf16.mxu1 %v410_v0  ;;  %v384_v1 = vld [vmem:[%s548_s2] sm:$0xff]   ;;  %v385_v2 = vld [vmem:[%s548_s2 + $0x54] sm:$0xff]   ;;  %v386_v3 = vld [vmem:[%s548_s2 + $0x8] sm:$0xff]  }
   0x2   :  { %117 = vmatpush1.bf16.msra.mxu0 %v384_v1  ;;  %271 = vmatpush1.bf16.msra.mxu1 %v385_v2  ;;  %v387_v4 = vld [vmem:[%s548_s2 + $0x5c] sm:$0xff]   ;;  %v388_v5 = vld [vmem:[%s548_s2 + $0x10] sm:$0xff]   ;;  %v389_v6 = vld [vmem:[%s548_s2 + $0x64] sm:$0xff]  }
   0x3   :  { %118 = vmatprep.subr.bf16.mxu0 %v410_v0  ;;  %272 = vmatprep.subr.bf16.mxu1 %v410_v0  ;;  %v390_v7 = vld [vmem:[%s548_s2 + $0x18] sm:$0xff]   ;;  %v391_v8 = vld [vmem:[%s548_s2 + $0x6c] sm:$0xff]   ;;  %v392_v9 = vld [vmem:[%s548_s2 + $0x20] sm:$0xff]  }
   0x4   :  { %v393_v10 = vld [vmem:[%s548_s2 + $0x74] sm:$0xff]   ;;  %v394_v11 = vld [vmem:[%s548_s2 + $0x28] sm:$0xff]   ;;  %v395_v12 = vld [vmem:[%s548_s2 + $0x7c] sm:$0xff]  }
   0x5   :  { %v17_v13 = vld [vmem:[%s549_s0] sm:$0xff]  ;;  %v396_v16 = vld [vmem:[%s548_s2 + $0x30] sm:$0xff]   ;;  %v398_v19 = vld [vmem:[%s548_s2 + $0x38] sm:$0xff]  }
   0x6   :  { %119 = vmatpush1.bf16.msra.mxu0 %v386_v3  ;;  %273 = vmatpush1.bf16.msra.mxu1 %v387_v4  ;;  %v335_v14 = vcombine.high %v17_v13, %v17_v13  ;;  %v172_v15 = vld [vmem:[%s550_s1] sm:$0xff]  ;;  %v399_v20 = vld [vmem:[%s548_s2 + $0x8c] sm:$0xff]   ;;  %v401_v22 = vld [vmem:[%s548_s2 + $0x94] sm:$0xff]   ;;  %v334_v29 = vcombine.low %v17_v13, %v17_v13 }
   0x7   :  { %120 = vmatprep.subr.bf16.mxu0 %v410_v0  ;;  %274 = vmatprep.subr.bf16.mxu1 %v410_v0  ;;  %v370_v17 = vcombine.high %v172_v15, %v172_v15  ;;  %v397_v18 = vld [vmem:[%s548_s2 + $0x84] sm:$0xff]   ;;  %v403_v24 = vld [vmem:[%s548_s2 + $0x9c] sm:$0xff]   ;;  %v404_v25 = vld [vmem:[%s548_s2 + $0x50] ss:$0 sps:$4 sm:$0x11]   ;;  %v369_v30 = vcombine.low %v172_v15, %v172_v15 }
   0x8   :  { %347 = vmatprep.mubr.msk.bf16.mxu0 %vm108_vm0, %v335_v14  ;;  %v400_v21 = vld [vmem:[%s548_s2 + $0x40] sm:$0xff]   ;;  %v402_v23 = vld [vmem:[%s548_s2 + $0x48] sm:$0xff]   ;;  %v114_v27 = vsel %vm112_vm1, %v404_v25, 0 }
   0x9   :  { %382 = vmatprep.mubr.msk.bf16.mxu1 %vm108_vm0, %v370_v17  ;;  %v405_v26 = vld [vmem:[%s548_s2 + $0xa4] ss:$0 sps:$4 sm:$0x11]  }
   0xa   :  { %121 = vmatpush1.bf16.msra.mxu0 %v388_v5  ;;  %275 = vmatpush1.bf16.msra.mxu1 %v389_v6  ;;  %v268_v28 = vsel %vm112_vm1, %v405_v26, 0 }
   0xb   :  { %122 = vmatprep.subr.bf16.mxu0 %v410_v0  ;;  %276 = vmatprep.subr.bf16.mxu1 %v410_v0 }
   0xe   :  { %123 = vmatpush1.bf16.msra.mxu0 %v390_v7  ;;  %277 = vmatpush1.bf16.msra.mxu1 %v391_v8 }
   0xf   :  { %124 = vmatprep.subr.bf16.mxu0 %v410_v0  ;;  %278 = vmatprep.subr.bf16.mxu1 %v410_v0 }
  0x12   :  { %125 = vmatpush1.bf16.msra.mxu0 %v392_v9  ;;  %279 = vmatpush1.bf16.msra.mxu1 %v393_v10 }
  0x13   :  { %126 = vmatprep.subr.bf16.mxu0 %v410_v0  ;;  %280 = vmatprep.subr.bf16.mxu1 %v410_v0 }
  0x16   :  { %127 = vmatpush1.bf16.msra.mxu0 %v394_v11  ;;  %281 = vmatpush1.bf16.msra.mxu1 %v395_v12 }
  0x17   :  { %128 = vmatprep.subr.bf16.mxu0 %v410_v0  ;;  %282 = vmatprep.subr.bf16.mxu1 %v410_v0 }
  0x1a   :  { %129 = vmatpush1.bf16.msra.mxu0 %v396_v16  ;;  %283 = vmatpush1.bf16.msra.mxu1 %v397_v18 }
  0x1b   :  { %130 = vmatprep.subr.bf16.mxu0 %v410_v0  ;;  %284 = vmatprep.subr.bf16.mxu1 %v410_v0 }
  0x1e   :  { %131 = vmatpush1.bf16.msra.mxu0 %v398_v19  ;;  %285 = vmatpush1.bf16.msra.mxu1 %v399_v20 }
  0x1f   :  { %132 = vmatprep.subr.bf16.mxu0 %v410_v0  ;;  %286 = vmatprep.subr.bf16.mxu1 %v410_v0 }
  0x22   :  { %133 = vmatpush1.bf16.msra.mxu0 %v400_v21  ;;  %287 = vmatpush1.bf16.msra.mxu1 %v401_v22 }
  0x23   :  { %134 = vmatprep.subr.bf16.mxu0 %v410_v0  ;;  %288 = vmatprep.subr.bf16.mxu1 %v410_v0 }
  0x26   :  { %135 = vmatpush1.bf16.msra.mxu0 %v402_v23  ;;  %289 = vmatpush1.bf16.msra.mxu1 %v403_v24 }
  0x27   :  { %136 = vmatprep.subr.bf16.mxu0 %v410_v0  ;;  %290 = vmatprep.subr.bf16.mxu1 %v410_v0 }
  0x2a   :  { %137 = vmatpush1.bf16.msra.mxu0 %v114_v27  ;;  %291 = vmatpush1.bf16.msra.mxu1 %v268_v28 }
  0x2d   :  { %149 = vmatmul.mubr.bf16.vlgmr.msra.gmra.mrb[0].mxu0 %v334_v29  ;;  %303 = vmatmul.mubr.bf16.vlgmr.msra.gmra.mrb[0].mxu1 %v369_v30 }
 0x100   :  { %v150_v31 = vpop.f32.mrb[0].mxu0  ;;  %v304_v34 = vpop.f32.mrb[0].mxu1 }
 0x101   :  { %156 = vst [vmem:[%s551_s3] sm:$0xff] %v150_v31  ;;  %v157_v32 = vrot.slane %v150_v31, 4  ;;  %v164_v33 = vmul.f32 %v150_v31, %v150_v31  ;;  %v152_v35 = vpop.f32.mrb[1].mxu0  ;;  %310 = vst [vmem:[%s551_s3 + $0x8] sm:$0xff] %v304_v34  ;;  %v311_v36 = vrot.slane %v304_v34, 4  ;;  %v318_v37 = vmul.f32 %v304_v34, %v304_v34  ;;  %v306_v38 = vpop.f32.mrb[1].mxu1 }
 0x102   :  { %v153_v39 = vpop.f32.mrb[2].mxu0  ;;  %v307_v42 = vpop.f32.mrb[2].mxu1 }
 0x103   :  { %v158_v40 = vadd.f32 %v157_v32, %v150_v31  ;;  %v165_v41 = vrot.slane %v164_v33, 4  ;;  %v154_v43 = vpop.f32.mrb[3].mxu0  ;;  %v312_v44 = vadd.f32 %v311_v36, %v304_v34  ;;  %v319_v45 = vrot.slane %v318_v37, 4  ;;  %v308_v46 = vpop.f32.mrb[3].mxu1 }
 0x105   :  { %v159_v47 = vrot.slane %v158_v40, 2  ;;  %v166_v48 = vadd.f32 %v165_v41, %v164_v33  ;;  %v313_v49 = vrot.slane %v312_v44, 2  ;;  %v320_v50 = vadd.f32 %v319_v45, %v318_v37 }
 0x107   :  { %v160_v51 = vadd.f32 %v159_v47, %v158_v40  ;;  %v167_v52 = vrot.slane %v166_v48, 2  ;;  %v314_v53 = vadd.f32 %v313_v49, %v312_v44  ;;  %v321_v54 = vrot.slane %v320_v50, 2 }
 0x109   :  { %v161_v55 = vrot.slane %v160_v51, 1  ;;  %v168_v56 = vadd.f32 %v167_v52, %v166_v48  ;;  %v315_v57 = vrot.slane %v314_v53, 1  ;;  %v322_v58 = vadd.f32 %v321_v54, %v320_v50 }
 0x10b   :  { %v162_v59 = vadd.f32 %v161_v55, %v160_v51  ;;  %v169_v60 = vrot.slane %v168_v56, 1  ;;  %v316_v61 = vadd.f32 %v315_v57, %v314_v53  ;;  %v323_v62 = vrot.slane %v322_v58, 1 }
 0x10d   :  { %163 = vst [vmem:[%s552_s4] sm:$0x1] %v162_v59  ;;  %v170_v63 = vadd.f32 %v169_v60, %v168_v56  ;;  %317 = vst [vmem:[%s552_s4 + $0x2] sm:$0x1] %v316_v61  ;;  %v324_v0 = vadd.f32 %v323_v62, %v322_v58 }
 0x10f   :  { %171 = vst [vmem:[%s552_s4 + $0x1] sm:$0x1] %v170_v63  ;;  %325 = vst [vmem:[%s552_s4 + $0x3] sm:$0x1] %v324_v0 }

// kernel: aspp_s_forward.39
= control target key start
LH: loop header
LB: loop body
LE: loop exit
PB: predicated region body
PF: predicated region fallthrough
CT: control target
= control target key end

     0   :  { %v25_v5 = vlaneseq  ;;  %vm230_vm0 = vcmask 15360   ;;  %s387_s3 = inlined_call_operand.vmem [shape: bf16[256,2], index: 3, kind: input, shape index: {}]   ;;  %s388_s0 = inlined_call_operand.vmem [shape: f32[8,256], index: 0, kind: input, shape index: {}]   ;;  %s389_s1 = inlined_call_operand.vmem [shape: f32[1,256], index: 1, kind: input, shape index: {}]   ;;  %s390_s2 = inlined_call_operand.vmem [shape: f32[1,256], index: 2, kind: input, shape index: {}]   ;;  %s391_s4 = inlined_call_operand.vmem [shape: f32[1,2], index: 4, kind: input, shape index: {}]   ;;  %s392_s5 = inlined_call_operand.vmem [shape: f32[8,2], index: 5, kind: output, shape index: {}]  }
   0x1   :  { %v275_v0 = vld [vmem:[%s387_s3 + $0x40] sm:$0xff]   ;;  %v277_v2 = vld [vmem:[%s387_s3 + $0x48] sm:$0xff]   ;;  %v279_v4 = vld [vmem:[%s387_s3 + $0x50] sm:$0xff]  }
   0x2   :  { %v276_v1 = vld [vmem:[%s387_s3] sm:$0xff]   ;;  %253 = vmatprep.subr.bf16.mxu0 %v275_v0  ;;  %v278_v3 = vld [vmem:[%s387_s3 + $0x8] sm:$0xff]   ;;  %v280_v6 = vld [vmem:[%s387_s3 + $0x10] sm:$0xff]   ;;  %v26_v8 = vshrl.u32 %v25_v5, 7 }
   0x3   :  { %254 = vmatpush3.bf16.msra.mxu0 %v276_v1  ;;  %v281_v7 = vld [vmem:[%s387_s3 + $0x58] sm:$0xff]   ;;  %v283_v10 = vld [vmem:[%s387_s3 + $0x60] sm:$0xff]   ;;  %v285_v14 = vld [vmem:[%s387_s3 + $0x68] sm:$0xff]  }
   0x4   :  { %255 = vmatprep.subr.bf16.mxu0 %v277_v2  ;;  %v282_v9 = vld [vmem:[%s387_s3 + $0x18] sm:$0xff]   ;;  %v27_v11 = vsub.s32 0, %v26_v8  ;;  %v31_v12 = vsub.s32 1, %v26_v8  ;;  %v284_v13 = vld [vmem:[%s387_s3 + $0x20] sm:$0xff]   ;;  %v22_v16 = vld [vmem:[%s388_s0 + $0x8] sm:$0xff] }
   0x5   :  { %v21_v15 = vld [vmem:[%s388_s0] sm:$0xff]  ;;  %v286_v23 = vld [vmem:[%s387_s3 + $0x28] sm:$0xff]   ;;  %v287_v26 = vld [vmem:[%s387_s3 + $0x70] sm:$0xff]  }
   0x6   :  { %v23_v17 = vld [vmem:[%s389_s1] sm:$0x3]  ;;  %v288_v29 = vld [vmem:[%s387_s3 + $0x30] sm:$0xff]   ;;  %v289_v31 = vld [vmem:[%s387_s3 + $0x78] sm:$0xff]  }
   0x7   :  { %256 = vmatpush3.bf16.msra.mxu0 %v278_v3  ;;  %v28_v18 = vrot.slane %v23_v17, %v27_v11  ;;  %v32_v19 = vrot.slane %v23_v17, %v31_v12  ;;  %v37_v20 = vld [vmem:[%s390_s2] sm:$0x3]  ;;  %v290_v34 = vld [vmem:[%s387_s3 + $0x38] sm:$0xff]  }
   0x8   :  { %257 = vmatprep.subr.bf16.mxu0 %v279_v4  ;;  %v42_v21 = vrot.slane %v37_v20, %v27_v11  ;;  %v46_v22 = vrot.slane %v37_v20, %v31_v12  ;;  %v236_v37 = vld [vmem:[%s391_s4] ss:$0 sm:$0xff] }
   0x9   :  { %v36_v24 = vmul.f32 %v32_v19, %v22_v16  ;;  %v35_v25 = vmul.f32 %v28_v18, %v21_v15 }
   0xb   :  { %258 = vmatpush3.bf16.msra.mxu0 %v280_v6  ;;  %v50_v27 = vadd.f32 %v46_v22, %v36_v24  ;;  %v49_v28 = vadd.f32 %v42_v21, %v35_v25 }
   0xc   :  { %259 = vmatprep.subr.bf16.mxu0 %v281_v7 }
   0xd   :  { %v52_v30 = vmax.f32 %v50_v27, 0.0  ;;  %v51_v33 = vmax.f32 %v49_v28, 0.0 }
   0xf   :  { %260 = vmatpush3.bf16.msra.mxu0 %v282_v9  ;;  %v54_v32 = vpack.c.bf16 %v52_v30, %v52_v30  ;;  %v53_v35 = vpack.c.bf16 %v51_v33, %v51_v33 }
  0x10   :  { %261 = vmatprep.subr.bf16.mxu0 %v283_v10 }
  0x11   :  { %222 = vmatprep.mubr.bf16.mxu0 %v54_v32 }
  0x13   :  { %262 = vmatpush3.bf16.msra.mxu0 %v284_v13 }
  0x14   :  { %263 = vmatprep.subr.bf16.mxu0 %v285_v14 }
  0x17   :  { %264 = vmatpush3.bf16.msra.mxu0 %v286_v23 }
  0x18   :  { %265 = vmatprep.subr.bf16.mxu0 %v287_v26 }
  0x1b   :  { %266 = vmatpush3.bf16.msra.mxu0 %v288_v29 }
  0x1c   :  { %267 = vmatprep.subr.bf16.mxu0 %v289_v31 }
  0x1f   :  { %268 = vmatpush3.bf16.msra.mxu0 %v290_v34 }
  0x22   :  { %223 = vmatmul.mubr.bf16.vlgmr.msra.gmra.mrb[0].mxu0 %v53_v35 }
  0xf5   :  { %v269_v36 = vpop.f32.mrb[0].mxu0 }
  0xf6   :  { %v270_v38 = vpop.f32.mrb[1].mxu0 }
  0xf7   :  { %v271_v39 = vadd.f32 %v270_v38, %v269_v36  ;;  %v272_v40 = vpop.f32.mrb[2].mxu0 }
  0xf8   :  { %v273_v41 = vpop.f32.mrb[3].mxu0 }
  0xf9   :  { %v225_v42 = vadd.f32 %v271_v39, %v236_v37 }
  0xfb   :  { %231 = vst.msk [vmem:[%s392_s5] sm:$0xff] %vm230_vm0, %v225_v42 }

</bundles_post_ra>
